<compile_context>
chip_gen: v6e
topology: v6e:2x2x1
jax: 0.10.0
libtpu: 0.0.40
codegen_flags: <defaults>
</compile_context>

<pallas_src>
import functools

import jax
import jax.numpy as jnp
from jax.experimental import pallas as pl
from jax.experimental.pallas import tpu as pltpu


# ------------------------------ fused kernel -------------------------------- #

def _vggfc_kernel(x_ref,
                  cw1_ref, cb1_ref, cw2_ref, cb2_ref,
                  fc1w_ref, fc1b_ref, fc2w_ref, fc2b_ref,
                  bnw_ref, bnb_ref, fcw_ref, fcb_ref,
                  feat_ref, logit_ref,
                  xp1_ref, slab1_ref, hpool1_ref,
                  xp2_ref, slab2_ref, hpool2_ref, flat_ref,
                  *, n, h, w, cin, c1, c2):
    """Whole VGGFc forward in one kernel; everything lives in VMEM."""
    h2, w2 = h // 2, w // 2
    h3, w3 = h // 4, w // 4

    def conv_relu_hpool(xp, slab, wmat, brow, hh, ww, ci, co, hpool):
        """3x3 conv (pre-padded xp) + bias + ReLU + H-direction of 2x2 pool."""
        # in-kernel im2col: 9 shifted windows written as static lane slices
        for k in range(9):
            di, dj = divmod(k, 3)
            slab[:, :, :, k * ci:(k + 1) * ci] = xp[:, di:di + hh, dj:dj + ww, :]
        # ONE MXU dot with K = 9*ci (instead of 9 dots with K = ci)
        acc = jnp.dot(slab[...].reshape(n * hh * ww, 9 * ci), wmat[...],
                      preferred_element_type=jnp.float32)        # (n*hh*ww, co)
        acc = jnp.maximum(acc + brow[...], 0.0)                   # bias + ReLU
        # H-direction of the 2x2 maxpool in-register: split rows (b, i, j) into
        # (b, i//2, i%2, j) -- a sublane-aligned leading-dim split -- and max.
        acc = acc.reshape(n, hh // 2, 2, ww, co)
        hpool[...] = jnp.max(acc, axis=2)                         # (n, hh/2, ww, co)

    # ---------------- stage 1: Conv2d(3x3, pad=1) + ReLU + MaxPool2d(2) -------
    xp1_ref[...] = jnp.zeros(xp1_ref.shape, xp1_ref.dtype)        # in-kernel halo pad
    xp1_ref[:, 1:h + 1, 1:w + 1, :] = x_ref[...]
    conv_relu_hpool(xp1_ref, slab1_ref, cw1_ref, cb1_ref, h, w, cin, c1, hpool1_ref)
    # W-direction of the pool: two stride-2 column reads, max in-register.
    p1 = jnp.maximum(hpool1_ref[:, :, pl.ds(0, w2, 2), :],
                     hpool1_ref[:, :, pl.ds(1, w2, 2), :])        # (n, h2, w2, c1)

    # ---------------- stage 2 --------------------------------------------------
    xp2_ref[...] = jnp.zeros(xp2_ref.shape, xp2_ref.dtype)
    xp2_ref[:, 1:h2 + 1, 1:w2 + 1, :] = p1
    conv_relu_hpool(xp2_ref, slab2_ref, cw2_ref, cb2_ref, h2, w2, c1, c2, hpool2_ref)
    # W-pool fused with the flatten: emit a lane-dense (n, h3*w3*c2) slab in
    # (i, j, c) order.  PyTorch's NCHW flatten permutation is folded into fc1_w
    # rows at init, so no runtime transpose of the activation is needed.
    for i in range(h3):
        for j in range(w3):
            v = jnp.maximum(hpool2_ref[:, i, 2 * j, :],
                            hpool2_ref[:, i, 2 * j + 1, :])       # (n, c2)
            c0 = (i * w3 + j) * c2
            flat_ref[:, c0:c0 + c2] = v

    # ------------- classifier (Dropout == identity in eval) + bottleneck + fc --
    xf = flat_ref[...]                                            # (n, h3*w3*c2)
    hid = jnp.maximum(jnp.dot(xf, fc1w_ref[...],
                              preferred_element_type=jnp.float32) + fc1b_ref[...], 0.0)
    hid = jnp.maximum(jnp.dot(hid, fc2w_ref[...],
                              preferred_element_type=jnp.float32) + fc2b_ref[...], 0.0)
    feat = jnp.dot(hid, bnw_ref[...],
                   preferred_element_type=jnp.float32) + bnb_ref[...]
    feat_ref[...] = feat
    logit_ref[...] = jnp.dot(feat, fcw_ref[...],
                             preferred_element_type=jnp.float32) + fcb_ref[...]


def vggfc_pallas(params, x_nhwc):
    """One pallas_call computing the full VGGFc forward on an NHWC input."""
    n, h, w, cin = x_nhwc.shape
    assert h % 4 == 0 and w % 4 == 0, "spatial extent must be divisible by 4 (two 2x2 pools)"
    c1 = params["conv1_w"].shape[1]
    c2 = params["conv2_w"].shape[1]
    bn_dim = params["bn_w"].shape[1]
    n_cls = params["fc_w"].shape[1]
    h2, w2 = h // 2, w // 2
    flat = (h // 4) * (w // 4) * c2
    assert params["fc1_w"].shape[0] == flat

    vmem = pl.BlockSpec(memory_space=pltpu.MemorySpace.VMEM)
    args = (x_nhwc,
            params["conv1_w"], params["conv1_b"],
            params["conv2_w"], params["conv2_b"],
            params["fc1_w"], params["fc1_b"],
            params["fc2_w"], params["fc2_b"],
            params["bn_w"], params["bn_b"],
            params["fc_w"], params["fc_b"])

    flops = (2 * 9 * n * h * w * cin * c1
             + 2 * 9 * n * h2 * w2 * c1 * c2
             + 2 * n * (params["fc1_w"].size + params["fc2_w"].size
                        + params["bn_w"].size + params["fc_w"].size))
    bytes_accessed = 4 * (sum(a.size for a in args) + n * (bn_dim + n_cls))

    return pl.pallas_call(
        functools.partial(_vggfc_kernel, n=n, h=h, w=w, cin=cin, c1=c1, c2=c2),
        out_shape=(jax.ShapeDtypeStruct((n, bn_dim), jnp.float32),
                   jax.ShapeDtypeStruct((n, n_cls), jnp.float32)),
        in_specs=[vmem] * len(args),
        out_specs=(vmem, vmem),
        scratch_shapes=[
            pltpu.VMEM((n, h + 2, w + 2, cin), jnp.float32),        # xp1 (padded in)
            pltpu.VMEM((n, h, w, 9 * cin), jnp.float32),            # slab1 (im2col)
            pltpu.VMEM((n, h2, w, c1), jnp.float32),                # hpool1
            pltpu.VMEM((n, h2 + 2, w2 + 2, c1), jnp.float32),       # xp2 (padded)
            pltpu.VMEM((n, h2, w2, 9 * c1), jnp.float32),           # slab2 (im2col)
            pltpu.VMEM((n, h2 // 2, w2, c2), jnp.float32),          # hpool2
            pltpu.VMEM((n, flat), jnp.float32),                     # flat (lane-dense)
        ],
        cost_estimate=pl.CostEstimate(flops=int(flops), transcendentals=0,
                                      bytes_accessed=int(bytes_accessed)),
    )(*args)


# ------------------------------- parameters --------------------------------- #

def init_params(key, *, in_ch=4, c1=8, c2=16, spatial=16,
                hidden=64, bottleneck_dim=32, class_num=10):
    h3 = spatial // 4                         # spatial extent after two 2x2 pools
    flat = c2 * h3 * h3
    ks = jax.random.split(key, 6)

    def kaiming_uniform_conv(k, cout, cin):
        # nn.init.kaiming_uniform_ defaults: bound = sqrt(6 / fan_in)
        fan_in = cin * 9
        bound = (6.0 / fan_in) ** 0.5
        w_pt = jax.random.uniform(k, (cout, cin, 3, 3), jnp.float32, -bound, bound)
        # store in the (9*cin, cout) layout the fused kernel's single dot consumes
        return jnp.transpose(w_pt, (2, 3, 1, 0)).reshape(9 * cin, cout)

    def xavier_normal(k, fin, fout):
        std = (2.0 / (fin + fout)) ** 0.5
        return std * jax.random.normal(k, (fin, fout), jnp.float32)

    # fc1 nominally acts on the PyTorch NCHW flatten (c, i, j).  Permute its rows
    # once here to the kernel's (i, j, c) flat order so the forward needs no
    # runtime transpose of the feature map.
    w1_nchw = xavier_normal(ks[2], flat, hidden)
    w1_nhwc = (w1_nchw.reshape(c2, h3, h3, hidden)
               .transpose(1, 2, 0, 3).reshape(flat, hidden))

    return {
        "conv1_w": kaiming_uniform_conv(ks[0], c1, in_ch),
        "conv1_b": jnp.zeros((1, c1), jnp.float32),
        "conv2_w": kaiming_uniform_conv(ks[1], c2, c1),
        "conv2_b": jnp.zeros((1, c2), jnp.float32),
        "fc1_w": w1_nhwc, "fc1_b": jnp.zeros((1, hidden), jnp.float32),
        "fc2_w": xavier_normal(ks[3], hidden, hidden),
        "fc2_b": jnp.zeros((1, hidden), jnp.float32),
        "bn_w": xavier_normal(ks[4], hidden, bottleneck_dim),
        "bn_b": jnp.zeros((1, bottleneck_dim), jnp.float32),
        "fc_w": xavier_normal(ks[5], bottleneck_dim, class_num),
        "fc_b": jnp.zeros((1, class_num), jnp.float32),
    }


# --------------------------------- forward ---------------------------------- #

@jax.jit
def vggfc_forward(params, x_nchw):
    """Returns (x, y) like VGGFc.forward (use_bottleneck=True, new_cls=True)."""
    # single tiny layout fix (8 KB); everything downstream stays NHWC in VMEM
    x = jnp.transpose(x_nchw, (0, 2, 3, 1))
    return vggfc_pallas(params, x)


# ---------------------------- pure-JAX reference ----------------------------- #

def _reference_forward(params, x_nchw):
    hi = jax.lax.Precision.HIGHEST
    x = jnp.transpose(x_nchw, (0, 2, 3, 1))
    for wk, bk in (("conv1_w", "conv1_b"), ("conv2_w", "conv2_b")):
        wmat = params[wk]                                    # (9*cin, cout)
        cin, cout = wmat.shape[0] // 9, wmat.shape[1]
        w_hwio = wmat.reshape(3, 3, cin, cout)
        y = jax.lax.conv_general_dilated(
            x, w_hwio, (1, 1), "SAME",
            dimension_numbers=("NHWC", "HWIO", "NHWC"), precision=hi)
        y = jnp.maximum(y + params[bk].reshape(1, 1, 1, -1), 0.0)
        x = jax.lax.reduce_window(y, -jnp.inf, jax.lax.max,
                                  (1, 2, 2, 1), (1, 2, 2, 1), "VALID")
    f = x.reshape(x.shape[0], -1)          # NHWC flatten == kernel's (i, j, c) order
    h = jnp.maximum(jnp.dot(f, params["fc1_w"], precision=hi) + params["fc1_b"], 0.0)
    h = jnp.maximum(jnp.dot(h, params["fc2_w"], precision=hi) + params["fc2_b"], 0.0)
    feat = jnp.dot(h, params["bn_w"], precision=hi) + params["bn_b"]
    logit = jnp.dot(feat, params["fc_w"], precision=hi) + params["fc_b"]
    return feat, logit


# ----------------------------------- main ------------------------------------ #

if __name__ == "__main__":
    key = jax.random.PRNGKey(0)
    k_params, k_x = jax.random.split(key)
    params = init_params(k_params)
    x_in = jax.random.normal(k_x, (2, 4, 16, 16), jnp.float32)   # NCHW like PyTorch

    feat, logits = vggfc_forward(params, x_in)
    jax.block_until_ready((feat, logits))

    assert feat.shape == (2, 32) and logits.shape == (2, 10)
    assert bool(jnp.all(jnp.isfinite(feat))) and bool(jnp.all(jnp.isfinite(logits)))

    ref_feat, ref_logits = _reference_forward(params, x_in)
    assert bool(jnp.allclose(feat, ref_feat, atol=1e-4, rtol=1e-4)), \
        float(jnp.max(jnp.abs(feat - ref_feat)))
    assert bool(jnp.allclose(logits, ref_logits, atol=1e-4, rtol=1e-4)), \
        float(jnp.max(jnp.abs(logits - ref_logits)))

    print("KERNEL_OK")
</pallas_src>

<mosaic_0001>
module attributes {stable_mosaic.version = 11 : i64} {
  func.func @_vggfc_kernel(%arg0: memref<2x16x16x4xf32, #tpu.memory_space<vmem>>, %arg1: memref<36x8xf32, #tpu.memory_space<vmem>>, %arg2: memref<1x8xf32, #tpu.memory_space<vmem>>, %arg3: memref<72x16xf32, #tpu.memory_space<vmem>>, %arg4: memref<1x16xf32, #tpu.memory_space<vmem>>, %arg5: memref<256x64xf32, #tpu.memory_space<vmem>>, %arg6: memref<1x64xf32, #tpu.memory_space<vmem>>, %arg7: memref<64x64xf32, #tpu.memory_space<vmem>>, %arg8: memref<1x64xf32, #tpu.memory_space<vmem>>, %arg9: memref<64x32xf32, #tpu.memory_space<vmem>>, %arg10: memref<1x32xf32, #tpu.memory_space<vmem>>, %arg11: memref<32x10xf32, #tpu.memory_space<vmem>>, %arg12: memref<1x10xf32, #tpu.memory_space<vmem>>, %arg13: memref<2x32xf32, #tpu.memory_space<vmem>>, %arg14: memref<2x10xf32, #tpu.memory_space<vmem>>, %arg15: memref<2x18x18x4xf32, #tpu.memory_space<vmem>>, %arg16: memref<2x16x16x36xf32, #tpu.memory_space<vmem>>, %arg17: memref<2x8x16x8xf32, #tpu.memory_space<vmem>>, %arg18: memref<2x10x10x8xf32, #tpu.memory_space<vmem>>, %arg19: memref<2x8x8x72xf32, #tpu.memory_space<vmem>>, %arg20: memref<2x4x8x16xf32, #tpu.memory_space<vmem>>, %arg21: memref<2x256xf32, #tpu.memory_space<vmem>>) attributes {dimension_semantics = [], scalar_prefetch = 0 : i64, scratch_operands = 7 : i64, tpu.core_type = #tpu.core_type<tc>} {
    %cst = arith.constant 0.000000e+00 : f32
    %0 = vector.broadcast %cst : f32 to vector<2x18x18x4xf32>
    %c0 = arith.constant 0 : index
    %c0_0 = arith.constant 0 : index
    %c0_1 = arith.constant 0 : index
    %c0_2 = arith.constant 0 : index
    %1 = vector.load %arg15[%c0, %c0_0, %c0_1, %c0_2] : memref<2x18x18x4xf32, #tpu.memory_space<vmem>>, vector<2x18x18x4xf32>
    tpu.vector_store %arg15[%c0, %c0_0, %c0_1, %c0_2], %0 {strides = array<i32>} : memref<2x18x18x4xf32, #tpu.memory_space<vmem>>, vector<2x18x18x4xf32>,
    %c0_3 = arith.constant 0 : index
    %c0_4 = arith.constant 0 : index
    %c0_5 = arith.constant 0 : index
    %c0_6 = arith.constant 0 : index
    %2 = vector.load %arg0[%c0_3, %c0_4, %c0_5, %c0_6] : memref<2x16x16x4xf32, #tpu.memory_space<vmem>>, vector<2x16x16x4xf32>
    %c0_7 = arith.constant 0 : index
    %c1 = arith.constant 1 : index
    %c1_8 = arith.constant 1 : index
    %c0_9 = arith.constant 0 : index
    %3 = vector.load %arg15[%c0_7, %c1, %c1_8, %c0_9] : memref<2x18x18x4xf32, #tpu.memory_space<vmem>>, vector<2x16x16x4xf32>
    tpu.vector_store %arg15[%c0_7, %c1, %c1_8, %c0_9], %2 {strides = array<i32>} : memref<2x18x18x4xf32, #tpu.memory_space<vmem>>, vector<2x16x16x4xf32>,
    %c0_10 = arith.constant 0 : index
    %c0_11 = arith.constant 0 : index
    %c0_12 = arith.constant 0 : index
    %c0_13 = arith.constant 0 : index
    %4 = vector.load %arg15[%c0_10, %c0_11, %c0_12, %c0_13] : memref<2x18x18x4xf32, #tpu.memory_space<vmem>>, vector<2x16x16x4xf32>
    %c0_14 = arith.constant 0 : index
    %c0_15 = arith.constant 0 : index
    %c0_16 = arith.constant 0 : index
    %c0_17 = arith.constant 0 : index
    %5 = vector.load %arg16[%c0_14, %c0_15, %c0_16, %c0_17] : memref<2x16x16x36xf32, #tpu.memory_space<vmem>>, vector<2x16x16x4xf32>
    tpu.vector_store %arg16[%c0_14, %c0_15, %c0_16, %c0_17], %4 {strides = array<i32>} : memref<2x16x16x36xf32, #tpu.memory_space<vmem>>, vector<2x16x16x4xf32>,
    %c0_18 = arith.constant 0 : index
    %c0_19 = arith.constant 0 : index
    %c1_20 = arith.constant 1 : index
    %c0_21 = arith.constant 0 : index
    %6 = vector.load %arg15[%c0_18, %c0_19, %c1_20, %c0_21] : memref<2x18x18x4xf32, #tpu.memory_space<vmem>>, vector<2x16x16x4xf32>
    %c0_22 = arith.constant 0 : index
    %c0_23 = arith.constant 0 : index
    %c0_24 = arith.constant 0 : index
    %c4 = arith.constant 4 : index
    %7 = vector.load %arg16[%c0_22, %c0_23, %c0_24, %c4] : memref<2x16x16x36xf32, #tpu.memory_space<vmem>>, vector<2x16x16x4xf32>
    tpu.vector_store %arg16[%c0_22, %c0_23, %c0_24, %c4], %6 {strides = array<i32>} : memref<2x16x16x36xf32, #tpu.memory_space<vmem>>, vector<2x16x16x4xf32>,
    %c0_25 = arith.constant 0 : index
    %c0_26 = arith.constant 0 : index
    %c2 = arith.constant 2 : index
    %c0_27 = arith.constant 0 : index
    %8 = vector.load %arg15[%c0_25, %c0_26, %c2, %c0_27] : memref<2x18x18x4xf32, #tpu.memory_space<vmem>>, vector<2x16x16x4xf32>
    %c0_28 = arith.constant 0 : index
    %c0_29 = arith.constant 0 : index
    %c0_30 = arith.constant 0 : index
    %c8 = arith.constant 8 : index
    %9 = vector.load %arg16[%c0_28, %c0_29, %c0_30, %c8] : memref<2x16x16x36xf32, #tpu.memory_space<vmem>>, vector<2x16x16x4xf32>
    tpu.vector_store %arg16[%c0_28, %c0_29, %c0_30, %c8], %8 {strides = array<i32>} : memref<2x16x16x36xf32, #tpu.memory_space<vmem>>, vector<2x16x16x4xf32>,
    %c0_31 = arith.constant 0 : index
    %c1_32 = arith.constant 1 : index
    %c0_33 = arith.constant 0 : index
    %c0_34 = arith.constant 0 : index
    %10 = vector.load %arg15[%c0_31, %c1_32, %c0_33, %c0_34] : memref<2x18x18x4xf32, #tpu.memory_space<vmem>>, vector<2x16x16x4xf32>
    %c0_35 = arith.constant 0 : index
    %c0_36 = arith.constant 0 : index
    %c0_37 = arith.constant 0 : index
    %c12 = arith.constant 12 : index
    %11 = vector.load %arg16[%c0_35, %c0_36, %c0_37, %c12] : memref<2x16x16x36xf32, #tpu.memory_space<vmem>>, vector<2x16x16x4xf32>
    tpu.vector_store %arg16[%c0_35, %c0_36, %c0_37, %c12], %10 {strides = array<i32>} : memref<2x16x16x36xf32, #tpu.memory_space<vmem>>, vector<2x16x16x4xf32>,
    %c0_38 = arith.constant 0 : index
    %c1_39 = arith.constant 1 : index
    %c1_40 = arith.constant 1 : index
    %c0_41 = arith.constant 0 : index
    %12 = vector.load %arg15[%c0_38, %c1_39, %c1_40, %c0_41] : memref<2x18x18x4xf32, #tpu.memory_space<vmem>>, vector<2x16x16x4xf32>
    %c0_42 = arith.constant 0 : index
    %c0_43 = arith.constant 0 : index
    %c0_44 = arith.constant 0 : index
    %c16 = arith.constant 16 : index
    %13 = vector.load %arg16[%c0_42, %c0_43, %c0_44, %c16] : memref<2x16x16x36xf32, #tpu.memory_space<vmem>>, vector<2x16x16x4xf32>
    tpu.vector_store %arg16[%c0_42, %c0_43, %c0_44, %c16], %12 {strides = array<i32>} : memref<2x16x16x36xf32, #tpu.memory_space<vmem>>, vector<2x16x16x4xf32>,
    %c0_45 = arith.constant 0 : index
    %c1_46 = arith.constant 1 : index
    %c2_47 = arith.constant 2 : index
    %c0_48 = arith.constant 0 : index
    %14 = vector.load %arg15[%c0_45, %c1_46, %c2_47, %c0_48] : memref<2x18x18x4xf32, #tpu.memory_space<vmem>>, vector<2x16x16x4xf32>
    %c0_49 = arith.constant 0 : index
    %c0_50 = arith.constant 0 : index
    %c0_51 = arith.constant 0 : index
    %c20 = arith.constant 20 : index
    %15 = vector.load %arg16[%c0_49, %c0_50, %c0_51, %c20] : memref<2x16x16x36xf32, #tpu.memory_space<vmem>>, vector<2x16x16x4xf32>
    tpu.vector_store %arg16[%c0_49, %c0_50, %c0_51, %c20], %14 {strides = array<i32>} : memref<2x16x16x36xf32, #tpu.memory_space<vmem>>, vector<2x16x16x4xf32>,
    %c0_52 = arith.constant 0 : index
    %c2_53 = arith.constant 2 : index
    %c0_54 = arith.constant 0 : index
    %c0_55 = arith.constant 0 : index
    %16 = vector.load %arg15[%c0_52, %c2_53, %c0_54, %c0_55] : memref<2x18x18x4xf32, #tpu.memory_space<vmem>>, vector<2x16x16x4xf32>
    %c0_56 = arith.constant 0 : index
    %c0_57 = arith.constant 0 : index
    %c0_58 = arith.constant 0 : index
    %c24 = arith.constant 24 : index
    %17 = vector.load %arg16[%c0_56, %c0_57, %c0_58, %c24] : memref<2x16x16x36xf32, #tpu.memory_space<vmem>>, vector<2x16x16x4xf32>
    tpu.vector_store %arg16[%c0_56, %c0_57, %c0_58, %c24], %16 {strides = array<i32>} : memref<2x16x16x36xf32, #tpu.memory_space<vmem>>, vector<2x16x16x4xf32>,
    %c0_59 = arith.constant 0 : index
    %c2_60 = arith.constant 2 : index
    %c1_61 = arith.constant 1 : index
    %c0_62 = arith.constant 0 : index
    %18 = vector.load %arg15[%c0_59, %c2_60, %c1_61, %c0_62] : memref<2x18x18x4xf32, #tpu.memory_space<vmem>>, vector<2x16x16x4xf32>
    %c0_63 = arith.constant 0 : index
    %c0_64 = arith.constant 0 : index
    %c0_65 = arith.constant 0 : index
    %c28 = arith.constant 28 : index
    %19 = vector.load %arg16[%c0_63, %c0_64, %c0_65, %c28] : memref<2x16x16x36xf32, #tpu.memory_space<vmem>>, vector<2x16x16x4xf32>
    tpu.vector_store %arg16[%c0_63, %c0_64, %c0_65, %c28], %18 {strides = array<i32>} : memref<2x16x16x36xf32, #tpu.memory_space<vmem>>, vector<2x16x16x4xf32>,
    %c0_66 = arith.constant 0 : index
    %c2_67 = arith.constant 2 : index
    %c2_68 = arith.constant 2 : index
    %c0_69 = arith.constant 0 : index
    %20 = vector.load %arg15[%c0_66, %c2_67, %c2_68, %c0_69] : memref<2x18x18x4xf32, #tpu.memory_space<vmem>>, vector<2x16x16x4xf32>
    %c0_70 = arith.constant 0 : index
    %c0_71 = arith.constant 0 : index
    %c0_72 = arith.constant 0 : index
    %c32 = arith.constant 32 : index
    %21 = vector.load %arg16[%c0_70, %c0_71, %c0_72, %c32] : memref<2x16x16x36xf32, #tpu.memory_space<vmem>>, vector<2x16x16x4xf32>
    tpu.vector_store %arg16[%c0_70, %c0_71, %c0_72, %c32], %20 {strides = array<i32>} : memref<2x16x16x36xf32, #tpu.memory_space<vmem>>, vector<2x16x16x4xf32>,
    %c0_73 = arith.constant 0 : index
    %c0_74 = arith.constant 0 : index
    %c0_75 = arith.constant 0 : index
    %c0_76 = arith.constant 0 : index
    %22 = vector.load %arg16[%c0_73, %c0_74, %c0_75, %c0_76] : memref<2x16x16x36xf32, #tpu.memory_space<vmem>>, vector<2x16x16x36xf32>
    %23 = vector.shape_cast %22 : vector<2x16x16x36xf32> to vector<512x36xf32>
    %c0_77 = arith.constant 0 : index
    %c0_78 = arith.constant 0 : index
    %24 = vector.load %arg1[%c0_77, %c0_78] : memref<36x8xf32, #tpu.memory_space<vmem>>, vector<36x8xf32>
    %cst_79 = arith.constant dense<0.000000e+00> : vector<512x8xf32>
    %25 = tpu.matmul %23, %24, %cst_79 {dimension_numbers = #tpu.dot_dimension_numbers<[1], [0], [0], [1], [0, 0, 1, 1], [], []>} : vector<512x36xf32>, vector<36x8xf32>, vector<512x8xf32> -> vector<512x8xf32>
    %c0_80 = arith.constant 0 : index
    %c0_81 = arith.constant 0 : index
    %26 = vector.load %arg2[%c0_80, %c0_81] : memref<1x8xf32, #tpu.memory_space<vmem>>, vector<1x8xf32>
    %27 = vector.broadcast %26 : vector<1x8xf32> to vector<512x8xf32>
    %28 = arith.addf %25, %27 : vector<512x8xf32>
    %cst_82 = arith.constant 0.000000e+00 : f32
    %29 = vector.broadcast %cst_82 : f32 to vector<512x8xf32>
    %30 = arith.maximumf %28, %29 : vector<512x8xf32>
    %31 = vector.shape_cast %30 : vector<512x8xf32> to vector<2x8x2x16x8xf32>
    %cst_83 = arith.constant dense<0xFF800000> : vector<2x8x16x8xf32>
    %32 = vector.multi_reduction <maximumf>, %31, %cst_83 [2] : vector<2x8x2x16x8xf32> to vector<2x8x16x8xf32>
    %c0_84 = arith.constant 0 : index
    %c0_85 = arith.constant 0 : index
    %c0_86 = arith.constant 0 : index
    %c0_87 = arith.constant 0 : index
    %33 = vector.load %arg17[%c0_84, %c0_85, %c0_86, %c0_87] : memref<2x8x16x8xf32, #tpu.memory_space<vmem>>, vector<2x8x16x8xf32>
    tpu.vector_store %arg17[%c0_84, %c0_85, %c0_86, %c0_87], %32 {strides = array<i32>} : memref<2x8x16x8xf32, #tpu.memory_space<vmem>>, vector<2x8x16x8xf32>,
    %c0_88 = arith.constant 0 : index
    %c0_89 = arith.constant 0 : index
    %c0_90 = arith.constant 0 : index
    %c0_91 = arith.constant 0 : index
    %34 = tpu.strided_load %arg17[%c0_88, %c0_89, %c0_90, %c0_91] {strides = array<i32: 1, 1, 2, 1>} : memref<2x8x16x8xf32, #tpu.memory_space<vmem>>, vector<2x8x8x8xf32>
    %c0_92 = arith.constant 0 : index
    %c0_93 = arith.constant 0 : index
    %c1_94 = arith.constant 1 : index
    %c0_95 = arith.constant 0 : index
    %35 = tpu.strided_load %arg17[%c0_92, %c0_93, %c1_94, %c0_95] {strides = array<i32: 1, 1, 2, 1>} : memref<2x8x16x8xf32, #tpu.memory_space<vmem>>, vector<2x8x8x8xf32>
    %36 = arith.maximumf %34, %35 : vector<2x8x8x8xf32>
    %cst_96 = arith.constant 0.000000e+00 : f32
    %37 = vector.broadcast %cst_96 : f32 to vector<2x10x10x8xf32>
    %c0_97 = arith.constant 0 : index
    %c0_98 = arith.constant 0 : index
    %c0_99 = arith.constant 0 : index
    %c0_100 = arith.constant 0 : index
    %38 = vector.load %arg18[%c0_97, %c0_98, %c0_99, %c0_100] : memref<2x10x10x8xf32, #tpu.memory_space<vmem>>, vector<2x10x10x8xf32>
    tpu.vector_store %arg18[%c0_97, %c0_98, %c0_99, %c0_100], %37 {strides = array<i32>} : memref<2x10x10x8xf32, #tpu.memory_space<vmem>>, vector<2x10x10x8xf32>,
    %c0_101 = arith.constant 0 : index
    %c1_102 = arith.constant 1 : index
    %c1_103 = arith.constant 1 : index
    %c0_104 = arith.constant 0 : index
    %39 = vector.load %arg18[%c0_101, %c1_102, %c1_103, %c0_104] : memref<2x10x10x8xf32, #tpu.memory_space<vmem>>, vector<2x8x8x8xf32>
    tpu.vector_store %arg18[%c0_101, %c1_102, %c1_103, %c0_104], %36 {strides = array<i32>} : memref<2x10x10x8xf32, #tpu.memory_space<vmem>>, vector<2x8x8x8xf32>,
    %c0_105 = arith.constant 0 : index
    %c0_106 = arith.constant 0 : index
    %c0_107 = arith.constant 0 : index
    %c0_108 = arith.constant 0 : index
    %40 = vector.load %arg18[%c0_105, %c0_106, %c0_107, %c0_108] : memref<2x10x10x8xf32, #tpu.memory_space<vmem>>, vector<2x8x8x8xf32>
    %c0_109 = arith.constant 0 : index
    %c0_110 = arith.constant 0 : index
    %c0_111 = arith.constant 0 : index
    %c0_112 = arith.constant 0 : index
    %41 = vector.load %arg19[%c0_109, %c0_110, %c0_111, %c0_112] : memref<2x8x8x72xf32, #tpu.memory_space<vmem>>, vector<2x8x8x8xf32>
    tpu.vector_store %arg19[%c0_109, %c0_110, %c0_111, %c0_112], %40 {strides = array<i32>} : memref<2x8x8x72xf32, #tpu.memory_space<vmem>>, vector<2x8x8x8xf32>,
    %c0_113 = arith.constant 0 : index
    %c0_114 = arith.constant 0 : index
    %c1_115 = arith.constant 1 : index
    %c0_116 = arith.constant 0 : index
    %42 = vector.load %arg18[%c0_113, %c0_114, %c1_115, %c0_116] : memref<2x10x10x8xf32, #tpu.memory_space<vmem>>, vector<2x8x8x8xf32>
    %c0_117 = arith.constant 0 : index
    %c0_118 = arith.constant 0 : index
    %c0_119 = arith.constant 0 : index
    %c8_120 = arith.constant 8 : index
    %43 = vector.load %arg19[%c0_117, %c0_118, %c0_119, %c8_120] : memref<2x8x8x72xf32, #tpu.memory_space<vmem>>, vector<2x8x8x8xf32>
    tpu.vector_store %arg19[%c0_117, %c0_118, %c0_119, %c8_120], %42 {strides = array<i32>} : memref<2x8x8x72xf32, #tpu.memory_space<vmem>>, vector<2x8x8x8xf32>,
    %c0_121 = arith.constant 0 : index
    %c0_122 = arith.constant 0 : index
    %c2_123 = arith.constant 2 : index
    %c0_124 = arith.constant 0 : index
    %44 = vector.load %arg18[%c0_121, %c0_122, %c2_123, %c0_124] : memref<2x10x10x8xf32, #tpu.memory_space<vmem>>, vector<2x8x8x8xf32>
    %c0_125 = arith.constant 0 : index
    %c0_126 = arith.constant 0 : index
    %c0_127 = arith.constant 0 : index
    %c16_128 = arith.constant 16 : index
    %45 = vector.load %arg19[%c0_125, %c0_126, %c0_127, %c16_128] : memref<2x8x8x72xf32, #tpu.memory_space<vmem>>, vector<2x8x8x8xf32>
    tpu.vector_store %arg19[%c0_125, %c0_126, %c0_127, %c16_128], %44 {strides = array<i32>} : memref<2x8x8x72xf32, #tpu.memory_space<vmem>>, vector<2x8x8x8xf32>,
    %c0_129 = arith.constant 0 : index
    %c1_130 = arith.constant 1 : index
    %c0_131 = arith.constant 0 : index
    %c0_132 = arith.constant 0 : index
    %46 = vector.load %arg18[%c0_129, %c1_130, %c0_131, %c0_132] : memref<2x10x10x8xf32, #tpu.memory_space<vmem>>, vector<2x8x8x8xf32>
    %c0_133 = arith.constant 0 : index
    %c0_134 = arith.constant 0 : index
    %c0_135 = arith.constant 0 : index
    %c24_136 = arith.constant 24 : index
    %47 = vector.load %arg19[%c0_133, %c0_134, %c0_135, %c24_136] : memref<2x8x8x72xf32, #tpu.memory_space<vmem>>, vector<2x8x8x8xf32>
    tpu.vector_store %arg19[%c0_133, %c0_134, %c0_135, %c24_136], %46 {strides = array<i32>} : memref<2x8x8x72xf32, #tpu.memory_space<vmem>>, vector<2x8x8x8xf32>,
    %c0_137 = arith.constant 0 : index
    %c1_138 = arith.constant 1 : index
    %c1_139 = arith.constant 1 : index
    %c0_140 = arith.constant 0 : index
    %48 = vector.load %arg18[%c0_137, %c1_138, %c1_139, %c0_140] : memref<2x10x10x8xf32, #tpu.memory_space<vmem>>, vector<2x8x8x8xf32>
    %c0_141 = arith.constant 0 : index
    %c0_142 = arith.constant 0 : index
    %c0_143 = arith.constant 0 : index
    %c32_144 = arith.constant 32 : index
    %49 = vector.load %arg19[%c0_141, %c0_142, %c0_143, %c32_144] : memref<2x8x8x72xf32, #tpu.memory_space<vmem>>, vector<2x8x8x8xf32>
    tpu.vector_store %arg19[%c0_141, %c0_142, %c0_143, %c32_144], %48 {strides = array<i32>} : memref<2x8x8x72xf32, #tpu.memory_space<vmem>>, vector<2x8x8x8xf32>,
    %c0_145 = arith.constant 0 : index
    %c1_146 = arith.constant 1 : index
    %c2_147 = arith.constant 2 : index
    %c0_148 = arith.constant 0 : index
    %50 = vector.load %arg18[%c0_145, %c1_146, %c2_147, %c0_148] : memref<2x10x10x8xf32, #tpu.memory_space<vmem>>, vector<2x8x8x8xf32>
    %c0_149 = arith.constant 0 : index
    %c0_150 = arith.constant 0 : index
    %c0_151 = arith.constant 0 : index
    %c40 = arith.constant 40 : index
    %51 = vector.load %arg19[%c0_149, %c0_150, %c0_151, %c40] : memref<2x8x8x72xf32, #tpu.memory_space<vmem>>, vector<2x8x8x8xf32>
    tpu.vector_store %arg19[%c0_149, %c0_150, %c0_151, %c40], %50 {strides = array<i32>} : memref<2x8x8x72xf32, #tpu.memory_space<vmem>>, vector<2x8x8x8xf32>,
    %c0_152 = arith.constant 0 : index
    %c2_153 = arith.constant 2 : index
    %c0_154 = arith.constant 0 : index
    %c0_155 = arith.constant 0 : index
    %52 = vector.load %arg18[%c0_152, %c2_153, %c0_154, %c0_155] : memref<2x10x10x8xf32, #tpu.memory_space<vmem>>, vector<2x8x8x8xf32>
    %c0_156 = arith.constant 0 : index
    %c0_157 = arith.constant 0 : index
    %c0_158 = arith.constant 0 : index
    %c48 = arith.constant 48 : index
    %53 = vector.load %arg19[%c0_156, %c0_157, %c0_158, %c48] : memref<2x8x8x72xf32, #tpu.memory_space<vmem>>, vector<2x8x8x8xf32>
    tpu.vector_store %arg19[%c0_156, %c0_157, %c0_158, %c48], %52 {strides = array<i32>} : memref<2x8x8x72xf32, #tpu.memory_space<vmem>>, vector<2x8x8x8xf32>,
    %c0_159 = arith.constant 0 : index
    %c2_160 = arith.constant 2 : index
    %c1_161 = arith.constant 1 : index
    %c0_162 = arith.constant 0 : index
    %54 = vector.load %arg18[%c0_159, %c2_160, %c1_161, %c0_162] : memref<2x10x10x8xf32, #tpu.memory_space<vmem>>, vector<2x8x8x8xf32>
    %c0_163 = arith.constant 0 : index
    %c0_164 = arith.constant 0 : index
    %c0_165 = arith.constant 0 : index
    %c56 = arith.constant 56 : index
    %55 = vector.load %arg19[%c0_163, %c0_164, %c0_165, %c56] : memref<2x8x8x72xf32, #tpu.memory_space<vmem>>, vector<2x8x8x8xf32>
    tpu.vector_store %arg19[%c0_163, %c0_164, %c0_165, %c56], %54 {strides = array<i32>} : memref<2x8x8x72xf32, #tpu.memory_space<vmem>>, vector<2x8x8x8xf32>,
    %c0_166 = arith.constant 0 : index
    %c2_167 = arith.constant 2 : index
    %c2_168 = arith.constant 2 : index
    %c0_169 = arith.constant 0 : index
    %56 = vector.load %arg18[%c0_166, %c2_167, %c2_168, %c0_169] : memref<2x10x10x8xf32, #tpu.memory_space<vmem>>, vector<2x8x8x8xf32>
    %c0_170 = arith.constant 0 : index
    %c0_171 = arith.constant 0 : index
    %c0_172 = arith.constant 0 : index
    %c64 = arith.constant 64 : index
    %57 = vector.load %arg19[%c0_170, %c0_171, %c0_172, %c64] : memref<2x8x8x72xf32, #tpu.memory_space<vmem>>, vector<2x8x8x8xf32>
    tpu.vector_store %arg19[%c0_170, %c0_171, %c0_172, %c64], %56 {strides = array<i32>} : memref<2x8x8x72xf32, #tpu.memory_space<vmem>>, vector<2x8x8x8xf32>,
    %c0_173 = arith.constant 0 : index
    %c0_174 = arith.constant 0 : index
    %c0_175 = arith.constant 0 : index
    %c0_176 = arith.constant 0 : index
    %58 = vector.load %arg19[%c0_173, %c0_174, %c0_175, %c0_176] : memref<2x8x8x72xf32, #tpu.memory_space<vmem>>, vector<2x8x8x72xf32>
    %59 = vector.shape_cast %58 : vector<2x8x8x72xf32> to vector<128x72xf32>
    %c0_177 = arith.constant 0 : index
    %c0_178 = arith.constant 0 : index
    %60 = vector.load %arg3[%c0_177, %c0_178] : memref<72x16xf32, #tpu.memory_space<vmem>>, vector<72x16xf32>
    %cst_179 = arith.constant dense<0.000000e+00> : vector<128x16xf32>
    %61 = tpu.matmul %59, %60, %cst_179 {dimension_numbers = #tpu.dot_dimension_numbers<[1], [0], [0], [1], [0, 0, 1, 1], [], []>} : vector<128x72xf32>, vector<72x16xf32>, vector<128x16xf32> -> vector<128x16xf32>
    %c0_180 = arith.constant 0 : index
    %c0_181 = arith.constant 0 : index
    %62 = vector.load %arg4[%c0_180, %c0_181] : memref<1x16xf32, #tpu.memory_space<vmem>>, vector<1x16xf32>
    %63 = vector.broadcast %62 : vector<1x16xf32> to vector<128x16xf32>
    %64 = arith.addf %61, %63 : vector<128x16xf32>
    %cst_182 = arith.constant 0.000000e+00 : f32
    %65 = vector.broadcast %cst_182 : f32 to vector<128x16xf32>
    %66 = arith.maximumf %64, %65 : vector<128x16xf32>
    %67 = vector.shape_cast %66 : vector<128x16xf32> to vector<2x4x2x8x16xf32>
    %cst_183 = arith.constant dense<0xFF800000> : vector<2x4x8x16xf32>
    %68 = vector.multi_reduction <maximumf>, %67, %cst_183 [2] : vector<2x4x2x8x16xf32> to vector<2x4x8x16xf32>
    %c0_184 = arith.constant 0 : index
    %c0_185 = arith.constant 0 : index
    %c0_186 = arith.constant 0 : index
    %c0_187 = arith.constant 0 : index
    %69 = vector.load %arg20[%c0_184, %c0_185, %c0_186, %c0_187] : memref<2x4x8x16xf32, #tpu.memory_space<vmem>>, vector<2x4x8x16xf32>
    tpu.vector_store %arg20[%c0_184, %c0_185, %c0_186, %c0_187], %68 {strides = array<i32>} : memref<2x4x8x16xf32, #tpu.memory_space<vmem>>, vector<2x4x8x16xf32>,
    %c0_188 = arith.constant 0 : index
    %c0_189 = arith.constant 0 : index
    %c0_190 = arith.constant 0 : index
    %c0_191 = arith.constant 0 : index
    %70 = vector.load %arg20[%c0_188, %c0_189, %c0_190, %c0_191] : memref<2x4x8x16xf32, #tpu.memory_space<vmem>>, vector<2x1x1x16xf32>
    %71 = vector.shape_cast %70 : vector<2x1x1x16xf32> to vector<2x16xf32>
    %c0_192 = arith.constant 0 : index
    %c0_193 = arith.constant 0 : index
    %c1_194 = arith.constant 1 : index
    %c0_195 = arith.constant 0 : index
    %72 = vector.load %arg20[%c0_192, %c0_193, %c1_194, %c0_195] : memref<2x4x8x16xf32, #tpu.memory_space<vmem>>, vector<2x1x1x16xf32>
    %73 = vector.shape_cast %72 : vector<2x1x1x16xf32> to vector<2x16xf32>
    %74 = arith.maximumf %71, %73 : vector<2x16xf32>
    %c0_196 = arith.constant 0 : index
    %c0_197 = arith.constant 0 : index
    %75 = vector.load %arg21[%c0_196, %c0_197] : memref<2x256xf32, #tpu.memory_space<vmem>>, vector<2x16xf32>
    tpu.vector_store %arg21[%c0_196, %c0_197], %74 {strides = array<i32>} : memref<2x256xf32, #tpu.memory_space<vmem>>, vector<2x16xf32>,
    %c0_198 = arith.constant 0 : index
    %c0_199 = arith.constant 0 : index
    %c2_200 = arith.constant 2 : index
    %c0_201 = arith.constant 0 : index
    %76 = vector.load %arg20[%c0_198, %c0_199, %c2_200, %c0_201] : memref<2x4x8x16xf32, #tpu.memory_space<vmem>>, vector<2x1x1x16xf32>
    %77 = vector.shape_cast %76 : vector<2x1x1x16xf32> to vector<2x16xf32>
    %c0_202 = arith.constant 0 : index
    %c0_203 = arith.constant 0 : index
    %c3 = arith.constant 3 : index
    %c0_204 = arith.constant 0 : index
    %78 = vector.load %arg20[%c0_202, %c0_203, %c3, %c0_204] : memref<2x4x8x16xf32, #tpu.memory_space<vmem>>, vector<2x1x1x16xf32>
    %79 = vector.shape_cast %78 : vector<2x1x1x16xf32> to vector<2x16xf32>
    %80 = arith.maximumf %77, %79 : vector<2x16xf32>
    %c0_205 = arith.constant 0 : index
    %c16_206 = arith.constant 16 : index
    %81 = vector.load %arg21[%c0_205, %c16_206] : memref<2x256xf32, #tpu.memory_space<vmem>>, vector<2x16xf32>
    tpu.vector_store %arg21[%c0_205, %c16_206], %80 {strides = array<i32>} : memref<2x256xf32, #tpu.memory_space<vmem>>, vector<2x16xf32>,
    %c0_207 = arith.constant 0 : index
    %c0_208 = arith.constant 0 : index
    %c4_209 = arith.constant 4 : index
    %c0_210 = arith.constant 0 : index
    %82 = vector.load %arg20[%c0_207, %c0_208, %c4_209, %c0_210] : memref<2x4x8x16xf32, #tpu.memory_space<vmem>>, vector<2x1x1x16xf32>
    %83 = vector.shape_cast %82 : vector<2x1x1x16xf32> to vector<2x16xf32>
    %c0_211 = arith.constant 0 : index
    %c0_212 = arith.constant 0 : index
    %c5 = arith.constant 5 : index
    %c0_213 = arith.constant 0 : index
    %84 = vector.load %arg20[%c0_211, %c0_212, %c5, %c0_213] : memref<2x4x8x16xf32, #tpu.memory_space<vmem>>, vector<2x1x1x16xf32>
    %85 = vector.shape_cast %84 : vector<2x1x1x16xf32> to vector<2x16xf32>
    %86 = arith.maximumf %83, %85 : vector<2x16xf32>
    %c0_214 = arith.constant 0 : index
    %c32_215 = arith.constant 32 : index
    %87 = vector.load %arg21[%c0_214, %c32_215] : memref<2x256xf32, #tpu.memory_space<vmem>>, vector<2x16xf32>
    tpu.vector_store %arg21[%c0_214, %c32_215], %86 {strides = array<i32>} : memref<2x256xf32, #tpu.memory_space<vmem>>, vector<2x16xf32>,
    %c0_216 = arith.constant 0 : index
    %c0_217 = arith.constant 0 : index
    %c6 = arith.constant 6 : index
    %c0_218 = arith.constant 0 : index
    %88 = vector.load %arg20[%c0_216, %c0_217, %c6, %c0_218] : memref<2x4x8x16xf32, #tpu.memory_space<vmem>>, vector<2x1x1x16xf32>
    %89 = vector.shape_cast %88 : vector<2x1x1x16xf32> to vector<2x16xf32>
    %c0_219 = arith.constant 0 : index
    %c0_220 = arith.constant 0 : index
    %c7 = arith.constant 7 : index
    %c0_221 = arith.constant 0 : index
    %90 = vector.load %arg20[%c0_219, %c0_220, %c7, %c0_221] : memref<2x4x8x16xf32, #tpu.memory_space<vmem>>, vector<2x1x1x16xf32>
    %91 = vector.shape_cast %90 : vector<2x1x1x16xf32> to vector<2x16xf32>
    %92 = arith.maximumf %89, %91 : vector<2x16xf32>
    %c0_222 = arith.constant 0 : index
    %c48_223 = arith.constant 48 : index
    %93 = vector.load %arg21[%c0_222, %c48_223] : memref<2x256xf32, #tpu.memory_space<vmem>>, vector<2x16xf32>
    tpu.vector_store %arg21[%c0_222, %c48_223], %92 {strides = array<i32>} : memref<2x256xf32, #tpu.memory_space<vmem>>, vector<2x16xf32>,
    %c0_224 = arith.constant 0 : index
    %c1_225 = arith.constant 1 : index
    %c0_226 = arith.constant 0 : index
    %c0_227 = arith.constant 0 : index
    %94 = vector.load %arg20[%c0_224, %c1_225, %c0_226, %c0_227] : memref<2x4x8x16xf32, #tpu.memory_space<vmem>>, vector<2x1x1x16xf32>
    %95 = vector.shape_cast %94 : vector<2x1x1x16xf32> to vector<2x16xf32>
    %c0_228 = arith.constant 0 : index
    %c1_229 = arith.constant 1 : index
    %c1_230 = arith.constant 1 : index
    %c0_231 = arith.constant 0 : index
    %96 = vector.load %arg20[%c0_228, %c1_229, %c1_230, %c0_231] : memref<2x4x8x16xf32, #tpu.memory_space<vmem>>, vector<2x1x1x16xf32>
    %97 = vector.shape_cast %96 : vector<2x1x1x16xf32> to vector<2x16xf32>
    %98 = arith.maximumf %95, %97 : vector<2x16xf32>
    %c0_232 = arith.constant 0 : index
    %c64_233 = arith.constant 64 : index
    %99 = vector.load %arg21[%c0_232, %c64_233] : memref<2x256xf32, #tpu.memory_space<vmem>>, vector<2x16xf32>
    tpu.vector_store %arg21[%c0_232, %c64_233], %98 {strides = array<i32>} : memref<2x256xf32, #tpu.memory_space<vmem>>, vector<2x16xf32>,
    %c0_234 = arith.constant 0 : index
    %c1_235 = arith.constant 1 : index
    %c2_236 = arith.constant 2 : index
    %c0_237 = arith.constant 0 : index
    %100 = vector.load %arg20[%c0_234, %c1_235, %c2_236, %c0_237] : memref<2x4x8x16xf32, #tpu.memory_space<vmem>>, vector<2x1x1x16xf32>
    %101 = vector.shape_cast %100 : vector<2x1x1x16xf32> to vector<2x16xf32>
    %c0_238 = arith.constant 0 : index
    %c1_239 = arith.constant 1 : index
    %c3_240 = arith.constant 3 : index
    %c0_241 = arith.constant 0 : index
    %102 = vector.load %arg20[%c0_238, %c1_239, %c3_240, %c0_241] : memref<2x4x8x16xf32, #tpu.memory_space<vmem>>, vector<2x1x1x16xf32>
    %103 = vector.shape_cast %102 : vector<2x1x1x16xf32> to vector<2x16xf32>
    %104 = arith.maximumf %101, %103 : vector<2x16xf32>
    %c0_242 = arith.constant 0 : index
    %c80 = arith.constant 80 : index
    %105 = vector.load %arg21[%c0_242, %c80] : memref<2x256xf32, #tpu.memory_space<vmem>>, vector<2x16xf32>
    tpu.vector_store %arg21[%c0_242, %c80], %104 {strides = array<i32>} : memref<2x256xf32, #tpu.memory_space<vmem>>, vector<2x16xf32>,
    %c0_243 = arith.constant 0 : index
    %c1_244 = arith.constant 1 : index
    %c4_245 = arith.constant 4 : index
    %c0_246 = arith.constant 0 : index
    %106 = vector.load %arg20[%c0_243, %c1_244, %c4_245, %c0_246] : memref<2x4x8x16xf32, #tpu.memory_space<vmem>>, vector<2x1x1x16xf32>
    %107 = vector.shape_cast %106 : vector<2x1x1x16xf32> to vector<2x16xf32>
    %c0_247 = arith.constant 0 : index
    %c1_248 = arith.constant 1 : index
    %c5_249 = arith.constant 5 : index
    %c0_250 = arith.constant 0 : index
    %108 = vector.load %arg20[%c0_247, %c1_248, %c5_249, %c0_250] : memref<2x4x8x16xf32, #tpu.memory_space<vmem>>, vector<2x1x1x16xf32>
    %109 = vector.shape_cast %108 : vector<2x1x1x16xf32> to vector<2x16xf32>
    %110 = arith.maximumf %107, %109 : vector<2x16xf32>
    %c0_251 = arith.constant 0 : index
    %c96 = arith.constant 96 : index
    %111 = vector.load %arg21[%c0_251, %c96] : memref<2x256xf32, #tpu.memory_space<vmem>>, vector<2x16xf32>
    tpu.vector_store %arg21[%c0_251, %c96], %110 {strides = array<i32>} : memref<2x256xf32, #tpu.memory_space<vmem>>, vector<2x16xf32>,
    %c0_252 = arith.constant 0 : index
    %c1_253 = arith.constant 1 : index
    %c6_254 = arith.constant 6 : index
    %c0_255 = arith.constant 0 : index
    %112 = vector.load %arg20[%c0_252, %c1_253, %c6_254, %c0_255] : memref<2x4x8x16xf32, #tpu.memory_space<vmem>>, vector<2x1x1x16xf32>
    %113 = vector.shape_cast %112 : vector<2x1x1x16xf32> to vector<2x16xf32>
    %c0_256 = arith.constant 0 : index
    %c1_257 = arith.constant 1 : index
    %c7_258 = arith.constant 7 : index
    %c0_259 = arith.constant 0 : index
    %114 = vector.load %arg20[%c0_256, %c1_257, %c7_258, %c0_259] : memref<2x4x8x16xf32, #tpu.memory_space<vmem>>, vector<2x1x1x16xf32>
    %115 = vector.shape_cast %114 : vector<2x1x1x16xf32> to vector<2x16xf32>
    %116 = arith.maximumf %113, %115 : vector<2x16xf32>
    %c0_260 = arith.constant 0 : index
    %c112 = arith.constant 112 : index
    %117 = vector.load %arg21[%c0_260, %c112] : memref<2x256xf32, #tpu.memory_space<vmem>>, vector<2x16xf32>
    tpu.vector_store %arg21[%c0_260, %c112], %116 {strides = array<i32>} : memref<2x256xf32, #tpu.memory_space<vmem>>, vector<2x16xf32>,
    %c0_261 = arith.constant 0 : index
    %c2_262 = arith.constant 2 : index
    %c0_263 = arith.constant 0 : index
    %c0_264 = arith.constant 0 : index
    %118 = vector.load %arg20[%c0_261, %c2_262, %c0_263, %c0_264] : memref<2x4x8x16xf32, #tpu.memory_space<vmem>>, vector<2x1x1x16xf32>
    %119 = vector.shape_cast %118 : vector<2x1x1x16xf32> to vector<2x16xf32>
    %c0_265 = arith.constant 0 : index
    %c2_266 = arith.constant 2 : index
    %c1_267 = arith.constant 1 : index
    %c0_268 = arith.constant 0 : index
    %120 = vector.load %arg20[%c0_265, %c2_266, %c1_267, %c0_268] : memref<2x4x8x16xf32, #tpu.memory_space<vmem>>, vector<2x1x1x16xf32>
    %121 = vector.shape_cast %120 : vector<2x1x1x16xf32> to vector<2x16xf32>
    %122 = arith.maximumf %119, %121 : vector<2x16xf32>
    %c0_269 = arith.constant 0 : index
    %c128 = arith.constant 128 : index
    %123 = vector.load %arg21[%c0_269, %c128] : memref<2x256xf32, #tpu.memory_space<vmem>>, vector<2x16xf32>
    tpu.vector_store %arg21[%c0_269, %c128], %122 {strides = array<i32>} : memref<2x256xf32, #tpu.memory_space<vmem>>, vector<2x16xf32>,
    %c0_270 = arith.constant 0 : index
    %c2_271 = arith.constant 2 : index
    %c2_272 = arith.constant 2 : index
    %c0_273 = arith.constant 0 : index
    %124 = vector.load %arg20[%c0_270, %c2_271, %c2_272, %c0_273] : memref<2x4x8x16xf32, #tpu.memory_space<vmem>>, vector<2x1x1x16xf32>
    %125 = vector.shape_cast %124 : vector<2x1x1x16xf32> to vector<2x16xf32>
    %c0_274 = arith.constant 0 : index
    %c2_275 = arith.constant 2 : index
    %c3_276 = arith.constant 3 : index
    %c0_277 = arith.constant 0 : index
    %126 = vector.load %arg20[%c0_274, %c2_275, %c3_276, %c0_277] : memref<2x4x8x16xf32, #tpu.memory_space<vmem>>, vector<2x1x1x16xf32>
    %127 = vector.shape_cast %126 : vector<2x1x1x16xf32> to vector<2x16xf32>
    %128 = arith.maximumf %125, %127 : vector<2x16xf32>
    %c0_278 = arith.constant 0 : index
    %c144 = arith.constant 144 : index
    %129 = vector.load %arg21[%c0_278, %c144] : memref<2x256xf32, #tpu.memory_space<vmem>>, vector<2x16xf32>
    tpu.vector_store %arg21[%c0_278, %c144], %128 {strides = array<i32>} : memref<2x256xf32, #tpu.memory_space<vmem>>, vector<2x16xf32>,
    %c0_279 = arith.constant 0 : index
    %c2_280 = arith.constant 2 : index
    %c4_281 = arith.constant 4 : index
    %c0_282 = arith.constant 0 : index
    %130 = vector.load %arg20[%c0_279, %c2_280, %c4_281, %c0_282] : memref<2x4x8x16xf32, #tpu.memory_space<vmem>>, vector<2x1x1x16xf32>
    %131 = vector.shape_cast %130 : vector<2x1x1x16xf32> to vector<2x16xf32>
    %c0_283 = arith.constant 0 : index
    %c2_284 = arith.constant 2 : index
    %c5_285 = arith.constant 5 : index
    %c0_286 = arith.constant 0 : index
    %132 = vector.load %arg20[%c0_283, %c2_284, %c5_285, %c0_286] : memref<2x4x8x16xf32, #tpu.memory_space<vmem>>, vector<2x1x1x16xf32>
    %133 = vector.shape_cast %132 : vector<2x1x1x16xf32> to vector<2x16xf32>
    %134 = arith.maximumf %131, %133 : vector<2x16xf32>
    %c0_287 = arith.constant 0 : index
    %c160 = arith.constant 160 : index
    %135 = vector.load %arg21[%c0_287, %c160] : memref<2x256xf32, #tpu.memory_space<vmem>>, vector<2x16xf32>
    tpu.vector_store %arg21[%c0_287, %c160], %134 {strides = array<i32>} : memref<2x256xf32, #tpu.memory_space<vmem>>, vector<2x16xf32>,
    %c0_288 = arith.constant 0 : index
    %c2_289 = arith.constant 2 : index
    %c6_290 = arith.constant 6 : index
    %c0_291 = arith.constant 0 : index
    %136 = vector.load %arg20[%c0_288, %c2_289, %c6_290, %c0_291] : memref<2x4x8x16xf32, #tpu.memory_space<vmem>>, vector<2x1x1x16xf32>
    %137 = vector.shape_cast %136 : vector<2x1x1x16xf32> to vector<2x16xf32>
    %c0_292 = arith.constant 0 : index
    %c2_293 = arith.constant 2 : index
    %c7_294 = arith.constant 7 : index
    %c0_295 = arith.constant 0 : index
    %138 = vector.load %arg20[%c0_292, %c2_293, %c7_294, %c0_295] : memref<2x4x8x16xf32, #tpu.memory_space<vmem>>, vector<2x1x1x16xf32>
    %139 = vector.shape_cast %138 : vector<2x1x1x16xf32> to vector<2x16xf32>
    %140 = arith.maximumf %137, %139 : vector<2x16xf32>
    %c0_296 = arith.constant 0 : index
    %c176 = arith.constant 176 : index
    %141 = vector.load %arg21[%c0_296, %c176] : memref<2x256xf32, #tpu.memory_space<vmem>>, vector<2x16xf32>
    tpu.vector_store %arg21[%c0_296, %c176], %140 {strides = array<i32>} : memref<2x256xf32, #tpu.memory_space<vmem>>, vector<2x16xf32>,
    %c0_297 = arith.constant 0 : index
    %c3_298 = arith.constant 3 : index
    %c0_299 = arith.constant 0 : index
    %c0_300 = arith.constant 0 : index
    %142 = vector.load %arg20[%c0_297, %c3_298, %c0_299, %c0_300] : memref<2x4x8x16xf32, #tpu.memory_space<vmem>>, vector<2x1x1x16xf32>
    %143 = vector.shape_cast %142 : vector<2x1x1x16xf32> to vector<2x16xf32>
    %c0_301 = arith.constant 0 : index
    %c3_302 = arith.constant 3 : index
    %c1_303 = arith.constant 1 : index
    %c0_304 = arith.constant 0 : index
    %144 = vector.load %arg20[%c0_301, %c3_302, %c1_303, %c0_304] : memref<2x4x8x16xf32, #tpu.memory_space<vmem>>, vector<2x1x1x16xf32>
    %145 = vector.shape_cast %144 : vector<2x1x1x16xf32> to vector<2x16xf32>
    %146 = arith.maximumf %143, %145 : vector<2x16xf32>
    %c0_305 = arith.constant 0 : index
    %c192 = arith.constant 192 : index
    %147 = vector.load %arg21[%c0_305, %c192] : memref<2x256xf32, #tpu.memory_space<vmem>>, vector<2x16xf32>
    tpu.vector_store %arg21[%c0_305, %c192], %146 {strides = array<i32>} : memref<2x256xf32, #tpu.memory_space<vmem>>, vector<2x16xf32>,
    %c0_306 = arith.constant 0 : index
    %c3_307 = arith.constant 3 : index
    %c2_308 = arith.constant 2 : index
    %c0_309 = arith.constant 0 : index
    %148 = vector.load %arg20[%c0_306, %c3_307, %c2_308, %c0_309] : memref<2x4x8x16xf32, #tpu.memory_space<vmem>>, vector<2x1x1x16xf32>
    %149 = vector.shape_cast %148 : vector<2x1x1x16xf32> to vector<2x16xf32>
    %c0_310 = arith.constant 0 : index
    %c3_311 = arith.constant 3 : index
    %c3_312 = arith.constant 3 : index
    %c0_313 = arith.constant 0 : index
    %150 = vector.load %arg20[%c0_310, %c3_311, %c3_312, %c0_313] : memref<2x4x8x16xf32, #tpu.memory_space<vmem>>, vector<2x1x1x16xf32>
    %151 = vector.shape_cast %150 : vector<2x1x1x16xf32> to vector<2x16xf32>
    %152 = arith.maximumf %149, %151 : vector<2x16xf32>
    %c0_314 = arith.constant 0 : index
    %c208 = arith.constant 208 : index
    %153 = vector.load %arg21[%c0_314, %c208] : memref<2x256xf32, #tpu.memory_space<vmem>>, vector<2x16xf32>
    tpu.vector_store %arg21[%c0_314, %c208], %152 {strides = array<i32>} : memref<2x256xf32, #tpu.memory_space<vmem>>, vector<2x16xf32>,
    %c0_315 = arith.constant 0 : index
    %c3_316 = arith.constant 3 : index
    %c4_317 = arith.constant 4 : index
    %c0_318 = arith.constant 0 : index
    %154 = vector.load %arg20[%c0_315, %c3_316, %c4_317, %c0_318] : memref<2x4x8x16xf32, #tpu.memory_space<vmem>>, vector<2x1x1x16xf32>
    %155 = vector.shape_cast %154 : vector<2x1x1x16xf32> to vector<2x16xf32>
    %c0_319 = arith.constant 0 : index
    %c3_320 = arith.constant 3 : index
    %c5_321 = arith.constant 5 : index
    %c0_322 = arith.constant 0 : index
    %156 = vector.load %arg20[%c0_319, %c3_320, %c5_321, %c0_322] : memref<2x4x8x16xf32, #tpu.memory_space<vmem>>, vector<2x1x1x16xf32>
    %157 = vector.shape_cast %156 : vector<2x1x1x16xf32> to vector<2x16xf32>
    %158 = arith.maximumf %155, %157 : vector<2x16xf32>
    %c0_323 = arith.constant 0 : index
    %c224 = arith.constant 224 : index
    %159 = vector.load %arg21[%c0_323, %c224] : memref<2x256xf32, #tpu.memory_space<vmem>>, vector<2x16xf32>
    tpu.vector_store %arg21[%c0_323, %c224], %158 {strides = array<i32>} : memref<2x256xf32, #tpu.memory_space<vmem>>, vector<2x16xf32>,
    %c0_324 = arith.constant 0 : index
    %c3_325 = arith.constant 3 : index
    %c6_326 = arith.constant 6 : index
    %c0_327 = arith.constant 0 : index
    %160 = vector.load %arg20[%c0_324, %c3_325, %c6_326, %c0_327] : memref<2x4x8x16xf32, #tpu.memory_space<vmem>>, vector<2x1x1x16xf32>
    %161 = vector.shape_cast %160 : vector<2x1x1x16xf32> to vector<2x16xf32>
    %c0_328 = arith.constant 0 : index
    %c3_329 = arith.constant 3 : index
    %c7_330 = arith.constant 7 : index
    %c0_331 = arith.constant 0 : index
    %162 = vector.load %arg20[%c0_328, %c3_329, %c7_330, %c0_331] : memref<2x4x8x16xf32, #tpu.memory_space<vmem>>, vector<2x1x1x16xf32>
    %163 = vector.shape_cast %162 : vector<2x1x1x16xf32> to vector<2x16xf32>
    %164 = arith.maximumf %161, %163 : vector<2x16xf32>
    %c0_332 = arith.constant 0 : index
    %c240 = arith.constant 240 : index
    %165 = vector.load %arg21[%c0_332, %c240] : memref<2x256xf32, #tpu.memory_space<vmem>>, vector<2x16xf32>
    tpu.vector_store %arg21[%c0_332, %c240], %164 {strides = array<i32>} : memref<2x256xf32, #tpu.memory_space<vmem>>, vector<2x16xf32>,
    %c0_333 = arith.constant 0 : index
    %c0_334 = arith.constant 0 : index
    %166 = vector.load %arg21[%c0_333, %c0_334] : memref<2x256xf32, #tpu.memory_space<vmem>>, vector<2x256xf32>
    %c0_335 = arith.constant 0 : index
    %c0_336 = arith.constant 0 : index
    %167 = vector.load %arg5[%c0_335, %c0_336] : memref<256x64xf32, #tpu.memory_space<vmem>>, vector<256x64xf32>
    %cst_337 = arith.constant dense<0.000000e+00> : vector<2x64xf32>
    %168 = tpu.matmul %166, %167, %cst_337 {dimension_numbers = #tpu.dot_dimension_numbers<[1], [0], [0], [1], [0, 0, 1, 1], [], []>} : vector<2x256xf32>, vector<256x64xf32>, vector<2x64xf32> -> vector<2x64xf32>
    %c0_338 = arith.constant 0 : index
    %c0_339 = arith.constant 0 : index
    %169 = vector.load %arg6[%c0_338, %c0_339] : memref<1x64xf32, #tpu.memory_space<vmem>>, vector<1x64xf32>
    %170 = vector.broadcast %169 : vector<1x64xf32> to vector<2x64xf32>
    %171 = arith.addf %168, %170 : vector<2x64xf32>
    %cst_340 = arith.constant 0.000000e+00 : f32
    %172 = vector.broadcast %cst_340 : f32 to vector<2x64xf32>
    %173 = arith.maximumf %171, %172 : vector<2x64xf32>
    %c0_341 = arith.constant 0 : index
    %c0_342 = arith.constant 0 : index
    %174 = vector.load %arg7[%c0_341, %c0_342] : memref<64x64xf32, #tpu.memory_space<vmem>>, vector<64x64xf32>
    %cst_343 = arith.constant dense<0.000000e+00> : vector<2x64xf32>
    %175 = tpu.matmul %173, %174, %cst_343 {dimension_numbers = #tpu.dot_dimension_numbers<[1], [0], [0], [1], [0, 0, 1, 1], [], []>} : vector<2x64xf32>, vector<64x64xf32>, vector<2x64xf32> -> vector<2x64xf32>
    %c0_344 = arith.constant 0 : index
    %c0_345 = arith.constant 0 : index
    %176 = vector.load %arg8[%c0_344, %c0_345] : memref<1x64xf32, #tpu.memory_space<vmem>>, vector<1x64xf32>
    %177 = vector.broadcast %176 : vector<1x64xf32> to vector<2x64xf32>
    %178 = arith.addf %175, %177 : vector<2x64xf32>
    %cst_346 = arith.constant 0.000000e+00 : f32
    %179 = vector.broadcast %cst_346 : f32 to vector<2x64xf32>
    %180 = arith.maximumf %178, %179 : vector<2x64xf32>
    %c0_347 = arith.constant 0 : index
    %c0_348 = arith.constant 0 : index
    %181 = vector.load %arg9[%c0_347, %c0_348] : memref<64x32xf32, #tpu.memory_space<vmem>>, vector<64x32xf32>
    %cst_349 = arith.constant dense<0.000000e+00> : vector<2x32xf32>
    %182 = tpu.matmul %180, %181, %cst_349 {dimension_numbers = #tpu.dot_dimension_numbers<[1], [0], [0], [1], [0, 0, 1, 1], [], []>} : vector<2x64xf32>, vector<64x32xf32>, vector<2x32xf32> -> vector<2x32xf32>
    %c0_350 = arith.constant 0 : index
    %c0_351 = arith.constant 0 : index
    %183 = vector.load %arg10[%c0_350, %c0_351] : memref<1x32xf32, #tpu.memory_space<vmem>>, vector<1x32xf32>
    %184 = vector.broadcast %183 : vector<1x32xf32> to vector<2x32xf32>
    %185 = arith.addf %182, %184 : vector<2x32xf32>
    %c0_352 = arith.constant 0 : index
    %c0_353 = arith.constant 0 : index
    %186 = vector.load %arg13[%c0_352, %c0_353] : memref<2x32xf32, #tpu.memory_space<vmem>>, vector<2x32xf32>
    tpu.vector_store %arg13[%c0_352, %c0_353], %185 {strides = array<i32>} : memref<2x32xf32, #tpu.memory_space<vmem>>, vector<2x32xf32>,
    %c0_354 = arith.constant 0 : index
    %c0_355 = arith.constant 0 : index
    %187 = vector.load %arg11[%c0_354, %c0_355] : memref<32x10xf32, #tpu.memory_space<vmem>>, vector<32x10xf32>
    %cst_356 = arith.constant dense<0.000000e+00> : vector<2x10xf32>
    %188 = tpu.matmul %185, %187, %cst_356 {dimension_numbers = #tpu.dot_dimension_numbers<[1], [0], [0], [1], [0, 0, 1, 1], [], []>} : vector<2x32xf32>, vector<32x10xf32>, vector<2x10xf32> -> vector<2x10xf32>
    %c0_357 = arith.constant 0 : index
    %c0_358 = arith.constant 0 : index
    %189 = vector.load %arg12[%c0_357, %c0_358] : memref<1x10xf32, #tpu.memory_space<vmem>>, vector<1x10xf32>
    %190 = vector.broadcast %189 : vector<1x10xf32> to vector<2x10xf32>
    %191 = arith.addf %188, %190 : vector<2x10xf32>
    %c0_359 = arith.constant 0 : index
    %c0_360 = arith.constant 0 : index
    %192 = vector.load %arg14[%c0_359, %c0_360] : memref<2x10xf32, #tpu.memory_space<vmem>>, vector<2x10xf32>
    tpu.vector_store %arg14[%c0_359, %c0_360], %191 {strides = array<i32>} : memref<2x10xf32, #tpu.memory_space<vmem>>, vector<2x10xf32>,
    return
  }
}

</mosaic_0001>

<bundles_post_ra>
// kernel: vggfc_forward.1
= control target key start
LH: loop header
LB: loop body
LE: loop exit
PB: predicated region body
PF: predicated region fallthrough
CT: control target
= control target key end

     0   :  { %20 = vsyncpa [#allocation10], 0  ;;  %vm48_vm0 = vcmask 31744   ;;  %vm51_vm1 = vcmask 25600   ;;  %v7044_v1 = vmov 0.0   ;;  %s10123_s0 = inlined_call_operand.vmem [shape: f32[2,16,16,4], index: 0, kind: input, shape index: {}]   ;;  %s10124_s1 = inlined_call_operand.vmem [shape: f32[36,8], index: 1, kind: input, shape index: {}]   ;;  %s10125_s2 = inlined_call_operand.vmem [shape: f32[1,8], index: 2, kind: input, shape index: {}]   ;;  %s10126_s3 = inlined_call_operand.vmem [shape: f32[72,16], index: 3, kind: input, shape index: {}]   ;;  %s10127_s4 = inlined_call_operand.vmem [shape: f32[1,16], index: 4, kind: input, shape index: {}]   ;;  %s10128_s5 = inlined_call_operand.vmem [shape: f32[256,64], index: 5, kind: input, shape index: {}]   ;;  %s10129_s6 = inlined_call_operand.vmem [shape: f32[1,64], index: 6, kind: input, shape index: {}]   ;;  %s10130_s7 = inlined_call_operand.vmem [shape: f32[64,64], index: 7, kind: input, shape index: {}]   ;;  %s10131_s8 = inlined_call_operand.vmem [shape: f32[1,64], index: 8, kind: input, shape index: {}]   ;;  %s10132_s9 = inlined_call_operand.vmem [shape: f32[64,32], index: 9, kind: input, shape index: {}]   ;;  %s10133_s10 = inlined_call_operand.vmem [shape: f32[1,32], index: 10, kind: input, shape index: {}]   ;;  %s10134_s11 = inlined_call_operand.vmem [shape: f32[32,10], index: 11, kind: input, shape index: {}]   ;;  %s10135_s12 = inlined_call_operand.vmem [shape: f32[1,10], index: 12, kind: input, shape index: {}]   ;;  %s10136_s13 = inlined_call_operand.hbm [shape: f32[2,32], index: 13, kind: output, shape index: {0}]   ;;  %s10137_s14 = inlined_call_operand.hbm [shape: f32[2,10], index: 14, kind: output, shape index: {1}]  }
   0x1   :  { %v7142_v0 = vld [vmem:[%s10123_s0] sm:$0xff]  ;;  %49 = vst.msk [vmem:[#allocation2] sm:$0xff] %vm48_vm0, %v7044_v1  ;;  %50 = vst.msk [vmem:[#allocation2 + $0x8] sm:$0xff] %vm48_vm0, %v7044_v1  ;;  %v159_v2 = vld [vmem:[%s10123_s0 + $0x8] sm:$0xff] }
   0x2   :  { %53 = vst.msk [vmem:[#allocation2 + $0x18] sm:$0xff] %vm48_vm0, %v7044_v1  ;;  %54 = vst.msk [vmem:[#allocation2 + $0x20] sm:$0xff] %vm48_vm0, %v7044_v1  ;;  %v160_v3 = vld [vmem:[%s10123_s0 + $0x10] sm:$0xff]  ;;  %v161_v4 = vld [vmem:[%s10123_s0 + $0x18] sm:$0xff] }
   0x3   :  { %56 = vst.msk [vmem:[#allocation2 + $0x30] sm:$0xff] %vm48_vm0, %v7044_v1  ;;  %57 = vst.msk [vmem:[#allocation2 + $0x38] sm:$0xff] %vm48_vm0, %v7044_v1  ;;  %v162_v5 = vld [vmem:[%s10123_s0 + $0x20] sm:$0xff]  ;;  %v163_v6 = vld [vmem:[%s10123_s0 + $0x28] sm:$0xff] }
   0x4   :  { %59 = vst.msk [vmem:[#allocation2 + $0x48] sm:$0xff] %vm48_vm0, %v7044_v1  ;;  %60 = vst.msk [vmem:[#allocation2 + $0x50] sm:$0xff] %vm48_vm0, %v7044_v1  ;;  %v164_v7 = vld [vmem:[%s10123_s0 + $0x30] sm:$0xff]  ;;  %v165_v8 = vld [vmem:[%s10123_s0 + $0x38] sm:$0xff] }
   0x5   :  { %62 = vst.msk [vmem:[#allocation2 + $0x60] sm:$0xff] %vm48_vm0, %v7044_v1  ;;  %63 = vst.msk [vmem:[#allocation2 + $0x68] sm:$0xff] %vm48_vm0, %v7044_v1  ;;  %v166_v9 = vld [vmem:[%s10123_s0 + $0x40] sm:$0xff]  ;;  %v167_v10 = vld [vmem:[%s10123_s0 + $0x48] sm:$0xff] }
   0x6   :  { %65 = vst.msk [vmem:[#allocation2 + $0x78] sm:$0xff] %vm48_vm0, %v7044_v1  ;;  %66 = vst.msk [vmem:[#allocation2 + $0x80] sm:$0xff] %vm48_vm0, %v7044_v1 }
   0x7   :  { %68 = vst.msk [vmem:[#allocation2 + $0x90] sm:$0xff] %vm48_vm0, %v7044_v1  ;;  %69 = vst.msk [vmem:[#allocation2 + $0x98] sm:$0xff] %vm48_vm0, %v7044_v1 }
   0x8   :  { %71 = vst.msk [vmem:[#allocation2 + $0xa8] sm:$0xff] %vm48_vm0, %v7044_v1  ;;  %72 = vst.msk [vmem:[#allocation2 + $0xb0] sm:$0xff] %vm48_vm0, %v7044_v1 }
   0x9   :  { %74 = vst.msk [vmem:[#allocation2 + $0xc0] sm:$0xff] %vm48_vm0, %v7044_v1  ;;  %75 = vst.msk [vmem:[#allocation2 + $0xc8] sm:$0xff] %vm48_vm0, %v7044_v1 }
   0xa   :  { %77 = vst.msk [vmem:[#allocation2 + $0xd8] sm:$0xff] %vm48_vm0, %v7044_v1  ;;  %78 = vst.msk [vmem:[#allocation2 + $0xe0] sm:$0xff] %vm48_vm0, %v7044_v1 }
   0xb   :  { %80 = vst.msk [vmem:[#allocation2 + $0xf0] sm:$0xff] %vm48_vm0, %v7044_v1  ;;  %81 = vst.msk [vmem:[#allocation2 + $0xf8] sm:$0xff] %vm48_vm0, %v7044_v1 }
   0xc   :  { %83 = vst.msk [vmem:[#allocation2 + $0x108] sm:$0xff] %vm48_vm0, %v7044_v1  ;;  %84 = vst.msk [vmem:[#allocation2 + $0x110] sm:$0xff] %vm48_vm0, %v7044_v1 }
   0xd   :  { %86 = vst.msk [vmem:[#allocation2 + $0x120] sm:$0xff] %vm48_vm0, %v7044_v1  ;;  %87 = vst.msk [vmem:[#allocation2 + $0x128] sm:$0xff] %vm48_vm0, %v7044_v1 }
   0xe   :  { %89 = vst.msk [vmem:[#allocation2 + $0x138] sm:$0xff] %vm48_vm0, %v7044_v1  ;;  %90 = vst.msk [vmem:[#allocation2 + $0x140] sm:$0xff] %vm48_vm0, %v7044_v1 }
   0xf   :  { %92 = vst.msk [vmem:[#allocation2 + $0x150] sm:$0xff] %vm48_vm0, %v7044_v1  ;;  %93 = vst.msk [vmem:[#allocation2 + $0x158] sm:$0xff] %vm48_vm0, %v7044_v1 }
  0x10   :  { %95 = vst.msk [vmem:[#allocation2 + $0x168] sm:$0xff] %vm48_vm0, %v7044_v1  ;;  %96 = vst.msk [vmem:[#allocation2 + $0x170] sm:$0xff] %vm48_vm0, %v7044_v1 }
  0x11   :  { %98 = vst.msk [vmem:[#allocation2 + $0x180] sm:$0xff] %vm48_vm0, %v7044_v1  ;;  %99 = vst.msk [vmem:[#allocation2 + $0x188] sm:$0xff] %vm48_vm0, %v7044_v1 }
  0x12   :  { %101 = vst.msk [vmem:[#allocation2 + $0x198] sm:$0xff] %vm48_vm0, %v7044_v1  ;;  %102 = vst.msk [vmem:[#allocation2 + $0x1a0] sm:$0xff] %vm48_vm0, %v7044_v1 }
  0x13   :  { %104 = vst.msk [vmem:[#allocation2 + $0x1b0] sm:$0xff] %vm48_vm0, %v7044_v1  ;;  %105 = vst.msk [vmem:[#allocation2 + $0x1b8] sm:$0xff] %vm48_vm0, %v7044_v1 }
  0x14   :  { %107 = vst.msk [vmem:[#allocation2 + $0x1c8] sm:$0xff] %vm48_vm0, %v7044_v1  ;;  %108 = vst.msk [vmem:[#allocation2 + $0x1d0] sm:$0xff] %vm48_vm0, %v7044_v1 }
  0x15   :  { %110 = vst.msk [vmem:[#allocation2 + $0x1e0] sm:$0xff] %vm48_vm0, %v7044_v1  ;;  %111 = vst.msk [vmem:[#allocation2 + $0x1e8] sm:$0xff] %vm48_vm0, %v7044_v1 }
  0x16   :  { %113 = vst.msk [vmem:[#allocation2 + $0x1f8] sm:$0xff] %vm48_vm0, %v7044_v1  ;;  %114 = vst.msk [vmem:[#allocation2 + $0x200] sm:$0xff] %vm48_vm0, %v7044_v1 }
  0x17   :  { %116 = vst.msk [vmem:[#allocation2 + $0x210] sm:$0xff] %vm48_vm0, %v7044_v1  ;;  %117 = vst.msk [vmem:[#allocation2 + $0x218] sm:$0xff] %vm48_vm0, %v7044_v1 }
  0x18   :  { %119 = vst.msk [vmem:[#allocation2 + $0x228] sm:$0xff] %vm48_vm0, %v7044_v1  ;;  %120 = vst.msk [vmem:[#allocation2 + $0x230] sm:$0xff] %vm48_vm0, %v7044_v1 }
  0x19   :  { %122 = vst.msk [vmem:[#allocation2 + $0x240] sm:$0xff] %vm48_vm0, %v7044_v1  ;;  %123 = vst.msk [vmem:[#allocation2 + $0x248] sm:$0xff] %vm48_vm0, %v7044_v1 }
  0x1a   :  { %125 = vst.msk [vmem:[#allocation2 + $0x258] sm:$0xff] %vm48_vm0, %v7044_v1  ;;  %126 = vst.msk [vmem:[#allocation2 + $0x260] sm:$0xff] %vm48_vm0, %v7044_v1 }
  0x1b   :  { %128 = vst.msk [vmem:[#allocation2 + $0x270] sm:$0xff] %vm48_vm0, %v7044_v1  ;;  %129 = vst.msk [vmem:[#allocation2 + $0x278] sm:$0xff] %vm48_vm0, %v7044_v1 }
  0x1c   :  { %131 = vst.msk [vmem:[#allocation2 + $0x288] sm:$0xff] %vm48_vm0, %v7044_v1  ;;  %132 = vst.msk [vmem:[#allocation2 + $0x290] sm:$0xff] %vm48_vm0, %v7044_v1 }
  0x1d   :  { %134 = vst.msk [vmem:[#allocation2 + $0x2a0] sm:$0xff] %vm48_vm0, %v7044_v1  ;;  %135 = vst.msk [vmem:[#allocation2 + $0x2a8] sm:$0xff] %vm48_vm0, %v7044_v1 }
  0x1e   :  { %137 = vst.msk [vmem:[#allocation2 + $0x2b8] sm:$0xff] %vm48_vm0, %v7044_v1  ;;  %138 = vst.msk [vmem:[#allocation2 + $0x2c0] sm:$0xff] %vm48_vm0, %v7044_v1 }
  0x1f   :  { %140 = vst.msk [vmem:[#allocation2 + $0x2d0] sm:$0xff] %vm48_vm0, %v7044_v1  ;;  %141 = vst.msk [vmem:[#allocation2 + $0x2d8] sm:$0xff] %vm48_vm0, %v7044_v1 }
  0x20   :  { %143 = vst.msk [vmem:[#allocation2 + $0x2e8] sm:$0xff] %vm48_vm0, %v7044_v1  ;;  %144 = vst.msk [vmem:[#allocation2 + $0x2f0] sm:$0xff] %vm48_vm0, %v7044_v1 }
  0x21   :  { %146 = vst.msk [vmem:[#allocation2 + $0x300] sm:$0xff] %vm48_vm0, %v7044_v1  ;;  %147 = vst.msk [vmem:[#allocation2 + $0x308] sm:$0xff] %vm48_vm0, %v7044_v1 }
  0x22   :  { %149 = vst.msk [vmem:[#allocation2 + $0x318] sm:$0xff] %vm48_vm0, %v7044_v1  ;;  %150 = vst.msk [vmem:[#allocation2 + $0x320] sm:$0xff] %vm48_vm0, %v7044_v1 }
  0x23   :  { %152 = vst.msk [vmem:[#allocation2 + $0x330] sm:$0xff] %vm48_vm0, %v7044_v1  ;;  %153 = vst.msk [vmem:[#allocation2 + $0x338] sm:$0xff] %vm48_vm0, %v7044_v1 }
  0x24   :  { %155 = vst.msk [vmem:[#allocation2 + $0x348] sm:$0xff] %vm48_vm0, %v7044_v1  ;;  %156 = vst.msk [vmem:[#allocation2 + $0x350] sm:$0xff] %vm48_vm0, %v7044_v1 }
  0x25   :  { %52 = vst.msk [vmem:[#allocation2 + $0x10] sm:$0x3] %vm51_vm1, %v7044_v1  ;;  %55 = vst.msk [vmem:[#allocation2 + $0x28] sm:$0x3] %vm51_vm1, %v7044_v1 }
  0x26   :  { %58 = vst.msk [vmem:[#allocation2 + $0x40] sm:$0x3] %vm51_vm1, %v7044_v1  ;;  %61 = vst.msk [vmem:[#allocation2 + $0x58] sm:$0x3] %vm51_vm1, %v7044_v1 }
  0x27   :  { %64 = vst.msk [vmem:[#allocation2 + $0x70] sm:$0x3] %vm51_vm1, %v7044_v1  ;;  %67 = vst.msk [vmem:[#allocation2 + $0x88] sm:$0x3] %vm51_vm1, %v7044_v1 }
  0x28   :  { %70 = vst.msk [vmem:[#allocation2 + $0xa0] sm:$0x3] %vm51_vm1, %v7044_v1  ;;  %73 = vst.msk [vmem:[#allocation2 + $0xb8] sm:$0x3] %vm51_vm1, %v7044_v1 }
  0x29   :  { %76 = vst.msk [vmem:[#allocation2 + $0xd0] sm:$0x3] %vm51_vm1, %v7044_v1  ;;  %79 = vst.msk [vmem:[#allocation2 + $0xe8] sm:$0x3] %vm51_vm1, %v7044_v1 }
  0x2a   :  { %82 = vst.msk [vmem:[#allocation2 + $0x100] sm:$0x3] %vm51_vm1, %v7044_v1  ;;  %85 = vst.msk [vmem:[#allocation2 + $0x118] sm:$0x3] %vm51_vm1, %v7044_v1 }
  0x2b   :  { %88 = vst.msk [vmem:[#allocation2 + $0x130] sm:$0x3] %vm51_vm1, %v7044_v1  ;;  %91 = vst.msk [vmem:[#allocation2 + $0x148] sm:$0x3] %vm51_vm1, %v7044_v1 }
  0x2c   :  { %94 = vst.msk [vmem:[#allocation2 + $0x160] sm:$0x3] %vm51_vm1, %v7044_v1  ;;  %97 = vst.msk [vmem:[#allocation2 + $0x178] sm:$0x3] %vm51_vm1, %v7044_v1 }
  0x2d   :  { %100 = vst.msk [vmem:[#allocation2 + $0x190] sm:$0x3] %vm51_vm1, %v7044_v1  ;;  %103 = vst.msk [vmem:[#allocation2 + $0x1a8] sm:$0x3] %vm51_vm1, %v7044_v1 }
  0x2e   :  { %106 = vst.msk [vmem:[#allocation2 + $0x1c0] sm:$0x3] %vm51_vm1, %v7044_v1  ;;  %109 = vst.msk [vmem:[#allocation2 + $0x1d8] sm:$0x3] %vm51_vm1, %v7044_v1 }
  0x2f   :  { %112 = vst.msk [vmem:[#allocation2 + $0x1f0] sm:$0x3] %vm51_vm1, %v7044_v1  ;;  %115 = vst.msk [vmem:[#allocation2 + $0x208] sm:$0x3] %vm51_vm1, %v7044_v1 }
  0x30   :  { %118 = vst.msk [vmem:[#allocation2 + $0x220] sm:$0x3] %vm51_vm1, %v7044_v1  ;;  %121 = vst.msk [vmem:[#allocation2 + $0x238] sm:$0x3] %vm51_vm1, %v7044_v1 }
  0x31   :  { %124 = vst.msk [vmem:[#allocation2 + $0x250] sm:$0x3] %vm51_vm1, %v7044_v1  ;;  %127 = vst.msk [vmem:[#allocation2 + $0x268] sm:$0x3] %vm51_vm1, %v7044_v1 }
  0x32   :  { %130 = vst.msk [vmem:[#allocation2 + $0x280] sm:$0x3] %vm51_vm1, %v7044_v1  ;;  %133 = vst.msk [vmem:[#allocation2 + $0x298] sm:$0x3] %vm51_vm1, %v7044_v1 }
  0x33   :  { %136 = vst.msk [vmem:[#allocation2 + $0x2b0] sm:$0x3] %vm51_vm1, %v7044_v1  ;;  %139 = vst.msk [vmem:[#allocation2 + $0x2c8] sm:$0x3] %vm51_vm1, %v7044_v1 }
  0x34   :  { %142 = vst.msk [vmem:[#allocation2 + $0x2e0] sm:$0x3] %vm51_vm1, %v7044_v1  ;;  %145 = vst.msk [vmem:[#allocation2 + $0x2f8] sm:$0x3] %vm51_vm1, %v7044_v1 }
  0x35   :  { %148 = vst.msk [vmem:[#allocation2 + $0x310] sm:$0x3] %vm51_vm1, %v7044_v1  ;;  %151 = vst.msk [vmem:[#allocation2 + $0x328] sm:$0x3] %vm51_vm1, %v7044_v1 }
  0x36   :  { %154 = vst.msk [vmem:[#allocation2 + $0x340] sm:$0x3] %vm51_vm1, %v7044_v1  ;;  %157 = vst.msk [vmem:[#allocation2 + $0x358] sm:$0x3] %vm51_vm1, %v7044_v1 }
  0x37   :  { %223 = vst.msk [vmem:[#allocation2 + $0x19] sm:$0xff] %vm48_vm0, %v7142_v0  ;;  %224 = vst.msk [vmem:[#allocation2 + $0x21] sm:$0xff] %vm48_vm0, %v159_v2 }
  0x38   :  { %225 = vst.msk [vmem:[#allocation2 + $0x31] sm:$0xff] %vm48_vm0, %v160_v3  ;;  %226 = vst.msk [vmem:[#allocation2 + $0x39] sm:$0xff] %vm48_vm0, %v161_v4 }
  0x39   :  { %227 = vst.msk [vmem:[#allocation2 + $0x49] sm:$0xff] %vm48_vm0, %v162_v5  ;;  %228 = vst.msk [vmem:[#allocation2 + $0x51] sm:$0xff] %vm48_vm0, %v163_v6 }
  0x3a   :  { %229 = vst.msk [vmem:[#allocation2 + $0x61] sm:$0xff] %vm48_vm0, %v164_v7  ;;  %230 = vst.msk [vmem:[#allocation2 + $0x69] sm:$0xff] %vm48_vm0, %v165_v8 }
  0x3b   :  { %231 = vst.msk [vmem:[#allocation2 + $0x79] sm:$0xff] %vm48_vm0, %v166_v9  ;;  %232 = vst.msk [vmem:[#allocation2 + $0x81] sm:$0xff] %vm48_vm0, %v167_v10 }
  0x3c   :  { %21 = vsyncpa [#allocation12], 0  ;;  %v800_v11 = vld [vmem:[#allocation2 + $0x2] sm:$0xff]  ;;  %s7045_s17 = smov 8   ;;  %s7046_s18 = smov 4   ;;  %v801_v15 = vld [vmem:[#allocation2 + $0xa] sm:$0xff] }
  0x3d   :  { %v415_v12 = vld [vmem:[#allocation2 + $0x1] sm:$0xff]  ;;  %928 = vrot.lane.b32.xlu1 %v800_v11, %s7045_s17  ;;  %v416_v16 = vld [vmem:[#allocation2 + $0x9] sm:$0xff]  ;;  %s7047_s19 = smov 12   ;;  %s7048_s20 = smov 16   ;;  %v169_v33 = vld [vmem:[%s10123_s0 + $0x58] sm:$0xff]  ;;  %vm3765_vm2 = vcmask 1043456  }
  0x3e   :  { %543 = vrot.lane.b32.xlu0 %v415_v12, %s7046_s18  ;;  %v1186_v13 = vld [vmem:[#allocation2 + $0x20] sm:$0xff]  ;;  %v1185_v14 = vld [vmem:[#allocation2 + $0x18] sm:$0xff]  ;;  %v288_v24 = vld [vmem:[#allocation2 + $0x8] sm:$0xff]  ;;  %s7049_s23 = smov 20   ;;  %s7050_s26 = smov 24   ;;  %234 = vst.msk [vmem:[#allocation2 + $0x99] sm:$0xff] %vm48_vm0, %v169_v33 }
  0x3f   :  { %353 = vst.msk [vmem:[#allocation3 + $0x10] sm:$0xff] %vm48_vm0, %v1185_v14  ;;  %354 = vst.msk [vmem:[#allocation3 + $0x18] sm:$0xff] %vm48_vm0, %v1186_v13  ;;  %v2341_v17 = vld [vmem:[#allocation2 + $0x30] sm:$0xff]  ;;  %v2342_v18 = vld [vmem:[#allocation2 + $0x38] sm:$0xff]  ;;  %s7051_s27 = smov 28   ;;  %s7052_s25 = smov 32  }
  0x40   :  { %355 = vst.msk [vmem:[#allocation3 + $0x20] sm:$0xff] %vm48_vm0, %v2341_v17  ;;  %v7405_v19 = vld [vmem:[#allocation2 + $0x48] sm:$0xff]  ;;  %356 = vst.msk [vmem:[#allocation3 + $0x28] sm:$0xff] %vm48_vm0, %v2342_v18  ;;  %v7408_v20 = vld [vmem:[#allocation2 + $0x50] sm:$0xff]  ;;  %vm735_vm3 = vcmask 64544   ;;  %vm1120_vm4 = vcmask 97344  }
  0x41   :  { %930 = vrot.lane.b32.xlu1 %v801_v15, %s7045_s17  ;;  %357 = vst.msk [vmem:[#allocation3 + $0x30] sm:$0xff] %vm48_vm0, %v7405_v19  ;;  %v7412_v21 = vld [vmem:[#allocation2 + $0x60] sm:$0xff]  ;;  %358 = vst.msk [vmem:[#allocation3 + $0x38] sm:$0xff] %vm48_vm0, %v7408_v20  ;;  %v7416_v22 = vld [vmem:[#allocation2 + $0x68] sm:$0xff]  ;;  %vm1505_vm5 = vcmask 130144   ;;  %vm1890_vm6 = vcmask 162944  }
  0x42   :  { %545 = vrot.lane.b32.xlu0 %v416_v16, %s7046_s18  ;;  %359 = vst.msk [vmem:[#allocation3 + $0x40] sm:$0xff] %vm48_vm0, %v7412_v21  ;;  %v287_v23 = vld [vmem:[#allocation2] sm:$0xff]  ;;  %360 = vst.msk [vmem:[#allocation3 + $0x48] sm:$0xff] %vm48_vm0, %v7416_v22  ;;  %v7426_v26 = vld [vmem:[#allocation2 + $0x78] sm:$0xff]  ;;  %vm2275_vm7 = vcmask 195744   ;;  %vm2661_vm8 = vcmask 228544  }
  0x43   :  { %v417_v25 = vld [vmem:[#allocation2 + $0x19] sm:$0xff]  ;;  %351 = vst.msk [vmem:[#allocation3] sm:$0xff] %vm48_vm0, %v287_v23  ;;  %352 = vst.msk [vmem:[#allocation3 + $0x8] sm:$0xff] %vm48_vm0, %v288_v24  ;;  %v1571_v29 = vld [vmem:[#allocation2 + $0x21] sm:$0xff]  ;;  %vm3046_vm9 = vcmask 261344   ;;  %vm3431_vm10 = vcmask 294144  }
  0x44   :  { %v7428_v27 = vld [vmem:[#allocation2 + $0x80] sm:$0xff]  ;;  %361 = vst.msk [vmem:[#allocation3 + $0x50] sm:$0xff] %vm48_vm0, %v7426_v26  ;;  %v168_v30 = vld [vmem:[%s10123_s0 + $0x50] sm:$0xff]  ;;  %v3563_v37 = vld [vmem:[%s10124_s1 + $0x18] sm:$0xff]  ;;  %vm3572_vm11 = vcmask 293888   ;;  %vm4218_vm12 = vcmask 64512  }
  0x45   :  { %1315 = vrot.lane.b32.xlu1 %v1186_v13, %s7047_s19  ;;  %362 = vst.msk [vmem:[#allocation3 + $0x58] sm:$0xff] %vm48_vm0, %v7428_v27  ;;  %v1955_v28 = vld [vmem:[#allocation2 + $0x1a] sm:$0xff]  ;;  %233 = vst.msk [vmem:[#allocation2 + $0x91] sm:$0xff] %vm48_vm0, %v168_v30  ;;  %v1956_v31 = vld [vmem:[#allocation2 + $0x22] sm:$0xff]  ;;  %vm4427_vm13 = vcmask 58368   ;;  %s7055_s28 = smov 56  }
  0x46   :  { %1313 = vrot.lane.b32.xlu0 %v1185_v14, %s7047_s19  ;;  %v2726_v34 = vld [vmem:[#allocation2 + $0x31] sm:$0xff]  ;;  %v3564_v36 = vld [vmem:[%s10124_s1 + $0x20] sm:$0xf]  ;;  %v3561_v41 = vld [vmem:[%s10124_s1 + $0x8] sm:$0xff]  ;;  %4426 = vst.msk [vmem:[#allocation5] sm:$0xff] %vm4218_vm12, %v7044_v1  ;;  %vm4596_vm14 = vcmask 130112  }
  0x47   :  { %6769 = vmatprep.subr.msk.mxu0 %vm3765_vm2, %v3564_v36  ;;  %6966 = vmatprep.subr.msk.mxu1 %vm3765_vm2, %v3564_v36  ;;  %v3562_v38 = vld [vmem:[%s10124_s1 + $0x10] sm:$0xff]  ;;  %v2727_v40 = vld [vmem:[#allocation2 + $0x39] sm:$0xff]  ;;  %v171_v46 = vld [vmem:[%s10123_s0 + $0x68] sm:$0xff]  ;;  %4429 = vst.msk [vmem:[#allocation5 + $0x10] sm:$0xff] %vm4218_vm12, %v7044_v1  ;;  %vm4693_vm15 = vcmask 195712   ;;  %vm4887_vm1 = vcmask 326912  }
  0x48   :  { %6770 = vmatpush3.msk.msra.mxu0 %vm3765_vm2, %v3564_v36  ;;  %6971 = vmatpush3.msk.msra.mxu1 %vm3765_vm2, %v3564_v36  ;;  %v3111_v39 = vld [vmem:[#allocation2 + $0x32] sm:$0xff]  ;;  %v3560_v42 = vld [vmem:[%s10124_s1] sm:$0xff]  ;;  %236 = vst.msk [vmem:[#allocation2 + $0xb1] sm:$0xff] %vm48_vm0, %v171_v46  ;;  %v2728_v47 = vld [vmem:[#allocation2 + $0x49] sm:$0xff]  ;;  %s7056_s1 = smov 64   ;;  %vm4984_vm2 = vcmask 392512  }
  0x49   :  { %547 = vrot.lane.b32.xlu1 %v417_v25, %s7046_s18  ;;  %6771 = vmatprep.subr.mxu0 %v3563_v37  ;;  %v3112_v43 = vld [vmem:[#allocation2 + $0x3a] sm:$0xff]  ;;  %v3113_v49 = vld [vmem:[#allocation2 + $0x4a] sm:$0xff]  ;;  %v3114_v51 = vld [vmem:[#allocation2 + $0x52] sm:$0xff]  ;;  %4431 = vst.msk [vmem:[#allocation5 + $0x20] sm:$0xff] %vm4218_vm12, %v7044_v1  ;;  %s7062_s15 = smov [#allocation9]  }
  0x4a   :  { %1698 = vrot.lane.b32.xlu0 %v417_v25, %s7048_s20  ;;  %6967 = vmatprep.subr.mxu1 %v3563_v37  ;;  %v170_v44 = vld [vmem:[%s10123_s0 + $0x60] sm:$0xff]  ;;  %v2729_v50 = vld [vmem:[#allocation2 + $0x51] sm:$0xff]  ;;  %v2731_v58 = vld [vmem:[#allocation2 + $0x69] sm:$0xff]  ;;  %4433 = vst.msk [vmem:[#allocation5 + $0x30] sm:$0xff] %vm4218_vm12, %v7044_v1 }
  0x4b   :  { %6772 = vmatpush3.msra.mxu0 %v3563_v37  ;;  %6972 = vmatpush3.msra.mxu1 %v3563_v37  ;;  %235 = vst.msk [vmem:[#allocation2 + $0xa9] sm:$0xff] %vm48_vm0, %v170_v44  ;;  %v172_v52 = vld [vmem:[%s10123_s0 + $0x70] sm:$0xff]  ;;  %v173_v54 = vld [vmem:[%s10123_s0 + $0x78] sm:$0xff]  ;;  %v2730_v55 = vld [vmem:[#allocation2 + $0x61] sm:$0xff] }
  0x4c   :  { %v7444_v32 = vld [vmem:[#allocation2 + $0x90] sm:$0xff]  ;;  %v7456_v35 = vld [vmem:[#allocation2 + $0x98] sm:$0xff]  ;;  %6773 = vmatprep.subr.mxu0 %v3562_v38  ;;  %6968 = vmatprep.subr.mxu1 %v3562_v38  ;;  %237 = vst.msk [vmem:[#allocation2 + $0xc1] sm:$0xff] %vm48_vm0, %v172_v52  ;;  %238 = vst.msk [vmem:[#allocation2 + $0xc9] sm:$0xff] %vm48_vm0, %v173_v54 }
  0x4d   :  { %2083 = vrot.lane.b32.xlu1 %v1955_v28, %s7049_s23  ;;  %363 = vst.msk [vmem:[#allocation3 + $0x60] sm:$0xff] %vm48_vm0, %v7444_v32  ;;  %364 = vst.msk [vmem:[#allocation3 + $0x68] sm:$0xff] %vm48_vm0, %v7456_v35  ;;  %6774 = vmatpush3.msra.mxu0 %v3562_v38  ;;  %v3115_v57 = vld [vmem:[#allocation2 + $0x62] sm:$0xff]  ;;  %v3116_v59 = vld [vmem:[#allocation2 + $0x6a] sm:$0xff] }
  0x4e   :  { %1700 = vrot.lane.b32.xlu0 %v1571_v29, %s7048_s20  ;;  %6973 = vmatpush3.msra.mxu1 %v3562_v38  ;;  %v174_v60 = vld [vmem:[%s10123_s0 + $0x80] sm:$0xff]  ;;  %v175_v3 = vld [vmem:[%s10123_s0 + $0x88] sm:$0xff]  ;;  %v2734_v30 = vld [vmem:[#allocation2 + $0x91] sm:$0xff]  ;;  %4435 = vst.msk [vmem:[#allocation5 + $0x40] sm:$0xff] %vm4218_vm12, %v7044_v1 }
  0x4f   :  { %6775 = vmatprep.subr.mxu0 %v3561_v41  ;;  %6969 = vmatprep.subr.mxu1 %v3561_v41  ;;  %239 = vst.msk [vmem:[#allocation2 + $0xd9] sm:$0xff] %vm48_vm0, %v174_v60  ;;  %240 = vst.msk [vmem:[#allocation2 + $0xe1] sm:$0xff] %vm48_vm0, %v175_v3  ;;  %v2732_v6 = vld [vmem:[#allocation2 + $0x79] sm:$0xff]  ;;  %v2733_v13 = vld [vmem:[#allocation2 + $0x81] sm:$0xff] }
  0x50   :  { %6776 = vmatpush3.msra.mxu0 %v3561_v41  ;;  %6974 = vmatpush3.msra.mxu1 %v3561_v41  ;;  %v3117_v12 = vld [vmem:[#allocation2 + $0x7a] sm:$0xff]  ;;  %v3119_v38 = vld [vmem:[#allocation2 + $0x92] sm:$0xff]  ;;  %4437 = vst.msk [vmem:[#allocation5 + $0x50] sm:$0xff] %vm4218_vm12, %v7044_v1  ;;  %4439 = vst.msk [vmem:[#allocation5 + $0x60] sm:$0xff] %vm4218_vm12, %v7044_v1 }
  0x51   :  { %932 = vrot.lane.b32.xlu1 %v1955_v28, %s7045_s17  ;;  %6777 = vmatprep.subr.mxu0 %v3560_v42  ;;  %4441 = vst.msk [vmem:[#allocation5 + $0x70] sm:$0xff] %vm4218_vm12, %v7044_v1  ;;  %4443 = vst.msk [vmem:[#allocation5 + $0x80] sm:$0xff] %vm4218_vm12, %v7044_v1 }
  0x52   :  { %549 = vrot.lane.b32.xlu0 %v1571_v29, %s7046_s18  ;;  %6970 = vmatprep.subr.mxu1 %v3560_v42  ;;  %v7491_v45 = vld [vmem:[#allocation2 + $0xa8] sm:$0xff]  ;;  %v7505_v48 = vld [vmem:[#allocation2 + $0xb0] sm:$0xff]  ;;  %4445 = vst.msk [vmem:[#allocation5 + $0x90] sm:$0xff] %vm4218_vm12, %v7044_v1  ;;  %4447 = vst.msk [vmem:[#allocation5 + $0xa0] sm:$0xff] %vm4218_vm12, %v7044_v1 }
  0x53   :  { %6778 = vmatpush3.msra.mxu0 %v3560_v42  ;;  %6975 = vmatpush3.msra.mxu1 %v3560_v42  ;;  %365 = vst.msk [vmem:[#allocation3 + $0x70] sm:$0xff] %vm48_vm0, %v7491_v45  ;;  %366 = vst.msk [vmem:[#allocation3 + $0x78] sm:$0xff] %vm48_vm0, %v7505_v48  ;;  %v7527_v53 = vld [vmem:[#allocation2 + $0xc0] sm:$0xff]  ;;  %v7541_v56 = vld [vmem:[#allocation2 + $0xc8] sm:$0xff] }
  0x54   :  { %367 = vst.msk [vmem:[#allocation3 + $0x80] sm:$0xff] %vm48_vm0, %v7527_v53  ;;  %368 = vst.msk [vmem:[#allocation3 + $0x88] sm:$0xff] %vm48_vm0, %v7541_v56  ;;  %v2736_v60 = vld [vmem:[#allocation2 + $0xa9] sm:$0xff] }
  0x55   :  { %2469 = vrot.lane.b32.xlu1 %v2341_v17, %s7050_s26  ;;  %4449 = vst.msk [vmem:[#allocation5 + $0xb0] sm:$0xff] %vm4218_vm12, %v7044_v1  ;;  %4451 = vst.msk [vmem:[#allocation5 + $0xc0] sm:$0xff] %vm4218_vm12, %v7044_v1 }
  0x56   :  { %2085 = vrot.lane.b32.xlu0 %v1956_v31, %s7049_s23  ;;  %v7566_v2 = vld [vmem:[#allocation2 + $0xd8] sm:$0xff]  ;;  %v7585_v9 = vld [vmem:[#allocation2 + $0xe0] sm:$0xff]  ;;  %4453 = vst.msk [vmem:[#allocation5 + $0xd0] sm:$0xff] %vm4218_vm12, %v7044_v1  ;;  %4455 = vst.msk [vmem:[#allocation5 + $0xe0] sm:$0xff] %vm4218_vm12, %v7044_v1 }
  0x57   :  { %369 = vst.msk [vmem:[#allocation3 + $0x90] sm:$0xff] %vm48_vm0, %v7566_v2  ;;  %370 = vst.msk [vmem:[#allocation3 + $0x98] sm:$0xff] %vm48_vm0, %v7585_v9 }
  0x58   :  { %4457 = vst.msk [vmem:[#allocation5 + $0xf0] sm:$0xff] %vm4218_vm12, %v7044_v1  ;;  %4459 = vst.msk [vmem:[#allocation5 + $0x100] sm:$0xff] %vm4218_vm12, %v7044_v1 }
  0x59   :  { %1317 = vrot.lane.b32.xlu1 %v2341_v17, %s7047_s19  ;;  %4461 = vst.msk [vmem:[#allocation5 + $0x110] sm:$0xff] %vm4218_vm12, %v7044_v1  ;;  %4463 = vst.msk [vmem:[#allocation5 + $0x120] sm:$0xff] %vm4218_vm12, %v7044_v1 }
  0x5a   :  { %934 = vrot.lane.b32.xlu0 %v1956_v31, %s7045_s17  ;;  %4465 = vst.msk [vmem:[#allocation5 + $0x130] sm:$0xff] %vm4218_vm12, %v7044_v1 }
  0x5b   :  { %4428 = vst.msk [vmem:[#allocation5 + $0x8] sm:$0x3] %vm4427_vm13, %v7044_v1  ;;  %4430 = vst.msk [vmem:[#allocation5 + $0x18] sm:$0x3] %vm4427_vm13, %v7044_v1 }
  0x5c   :  { %4432 = vst.msk [vmem:[#allocation5 + $0x28] sm:$0x3] %vm4427_vm13, %v7044_v1  ;;  %4434 = vst.msk [vmem:[#allocation5 + $0x38] sm:$0x3] %vm4427_vm13, %v7044_v1 }
  0x5d   :  { %2854 = vrot.lane.b32.xlu1 %v2726_v34, %s7051_s27  ;;  %4436 = vst.msk [vmem:[#allocation5 + $0x48] sm:$0x3] %vm4427_vm13, %v7044_v1  ;;  %4438 = vst.msk [vmem:[#allocation5 + $0x58] sm:$0x3] %vm4427_vm13, %v7044_v1 }
  0x5e   :  { %2471 = vrot.lane.b32.xlu0 %v2342_v18, %s7050_s26  ;;  %4440 = vst.msk [vmem:[#allocation5 + $0x68] sm:$0x3] %vm4427_vm13, %v7044_v1  ;;  %4442 = vst.msk [vmem:[#allocation5 + $0x78] sm:$0x3] %vm4427_vm13, %v7044_v1 }
  0x5f   :  { %4444 = vst.msk [vmem:[#allocation5 + $0x88] sm:$0x3] %vm4427_vm13, %v7044_v1  ;;  %4446 = vst.msk [vmem:[#allocation5 + $0x98] sm:$0x3] %vm4427_vm13, %v7044_v1 }
  0x60   :  { %4448 = vst.msk [vmem:[#allocation5 + $0xa8] sm:$0x3] %vm4427_vm13, %v7044_v1  ;;  %4450 = vst.msk [vmem:[#allocation5 + $0xb8] sm:$0x3] %vm4427_vm13, %v7044_v1 }
  0x61   :  { %1702 = vrot.lane.b32.xlu1 %v2726_v34, %s7048_s20  ;;  %4452 = vst.msk [vmem:[#allocation5 + $0xc8] sm:$0x3] %vm4427_vm13, %v7044_v1  ;;  %4454 = vst.msk [vmem:[#allocation5 + $0xd8] sm:$0x3] %vm4427_vm13, %v7044_v1 }
  0x62   :  { %1319 = vrot.lane.b32.xlu0 %v2342_v18, %s7047_s19  ;;  %v3118_v18 = vld [vmem:[#allocation2 + $0x82] sm:$0xff]  ;;  %4456 = vst.msk [vmem:[#allocation5 + $0xe8] sm:$0x3] %vm4427_vm13, %v7044_v1  ;;  %4458 = vst.msk [vmem:[#allocation5 + $0xf8] sm:$0x3] %vm4427_vm13, %v7044_v1 }
  0x63   :  { %4460 = vst.msk [vmem:[#allocation5 + $0x108] sm:$0x3] %vm4427_vm13, %v7044_v1  ;;  %4462 = vst.msk [vmem:[#allocation5 + $0x118] sm:$0x3] %vm4427_vm13, %v7044_v1 }
  0x64   :  { %4464 = vst.msk [vmem:[#allocation5 + $0x128] sm:$0x3] %vm4427_vm13, %v7044_v1  ;;  %4466 = vst.msk [vmem:[#allocation5 + $0x138] sm:$0x3] %vm4427_vm13, %v7044_v1  ;;  %vm5638_vm13 = vcmask 255104  }
  0x65   :  { %3239 = vrot.lane.b32.xlu1 %v3111_v39, %s7052_s25 }
  0x66   :  { %2856 = vrot.lane.b32.xlu0 %v2727_v40, %s7051_s27 }
  0x69   :  { %1704 = vrot.lane.b32.xlu1 %v2727_v40, %s7048_s20 }
  0x6a   :  { %551 = vrot.lane.b32.xlu0 %v2726_v34, %s7046_s18 }
  0x6d   :  { %3241 = vrot.lane.b32.xlu1 %v3112_v43, %s7052_s25 }
  0x6e   :  { %2087 = vrot.lane.b32.xlu0 %v3111_v39, %s7049_s23 }
  0x71   :  { %936 = vrot.lane.b32.xlu1 %v3111_v39, %s7045_s17  ;;  %v2735_v39 = vld [vmem:[#allocation2 + $0x99] sm:$0xff] }
  0x72   :  { %553 = vrot.lane.b32.xlu0 %v2727_v40, %s7046_s18 }
  0x75   :  { %2473 = vrot.lane.b32.xlu1 %v7405_v19, %s7050_s26 }
  0x76   :  { %2089 = vrot.lane.b32.xlu0 %v3112_v43, %s7049_s23 }
  0x79   :  { %1321 = vrot.lane.b32.xlu1 %v7405_v19, %s7047_s19 }
  0x7a   :  { %938 = vrot.lane.b32.xlu0 %v3112_v43, %s7045_s17 }
  0x7d   :  { %2858 = vrot.lane.b32.xlu1 %v2728_v47, %s7051_s27 }
  0x7e   :  { %2475 = vrot.lane.b32.xlu0 %v7408_v20, %s7050_s26 }
  0x81   :  { %1706 = vrot.lane.b32.xlu1 %v2728_v47, %s7048_s20 }
  0x82   :  { %1323 = vrot.lane.b32.xlu0 %v7408_v20, %s7047_s19 }
  0x85   :  { %3243 = vrot.lane.b32.xlu1 %v3113_v49, %s7052_s25 }
  0x86   :  { %2860 = vrot.lane.b32.xlu0 %v2729_v50, %s7051_s27 }
  0x89   :  { %1708 = vrot.lane.b32.xlu1 %v2729_v50, %s7048_s20 }
  0x8a   :  { %555 = vrot.lane.b32.xlu0 %v2728_v47, %s7046_s18 }
  0x8d   :  { %3245 = vrot.lane.b32.xlu1 %v3114_v51, %s7052_s25 }
  0x8e   :  { %2091 = vrot.lane.b32.xlu0 %v3113_v49, %s7049_s23 }
  0x91   :  { %940 = vrot.lane.b32.xlu1 %v3113_v49, %s7045_s17  ;;  %v178_v49 = vld [vmem:[%s10123_s0 + $0xa0] sm:$0xff] }
  0x92   :  { %557 = vrot.lane.b32.xlu0 %v2729_v50, %s7046_s18  ;;  %243 = vst.msk [vmem:[#allocation2 + $0x109] sm:$0xff] %vm48_vm0, %v178_v49 }
  0x95   :  { %2477 = vrot.lane.b32.xlu1 %v7412_v21, %s7050_s26 }
  0x96   :  { %2093 = vrot.lane.b32.xlu0 %v3114_v51, %s7049_s23 }
  0x99   :  { %1325 = vrot.lane.b32.xlu1 %v7412_v21, %s7047_s19  ;;  %v176_v21 = vld [vmem:[%s10123_s0 + $0x90] sm:$0xff] }
  0x9a   :  { %942 = vrot.lane.b32.xlu0 %v3114_v51, %s7045_s17  ;;  %241 = vst.msk [vmem:[#allocation2 + $0xf1] sm:$0xff] %vm48_vm0, %v176_v21 }
  0x9d   :  { %2862 = vrot.lane.b32.xlu1 %v2730_v55, %s7051_s27 }
  0x9e   :  { %2479 = vrot.lane.b32.xlu0 %v7416_v22, %s7050_s26 }
  0xa1   :  { %1710 = vrot.lane.b32.xlu1 %v2730_v55, %s7048_s20 }
  0xa2   :  { %1327 = vrot.lane.b32.xlu0 %v7416_v22, %s7047_s19 }
  0xa5   :  { %3247 = vrot.lane.b32.xlu1 %v3115_v57, %s7052_s25 }
  0xa6   :  { %2864 = vrot.lane.b32.xlu0 %v2731_v58, %s7051_s27 }
  0xa9   :  { %1712 = vrot.lane.b32.xlu1 %v2731_v58, %s7048_s20 }
  0xaa   :  { %559 = vrot.lane.b32.xlu0 %v2730_v55, %s7046_s18  ;;  %v7673_v55 = vld [vmem:[#allocation2 + $0x108] sm:$0xff] }
  0xab   :  { %373 = vst.msk [vmem:[#allocation3 + $0xb0] sm:$0xff] %vm48_vm0, %v7673_v55 }
  0xad   :  { %3249 = vrot.lane.b32.xlu1 %v3116_v59, %s7052_s25 }
  0xae   :  { %2095 = vrot.lane.b32.xlu0 %v3115_v57, %s7049_s23 }
  0xaf   :  { %v929_v61 = vpop.permute.xlu1 %928 }
  0xb0   :  { %v544_v62 = vpop.permute.xlu0 %543 }
  0xb1   :  { %736 = vst.msk [vmem:[#allocation3] sm:$0xff] %vm735_vm3, %v544_v62  ;;  %944 = vrot.lane.b32.xlu1 %v3115_v57, %s7045_s17  ;;  %v179_v57 = vld [vmem:[%s10123_s0 + $0xa8] sm:$0xff] }
  0xb2   :  { %561 = vrot.lane.b32.xlu0 %v2731_v58, %s7046_s18  ;;  %1121 = vst.msk [vmem:[#allocation3] sm:$0xff] %vm1120_vm4, %v929_v61 }
  0xb3   :  { %v931_v63 = vpop.permute.xlu1 %930  ;;  %244 = vst.msk [vmem:[#allocation2 + $0x111] sm:$0xff] %vm48_vm0, %v179_v57 }
  0xb4   :  { %v546_v0 = vpop.permute.xlu0 %545 }
  0xb5   :  { %737 = vst.msk [vmem:[#allocation3 + $0x8] sm:$0xff] %vm735_vm3, %v546_v0  ;;  %2481 = vrot.lane.b32.xlu1 %v7426_v26, %s7050_s26 }
  0xb6   :  { %2097 = vrot.lane.b32.xlu0 %v3116_v59, %s7049_s23  ;;  %1122 = vst.msk [vmem:[#allocation3 + $0x8] sm:$0xff] %vm1120_vm4, %v931_v63 }
  0xb7   :  { %v1316_v4 = vpop.permute.xlu1 %1315 }
  0xb8   :  { %v1314_v5 = vpop.permute.xlu0 %1313  ;;  %1507 = vst.msk [vmem:[#allocation3 + $0x8] sm:$0xff] %vm1505_vm5, %v1316_v4  ;;  %v3121_v4 = vld [vmem:[#allocation2 + $0xaa] sm:$0xff] }
  0xb9   :  { %1506 = vst.msk [vmem:[#allocation3] sm:$0xff] %vm1505_vm5, %v1314_v5  ;;  %1329 = vrot.lane.b32.xlu1 %v7426_v26, %s7047_s19  ;;  %v7619_v26 = vld [vmem:[#allocation2 + $0xf0] sm:$0xff] }
  0xba   :  { %946 = vrot.lane.b32.xlu0 %v3116_v59, %s7045_s17  ;;  %371 = vst.msk [vmem:[#allocation3 + $0xa0] sm:$0xff] %vm48_vm0, %v7619_v26  ;;  %v7691_v63 = vld [vmem:[#allocation2 + $0x110] sm:$0xff] }
  0xbb   :  { %v548_v7 = vpop.permute.xlu1 %547  ;;  %374 = vst.msk [vmem:[#allocation3 + $0xb8] sm:$0xff] %vm48_vm0, %v7691_v63  ;;  %v2737_v5 = vld [vmem:[#allocation2 + $0xb1] sm:$0xff] }
  0xbc   :  { %v1699_v8 = vpop.permute.xlu0 %1698  ;;  %738 = vst.msk [vmem:[#allocation3 + $0x10] sm:$0xff] %vm735_vm3, %v548_v7 }
  0xbd   :  { %1891 = vst.msk [vmem:[#allocation3] sm:$0xff] %vm1890_vm6, %v1699_v8  ;;  %2866 = vrot.lane.b32.xlu1 %v2732_v6, %s7051_s27 }
  0xbe   :  { %2483 = vrot.lane.b32.xlu0 %v7428_v27, %s7050_s26 }
  0xbf   :  { %v2084_v10 = vpop.permute.xlu1 %2083 }
  0xc0   :  { %v1701_v11 = vpop.permute.xlu0 %1700  ;;  %2276 = vst.msk [vmem:[#allocation3] sm:$0xff] %vm2275_vm7, %v2084_v10 }
  0xc1   :  { %1892 = vst.msk [vmem:[#allocation3 + $0x8] sm:$0xff] %vm1890_vm6, %v1701_v11  ;;  %1714 = vrot.lane.b32.xlu1 %v2732_v6, %s7048_s20 }
  0xc2   :  { %1331 = vrot.lane.b32.xlu0 %v7428_v27, %s7047_s19  ;;  %v177_v27 = vld [vmem:[%s10123_s0 + $0x98] sm:$0xff] }
  0xc3   :  { %v933_v14 = vpop.permute.xlu1 %932  ;;  %242 = vst.msk [vmem:[#allocation2 + $0xf9] sm:$0xff] %vm48_vm0, %v177_v27 }
  0xc4   :  { %v550_v15 = vpop.permute.xlu0 %549  ;;  %1123 = vst.msk [vmem:[#allocation3 + $0x10] sm:$0xff] %vm1120_vm4, %v933_v14  ;;  %v180_v14 = vld [vmem:[%s10123_s0 + $0xb0] sm:$0xff] }
  0xc5   :  { %739 = vst.msk [vmem:[#allocation3 + $0x18] sm:$0xff] %vm735_vm3, %v550_v15  ;;  %3251 = vrot.lane.b32.xlu1 %v3117_v12, %s7052_s25 }
  0xc6   :  { %2868 = vrot.lane.b32.xlu0 %v2733_v13, %s7051_s27  ;;  %245 = vst.msk [vmem:[#allocation2 + $0x121] sm:$0xff] %vm48_vm0, %v180_v14 }
  0xc7   :  { %v2470_v16 = vpop.permute.xlu1 %2469 }
  0xc8   :  { %v2086_v17 = vpop.permute.xlu0 %2085  ;;  %2662 = vst.msk [vmem:[#allocation3] sm:$0xff] %vm2661_vm8, %v2470_v16 }
  0xc9   :  { %2277 = vst.msk [vmem:[#allocation3 + $0x8] sm:$0xff] %vm2275_vm7, %v2086_v17  ;;  %1716 = vrot.lane.b32.xlu1 %v2733_v13, %s7048_s20 }
  0xca   :  { %563 = vrot.lane.b32.xlu0 %v2732_v6, %s7046_s18  ;;  %v7637_v34 = vld [vmem:[#allocation2 + $0xf8] sm:$0xff] }
  0xcb   :  { %v1318_v19 = vpop.permute.xlu1 %1317  ;;  %372 = vst.msk [vmem:[#allocation3 + $0xa8] sm:$0xff] %vm48_vm0, %v7637_v34 }
  0xcc   :  { %v935_v20 = vpop.permute.xlu0 %934  ;;  %1508 = vst.msk [vmem:[#allocation3 + $0x10] sm:$0xff] %vm1505_vm5, %v1318_v19 }
  0xcd   :  { %1124 = vst.msk [vmem:[#allocation3 + $0x18] sm:$0xff] %vm1120_vm4, %v935_v20  ;;  %3253 = vrot.lane.b32.xlu1 %v3118_v18, %s7052_s25  ;;  %v7727_v19 = vld [vmem:[#allocation2 + $0x120] sm:$0xff]  ;;  %v181_v20 = vld [vmem:[%s10123_s0 + $0xb8] sm:$0xff] }
  0xce   :  { %2099 = vrot.lane.b32.xlu0 %v3117_v12, %s7049_s23  ;;  %246 = vst.msk [vmem:[#allocation2 + $0x129] sm:$0xff] %vm48_vm0, %v181_v20  ;;  %375 = vst.msk [vmem:[#allocation3 + $0xc0] sm:$0xff] %vm48_vm0, %v7727_v19 }
  0xcf   :  { %v2855_v22 = vpop.permute.xlu1 %2854 }
  0xd0   :  { %v2472_v23 = vpop.permute.xlu0 %2471  ;;  %3047 = vst.msk [vmem:[#allocation3] sm:$0xff] %vm3046_vm9, %v2855_v22 }
  0xd1   :  { %2663 = vst.msk [vmem:[#allocation3 + $0x8] sm:$0xff] %vm2661_vm8, %v2472_v23  ;;  %948 = vrot.lane.b32.xlu1 %v3117_v12, %s7045_s17  ;;  %v2738_v23 = vld [vmem:[#allocation2 + $0xc1] sm:$0xff] }
  0xd2   :  { %565 = vrot.lane.b32.xlu0 %v2733_v13, %s7046_s18 }
  0xd3   :  { %v1703_v24 = vpop.permute.xlu1 %1702 }
  0xd4   :  { %v1320_v25 = vpop.permute.xlu0 %1319  ;;  %1893 = vst.msk [vmem:[#allocation3 + $0x10] sm:$0xff] %vm1890_vm6, %v1703_v24 }
  0xd5   :  { %1509 = vst.msk [vmem:[#allocation3 + $0x18] sm:$0xff] %vm1505_vm5, %v1320_v25  ;;  %2485 = vrot.lane.b32.xlu1 %v7444_v32, %s7050_s26  ;;  %v7745_v27 = vld [vmem:[#allocation2 + $0x128] sm:$0xff] }
  0xd6   :  { %2101 = vrot.lane.b32.xlu0 %v3118_v18, %s7049_s23  ;;  %376 = vst.msk [vmem:[#allocation3 + $0xc8] sm:$0xff] %vm48_vm0, %v7745_v27 }
  0xd7   :  { %v3240_v28 = vpop.permute.xlu1 %3239 }
  0xd8   :  { %v2857_v29 = vpop.permute.xlu0 %2856  ;;  %3432 = vst.msk [vmem:[#allocation3] sm:$0xff] %vm3431_vm10, %v3240_v28 }
  0xd9   :  { %3048 = vst.msk [vmem:[#allocation3 + $0x8] sm:$0xff] %vm3046_vm9, %v2857_v29  ;;  %1333 = vrot.lane.b32.xlu1 %v7444_v32, %s7047_s19 }
  0xda   :  { %950 = vrot.lane.b32.xlu0 %v3118_v18, %s7045_s17 }
  0xdb   :  { %v1705_v31 = vpop.permute.xlu1 %1704 }
  0xdc   :  { %v552_v33 = vpop.permute.xlu0 %551  ;;  %1894 = vst.msk [vmem:[#allocation3 + $0x18] sm:$0xff] %vm1890_vm6, %v1705_v31  ;;  %v2739_v31 = vld [vmem:[#allocation2 + $0xc9] sm:$0xff] }
  0xdd   :  { %740 = vst.msk [vmem:[#allocation3 + $0x20] sm:$0xff] %vm735_vm3, %v552_v33  ;;  %2870 = vrot.lane.b32.xlu1 %v2734_v30, %s7051_s27 }
  0xde   :  { %2487 = vrot.lane.b32.xlu0 %v7456_v35, %s7050_s26 }
  0xdf   :  { %v3242_v32 = vpop.permute.xlu1 %3241  ;;  %v3496_v37 = vld [vmem:[#allocation3] sm:$0xff] }
  0xe0   :  { %v2088_v36 = vpop.permute.xlu0 %2087  ;;  %3433 = vst.msk [vmem:[#allocation3 + $0x8] sm:$0xff] %vm3431_vm10, %v3242_v32  ;;  %6779 = vmatprep.mubr.msk.f32.mxu0 %vm3572_vm11, %v3496_v37 }
  0xe1   :  { %2278 = vst.msk [vmem:[#allocation3 + $0x10] sm:$0xff] %vm2275_vm7, %v2088_v36  ;;  %1718 = vrot.lane.b32.xlu1 %v2734_v30, %s7048_s20 }
  0xe2   :  { %1335 = vrot.lane.b32.xlu0 %v7456_v35, %s7047_s19  ;;  %v3120_v35 = vld [vmem:[#allocation2 + $0x9a] sm:$0xff] }
  0xe3   :  { %v937_v40 = vpop.permute.xlu1 %936 }
  0xe4   :  { %v554_v41 = vpop.permute.xlu0 %553  ;;  %1125 = vst.msk [vmem:[#allocation3 + $0x20] sm:$0xff] %vm1120_vm4, %v937_v40 }
  0xe5   :  { %741 = vst.msk [vmem:[#allocation3 + $0x28] sm:$0xff] %vm735_vm3, %v554_v41  ;;  %3255 = vrot.lane.b32.xlu1 %v3119_v38, %s7052_s25  ;;  %v182_v41 = vld [vmem:[%s10123_s0 + $0xc0] sm:$0xff] }
  0xe6   :  { %2872 = vrot.lane.b32.xlu0 %v2735_v39, %s7051_s27  ;;  %247 = vst.msk [vmem:[#allocation2 + $0x139] sm:$0xff] %vm48_vm0, %v182_v41 }
  0xe7   :  { %v2474_v42 = vpop.permute.xlu1 %2473  ;;  %v3497_v44 = vld [vmem:[#allocation3 + $0x8] sm:$0xff] }
  0xe8   :  { %v2090_v43 = vpop.permute.xlu0 %2089  ;;  %2664 = vst.msk [vmem:[#allocation3 + $0x10] sm:$0xff] %vm2661_vm8, %v2474_v42  ;;  %6780 = vmatmul.mubr.msk.f32.vlgmr.msra.gmra.mxu0 %vm3572_vm11, %v3497_v44 }
  0xe9   :  { %2279 = vst.msk [vmem:[#allocation3 + $0x18] sm:$0xff] %vm2275_vm7, %v2090_v43  ;;  %1720 = vrot.lane.b32.xlu1 %v2735_v39, %s7048_s20 }
  0xea   :  { %567 = vrot.lane.b32.xlu0 %v2734_v30, %s7046_s18  ;;  %v3123_v30 = vld [vmem:[#allocation2 + $0xc2] sm:$0xff] }
  0xeb   :  { %v1322_v46 = vpop.permute.xlu1 %1321 }
  0xec   :  { %v939_v47 = vpop.permute.xlu0 %938  ;;  %1510 = vst.msk [vmem:[#allocation3 + $0x20] sm:$0xff] %vm1505_vm5, %v1322_v46 }
  0xed   :  { %1126 = vst.msk [vmem:[#allocation3 + $0x28] sm:$0xff] %vm1120_vm4, %v939_v47  ;;  %3257 = vrot.lane.b32.xlu1 %v3120_v35, %s7052_s25  ;;  %v7821_v46 = vld [vmem:[#allocation2 + $0x138] sm:$0xff]  ;;  %v183_v47 = vld [vmem:[%s10123_s0 + $0xc8] sm:$0xff] }
  0xee   :  { %2103 = vrot.lane.b32.xlu0 %v3119_v38, %s7049_s23  ;;  %248 = vst.msk [vmem:[#allocation2 + $0x141] sm:$0xff] %vm48_vm0, %v183_v47  ;;  %377 = vst.msk [vmem:[#allocation3 + $0xd0] sm:$0xff] %vm48_vm0, %v7821_v46 }
  0xef   :  { %v2859_v50 = vpop.permute.xlu1 %2858 }
  0xf0   :  { %v2476_v51 = vpop.permute.xlu0 %2475  ;;  %3049 = vst.msk [vmem:[#allocation3 + $0x10] sm:$0xff] %vm3046_vm9, %v2859_v50 }
  0xf1   :  { %2665 = vst.msk [vmem:[#allocation3 + $0x18] sm:$0xff] %vm2661_vm8, %v2476_v51  ;;  %952 = vrot.lane.b32.xlu1 %v3119_v38, %s7045_s17  ;;  %v2740_v51 = vld [vmem:[#allocation2 + $0xd9] sm:$0xff] }
  0xf2   :  { %569 = vrot.lane.b32.xlu0 %v2735_v39, %s7046_s18 }
  0xf3   :  { %v1707_v52 = vpop.permute.xlu1 %1706 }
  0xf4   :  { %v1324_v54 = vpop.permute.xlu0 %1323  ;;  %1895 = vst.msk [vmem:[#allocation3 + $0x20] sm:$0xff] %vm1890_vm6, %v1707_v52 }
  0xf5   :  { %1511 = vst.msk [vmem:[#allocation3 + $0x28] sm:$0xff] %vm1505_vm5, %v1324_v54  ;;  %2489 = vrot.lane.b32.xlu1 %v7491_v45, %s7050_s26  ;;  %v7839_v57 = vld [vmem:[#allocation2 + $0x140] sm:$0xff] }
  0xf6   :  { %2105 = vrot.lane.b32.xlu0 %v3120_v35, %s7049_s23  ;;  %378 = vst.msk [vmem:[#allocation3 + $0xd8] sm:$0xff] %vm48_vm0, %v7839_v57 }
  0xf7   :  { %v3244_v58 = vpop.permute.xlu1 %3243 }
  0xf8   :  { %v2861_v59 = vpop.permute.xlu0 %2860  ;;  %3434 = vst.msk [vmem:[#allocation3 + $0x10] sm:$0xff] %vm3431_vm10, %v3244_v58 }
  0xf9   :  { %3050 = vst.msk [vmem:[#allocation3 + $0x18] sm:$0xff] %vm3046_vm9, %v2861_v59  ;;  %1337 = vrot.lane.b32.xlu1 %v7491_v45, %s7047_s19 }
  0xfa   :  { %954 = vrot.lane.b32.xlu0 %v3120_v35, %s7045_s17 }
  0xfb   :  { %v1709_v61 = vpop.permute.xlu1 %1708 }
  0xfc   :  { %v556_v62 = vpop.permute.xlu0 %555  ;;  %1896 = vst.msk [vmem:[#allocation3 + $0x28] sm:$0xff] %vm1890_vm6, %v1709_v61  ;;  %v2741_v61 = vld [vmem:[#allocation2 + $0xe1] sm:$0xff] }
  0xfd   :  { %742 = vst.msk [vmem:[#allocation3 + $0x30] sm:$0xff] %vm735_vm3, %v556_v62  ;;  %2874 = vrot.lane.b32.xlu1 %v2736_v60, %s7051_s27 }
  0xfe   :  { %2491 = vrot.lane.b32.xlu0 %v7505_v48, %s7050_s26 }
  0xff   :  { %v3246_v45 = vpop.permute.xlu1 %3245  ;;  %v3498_v3 = vld [vmem:[#allocation3 + $0x10] sm:$0xff] }
 0x100   :  { %v2092_v0 = vpop.permute.xlu0 %2091  ;;  %3435 = vst.msk [vmem:[#allocation3 + $0x18] sm:$0xff] %vm3431_vm10, %v3246_v45  ;;  %6782 = vmatprep.mubr.msk.f32.mxu0 %vm3572_vm11, %v3498_v3 }
 0x101   :  { %2280 = vst.msk [vmem:[#allocation3 + $0x20] sm:$0xff] %vm2275_vm7, %v2092_v0  ;;  %1722 = vrot.lane.b32.xlu1 %v2736_v60, %s7048_s20 }
 0x102   :  { %1339 = vrot.lane.b32.xlu0 %v7505_v48, %s7047_s19  ;;  %v3122_v48 = vld [vmem:[#allocation2 + $0xb2] sm:$0xff] }
 0x103   :  { %v941_v6 = vpop.permute.xlu1 %940 }
 0x104   :  { %v558_v7 = vpop.permute.xlu0 %557  ;;  %1127 = vst.msk [vmem:[#allocation3 + $0x30] sm:$0xff] %vm1120_vm4, %v941_v6 }
 0x105   :  { %743 = vst.msk [vmem:[#allocation3 + $0x38] sm:$0xff] %vm735_vm3, %v558_v7  ;;  %3259 = vrot.lane.b32.xlu1 %v3121_v4, %s7052_s25  ;;  %v184_v7 = vld [vmem:[%s10123_s0 + $0xd0] sm:$0xff] }
 0x106   :  { %2876 = vrot.lane.b32.xlu0 %v2737_v5, %s7051_s27  ;;  %249 = vst.msk [vmem:[#allocation2 + $0x151] sm:$0xff] %vm48_vm0, %v184_v7 }
 0x107   :  { %v2478_v8 = vpop.permute.xlu1 %2477  ;;  %v3499_v11 = vld [vmem:[#allocation3 + $0x18] sm:$0xff] }
 0x108   :  { %v2094_v10 = vpop.permute.xlu0 %2093  ;;  %2666 = vst.msk [vmem:[#allocation3 + $0x20] sm:$0xff] %vm2661_vm8, %v2478_v8  ;;  %6783 = vmatmul.mubr.msk.f32.gmra.mxu0 %vm3572_vm11, %v3499_v11 }
 0x109   :  { %2281 = vst.msk [vmem:[#allocation3 + $0x28] sm:$0xff] %vm2275_vm7, %v2094_v10  ;;  %1724 = vrot.lane.b32.xlu1 %v2737_v5, %s7048_s20 }
 0x10a   :  { %571 = vrot.lane.b32.xlu0 %v2736_v60, %s7046_s18  ;;  %v3125_v60 = vld [vmem:[#allocation2 + $0xda] sm:$0xff] }
 0x10b   :  { %v1326_v12 = vpop.permute.xlu1 %1325 }
 0x10c   :  { %v943_v13 = vpop.permute.xlu0 %942  ;;  %1512 = vst.msk [vmem:[#allocation3 + $0x30] sm:$0xff] %vm1505_vm5, %v1326_v12 }
 0x10d   :  { %1128 = vst.msk [vmem:[#allocation3 + $0x38] sm:$0xff] %vm1120_vm4, %v943_v13  ;;  %3261 = vrot.lane.b32.xlu1 %v3122_v48, %s7052_s25  ;;  %v7875_v12 = vld [vmem:[#allocation2 + $0x150] sm:$0xff]  ;;  %v185_v13 = vld [vmem:[%s10123_s0 + $0xd8] sm:$0xff] }
 0x10e   :  { %2107 = vrot.lane.b32.xlu0 %v3121_v4, %s7049_s23  ;;  %250 = vst.msk [vmem:[#allocation2 + $0x159] sm:$0xff] %vm48_vm0, %v185_v13  ;;  %379 = vst.msk [vmem:[#allocation3 + $0xe0] sm:$0xff] %vm48_vm0, %v7875_v12 }
 0x10f   :  { %v2863_v15 = vpop.permute.xlu1 %2862 }
 0x110   :  { %v2480_v16 = vpop.permute.xlu0 %2479  ;;  %3051 = vst.msk [vmem:[#allocation3 + $0x20] sm:$0xff] %vm3046_vm9, %v2863_v15 }
 0x111   :  { %2667 = vst.msk [vmem:[#allocation3 + $0x28] sm:$0xff] %vm2661_vm8, %v2480_v16  ;;  %956 = vrot.lane.b32.xlu1 %v3121_v4, %s7045_s17  ;;  %v2742_v16 = vld [vmem:[#allocation2 + $0xf1] sm:$0xff] }
 0x112   :  { %573 = vrot.lane.b32.xlu0 %v2737_v5, %s7046_s18 }
 0x113   :  { %v1711_v17 = vpop.permute.xlu1 %1710 }
 0x114   :  { %v1328_v18 = vpop.permute.xlu0 %1327  ;;  %1897 = vst.msk [vmem:[#allocation3 + $0x30] sm:$0xff] %vm1890_vm6, %v1711_v17 }
 0x115   :  { %1513 = vst.msk [vmem:[#allocation3 + $0x38] sm:$0xff] %vm1505_vm5, %v1328_v18  ;;  %2493 = vrot.lane.b32.xlu1 %v7527_v53, %s7050_s26 }
 0x116   :  { %2109 = vrot.lane.b32.xlu0 %v3122_v48, %s7049_s23 }
 0x117   :  { %v3248_v21 = vpop.permute.xlu1 %3247 }
 0x118   :  { %v2865_v22 = vpop.permute.xlu0 %2864  ;;  %3436 = vst.msk [vmem:[#allocation3 + $0x20] sm:$0xff] %vm3431_vm10, %v3248_v21 }
 0x119   :  { %3052 = vst.msk [vmem:[#allocation3 + $0x28] sm:$0xff] %vm3046_vm9, %v2865_v22  ;;  %1341 = vrot.lane.b32.xlu1 %v7527_v53, %s7047_s19 }
 0x11a   :  { %958 = vrot.lane.b32.xlu0 %v3122_v48, %s7045_s17 }
 0x11b   :  { %v1713_v24 = vpop.permute.xlu1 %1712 }
 0x11c   :  { %v560_v25 = vpop.permute.xlu0 %559  ;;  %1898 = vst.msk [vmem:[#allocation3 + $0x38] sm:$0xff] %vm1890_vm6, %v1713_v24  ;;  %v2743_v24 = vld [vmem:[#allocation2 + $0xf9] sm:$0xff] }
 0x11d   :  { %744 = vst.msk [vmem:[#allocation3 + $0x40] sm:$0xff] %vm735_vm3, %v560_v25  ;;  %2878 = vrot.lane.b32.xlu1 %v2738_v23, %s7051_s27 }
 0x11e   :  { %2495 = vrot.lane.b32.xlu0 %v7541_v56, %s7050_s26 }
 0x11f   :  { %v3250_v53 = vpop.permute.xlu1 %3249  ;;  %v3500_v29 = vld [vmem:[#allocation3 + $0x20] sm:$0xff] }
 0x120   :  { %v2096_v28 = vpop.permute.xlu0 %2095  ;;  %3437 = vst.msk [vmem:[#allocation3 + $0x28] sm:$0xff] %vm3431_vm10, %v3250_v53  ;;  %6785 = vmatprep.mubr.msk.f32.mxu0 %vm3572_vm11, %v3500_v29 }
 0x121   :  { %2282 = vst.msk [vmem:[#allocation3 + $0x30] sm:$0xff] %vm2275_vm7, %v2096_v28  ;;  %1726 = vrot.lane.b32.xlu1 %v2738_v23, %s7048_s20 }
 0x122   :  { %1343 = vrot.lane.b32.xlu0 %v7541_v56, %s7047_s19  ;;  %v3124_v56 = vld [vmem:[#allocation2 + $0xca] sm:$0xff] }
 0x123   :  { %v945_v33 = vpop.permute.xlu1 %944 }
 0x124   :  { %v562_v32 = vpop.permute.xlu0 %561  ;;  %1129 = vst.msk [vmem:[#allocation3 + $0x40] sm:$0xff] %vm1120_vm4, %v945_v33 }
 0x125   :  { %745 = vst.msk [vmem:[#allocation3 + $0x48] sm:$0xff] %vm735_vm3, %v562_v32  ;;  %3263 = vrot.lane.b32.xlu1 %v3123_v30, %s7052_s25  ;;  %v186_v32 = vld [vmem:[%s10123_s0 + $0xe0] sm:$0xff] }
 0x126   :  { %2880 = vrot.lane.b32.xlu0 %v2739_v31, %s7051_s27  ;;  %251 = vst.msk [vmem:[#allocation2 + $0x169] sm:$0xff] %vm48_vm0, %v186_v32  ;;  %v2748_v32 = vld [vmem:[#allocation2 + $0x139] sm:$0xff] }
 0x127   :  { %v2482_v36 = vpop.permute.xlu1 %2481  ;;  %v3501_v38 = vld [vmem:[#allocation3 + $0x28] sm:$0xff] }
 0x128   :  { %v2098_v37 = vpop.permute.xlu0 %2097  ;;  %2668 = vst.msk [vmem:[#allocation3 + $0x30] sm:$0xff] %vm2661_vm8, %v2482_v36  ;;  %6786 = vmatmul.mubr.msk.f32.gmra.mxu0 %vm3572_vm11, %v3501_v38 }
 0x129   :  { %2283 = vst.msk [vmem:[#allocation3 + $0x38] sm:$0xff] %vm2275_vm7, %v2098_v37  ;;  %1728 = vrot.lane.b32.xlu1 %v2739_v31, %s7048_s20 }
 0x12a   :  { %575 = vrot.lane.b32.xlu0 %v2738_v23, %s7046_s18  ;;  %v3127_v23 = vld [vmem:[#allocation2 + $0xf2] sm:$0xff] }
 0x12b   :  { %v1330_v39 = vpop.permute.xlu1 %1329 }
 0x12c   :  { %v947_v40 = vpop.permute.xlu0 %946  ;;  %1514 = vst.msk [vmem:[#allocation3 + $0x40] sm:$0xff] %vm1505_vm5, %v1330_v39 }
 0x12d   :  { %1130 = vst.msk [vmem:[#allocation3 + $0x48] sm:$0xff] %vm1120_vm4, %v947_v40  ;;  %3265 = vrot.lane.b32.xlu1 %v3124_v56, %s7052_s25  ;;  %v7969_v39 = vld [vmem:[#allocation2 + $0x168] sm:$0xff] }
 0x12e   :  { %2111 = vrot.lane.b32.xlu0 %v3123_v30, %s7049_s23  ;;  %v187_v40 = vld [vmem:[%s10123_s0 + $0xe8] sm:$0xff]  ;;  %381 = vst.msk [vmem:[#allocation3 + $0xf0] sm:$0xff] %vm48_vm0, %v7969_v39 }
 0x12f   :  { %v2867_v42 = vpop.permute.xlu1 %2866  ;;  %252 = vst.msk [vmem:[#allocation2 + $0x171] sm:$0xff] %vm48_vm0, %v187_v40 }
 0x130   :  { %v2484_v43 = vpop.permute.xlu0 %2483  ;;  %3053 = vst.msk [vmem:[#allocation3 + $0x30] sm:$0xff] %vm3046_vm9, %v2867_v42 }
 0x131   :  { %2669 = vst.msk [vmem:[#allocation3 + $0x38] sm:$0xff] %vm2661_vm8, %v2484_v43  ;;  %960 = vrot.lane.b32.xlu1 %v3123_v30, %s7045_s17  ;;  %v2744_v43 = vld [vmem:[#allocation2 + $0x109] sm:$0xff] }
 0x132   :  { %577 = vrot.lane.b32.xlu0 %v2739_v31, %s7046_s18 }
 0x133   :  { %v1715_v44 = vpop.permute.xlu1 %1714 }
 0x134   :  { %v1332_v35 = vpop.permute.xlu0 %1331  ;;  %1899 = vst.msk [vmem:[#allocation3 + $0x40] sm:$0xff] %vm1890_vm6, %v1715_v44 }
 0x135   :  { %1515 = vst.msk [vmem:[#allocation3 + $0x48] sm:$0xff] %vm1505_vm5, %v1332_v35  ;;  %2497 = vrot.lane.b32.xlu1 %v7566_v2, %s7050_s26 }
 0x136   :  { %2113 = vrot.lane.b32.xlu0 %v3124_v56, %s7049_s23  ;;  %v7987_v47 = vld [vmem:[#allocation2 + $0x170] sm:$0xff] }
 0x137   :  { %v3252_v49 = vpop.permute.xlu1 %3251  ;;  %382 = vst.msk [vmem:[#allocation3 + $0xf8] sm:$0xff] %vm48_vm0, %v7987_v47 }
 0x138   :  { %v2869_v50 = vpop.permute.xlu0 %2868  ;;  %3438 = vst.msk [vmem:[#allocation3 + $0x30] sm:$0xff] %vm3431_vm10, %v3252_v49 }
 0x139   :  { %3054 = vst.msk [vmem:[#allocation3 + $0x38] sm:$0xff] %vm3046_vm9, %v2869_v50  ;;  %1345 = vrot.lane.b32.xlu1 %v7566_v2, %s7047_s19 }
 0x13a   :  { %962 = vrot.lane.b32.xlu0 %v3124_v56, %s7045_s17 }
 0x13b   :  { %v1717_v52 = vpop.permute.xlu1 %1716 }
 0x13c   :  { %v564_v54 = vpop.permute.xlu0 %563  ;;  %1900 = vst.msk [vmem:[#allocation3 + $0x48] sm:$0xff] %vm1890_vm6, %v1717_v52  ;;  %v2745_v52 = vld [vmem:[#allocation2 + $0x111] sm:$0xff] }
 0x13d   :  { %746 = vst.msk [vmem:[#allocation3 + $0x50] sm:$0xff] %vm735_vm3, %v564_v54  ;;  %2882 = vrot.lane.b32.xlu1 %v2740_v51, %s7051_s27 }
 0x13e   :  { %2499 = vrot.lane.b32.xlu0 %v7585_v9, %s7050_s26 }
 0x13f   :  { %v3254_v2 = vpop.permute.xlu1 %3253  ;;  %v3502_v59 = vld [vmem:[#allocation3 + $0x30] sm:$0xff] }
 0x140   :  { %v2100_v58 = vpop.permute.xlu0 %2099  ;;  %3439 = vst.msk [vmem:[#allocation3 + $0x38] sm:$0xff] %vm3431_vm10, %v3254_v2  ;;  %6788 = vmatprep.mubr.msk.f32.mxu0 %vm3572_vm11, %v3502_v59 }
 0x141   :  { %2284 = vst.msk [vmem:[#allocation3 + $0x40] sm:$0xff] %vm2275_vm7, %v2100_v58  ;;  %1730 = vrot.lane.b32.xlu1 %v2740_v51, %s7048_s20 }
 0x142   :  { %1347 = vrot.lane.b32.xlu0 %v7585_v9, %s7047_s19  ;;  %v3126_v9 = vld [vmem:[#allocation2 + $0xe2] sm:$0xff] }
 0x143   :  { %v949_v62 = vpop.permute.xlu1 %948 }
 0x144   :  { %v566_v45 = vpop.permute.xlu0 %565  ;;  %1131 = vst.msk [vmem:[#allocation3 + $0x50] sm:$0xff] %vm1120_vm4, %v949_v62 }
 0x145   :  { %747 = vst.msk [vmem:[#allocation3 + $0x58] sm:$0xff] %vm735_vm3, %v566_v45  ;;  %3267 = vrot.lane.b32.xlu1 %v3125_v60, %s7052_s25  ;;  %v188_v45 = vld [vmem:[%s10123_s0 + $0xf0] sm:$0xff] }
 0x146   :  { %2884 = vrot.lane.b32.xlu0 %v2741_v61, %s7051_s27  ;;  %253 = vst.msk [vmem:[#allocation2 + $0x181] sm:$0xff] %vm48_vm0, %v188_v45 }
 0x147   :  { %v2486_v0 = vpop.permute.xlu1 %2485  ;;  %v3503_v4 = vld [vmem:[#allocation3 + $0x38] sm:$0xff] }
 0x148   :  { %v2102_v3 = vpop.permute.xlu0 %2101  ;;  %2670 = vst.msk [vmem:[#allocation3 + $0x40] sm:$0xff] %vm2661_vm8, %v2486_v0  ;;  %6789 = vmatmul.mubr.msk.f32.gmra.mxu0 %vm3572_vm11, %v3503_v4 }
 0x149   :  { %2285 = vst.msk [vmem:[#allocation3 + $0x48] sm:$0xff] %vm2275_vm7, %v2102_v3  ;;  %1732 = vrot.lane.b32.xlu1 %v2741_v61, %s7048_s20 }
 0x14a   :  { %579 = vrot.lane.b32.xlu0 %v2740_v51, %s7046_s18  ;;  %v3129_v51 = vld [vmem:[#allocation2 + $0x10a] sm:$0xff] }
 0x14b   :  { %v1334_v5 = vpop.permute.xlu1 %1333 }
 0x14c   :  { %v951_v6 = vpop.permute.xlu0 %950  ;;  %1516 = vst.msk [vmem:[#allocation3 + $0x50] sm:$0xff] %vm1505_vm5, %v1334_v5  ;;  %v189_v5 = vld [vmem:[%s10123_s0 + $0xf8] sm:$0xff] }
 0x14d   :  { %1132 = vst.msk [vmem:[#allocation3 + $0x58] sm:$0xff] %vm1120_vm4, %v951_v6  ;;  %3269 = vrot.lane.b32.xlu1 %v3126_v9, %s7052_s25 }
 0x14e   :  { %2115 = vrot.lane.b32.xlu0 %v3125_v60, %s7049_s23  ;;  %254 = vst.msk [vmem:[#allocation2 + $0x189] sm:$0xff] %vm48_vm0, %v189_v5 }
 0x14f   :  { %v2871_v8 = vpop.permute.xlu1 %2870 }
 0x150   :  { %v2488_v10 = vpop.permute.xlu0 %2487  ;;  %3055 = vst.msk [vmem:[#allocation3 + $0x40] sm:$0xff] %vm3046_vm9, %v2871_v8  ;;  %v2746_v8 = vld [vmem:[#allocation2 + $0x121] sm:$0xff] }
 0x151   :  { %2671 = vst.msk [vmem:[#allocation3 + $0x48] sm:$0xff] %vm2661_vm8, %v2488_v10  ;;  %964 = vrot.lane.b32.xlu1 %v3125_v60, %s7045_s17 }
 0x152   :  { %581 = vrot.lane.b32.xlu0 %v2741_v61, %s7046_s18 }
 0x153   :  { %v1719_v11 = vpop.permute.xlu1 %1718 }
 0x154   :  { %v1336_v48 = vpop.permute.xlu0 %1335  ;;  %1901 = vst.msk [vmem:[#allocation3 + $0x50] sm:$0xff] %vm1890_vm6, %v1719_v11 }
 0x155   :  { %1517 = vst.msk [vmem:[#allocation3 + $0x58] sm:$0xff] %vm1505_vm5, %v1336_v48  ;;  %2501 = vrot.lane.b32.xlu1 %v7619_v26, %s7050_s26 }
 0x156   :  { %2117 = vrot.lane.b32.xlu0 %v3126_v9, %s7049_s23 }
 0x157   :  { %v3256_v14 = vpop.permute.xlu1 %3255 }
 0x158   :  { %v2873_v15 = vpop.permute.xlu0 %2872  ;;  %3440 = vst.msk [vmem:[#allocation3 + $0x40] sm:$0xff] %vm3431_vm10, %v3256_v14 }
 0x159   :  { %3056 = vst.msk [vmem:[#allocation3 + $0x48] sm:$0xff] %vm3046_vm9, %v2873_v15  ;;  %1349 = vrot.lane.b32.xlu1 %v7619_v26, %s7047_s19  ;;  %v7933_v26 = vld [vmem:[#allocation2 + $0x158] sm:$0xff]  ;;  %v2747_v15 = vld [vmem:[#allocation2 + $0x129] sm:$0xff] }
 0x15a   :  { %966 = vrot.lane.b32.xlu0 %v3126_v9, %s7045_s17  ;;  %380 = vst.msk [vmem:[#allocation3 + $0xe8] sm:$0xff] %vm48_vm0, %v7933_v26 }
 0x15b   :  { %v1721_v17 = vpop.permute.xlu1 %1720 }
 0x15c   :  { %v568_v18 = vpop.permute.xlu0 %567  ;;  %1902 = vst.msk [vmem:[#allocation3 + $0x58] sm:$0xff] %vm1890_vm6, %v1721_v17 }
 0x15d   :  { %748 = vst.msk [vmem:[#allocation3 + $0x60] sm:$0xff] %vm735_vm3, %v568_v18  ;;  %2886 = vrot.lane.b32.xlu1 %v2742_v16, %s7051_s27 }
 0x15e   :  { %2503 = vrot.lane.b32.xlu0 %v7637_v34, %s7050_s26 }
 0x15f   :  { %v3258_v20 = vpop.permute.xlu1 %3257  ;;  %v3504_v22 = vld [vmem:[#allocation3 + $0x40] sm:$0xff] }
 0x160   :  { %v2104_v21 = vpop.permute.xlu0 %2103  ;;  %3441 = vst.msk [vmem:[#allocation3 + $0x48] sm:$0xff] %vm3431_vm10, %v3258_v20  ;;  %6791 = vmatprep.mubr.msk.f32.mxu0 %vm3572_vm11, %v3504_v22 }
 0x161   :  { %2286 = vst.msk [vmem:[#allocation3 + $0x50] sm:$0xff] %vm2275_vm7, %v2104_v21  ;;  %1734 = vrot.lane.b32.xlu1 %v2742_v16, %s7048_s20 }
 0x162   :  { %1351 = vrot.lane.b32.xlu0 %v7637_v34, %s7047_s19  ;;  %v3128_v34 = vld [vmem:[#allocation2 + $0xfa] sm:$0xff] }
 0x163   :  { %v953_v25 = vpop.permute.xlu1 %952 }
 0x164   :  { %v570_v53 = vpop.permute.xlu0 %569  ;;  %1133 = vst.msk [vmem:[#allocation3 + $0x60] sm:$0xff] %vm1120_vm4, %v953_v25 }
 0x165   :  { %749 = vst.msk [vmem:[#allocation3 + $0x68] sm:$0xff] %vm735_vm3, %v570_v53  ;;  %3271 = vrot.lane.b32.xlu1 %v3127_v23, %s7052_s25  ;;  %v190_v53 = vld [vmem:[%s10123_s0 + $0x100] sm:$0xff] }
 0x166   :  { %2888 = vrot.lane.b32.xlu0 %v2743_v24, %s7051_s27  ;;  %255 = vst.msk [vmem:[#allocation2 + $0x1c9] sm:$0xff] %vm48_vm0, %v190_v53 }
 0x167   :  { %v2490_v28 = vpop.permute.xlu1 %2489  ;;  %v3505_v30 = vld [vmem:[#allocation3 + $0x48] sm:$0xff] }
 0x168   :  { %v2106_v29 = vpop.permute.xlu0 %2105  ;;  %2672 = vst.msk [vmem:[#allocation3 + $0x50] sm:$0xff] %vm2661_vm8, %v2490_v28  ;;  %6792 = vmatmul.mubr.msk.f32.gmra.mxu0 %vm3572_vm11, %v3505_v30 }
 0x169   :  { %2287 = vst.msk [vmem:[#allocation3 + $0x58] sm:$0xff] %vm2275_vm7, %v2106_v29  ;;  %1736 = vrot.lane.b32.xlu1 %v2743_v24, %s7048_s20 }
 0x16a   :  { %583 = vrot.lane.b32.xlu0 %v2742_v16, %s7046_s18 }
 0x16b   :  { %v1338_v31 = vpop.permute.xlu1 %1337 }
 0x16c   :  { %v955_v33 = vpop.permute.xlu0 %954  ;;  %1518 = vst.msk [vmem:[#allocation3 + $0x60] sm:$0xff] %vm1505_vm5, %v1338_v31 }
 0x16d   :  { %1134 = vst.msk [vmem:[#allocation3 + $0x68] sm:$0xff] %vm1120_vm4, %v955_v33  ;;  %3273 = vrot.lane.b32.xlu1 %v3128_v34, %s7052_s25  ;;  %v8074_v31 = vld [vmem:[#allocation2 + $0x1c8] sm:$0xff] }
 0x16e   :  { %2119 = vrot.lane.b32.xlu0 %v3127_v23, %s7049_s23  ;;  %v191_v33 = vld [vmem:[%s10123_s0 + $0x108] sm:$0xff]  ;;  %385 = vst.msk [vmem:[#allocation3 + $0x110] sm:$0xff] %vm48_vm0, %v8074_v31 }
 0x16f   :  { %v2875_v36 = vpop.permute.xlu1 %2874  ;;  %256 = vst.msk [vmem:[#allocation2 + $0x1d1] sm:$0xff] %vm48_vm0, %v191_v33 }
 0x170   :  { %v2492_v37 = vpop.permute.xlu0 %2491  ;;  %3057 = vst.msk [vmem:[#allocation3 + $0x50] sm:$0xff] %vm3046_vm9, %v2875_v36 }
 0x171   :  { %2673 = vst.msk [vmem:[#allocation3 + $0x58] sm:$0xff] %vm2661_vm8, %v2492_v37  ;;  %968 = vrot.lane.b32.xlu1 %v3127_v23, %s7045_s17 }
 0x172   :  { %585 = vrot.lane.b32.xlu0 %v2743_v24, %s7046_s18 }
 0x173   :  { %v1723_v38 = vpop.permute.xlu1 %1722 }
 0x174   :  { %v1340_v56 = vpop.permute.xlu0 %1339  ;;  %1903 = vst.msk [vmem:[#allocation3 + $0x60] sm:$0xff] %vm1890_vm6, %v1723_v38 }
 0x175   :  { %1519 = vst.msk [vmem:[#allocation3 + $0x68] sm:$0xff] %vm1505_vm5, %v1340_v56  ;;  %2505 = vrot.lane.b32.xlu1 %v7673_v55, %s7050_s26 }
 0x176   :  { %2121 = vrot.lane.b32.xlu0 %v3128_v34, %s7049_s23 }
 0x177   :  { %v3260_v41 = vpop.permute.xlu1 %3259 }
 0x178   :  { %v2877_v42 = vpop.permute.xlu0 %2876  ;;  %3442 = vst.msk [vmem:[#allocation3 + $0x50] sm:$0xff] %vm3431_vm10, %v3260_v41  ;;  %v8093_v41 = vld [vmem:[#allocation2 + $0x1d0] sm:$0xff] }
 0x179   :  { %3058 = vst.msk [vmem:[#allocation3 + $0x58] sm:$0xff] %vm3046_vm9, %v2877_v42  ;;  %1353 = vrot.lane.b32.xlu1 %v7673_v55, %s7047_s19  ;;  %v8103_v42 = vld [vmem:[%s10125_s2] ss:$0 sm:$0xff] }
 0x17a   :  { %970 = vrot.lane.b32.xlu0 %v3128_v34, %s7045_s17  ;;  %386 = vst.msk [vmem:[#allocation3 + $0x118] sm:$0xff] %vm48_vm0, %v8093_v41 }
 0x17b   :  { %v1725_v44 = vpop.permute.xlu1 %1724 }
 0x17c   :  { %v572_v35 = vpop.permute.xlu0 %571  ;;  %1904 = vst.msk [vmem:[#allocation3 + $0x68] sm:$0xff] %vm1890_vm6, %v1725_v44  ;;  %v2749_v44 = vld [vmem:[#allocation2 + $0x141] sm:$0xff] }
 0x17d   :  { %750 = vst.msk [vmem:[#allocation3 + $0x70] sm:$0xff] %vm735_vm3, %v572_v35  ;;  %2890 = vrot.lane.b32.xlu1 %v2744_v43, %s7051_s27 }
 0x17e   :  { %2507 = vrot.lane.b32.xlu0 %v7691_v63, %s7050_s26 }
 0x17f   :  { %v3262_v55 = vpop.permute.xlu1 %3261  ;;  %v3506_v50 = vld [vmem:[#allocation3 + $0x50] sm:$0xff] }
 0x180   :  { %v2108_v49 = vpop.permute.xlu0 %2107  ;;  %3443 = vst.msk [vmem:[#allocation3 + $0x58] sm:$0xff] %vm3431_vm10, %v3262_v55  ;;  %6794 = vmatprep.mubr.msk.f32.mxu0 %vm3572_vm11, %v3506_v50 }
 0x181   :  { %2288 = vst.msk [vmem:[#allocation3 + $0x60] sm:$0xff] %vm2275_vm7, %v2108_v49  ;;  %1738 = vrot.lane.b32.xlu1 %v2744_v43, %s7048_s20 }
 0x182   :  { %1355 = vrot.lane.b32.xlu0 %v7691_v63, %s7047_s19  ;;  %v3130_v63 = vld [vmem:[#allocation2 + $0x112] sm:$0xff] }
 0x183   :  { %v957_v54 = vpop.permute.xlu1 %956 }
 0x184   :  { %v574_v2 = vpop.permute.xlu0 %573  ;;  %1135 = vst.msk [vmem:[#allocation3 + $0x70] sm:$0xff] %vm1120_vm4, %v957_v54 }
 0x185   :  { %751 = vst.msk [vmem:[#allocation3 + $0x78] sm:$0xff] %vm735_vm3, %v574_v2  ;;  %3275 = vrot.lane.b32.xlu1 %v3129_v51, %s7052_s25 }
 0x186   :  { %2892 = vrot.lane.b32.xlu0 %v2745_v52, %s7051_s27 }
 0x187   :  { %v2494_v58 = vpop.permute.xlu1 %2493  ;;  %v3507_v60 = vld [vmem:[#allocation3 + $0x58] sm:$0xff] }
 0x188   :  { %v2110_v59 = vpop.permute.xlu0 %2109  ;;  %2674 = vst.msk [vmem:[#allocation3 + $0x60] sm:$0xff] %vm2661_vm8, %v2494_v58  ;;  %6795 = vmatmul.mubr.msk.f32.gmra.mxu0 %vm3572_vm11, %v3507_v60 }
 0x189   :  { %2289 = vst.msk [vmem:[#allocation3 + $0x68] sm:$0xff] %vm2275_vm7, %v2110_v59  ;;  %1740 = vrot.lane.b32.xlu1 %v2745_v52, %s7048_s20 }
 0x18a   :  { %587 = vrot.lane.b32.xlu0 %v2744_v43, %s7046_s18  ;;  %v3133_v43 = vld [vmem:[#allocation2 + $0x13a] sm:$0xff] }
 0x18b   :  { %v1342_v61 = vpop.permute.xlu1 %1341 }
 0x18c   :  { %v959_v62 = vpop.permute.xlu0 %958  ;;  %1520 = vst.msk [vmem:[#allocation3 + $0x70] sm:$0xff] %vm1505_vm5, %v1342_v61 }
 0x18d   :  { %1136 = vst.msk [vmem:[#allocation3 + $0x78] sm:$0xff] %vm1120_vm4, %v959_v62  ;;  %3277 = vrot.lane.b32.xlu1 %v3130_v63, %s7052_s25 }
 0x18e   :  { %2123 = vrot.lane.b32.xlu0 %v3129_v51, %s7049_s23 }
 0x18f   :  { %v2879_v0 = vpop.permute.xlu1 %2878 }
 0x190   :  { %v2496_v3 = vpop.permute.xlu0 %2495  ;;  %3059 = vst.msk [vmem:[#allocation3 + $0x60] sm:$0xff] %vm3046_vm9, %v2879_v0 }
 0x191   :  { %2675 = vst.msk [vmem:[#allocation3 + $0x68] sm:$0xff] %vm2661_vm8, %v2496_v3  ;;  %972 = vrot.lane.b32.xlu1 %v3129_v51, %s7045_s17 }
 0x192   :  { %589 = vrot.lane.b32.xlu0 %v2745_v52, %s7046_s18 }
 0x193   :  { %v1727_v4 = vpop.permute.xlu1 %1726 }
 0x194   :  { %v1344_v9 = vpop.permute.xlu0 %1343  ;;  %1905 = vst.msk [vmem:[#allocation3 + $0x70] sm:$0xff] %vm1890_vm6, %v1727_v4  ;;  %v192_v4 = vld [vmem:[%s10123_s0 + $0x110] sm:$0xff] }
 0x195   :  { %1521 = vst.msk [vmem:[#allocation3 + $0x78] sm:$0xff] %vm1505_vm5, %v1344_v9  ;;  %2509 = vrot.lane.b32.xlu1 %v7727_v19, %s7050_s26 }
 0x196   :  { %2125 = vrot.lane.b32.xlu0 %v3130_v63, %s7049_s23  ;;  %257 = vst.msk [vmem:[#allocation2 + $0x1e1] sm:$0xff] %vm48_vm0, %v192_v4 }
 0x197   :  { %v3264_v6 = vpop.permute.xlu1 %3263 }
 0x198   :  { %v2881_v7 = vpop.permute.xlu0 %2880  ;;  %3444 = vst.msk [vmem:[#allocation3 + $0x60] sm:$0xff] %vm3431_vm10, %v3264_v6 }
 0x199   :  { %3060 = vst.msk [vmem:[#allocation3 + $0x68] sm:$0xff] %vm3046_vm9, %v2881_v7  ;;  %1357 = vrot.lane.b32.xlu1 %v7727_v19, %s7047_s19  ;;  %v3131_v19 = vld [vmem:[#allocation2 + $0x122] sm:$0xff] }
 0x19a   :  { %974 = vrot.lane.b32.xlu0 %v3130_v63, %s7045_s17  ;;  %v3134_v63 = vld [vmem:[#allocation2 + $0x142] sm:$0xff] }
 0x19b   :  { %v1729_v10 = vpop.permute.xlu1 %1728 }
 0x19c   :  { %v576_v11 = vpop.permute.xlu0 %575  ;;  %1906 = vst.msk [vmem:[#allocation3 + $0x78] sm:$0xff] %vm1890_vm6, %v1729_v10 }
 0x19d   :  { %752 = vst.msk [vmem:[#allocation3 + $0x80] sm:$0xff] %vm735_vm3, %v576_v11  ;;  %2894 = vrot.lane.b32.xlu1 %v2746_v8, %s7051_s27 }
 0x19e   :  { %2511 = vrot.lane.b32.xlu0 %v7745_v27, %s7050_s26 }
 0x19f   :  { %v3266_v48 = vpop.permute.xlu1 %3265  ;;  %v3508_v14 = vld [vmem:[#allocation3 + $0x60] sm:$0xff] }
 0x1a0   :  { %v2112_v13 = vpop.permute.xlu0 %2111  ;;  %3445 = vst.msk [vmem:[#allocation3 + $0x68] sm:$0xff] %vm3431_vm10, %v3266_v48  ;;  %6797 = vmatprep.mubr.msk.f32.mxu0 %vm3572_vm11, %v3508_v14 }
 0x1a1   :  { %2290 = vst.msk [vmem:[#allocation3 + $0x70] sm:$0xff] %vm2275_vm7, %v2112_v13  ;;  %1742 = vrot.lane.b32.xlu1 %v2746_v8, %s7048_s20 }
 0x1a2   :  { %1359 = vrot.lane.b32.xlu0 %v7745_v27, %s7047_s19  ;;  %v3132_v27 = vld [vmem:[#allocation2 + $0x12a] sm:$0xff] }
 0x1a3   :  { %v961_v16 = vpop.permute.xlu1 %960 }
 0x1a4   :  { %v578_v17 = vpop.permute.xlu0 %577  ;;  %1137 = vst.msk [vmem:[#allocation3 + $0x80] sm:$0xff] %vm1120_vm4, %v961_v16  ;;  %v193_v16 = vld [vmem:[%s10123_s0 + $0x118] sm:$0xff] }
 0x1a5   :  { %753 = vst.msk [vmem:[#allocation3 + $0x88] sm:$0xff] %vm735_vm3, %v578_v17  ;;  %3279 = vrot.lane.b32.xlu1 %v3131_v19, %s7052_s25 }
 0x1a6   :  { %2896 = vrot.lane.b32.xlu0 %v2747_v15, %s7051_s27  ;;  %258 = vst.msk [vmem:[#allocation2 + $0x1e9] sm:$0xff] %vm48_vm0, %v193_v16 }
 0x1a7   :  { %v2498_v18 = vpop.permute.xlu1 %2497  ;;  %v3509_v21 = vld [vmem:[#allocation3 + $0x68] sm:$0xff] }
 0x1a8   :  { %v2114_v20 = vpop.permute.xlu0 %2113  ;;  %2676 = vst.msk [vmem:[#allocation3 + $0x70] sm:$0xff] %vm2661_vm8, %v2498_v18  ;;  %6798 = vmatmul.mubr.msk.f32.gmra.mxu0 %vm3572_vm11, %v3509_v21  ;;  %v6781_v40 = vpop.f32.mrf.mxu0 }
 0x1a9   :  { %2291 = vst.msk [vmem:[#allocation3 + $0x78] sm:$0xff] %vm2275_vm7, %v2114_v20  ;;  %1744 = vrot.lane.b32.xlu1 %v2747_v15, %s7048_s20  ;;  %v3841_v50 = vadd.f32 %v6781_v40, %v8103_v42  ;;  %v194_v40 = vld [vmem:[%s10123_s0 + $0x120] sm:$0xff] }
 0x1aa   :  { %591 = vrot.lane.b32.xlu0 %v2746_v8, %s7046_s18  ;;  %v3835_v49 = vpop.f32.mrf.mxu0  ;;  %259 = vst.msk [vmem:[#allocation2 + $0x1f9] sm:$0xff] %vm48_vm0, %v194_v40  ;;  %v2754_v40 = vld [vmem:[#allocation2 + $0x181] sm:$0xff] }
 0x1ab   :  { %v1346_v22 = vpop.permute.xlu1 %1345  ;;  %v4155_v58 = vmax.f32 %v3841_v50, 0.0  ;;  %v195_v50 = vld [vmem:[%s10123_s0 + $0x128] sm:$0xff] }
 0x1ac   :  { %v963_v23 = vpop.permute.xlu0 %962  ;;  %1522 = vst.msk [vmem:[#allocation3 + $0x80] sm:$0xff] %vm1505_vm5, %v1346_v22  ;;  %v2750_v22 = vld [vmem:[#allocation2 + $0x151] sm:$0xff] }
 0x1ad   :  { %1138 = vst.msk [vmem:[#allocation3 + $0x88] sm:$0xff] %vm1120_vm4, %v963_v23  ;;  %3281 = vrot.lane.b32.xlu1 %v3132_v27, %s7052_s25  ;;  %v4222_v9 = vsel %vm4218_vm12, %v4155_v58, -inf }
 0x1ae   :  { %2127 = vrot.lane.b32.xlu0 %v3131_v19, %s7049_s23  ;;  %260 = vst.msk [vmem:[#allocation2 + $0x201] sm:$0xff] %vm48_vm0, %v195_v50 }
 0x1af   :  { %v2883_v24 = vpop.permute.xlu1 %2882 }
 0x1b0   :  { %v2500_v25 = vpop.permute.xlu0 %2499  ;;  %3061 = vst.msk [vmem:[#allocation3 + $0x70] sm:$0xff] %vm3046_vm9, %v2883_v24 }
 0x1b1   :  { %2677 = vst.msk [vmem:[#allocation3 + $0x78] sm:$0xff] %vm2661_vm8, %v2500_v25  ;;  %976 = vrot.lane.b32.xlu1 %v3131_v19, %s7045_s17  ;;  %v8156_v25 = vld [vmem:[#allocation2 + $0x1e8] sm:$0xff] }
 0x1b2   :  { %593 = vrot.lane.b32.xlu0 %v2747_v15, %s7046_s18  ;;  %v8138_v15 = vld [vmem:[#allocation2 + $0x1e0] sm:$0xff]  ;;  %388 = vst.msk [vmem:[#allocation3 + $0x128] sm:$0xff] %vm48_vm0, %v8156_v25 }
 0x1b3   :  { %v1731_v28 = vpop.permute.xlu1 %1730  ;;  %387 = vst.msk [vmem:[#allocation3 + $0x120] sm:$0xff] %vm48_vm0, %v8138_v15 }
 0x1b4   :  { %v1348_v29 = vpop.permute.xlu0 %1347  ;;  %1907 = vst.msk [vmem:[#allocation3 + $0x80] sm:$0xff] %vm1890_vm6, %v1731_v28 }
 0x1b5   :  { %1523 = vst.msk [vmem:[#allocation3 + $0x88] sm:$0xff] %vm1505_vm5, %v1348_v29  ;;  %2513 = vrot.lane.b32.xlu1 %v7821_v46, %s7050_s26  ;;  %v3135_v29 = vld [vmem:[#allocation2 + $0x152] sm:$0xff]  ;;  %v8215_v58 = vld [vmem:[#allocation2 + $0x200] sm:$0xff] }
 0x1b6   :  { %2129 = vrot.lane.b32.xlu0 %v3132_v27, %s7049_s23  ;;  %390 = vst.msk [vmem:[#allocation3 + $0x138] sm:$0xff] %vm48_vm0, %v8215_v58 }
 0x1b7   :  { %v3268_v30 = vpop.permute.xlu1 %3267 }
 0x1b8   :  { %v2885_v34 = vpop.permute.xlu0 %2884  ;;  %3446 = vst.msk [vmem:[#allocation3 + $0x70] sm:$0xff] %vm3431_vm10, %v3268_v30  ;;  %v2751_v30 = vld [vmem:[#allocation2 + $0x159] sm:$0xff] }
 0x1b9   :  { %3062 = vst.msk [vmem:[#allocation3 + $0x78] sm:$0xff] %vm3046_vm9, %v2885_v34  ;;  %1361 = vrot.lane.b32.xlu1 %v7821_v46, %s7047_s19 }
 0x1ba   :  { %978 = vrot.lane.b32.xlu0 %v3132_v27, %s7045_s17 }
 0x1bb   :  { %v1733_v36 = vpop.permute.xlu1 %1732 }
 0x1bc   :  { %v580_v37 = vpop.permute.xlu0 %579  ;;  %1908 = vst.msk [vmem:[#allocation3 + $0x88] sm:$0xff] %vm1890_vm6, %v1733_v36 }
 0x1bd   :  { %754 = vst.msk [vmem:[#allocation3 + $0x90] sm:$0xff] %vm735_vm3, %v580_v37  ;;  %2898 = vrot.lane.b32.xlu1 %v2748_v32, %s7051_s27 }
 0x1be   :  { %2515 = vrot.lane.b32.xlu0 %v7839_v57, %s7050_s26 }
 0x1bf   :  { %v3270_v46 = vpop.permute.xlu1 %3269  ;;  %v3510_v56 = vld [vmem:[#allocation3 + $0x70] sm:$0xff] }
 0x1c0   :  { %v2116_v38 = vpop.permute.xlu0 %2115  ;;  %3447 = vst.msk [vmem:[#allocation3 + $0x78] sm:$0xff] %vm3431_vm10, %v3270_v46  ;;  %6800 = vmatprep.mubr.msk.f32.mxu0 %vm3572_vm11, %v3510_v56  ;;  %v3136_v46 = vld [vmem:[#allocation2 + $0x15a] sm:$0xff] }
 0x1c1   :  { %2292 = vst.msk [vmem:[#allocation3 + $0x80] sm:$0xff] %vm2275_vm7, %v2116_v38  ;;  %1746 = vrot.lane.b32.xlu1 %v2748_v32, %s7048_s20 }
 0x1c2   :  { %1363 = vrot.lane.b32.xlu0 %v7839_v57, %s7047_s19  ;;  %v3836_v57 = vadd.f32 %v8103_v42, %v3835_v49  ;;  %v8197_v49 = vld [vmem:[#allocation2 + $0x1f8] sm:$0xff] }
 0x1c3   :  { %v965_v35 = vpop.permute.xlu1 %964  ;;  %389 = vst.msk [vmem:[#allocation3 + $0x130] sm:$0xff] %vm48_vm0, %v8197_v49 }
 0x1c4   :  { %v582_v55 = vpop.permute.xlu0 %581  ;;  %1139 = vst.msk [vmem:[#allocation3 + $0x90] sm:$0xff] %vm1120_vm4, %v965_v35  ;;  %v4154_v61 = vmax.f32 %v3836_v57, 0.0 }
 0x1c5   :  { %755 = vst.msk [vmem:[#allocation3 + $0x98] sm:$0xff] %vm735_vm3, %v582_v55  ;;  %3283 = vrot.lane.b32.xlu1 %v3133_v43, %s7052_s25 }
 0x1c6   :  { %2900 = vrot.lane.b32.xlu0 %v2749_v44, %s7051_s27  ;;  %v4219_v8 = vsel %vm4218_vm12, %v4154_v61, -inf  ;;  %v3137_v61 = vld [vmem:[#allocation2 + $0x16a] sm:$0xff] }
 0x1c7   :  { %v2502_v51 = vpop.permute.xlu1 %2501  ;;  %v3511_v54 = vld [vmem:[#allocation3 + $0x78] sm:$0xff] }
 0x1c8   :  { %v2118_v52 = vpop.permute.xlu0 %2117  ;;  %2678 = vst.msk [vmem:[#allocation3 + $0x80] sm:$0xff] %vm2661_vm8, %v2502_v51  ;;  %v6784_v2 = vpop.f32.mrf.mxu0  ;;  %6801 = vmatmul.mubr.msk.f32.gmra.mxu0 %vm3572_vm11, %v3511_v54 }
 0x1c9   :  { %2293 = vst.msk [vmem:[#allocation3 + $0x88] sm:$0xff] %vm2275_vm7, %v2118_v52  ;;  %v3851_v59 = vadd.f32 %v6784_v2, %v8103_v42  ;;  %1748 = vrot.lane.b32.xlu1 %v2749_v44, %s7048_s20  ;;  %v2752_v52 = vld [vmem:[#allocation2 + $0x169] sm:$0xff] }
 0x1ca   :  { %595 = vrot.lane.b32.xlu0 %v2748_v32, %s7046_s18  ;;  %v3845_v60 = vpop.f32.mrf.mxu0 }
 0x1cb   :  { %v4157_v62 = vmax.f32 %v3851_v59, 0.0  ;;  %v3846_v45 = vadd.f32 %v8103_v42, %v3845_v60  ;;  %v1350_v0 = vpop.permute.xlu1 %1349 }
 0x1cc   :  { %v967_v3 = vpop.permute.xlu0 %966  ;;  %1524 = vst.msk [vmem:[#allocation3 + $0x90] sm:$0xff] %vm1505_vm5, %v1350_v0 }
 0x1cd   :  { %1140 = vst.msk [vmem:[#allocation3 + $0x98] sm:$0xff] %vm1120_vm4, %v967_v3  ;;  %v4223_v5 = vsel %vm4218_vm12, %v4157_v62, -inf  ;;  %v4156_v6 = vmax.f32 %v3846_v45, 0.0  ;;  %3285 = vrot.lane.b32.xlu1 %v3134_v63, %s7052_s25  ;;  %v2753_v62 = vld [vmem:[#allocation2 + $0x171] sm:$0xff] }
 0x1ce   :  { %2131 = vrot.lane.b32.xlu0 %v3133_v43, %s7049_s23  ;;  %v4224_v7 = vmax.f32 %v4222_v9, %v4223_v5 }
 0x1cf   :  { %v4220_v10 = vsel %vm4218_vm12, %v4156_v6, -inf  ;;  %v2887_v11 = vpop.permute.xlu1 %2886 }
 0x1d0   :  { %v2504_v48 = vpop.permute.xlu0 %2503  ;;  %4316 = vst.msk [vmem:[#allocation4 + $0x8] sm:$0xff] %vm4218_vm12, %v4224_v7  ;;  %v4221_v13 = vmax.f32 %v4219_v8, %v4220_v10 }
 0x1d1   :  { %3063 = vst.msk [vmem:[#allocation3 + $0x80] sm:$0xff] %vm3046_vm9, %v2887_v11  ;;  %980 = vrot.lane.b32.xlu1 %v3133_v43, %s7045_s17 }
 0x1d2   :  { %2679 = vst.msk [vmem:[#allocation3 + $0x88] sm:$0xff] %vm2661_vm8, %v2504_v48  ;;  %597 = vrot.lane.b32.xlu0 %v2749_v44, %s7046_s18  ;;  %v3138_v48 = vld [vmem:[#allocation2 + $0x172] sm:$0xff] }
 0x1d3   :  { %4315 = vst.msk [vmem:[#allocation4] sm:$0xff] %vm4218_vm12, %v4221_v13  ;;  %v1735_v14 = vpop.permute.xlu1 %1734 }
 0x1d4   :  { %v1352_v19 = vpop.permute.xlu0 %1351  ;;  %1909 = vst.msk [vmem:[#allocation3 + $0x90] sm:$0xff] %vm1890_vm6, %v1735_v14 }
 0x1d5   :  { %1525 = vst.msk [vmem:[#allocation3 + $0x98] sm:$0xff] %vm1505_vm5, %v1352_v19  ;;  %2517 = vrot.lane.b32.xlu1 %v7875_v12, %s7050_s26 }
 0x1d6   :  { %2133 = vrot.lane.b32.xlu0 %v3134_v63, %s7049_s23 }
 0x1d7   :  { %v3272_v17 = vpop.permute.xlu1 %3271 }
 0x1d8   :  { %v2889_v18 = vpop.permute.xlu0 %2888  ;;  %3448 = vst.msk [vmem:[#allocation3 + $0x80] sm:$0xff] %vm3431_vm10, %v3272_v17 }
 0x1d9   :  { %3064 = vst.msk [vmem:[#allocation3 + $0x88] sm:$0xff] %vm3046_vm9, %v2889_v18  ;;  %1365 = vrot.lane.b32.xlu1 %v7875_v12, %s7047_s19  ;;  %v196_v18 = vld [vmem:[%s10123_s0 + $0x130] sm:$0xff] }
 0x1da   :  { %v4347_v20 = vld [vmem:[#allocation4] ss:$2 sm:$0xff]  ;;  %v4379_v21 = vld [vmem:[#allocation4 + $0x1] ss:$2 sm:$0xff]  ;;  %982 = vrot.lane.b32.xlu0 %v3134_v63, %s7045_s17  ;;  %261 = vst.msk [vmem:[#allocation2 + $0x211] sm:$0xff] %vm48_vm0, %v196_v18 }
 0x1db   :  { %v4410_v27 = vmax.f32 %v4347_v20, %v4379_v21  ;;  %v1737_v23 = vpop.permute.xlu1 %1736  ;;  %v2756_v18 = vld [vmem:[#allocation2 + $0x199] sm:$0xff] }
 0x1dc   :  { %v584_v24 = vpop.permute.xlu0 %583  ;;  %1910 = vst.msk [vmem:[#allocation3 + $0x98] sm:$0xff] %vm1890_vm6, %v1737_v23 }
 0x1dd   :  { %756 = vst.msk [vmem:[#allocation3 + $0xa0] sm:$0xff] %vm735_vm3, %v584_v24  ;;  %2902 = vrot.lane.b32.xlu1 %v2750_v22, %s7051_s27 }
 0x1de   :  { %4468 = vst.msk [vmem:[#allocation5 + $0x11] sm:$0xff] %vm4218_vm12, %v4410_v27  ;;  %2519 = vrot.lane.b32.xlu0 %v7933_v26, %s7050_s26 }
 0x1df   :  { %v3274_v12 = vpop.permute.xlu1 %3273  ;;  %v3512_v28 = vld [vmem:[#allocation3 + $0x80] sm:$0xff] }
 0x1e0   :  { %v2120_v53 = vpop.permute.xlu0 %2119  ;;  %3449 = vst.msk [vmem:[#allocation3 + $0x88] sm:$0xff] %vm3431_vm10, %v3274_v12  ;;  %6803 = vmatprep.mubr.msk.f32.mxu0 %vm3572_vm11, %v3512_v28 }
 0x1e1   :  { %2294 = vst.msk [vmem:[#allocation3 + $0x90] sm:$0xff] %vm2275_vm7, %v2120_v53  ;;  %1750 = vrot.lane.b32.xlu1 %v2750_v22, %s7048_s20 }
 0x1e2   :  { %1367 = vrot.lane.b32.xlu0 %v7933_v26, %s7047_s19 }
 0x1e3   :  { %v969_v34 = vpop.permute.xlu1 %968 }
 0x1e4   :  { %v586_v33 = vpop.permute.xlu0 %585  ;;  %1141 = vst.msk [vmem:[#allocation3 + $0xa0] sm:$0xff] %vm1120_vm4, %v969_v34 }
 0x1e5   :  { %v8170_v32 = vld [vmem:[#allocation5 + $0x10] sm:$0xff]  ;;  %757 = vst.msk [vmem:[#allocation3 + $0xa8] sm:$0xff] %vm735_vm3, %v586_v33  ;;  %3287 = vrot.lane.b32.xlu1 %v3135_v29, %s7052_s25 }
 0x1e6   :  { %4501 = vst.msk [vmem:[#allocation6 + $0x8] sm:$0xff] %vm4218_vm12, %v8170_v32  ;;  %2904 = vrot.lane.b32.xlu0 %v2751_v30, %s7051_s27  ;;  %v8261_v33 = vld [vmem:[#allocation2 + $0x210] sm:$0xff] }
 0x1e7   :  { %v2506_v36 = vpop.permute.xlu1 %2505  ;;  %v3513_v26 = vld [vmem:[#allocation3 + $0x88] sm:$0xff]  ;;  %391 = vst.msk [vmem:[#allocation3 + $0x140] sm:$0xff] %vm48_vm0, %v8261_v33 }
 0x1e8   :  { %v2122_v37 = vpop.permute.xlu0 %2121  ;;  %2680 = vst.msk [vmem:[#allocation3 + $0x90] sm:$0xff] %vm2661_vm8, %v2506_v36  ;;  %6804 = vmatmul.mubr.msk.f32.gmra.mxu0 %vm3572_vm11, %v3513_v26  ;;  %v6787_v63 = vpop.f32.mrf.mxu0  ;;  %v197_v36 = vld [vmem:[%s10123_s0 + $0x138] sm:$0xff] }
 0x1e9   :  { %2295 = vst.msk [vmem:[#allocation3 + $0x98] sm:$0xff] %vm2275_vm7, %v2122_v37  ;;  %1752 = vrot.lane.b32.xlu1 %v2751_v30, %s7048_s20  ;;  %v3861_v4 = vadd.f32 %v6787_v63, %v8103_v42  ;;  %v320_v63 = vld [vmem:[#allocation2 + $0x1b8] sm:$0xff] }
 0x1ea   :  { %599 = vrot.lane.b32.xlu0 %v2750_v22, %s7046_s18  ;;  %v3855_v3 = vpop.f32.mrf.mxu0  ;;  %262 = vst.msk [vmem:[#allocation2 + $0x219] sm:$0xff] %vm48_vm0, %v197_v36  ;;  %384 = vst.msk [vmem:[#allocation3 + $0x108] sm:$0xff] %vm48_vm0, %v320_v63 }
 0x1eb   :  { %v1354_v38 = vpop.permute.xlu1 %1353  ;;  %v3856_v9 = vadd.f32 %v8103_v42, %v3855_v3  ;;  %v4159_v8 = vmax.f32 %v3861_v4, 0.0  ;;  %v3140_v3 = vld [vmem:[#allocation2 + $0x18a] sm:$0xff] }
 0x1ec   :  { %v971_v56 = vpop.permute.xlu0 %970  ;;  %1526 = vst.msk [vmem:[#allocation3 + $0xa0] sm:$0xff] %vm1505_vm5, %v1354_v38 }
 0x1ed   :  { %1142 = vst.msk [vmem:[#allocation3 + $0xa8] sm:$0xff] %vm1120_vm4, %v971_v56  ;;  %3289 = vrot.lane.b32.xlu1 %v3136_v46, %s7052_s25  ;;  %v4158_v13 = vmax.f32 %v3856_v9, 0.0  ;;  %v4228_v20 = vsel %vm4218_vm12, %v4159_v8, -inf }
 0x1ee   :  { %2135 = vrot.lane.b32.xlu0 %v3135_v29, %s7049_s23 }
 0x1ef   :  { %v2891_v43 = vpop.permute.xlu1 %2890  ;;  %v4225_v23 = vsel %vm4218_vm12, %v4158_v13, -inf }
 0x1f0   :  { %v2508_v44 = vpop.permute.xlu0 %2507  ;;  %3065 = vst.msk [vmem:[#allocation3 + $0x90] sm:$0xff] %vm3046_vm9, %v2891_v43  ;;  %v2370_v43 = vld [vmem:[#allocation2 + $0x188] sm:$0xff] }
 0x1f1   :  { %2681 = vst.msk [vmem:[#allocation3 + $0x98] sm:$0xff] %vm2661_vm8, %v2508_v44  ;;  %984 = vrot.lane.b32.xlu1 %v3135_v29, %s7045_s17  ;;  %v2369_v29 = vld [vmem:[#allocation2 + $0x180] sm:$0xff]  ;;  %v8277_v50 = vld [vmem:[#allocation2 + $0x218] sm:$0xff] }
 0x1f2   :  { %601 = vrot.lane.b32.xlu0 %v2751_v30, %s7046_s18  ;;  %392 = vst.msk [vmem:[#allocation3 + $0x148] sm:$0xff] %vm48_vm0, %v8277_v50 }
 0x1f3   :  { %v1739_v35 = vpop.permute.xlu1 %1738 }
 0x1f4   :  { %v1356_v55 = vpop.permute.xlu0 %1355  ;;  %1911 = vst.msk [vmem:[#allocation3 + $0xa0] sm:$0xff] %vm1890_vm6, %v1739_v35 }
 0x1f5   :  { %1527 = vst.msk [vmem:[#allocation3 + $0xa8] sm:$0xff] %vm1505_vm5, %v1356_v55  ;;  %2521 = vrot.lane.b32.xlu1 %v7969_v39, %s7050_s26  ;;  %v319_v55 = vld [vmem:[#allocation2 + $0x1b0] sm:$0xff] }
 0x1f6   :  { %2137 = vrot.lane.b32.xlu0 %v3136_v46, %s7049_s23  ;;  %383 = vst.msk [vmem:[#allocation3 + $0x100] sm:$0xff] %vm48_vm0, %v319_v55  ;;  %v3142_v55 = vld [vmem:[#allocation2 + $0x1a2] sm:$0xff] }
 0x1f7   :  { %v3276_v57 = vpop.permute.xlu1 %3275 }
 0x1f8   :  { %v2893_v51 = vpop.permute.xlu0 %2892  ;;  %3450 = vst.msk [vmem:[#allocation3 + $0x90] sm:$0xff] %vm3431_vm10, %v3276_v57 }
 0x1f9   :  { %3066 = vst.msk [vmem:[#allocation3 + $0x98] sm:$0xff] %vm3046_vm9, %v2893_v51  ;;  %1369 = vrot.lane.b32.xlu1 %v7969_v39, %s7047_s19 }
 0x1fa   :  { %986 = vrot.lane.b32.xlu0 %v3136_v46, %s7045_s17 }
 0x1fb   :  { %v1741_v54 = vpop.permute.xlu1 %1740 }
 0x1fc   :  { %v588_v2 = vpop.permute.xlu0 %587  ;;  %1912 = vst.msk [vmem:[#allocation3 + $0xa8] sm:$0xff] %vm1890_vm6, %v1741_v54  ;;  %v3139_v54 = vld [vmem:[#allocation2 + $0x182] sm:$0xff] }
 0x1fd   :  { %758 = vst.msk [vmem:[#allocation3 + $0xb0] sm:$0xff] %vm735_vm3, %v588_v2  ;;  %2906 = vrot.lane.b32.xlu1 %v2752_v52, %s7051_s27  ;;  %v2755_v2 = vld [vmem:[#allocation2 + $0x189] sm:$0xff] }
 0x1fe   :  { %2523 = vrot.lane.b32.xlu0 %v7987_v47, %s7050_s26 }
 0x1ff   :  { %v3278_v39 = vpop.permute.xlu1 %3277  ;;  %v3514_v60 = vld [vmem:[#allocation3 + $0x90] sm:$0xff] }
 0x200   :  { %v2124_v59 = vpop.permute.xlu0 %2123  ;;  %3451 = vst.msk [vmem:[#allocation3 + $0x98] sm:$0xff] %vm3431_vm10, %v3278_v39  ;;  %6806 = vmatprep.mubr.msk.f32.mxu0 %vm3572_vm11, %v3514_v60 }
 0x201   :  { %2296 = vst.msk [vmem:[#allocation3 + $0xa0] sm:$0xff] %vm2275_vm7, %v2124_v59  ;;  %1754 = vrot.lane.b32.xlu1 %v2752_v52, %s7048_s20 }
 0x202   :  { %1371 = vrot.lane.b32.xlu0 %v7987_v47, %s7047_s19 }
 0x203   :  { %v973_v45 = vpop.permute.xlu1 %972 }
 0x204   :  { %v590_v0 = vpop.permute.xlu0 %589  ;;  %1143 = vst.msk [vmem:[#allocation3 + $0xb0] sm:$0xff] %vm1120_vm4, %v973_v45 }
 0x205   :  { %759 = vst.msk [vmem:[#allocation3 + $0xb8] sm:$0xff] %vm735_vm3, %v590_v0  ;;  %3291 = vrot.lane.b32.xlu1 %v3137_v61, %s7052_s25 }
 0x206   :  { %2908 = vrot.lane.b32.xlu0 %v2753_v62, %s7051_s27 }
 0x207   :  { %v2510_v5 = vpop.permute.xlu1 %2509  ;;  %v3515_v47 = vld [vmem:[#allocation3 + $0x98] sm:$0xff] }
 0x208   :  { %v2126_v6 = vpop.permute.xlu0 %2125  ;;  %2682 = vst.msk [vmem:[#allocation3 + $0xa0] sm:$0xff] %vm2661_vm8, %v2510_v5  ;;  %v6790_v7 = vpop.f32.mrf.mxu0  ;;  %6807 = vmatmul.mubr.msk.f32.gmra.mxu0 %vm3572_vm11, %v3515_v47  ;;  %v198_v5 = vld [vmem:[%s10123_s0 + $0x140] sm:$0xff] }
 0x209   :  { %2297 = vst.msk [vmem:[#allocation3 + $0xa8] sm:$0xff] %vm2275_vm7, %v2126_v6  ;;  %v3871_v10 = vadd.f32 %v6790_v7, %v8103_v42  ;;  %1756 = vrot.lane.b32.xlu1 %v2753_v62, %s7048_s20  ;;  %v832_v6 = vld [vmem:[#allocation2 + $0x1b2] sm:$0xff] }
 0x20a   :  { %603 = vrot.lane.b32.xlu0 %v2752_v52, %s7046_s18  ;;  %v3865_v11 = vpop.f32.mrf.mxu0  ;;  %263 = vst.msk [vmem:[#allocation2 + $0x229] sm:$0xff] %vm48_vm0, %v198_v5  ;;  %v448_v47 = vld [vmem:[#allocation2 + $0x1b9] sm:$0xff] }
 0x20b   :  { %v4161_v14 = vmax.f32 %v3871_v10, 0.0  ;;  %v3866_v19 = vadd.f32 %v8103_v42, %v3865_v11  ;;  %v1358_v16 = vpop.permute.xlu1 %1357  ;;  %v2371_v10 = vld [vmem:[#allocation2 + $0x198] sm:$0xff] }
 0x20c   :  { %v975_v17 = vpop.permute.xlu0 %974  ;;  %1528 = vst.msk [vmem:[#allocation3 + $0xb0] sm:$0xff] %vm1505_vm5, %v1358_v16 }
 0x20d   :  { %1144 = vst.msk [vmem:[#allocation3 + $0xb8] sm:$0xff] %vm1120_vm4, %v975_v17  ;;  %v4229_v21 = vsel %vm4218_vm12, %v4161_v14, -inf  ;;  %v4160_v27 = vmax.f32 %v3866_v19, 0.0  ;;  %3293 = vrot.lane.b32.xlu1 %v3138_v48, %s7052_s25  ;;  %v199_v14 = vld [vmem:[%s10123_s0 + $0x148] sm:$0xff]  ;;  %v833_v19 = vld [vmem:[#allocation2 + $0x1ba] sm:$0xff] }
 0x20e   :  { %2139 = vrot.lane.b32.xlu0 %v3137_v61, %s7049_s23  ;;  %v4230_v22 = vmax.f32 %v4228_v20, %v4229_v21  ;;  %264 = vst.msk [vmem:[#allocation2 + $0x231] sm:$0xff] %vm48_vm0, %v199_v14  ;;  %v2372_v20 = vld [vmem:[#allocation2 + $0x1a0] sm:$0xff] }
 0x20f   :  { %v4226_v24 = vsel %vm4218_vm12, %v4160_v27, -inf  ;;  %v2895_v12 = vpop.permute.xlu1 %2894 }
 0x210   :  { %v2512_v53 = vpop.permute.xlu0 %2511  ;;  %4318 = vst.msk [vmem:[#allocation4 + $0x18] sm:$0xff] %vm4218_vm12, %v4230_v22  ;;  %v4227_v28 = vmax.f32 %v4225_v23, %v4226_v24 }
 0x211   :  { %3067 = vst.msk [vmem:[#allocation3 + $0xa0] sm:$0xff] %vm3046_vm9, %v2895_v12  ;;  %988 = vrot.lane.b32.xlu1 %v3137_v61, %s7045_s17  ;;  %v447_v61 = vld [vmem:[#allocation2 + $0x1b1] sm:$0xff]  ;;  %v8318_v13 = vld [vmem:[#allocation2 + $0x228] sm:$0xff] }
 0x212   :  { %2683 = vst.msk [vmem:[#allocation3 + $0xa8] sm:$0xff] %vm2661_vm8, %v2512_v53  ;;  %605 = vrot.lane.b32.xlu0 %v2753_v62, %s7046_s18 }
 0x213   :  { %4317 = vst.msk [vmem:[#allocation4 + $0x10] sm:$0xff] %vm4218_vm12, %v4227_v28  ;;  %v1743_v30 = vpop.permute.xlu1 %1742  ;;  %v3141_v28 = vld [vmem:[#allocation2 + $0x19a] sm:$0xff] }
 0x214   :  { %v1360_v34 = vpop.permute.xlu0 %1359  ;;  %1913 = vst.msk [vmem:[#allocation3 + $0xb0] sm:$0xff] %vm1890_vm6, %v1743_v30 }
 0x215   :  { %1529 = vst.msk [vmem:[#allocation3 + $0xb8] sm:$0xff] %vm1505_vm5, %v1360_v34  ;;  %2525 = vrot.lane.b32.xlu1 %v2369_v29, %s7050_s26  ;;  %v8335_v22 = vld [vmem:[#allocation2 + $0x230] sm:$0xff] }
 0x216   :  { %2141 = vrot.lane.b32.xlu0 %v3138_v48, %s7049_s23  ;;  %393 = vst.msk [vmem:[#allocation3 + $0x150] sm:$0xff] %vm48_vm0, %v8318_v13  ;;  %394 = vst.msk [vmem:[#allocation3 + $0x158] sm:$0xff] %vm48_vm0, %v8335_v22 }
 0x217   :  { %v3280_v37 = vpop.permute.xlu1 %3279 }
 0x218   :  { %v2897_v26 = vpop.permute.xlu0 %2896  ;;  %3452 = vst.msk [vmem:[#allocation3 + $0xa0] sm:$0xff] %vm3431_vm10, %v3280_v37 }
 0x219   :  { %3068 = vst.msk [vmem:[#allocation3 + $0xa8] sm:$0xff] %vm3046_vm9, %v2897_v26  ;;  %1373 = vrot.lane.b32.xlu1 %v2369_v29, %s7047_s19  ;;  %v2757_v29 = vld [vmem:[#allocation2 + $0x1a1] sm:$0xff]  ;;  %v1603_v26 = vld [vmem:[#allocation2 + $0x1d1] sm:$0xff] }
 0x21a   :  { %v4349_v46 = vld [vmem:[#allocation4 + $0x10] ss:$2 sm:$0xff]  ;;  %v4381_v38 = vld [vmem:[#allocation4 + $0x11] ss:$2 sm:$0xff]  ;;  %990 = vrot.lane.b32.xlu0 %v3138_v48, %s7045_s17 }
 0x21b   :  { %v4411_v56 = vmax.f32 %v4349_v46, %v4381_v38  ;;  %v1745_v44 = vpop.permute.xlu1 %1744 }
 0x21c   :  { %v592_v35 = vpop.permute.xlu0 %591  ;;  %1914 = vst.msk [vmem:[#allocation3 + $0xb8] sm:$0xff] %vm1890_vm6, %v1745_v44 }
 0x21d   :  { %760 = vst.msk [vmem:[#allocation3 + $0xc0] sm:$0xff] %vm735_vm3, %v592_v35  ;;  %2910 = vrot.lane.b32.xlu1 %v2754_v40, %s7051_s27 }
 0x21e   :  { %4469 = vst.msk [vmem:[#allocation5 + $0x21] sm:$0xff] %vm4218_vm12, %v4411_v56  ;;  %2527 = vrot.lane.b32.xlu0 %v2370_v43, %s7050_s26 }
 0x21f   :  { %v3282_v57 = vpop.permute.xlu1 %3281  ;;  %v3516_v52 = vld [vmem:[#allocation3 + $0xa0] sm:$0xff] }
 0x220   :  { %v2128_v51 = vpop.permute.xlu0 %2127  ;;  %3453 = vst.msk [vmem:[#allocation3 + $0xa8] sm:$0xff] %vm3431_vm10, %v3282_v57  ;;  %6809 = vmatprep.mubr.msk.f32.mxu0 %vm3572_vm11, %v3516_v52  ;;  %v1987_v57 = vld [vmem:[#allocation2 + $0x1ca] sm:$0xff] }
 0x221   :  { %2298 = vst.msk [vmem:[#allocation3 + $0xb0] sm:$0xff] %vm2275_vm7, %v2128_v51  ;;  %1758 = vrot.lane.b32.xlu1 %v2754_v40, %s7048_s20 }
 0x222   :  { %1375 = vrot.lane.b32.xlu0 %v2370_v43, %s7047_s19 }
 0x223   :  { %v977_v39 = vpop.permute.xlu1 %976 }
 0x224   :  { %v594_v59 = vpop.permute.xlu0 %593  ;;  %1145 = vst.msk [vmem:[#allocation3 + $0xc0] sm:$0xff] %vm1120_vm4, %v977_v39 }
 0x225   :  { %v8290_v60 = vld [vmem:[#allocation5 + $0x20] sm:$0xff]  ;;  %761 = vst.msk [vmem:[#allocation3 + $0xc8] sm:$0xff] %vm735_vm3, %v594_v59  ;;  %3295 = vrot.lane.b32.xlu1 %v3139_v54, %s7052_s25  ;;  %v200_v59 = vld [vmem:[%s10123_s0 + $0x150] sm:$0xff] }
 0x226   :  { %4502 = vst.msk [vmem:[#allocation6 + $0x10] sm:$0xff] %vm4218_vm12, %v8290_v60  ;;  %2912 = vrot.lane.b32.xlu0 %v2755_v2, %s7051_s27 }
 0x227   :  { %v2514_v62 = vpop.permute.xlu1 %2513  ;;  %v3517_v0 = vld [vmem:[#allocation3 + $0xa8] sm:$0xff]  ;;  %265 = vst.msk [vmem:[#allocation2 + $0x241] sm:$0xff] %vm48_vm0, %v200_v59 }
 0x228   :  { %v2130_v45 = vpop.permute.xlu0 %2129  ;;  %2684 = vst.msk [vmem:[#allocation3 + $0xb0] sm:$0xff] %vm2661_vm8, %v2514_v62  ;;  %6810 = vmatmul.mubr.msk.f32.gmra.mxu0 %vm3572_vm11, %v3517_v0  ;;  %v6793_v53 = vpop.f32.mrf.mxu0 }
 0x229   :  { %2299 = vst.msk [vmem:[#allocation3 + $0xb8] sm:$0xff] %vm2275_vm7, %v2130_v45  ;;  %1760 = vrot.lane.b32.xlu1 %v2755_v2, %s7048_s20  ;;  %v3881_v37 = vadd.f32 %v6793_v53, %v8103_v42  ;;  %v2759_v53 = vld [vmem:[#allocation2 + $0x1e9] sm:$0xff] }
 0x22a   :  { %607 = vrot.lane.b32.xlu0 %v447_v61, %s7046_s18  ;;  %v3875_v36 = vpop.f32.mrf.mxu0 }
 0x22b   :  { %v1362_v4 = vpop.permute.xlu1 %1361  ;;  %v3876_v46 = vadd.f32 %v8103_v42, %v3875_v36  ;;  %v4163_v43 = vmax.f32 %v3881_v37, 0.0  ;;  %v210_v37 = vld [vmem:[%s10123_s0 + $0x1a0] sm:$0xff] }
 0x22c   :  { %v979_v9 = vpop.permute.xlu0 %978  ;;  %1530 = vst.msk [vmem:[#allocation3 + $0xc0] sm:$0xff] %vm1505_vm5, %v1362_v4 }
 0x22d   :  { %1146 = vst.msk [vmem:[#allocation3 + $0xc8] sm:$0xff] %vm1120_vm4, %v979_v9  ;;  %3297 = vrot.lane.b32.xlu1 %v3140_v3, %s7052_s25  ;;  %v4162_v51 = vmax.f32 %v3876_v46, 0.0  ;;  %v4234_v63 = vsel %vm4218_vm12, %v4163_v43, -inf }
 0x22e   :  { %2143 = vrot.lane.b32.xlu0 %v3139_v54, %s7049_s23  ;;  %275 = vst.msk [vmem:[#allocation2 + $0x2b9] sm:$0xff] %vm48_vm0, %v210_v37 }
 0x22f   :  { %v2899_v7 = vpop.permute.xlu1 %2898  ;;  %v4231_v0 = vsel %vm4218_vm12, %v4162_v51, -inf  ;;  %v2760_v51 = vld [vmem:[#allocation2 + $0x1f9] sm:$0xff] }
 0x230   :  { %v2516_v8 = vpop.permute.xlu0 %2515  ;;  %3069 = vst.msk [vmem:[#allocation3 + $0xb0] sm:$0xff] %vm3046_vm9, %v2899_v7 }
 0x231   :  { %2685 = vst.msk [vmem:[#allocation3 + $0xb8] sm:$0xff] %vm2661_vm8, %v2516_v8  ;;  %992 = vrot.lane.b32.xlu1 %v832_v6, %s7045_s17  ;;  %v208_v6 = vld [vmem:[%s10123_s0 + $0x190] sm:$0xff] }
 0x232   :  { %609 = vrot.lane.b32.xlu0 %v448_v47, %s7046_s18  ;;  %273 = vst.msk [vmem:[#allocation2 + $0x2a1] sm:$0xff] %vm48_vm0, %v208_v6  ;;  %v1988_v47 = vld [vmem:[#allocation2 + $0x1d2] sm:$0xff] }
 0x233   :  { %v1747_v11 = vpop.permute.xlu1 %1746 }
 0x234   :  { %v1364_v48 = vpop.permute.xlu0 %1363  ;;  %1915 = vst.msk [vmem:[#allocation3 + $0xc0] sm:$0xff] %vm1890_vm6, %v1747_v11  ;;  %v201_v11 = vld [vmem:[%s10123_s0 + $0x158] sm:$0xff] }
 0x235   :  { %1531 = vst.msk [vmem:[#allocation3 + $0xc8] sm:$0xff] %vm1505_vm5, %v1364_v48  ;;  %2529 = vrot.lane.b32.xlu1 %v2371_v10, %s7050_s26  ;;  %v8384_v10 = vld [vmem:[#allocation2 + $0x240] sm:$0xff] }
 0x236   :  { %2145 = vrot.lane.b32.xlu0 %v3140_v3, %s7049_s23  ;;  %266 = vst.msk [vmem:[#allocation2 + $0x249] sm:$0xff] %vm48_vm0, %v201_v11  ;;  %395 = vst.msk [vmem:[#allocation3 + $0x160] sm:$0xff] %vm48_vm0, %v8384_v10  ;;  %v203_v11 = vld [vmem:[%s10123_s0 + $0x168] sm:$0xff] }
 0x237   :  { %v3284_v16 = vpop.permute.xlu1 %3283  ;;  %268 = vst.msk [vmem:[#allocation2 + $0x261] sm:$0xff] %vm48_vm0, %v203_v11  ;;  %v204_v11 = vld [vmem:[%s10123_s0 + $0x170] sm:$0xff] }
 0x238   :  { %v2901_v17 = vpop.permute.xlu0 %2900  ;;  %3454 = vst.msk [vmem:[#allocation3 + $0xb0] sm:$0xff] %vm3431_vm10, %v3284_v16 }
 0x239   :  { %3070 = vst.msk [vmem:[#allocation3 + $0xb8] sm:$0xff] %vm3046_vm9, %v2901_v17  ;;  %1377 = vrot.lane.b32.xlu1 %v8074_v31, %s7047_s19  ;;  %v1602_v31 = vld [vmem:[#allocation2 + $0x1c9] sm:$0xff] }
 0x23a   :  { %994 = vrot.lane.b32.xlu0 %v833_v19, %s7045_s17  ;;  %v209_v19 = vld [vmem:[%s10123_s0 + $0x198] sm:$0xff]  ;;  %269 = vst.msk [vmem:[#allocation2 + $0x271] sm:$0xff] %vm48_vm0, %v204_v11 }
 0x23b   :  { %v1749_v21 = vpop.permute.xlu1 %1748  ;;  %274 = vst.msk [vmem:[#allocation2 + $0x2a9] sm:$0xff] %vm48_vm0, %v209_v19 }
 0x23c   :  { %v596_v27 = vpop.permute.xlu0 %595  ;;  %1916 = vst.msk [vmem:[#allocation3 + $0xc8] sm:$0xff] %vm1890_vm6, %v1749_v21 }
 0x23d   :  { %762 = vst.msk [vmem:[#allocation3 + $0xd0] sm:$0xff] %vm735_vm3, %v596_v27  ;;  %2914 = vrot.lane.b32.xlu1 %v2756_v18, %s7051_s27 }
 0x23e   :  { %2531 = vrot.lane.b32.xlu0 %v2372_v20, %s7050_s26  ;;  %v2758_v20 = vld [vmem:[#allocation2 + $0x1e1] sm:$0xff] }
 0x23f   :  { %v3286_v23 = vpop.permute.xlu1 %3285  ;;  %v3518_v12 = vld [vmem:[#allocation3 + $0xb0] sm:$0xff] }
 0x240   :  { %v2132_v24 = vpop.permute.xlu0 %2131  ;;  %3455 = vst.msk [vmem:[#allocation3 + $0xb8] sm:$0xff] %vm3431_vm10, %v3286_v23  ;;  %6812 = vmatprep.mubr.msk.f32.mxu0 %vm3572_vm11, %v3518_v12  ;;  %v3143_v12 = vld [vmem:[#allocation2 + $0x1e2] sm:$0xff] }
 0x241   :  { %2300 = vst.msk [vmem:[#allocation3 + $0xc0] sm:$0xff] %vm2275_vm7, %v2132_v24  ;;  %1762 = vrot.lane.b32.xlu1 %v1602_v31, %s7048_s20 }
 0x242   :  { %1379 = vrot.lane.b32.xlu0 %v8093_v41, %s7047_s19 }
 0x243   :  { %v981_v30 = vpop.permute.xlu1 %980 }
 0x244   :  { %v598_v34 = vpop.permute.xlu0 %597  ;;  %1147 = vst.msk [vmem:[#allocation3 + $0xd0] sm:$0xff] %vm1120_vm4, %v981_v30 }
 0x245   :  { %763 = vst.msk [vmem:[#allocation3 + $0xd8] sm:$0xff] %vm735_vm3, %v598_v34  ;;  %3299 = vrot.lane.b32.xlu1 %v3141_v28, %s7052_s25 }
 0x246   :  { %2916 = vrot.lane.b32.xlu0 %v2757_v29, %s7051_s27 }
 0x247   :  { %v2518_v38 = vpop.permute.xlu1 %2517  ;;  %v3519_v56 = vld [vmem:[#allocation3 + $0xb8] sm:$0xff] }
 0x248   :  { %v2134_v41 = vpop.permute.xlu0 %2133  ;;  %2686 = vst.msk [vmem:[#allocation3 + $0xc0] sm:$0xff] %vm2661_vm8, %v2518_v38  ;;  %v6796_v40 = vpop.f32.mrf.mxu0  ;;  %6813 = vmatmul.mubr.msk.f32.gmra.mxu0 %vm3572_vm11, %v3519_v56 }
 0x249   :  { %2301 = vst.msk [vmem:[#allocation3 + $0xc8] sm:$0xff] %vm2275_vm7, %v2134_v41  ;;  %v3891_v44 = vadd.f32 %v6796_v40, %v8103_v42  ;;  %1764 = vrot.lane.b32.xlu1 %v1603_v26, %s7048_s20  ;;  %v8443_v40 = vld [vmem:[#allocation2 + $0x2b8] sm:$0xff] }
 0x24a   :  { %611 = vrot.lane.b32.xlu0 %v1602_v31, %s7046_s18  ;;  %v3885_v35 = vpop.f32.mrf.mxu0  ;;  %v8406_v31 = vld [vmem:[#allocation2 + $0x248] sm:$0xff]  ;;  %405 = vst.msk [vmem:[#allocation3 + $0x1b0] sm:$0xff] %vm48_vm0, %v8443_v40 }
 0x24b   :  { %v4165_v52 = vmax.f32 %v3891_v44, 0.0  ;;  %v3886_v54 = vadd.f32 %v8103_v42, %v3885_v35  ;;  %v1366_v2 = vpop.permute.xlu1 %1365  ;;  %396 = vst.msk [vmem:[#allocation3 + $0x168] sm:$0xff] %vm48_vm0, %v8406_v31  ;;  %v211_v35 = vld [vmem:[%s10123_s0 + $0x1a8] sm:$0xff] }
 0x24c   :  { %v983_v39 = vpop.permute.xlu0 %982  ;;  %1532 = vst.msk [vmem:[#allocation3 + $0xd0] sm:$0xff] %vm1505_vm5, %v1366_v2 }
 0x24d   :  { %1148 = vst.msk [vmem:[#allocation3 + $0xd8] sm:$0xff] %vm1120_vm4, %v983_v39  ;;  %v4235_v61 = vsel %vm4218_vm12, %v4165_v52, -inf  ;;  %v4164_v62 = vmax.f32 %v3886_v54, 0.0  ;;  %3301 = vrot.lane.b32.xlu1 %v3142_v55, %s7052_s25  ;;  %v202_v39 = vld [vmem:[%s10123_s0 + $0x160] sm:$0xff] }
 0x24e   :  { %2147 = vrot.lane.b32.xlu0 %v1987_v57, %s7049_s23  ;;  %v4236_v45 = vmax.f32 %v4234_v63, %v4235_v61  ;;  %276 = vst.msk [vmem:[#allocation2 + $0x2c1] sm:$0xff] %vm48_vm0, %v211_v35  ;;  %267 = vst.msk [vmem:[#allocation2 + $0x259] sm:$0xff] %vm48_vm0, %v202_v39  ;;  %v2762_v35 = vld [vmem:[#allocation2 + $0x211] sm:$0xff] }
 0x24f   :  { %v4232_v3 = vsel %vm4218_vm12, %v4164_v62, -inf  ;;  %v2903_v4 = vpop.permute.xlu1 %2902  ;;  %v3145_v62 = vld [vmem:[#allocation2 + $0x1fa] sm:$0xff]  ;;  %v3147_v39 = vld [vmem:[#allocation2 + $0x212] sm:$0xff] }
 0x250   :  { %v2520_v9 = vpop.permute.xlu0 %2519  ;;  %4320 = vst.msk [vmem:[#allocation4 + $0x28] sm:$0xff] %vm4218_vm12, %v4236_v45  ;;  %v4233_v5 = vmax.f32 %v4231_v0, %v4232_v3  ;;  %v2761_v45 = vld [vmem:[#allocation2 + $0x201] sm:$0xff] }
 0x251   :  { %3071 = vst.msk [vmem:[#allocation3 + $0xc0] sm:$0xff] %vm3046_vm9, %v2903_v4  ;;  %996 = vrot.lane.b32.xlu1 %v1987_v57, %s7045_s17 }
 0x252   :  { %2687 = vst.msk [vmem:[#allocation3 + $0xc8] sm:$0xff] %vm2661_vm8, %v2520_v9  ;;  %613 = vrot.lane.b32.xlu0 %v1603_v26, %s7046_s18  ;;  %v3144_v26 = vld [vmem:[#allocation2 + $0x1ea] sm:$0xff] }
 0x253   :  { %4319 = vst.msk [vmem:[#allocation4 + $0x20] sm:$0xff] %vm4218_vm12, %v4233_v5  ;;  %v1751_v7 = vpop.permute.xlu1 %1750 }
 0x254   :  { %v1368_v8 = vpop.permute.xlu0 %1367  ;;  %1917 = vst.msk [vmem:[#allocation3 + $0xd0] sm:$0xff] %vm1890_vm6, %v1751_v7 }
 0x255   :  { %1533 = vst.msk [vmem:[#allocation3 + $0xd8] sm:$0xff] %vm1505_vm5, %v1368_v8  ;;  %2533 = vrot.lane.b32.xlu1 %v8138_v15, %s7050_s26  ;;  %v8465_v2 = vld [vmem:[#allocation2 + $0x2c0] sm:$0xff]  ;;  %v8484_v9 = vld [vmem:[#allocation2 + $0x258] sm:$0xff] }
 0x256   :  { %2149 = vrot.lane.b32.xlu0 %v1988_v47, %s7049_s23  ;;  %406 = vst.msk [vmem:[#allocation3 + $0x1b8] sm:$0xff] %vm48_vm0, %v8465_v2  ;;  %397 = vst.msk [vmem:[#allocation3 + $0x170] sm:$0xff] %vm48_vm0, %v8484_v9 }
 0x257   :  { %v3288_v48 = vpop.permute.xlu1 %3287 }
 0x258   :  { %v2905_v14 = vpop.permute.xlu0 %2904  ;;  %3456 = vst.msk [vmem:[#allocation3 + $0xc0] sm:$0xff] %vm3431_vm10, %v3288_v48 }
 0x259   :  { %3072 = vst.msk [vmem:[#allocation3 + $0xc8] sm:$0xff] %vm3046_vm9, %v2905_v14  ;;  %1381 = vrot.lane.b32.xlu1 %v8138_v15, %s7047_s19 }
 0x25a   :  { %v4351_v16 = vld [vmem:[#allocation4 + $0x20] ss:$2 sm:$0xff]  ;;  %v4383_v17 = vld [vmem:[#allocation4 + $0x21] ss:$2 sm:$0xff]  ;;  %998 = vrot.lane.b32.xlu0 %v1988_v47, %s7045_s17 }
 0x25b   :  { %v4412_v18 = vmax.f32 %v4351_v16, %v4383_v17  ;;  %v1753_v21 = vpop.permute.xlu1 %1752  ;;  %v3146_v16 = vld [vmem:[#allocation2 + $0x202] sm:$0xff] }
 0x25c   :  { %v600_v27 = vpop.permute.xlu0 %599  ;;  %1918 = vst.msk [vmem:[#allocation3 + $0xd8] sm:$0xff] %vm1890_vm6, %v1753_v21 }
 0x25d   :  { %764 = vst.msk [vmem:[#allocation3 + $0xe0] sm:$0xff] %vm735_vm3, %v600_v27  ;;  %2918 = vrot.lane.b32.xlu1 %v2758_v20, %s7051_s27 }
 0x25e   :  { %4470 = vst.msk [vmem:[#allocation5 + $0x31] sm:$0xff] %vm4218_vm12, %v4412_v18  ;;  %2535 = vrot.lane.b32.xlu0 %v8156_v25, %s7050_s26 }
 0x25f   :  { %v3290_v15 = vpop.permute.xlu1 %3289  ;;  %v3520_v24 = vld [vmem:[#allocation3 + $0xc0] sm:$0xff] }
 0x260   :  { %v2136_v23 = vpop.permute.xlu0 %2135  ;;  %3457 = vst.msk [vmem:[#allocation3 + $0xc8] sm:$0xff] %vm3431_vm10, %v3290_v15  ;;  %6815 = vmatprep.mubr.msk.f32.mxu0 %vm3572_vm11, %v3520_v24 }
 0x261   :  { %2302 = vst.msk [vmem:[#allocation3 + $0xd0] sm:$0xff] %vm2275_vm7, %v2136_v23  ;;  %1766 = vrot.lane.b32.xlu1 %v2758_v20, %s7048_s20 }
 0x262   :  { %1383 = vrot.lane.b32.xlu0 %v8156_v25, %s7047_s19 }
 0x263   :  { %v985_v28 = vpop.permute.xlu1 %984 }
 0x264   :  { %v602_v29 = vpop.permute.xlu0 %601  ;;  %1149 = vst.msk [vmem:[#allocation3 + $0xe0] sm:$0xff] %vm1120_vm4, %v985_v28 }
 0x265   :  { %v8420_v30 = vld [vmem:[#allocation5 + $0x30] sm:$0xff]  ;;  %765 = vst.msk [vmem:[#allocation3 + $0xe8] sm:$0xff] %vm735_vm3, %v602_v29  ;;  %3303 = vrot.lane.b32.xlu1 %v3143_v12, %s7052_s25 }
 0x266   :  { %4503 = vst.msk [vmem:[#allocation6 + $0x18] sm:$0xff] %vm4218_vm12, %v8420_v30  ;;  %2920 = vrot.lane.b32.xlu0 %v2759_v53, %s7051_s27 }
 0x267   :  { %v2522_v34 = vpop.permute.xlu1 %2521  ;;  %v3521_v25 = vld [vmem:[#allocation3 + $0xc8] sm:$0xff] }
 0x268   :  { %v2138_v36 = vpop.permute.xlu0 %2137  ;;  %2688 = vst.msk [vmem:[#allocation3 + $0xd0] sm:$0xff] %vm2661_vm8, %v2522_v34  ;;  %6816 = vmatmul.mubr.msk.f32.gmra.mxu0 %vm3572_vm11, %v3521_v25  ;;  %v6799_v61 = vpop.f32.mrf.mxu0  ;;  %v8519_v25 = vld [vmem:[#allocation2 + $0x260] sm:$0xff] }
 0x269   :  { %2303 = vst.msk [vmem:[#allocation3 + $0xd8] sm:$0xff] %vm2275_vm7, %v2138_v36  ;;  %1768 = vrot.lane.b32.xlu1 %v2759_v53, %s7048_s20  ;;  %v3901_v5 = vadd.f32 %v6799_v61, %v8103_v42 }
 0x26a   :  { %615 = vrot.lane.b32.xlu0 %v2758_v20, %s7046_s18  ;;  %v3895_v4 = vpop.f32.mrf.mxu0  ;;  %v8505_v20 = vld [vmem:[%s10125_s2] ss:$0 sm:$0xff]  ;;  %398 = vst.msk [vmem:[#allocation3 + $0x178] sm:$0xff] %vm48_vm0, %v8519_v25 }
 0x26b   :  { %v1370_v46 = vpop.permute.xlu1 %1369  ;;  %v4167_v48 = vmax.f32 %v3901_v5, 0.0 }
 0x26c   :  { %v987_v38 = vpop.permute.xlu0 %986  ;;  %1534 = vst.msk [vmem:[#allocation3 + $0xe0] sm:$0xff] %vm1505_vm5, %v1370_v46  ;;  %v212_v46 = vld [vmem:[%s10123_s0 + $0x1b0] sm:$0xff] }
 0x26d   :  { %1150 = vst.msk [vmem:[#allocation3 + $0xe8] sm:$0xff] %vm1120_vm4, %v987_v38  ;;  %3305 = vrot.lane.b32.xlu1 %v3144_v26, %s7052_s25 }
 0x26e   :  { %2151 = vrot.lane.b32.xlu0 %v3143_v12, %s7049_s23  ;;  %277 = vst.msk [vmem:[#allocation2 + $0x2d1] sm:$0xff] %vm48_vm0, %v212_v46 }
 0x26f   :  { %v2907_v41 = vpop.permute.xlu1 %2906 }
 0x270   :  { %v2524_v56 = vpop.permute.xlu0 %2523  ;;  %3073 = vst.msk [vmem:[#allocation3 + $0xd0] sm:$0xff] %vm3046_vm9, %v2907_v41 }
 0x271   :  { %2689 = vst.msk [vmem:[#allocation3 + $0xd8] sm:$0xff] %vm2661_vm8, %v2524_v56  ;;  %1000 = vrot.lane.b32.xlu1 %v3143_v12, %s7045_s17 }
 0x272   :  { %617 = vrot.lane.b32.xlu0 %v2759_v53, %s7046_s18 }
 0x273   :  { %v1755_v43 = vpop.permute.xlu1 %1754 }
 0x274   :  { %v1372_v44 = vpop.permute.xlu0 %1371  ;;  %1919 = vst.msk [vmem:[#allocation3 + $0xe0] sm:$0xff] %vm1890_vm6, %v1755_v43 }
 0x275   :  { %1535 = vst.msk [vmem:[#allocation3 + $0xe8] sm:$0xff] %vm1505_vm5, %v1372_v44  ;;  %2537 = vrot.lane.b32.xlu1 %v8197_v49, %s7050_s26 }
 0x276   :  { %2153 = vrot.lane.b32.xlu0 %v3144_v26, %s7049_s23 }
 0x277   :  { %v3292_v55 = vpop.permute.xlu1 %3291 }
 0x278   :  { %v2909_v57 = vpop.permute.xlu0 %2908  ;;  %3458 = vst.msk [vmem:[#allocation3 + $0xd0] sm:$0xff] %vm3431_vm10, %v3292_v55 }
 0x279   :  { %3074 = vst.msk [vmem:[#allocation3 + $0xd8] sm:$0xff] %vm3046_vm9, %v2909_v57  ;;  %1385 = vrot.lane.b32.xlu1 %v8197_v49, %s7047_s19 }
 0x27a   :  { %1002 = vrot.lane.b32.xlu0 %v3144_v26, %s7045_s17 }
 0x27b   :  { %v1757_v52 = vpop.permute.xlu1 %1756 }
 0x27c   :  { %v604_v54 = vpop.permute.xlu0 %603  ;;  %1920 = vst.msk [vmem:[#allocation3 + $0xe8] sm:$0xff] %vm1890_vm6, %v1757_v52 }
 0x27d   :  { %766 = vst.msk [vmem:[#allocation3 + $0xf0] sm:$0xff] %vm735_vm3, %v604_v54  ;;  %2922 = vrot.lane.b32.xlu1 %v2760_v51, %s7051_s27 }
 0x27e   :  { %2539 = vrot.lane.b32.xlu0 %v8215_v58, %s7050_s26 }
 0x27f   :  { %v3294_v49 = vpop.permute.xlu1 %3293  ;;  %v3522_v63 = vld [vmem:[#allocation3 + $0xd0] sm:$0xff] }
 0x280   :  { %v2140_v59 = vpop.permute.xlu0 %2139  ;;  %3459 = vst.msk [vmem:[#allocation3 + $0xd8] sm:$0xff] %vm3431_vm10, %v3294_v49  ;;  %6818 = vmatprep.mubr.msk.f32.mxu0 %vm3572_vm11, %v3522_v63  ;;  %v2763_v49 = vld [vmem:[#allocation2 + $0x219] sm:$0xff] }
 0x281   :  { %2304 = vst.msk [vmem:[#allocation3 + $0xe0] sm:$0xff] %vm2275_vm7, %v2140_v59  ;;  %1770 = vrot.lane.b32.xlu1 %v2760_v51, %s7048_s20 }
 0x282   :  { %1387 = vrot.lane.b32.xlu0 %v8215_v58, %s7047_s19  ;;  %v3896_v58 = vadd.f32 %v8103_v42, %v3895_v4 }
 0x283   :  { %v989_v0 = vpop.permute.xlu1 %988 }
 0x284   :  { %v606_v3 = vpop.permute.xlu0 %605  ;;  %1151 = vst.msk [vmem:[#allocation3 + $0xf0] sm:$0xff] %vm1120_vm4, %v989_v0  ;;  %v4166_v17 = vmax.f32 %v3896_v58, 0.0 }
 0x285   :  { %767 = vst.msk [vmem:[#allocation3 + $0xf8] sm:$0xff] %vm735_vm3, %v606_v3  ;;  %3307 = vrot.lane.b32.xlu1 %v3145_v62, %s7052_s25  ;;  %v3148_v3 = vld [vmem:[#allocation2 + $0x21a] sm:$0xff] }
 0x286   :  { %2924 = vrot.lane.b32.xlu0 %v2761_v45, %s7051_s27  ;;  %v4237_v53 = vsel %vm4218_vm12, %v4166_v17, -inf }
 0x287   :  { %v2526_v6 = vpop.permute.xlu1 %2525  ;;  %v3523_v7 = vld [vmem:[#allocation3 + $0xd8] sm:$0xff] }
 0x288   :  { %v2142_v47 = vpop.permute.xlu0 %2141  ;;  %2690 = vst.msk [vmem:[#allocation3 + $0xe0] sm:$0xff] %vm2661_vm8, %v2526_v6  ;;  %v6802_v8 = vpop.f32.mrf.mxu0  ;;  %6819 = vmatmul.mubr.msk.f32.gmra.mxu0 %vm3572_vm11, %v3523_v7 }
 0x289   :  { %2305 = vst.msk [vmem:[#allocation3 + $0xe8] sm:$0xff] %vm2275_vm7, %v2142_v47  ;;  %v3911_v14 = vadd.f32 %v6802_v8, %v8103_v42  ;;  %1772 = vrot.lane.b32.xlu1 %v2761_v45, %s7048_s20  ;;  %v4240_v42 = vsel %vm4218_vm12, %v4167_v48, -inf }
 0x28a   :  { %619 = vrot.lane.b32.xlu0 %v2760_v51, %s7046_s18  ;;  %v3905_v19 = vpop.f32.mrf.mxu0  ;;  %v8542_v51 = vld [vmem:[#allocation2 + $0x2d0] sm:$0xff] }
 0x28b   :  { %v4169_v18 = vmax.f32 %v3911_v14, 0.0  ;;  %v3906_v21 = vadd.f32 %v8505_v20, %v3905_v19  ;;  %v1374_v27 = vpop.permute.xlu1 %1373  ;;  %407 = vst.msk [vmem:[#allocation3 + $0x1c0] sm:$0xff] %vm48_vm0, %v8542_v51  ;;  %v2764_v19 = vld [vmem:[#allocation2 + $0x229] sm:$0xff] }
 0x28c   :  { %v991_v15 = vpop.permute.xlu0 %990  ;;  %1536 = vst.msk [vmem:[#allocation3 + $0xf0] sm:$0xff] %vm1505_vm5, %v1374_v27 }
 0x28d   :  { %1152 = vst.msk [vmem:[#allocation3 + $0xf8] sm:$0xff] %vm1120_vm4, %v991_v15  ;;  %v4241_v23 = vsel %vm4218_vm12, %v4169_v18, -inf  ;;  %v4168_v24 = vmax.f32 %v3906_v21, 0.0  ;;  %3309 = vrot.lane.b32.xlu1 %v3146_v16, %s7052_s25  ;;  %v8601_v18 = vld [vmem:[#allocation2 + $0x270] sm:$0xff] }
 0x28e   :  { %2155 = vrot.lane.b32.xlu0 %v3145_v62, %s7049_s23  ;;  %v4242_v12 = vmax.f32 %v4240_v42, %v4241_v23  ;;  %399 = vst.msk [vmem:[#allocation3 + $0x180] sm:$0xff] %vm48_vm0, %v8601_v18  ;;  %v3149_v42 = vld [vmem:[#allocation2 + $0x22a] sm:$0xff] }
 0x28f   :  { %v4238_v28 = vsel %vm4218_vm12, %v4168_v24, -inf  ;;  %v2911_v29 = vpop.permute.xlu1 %2910  ;;  %v2765_v23 = vld [vmem:[#allocation2 + $0x231] sm:$0xff] }
 0x290   :  { %v2528_v34 = vpop.permute.xlu0 %2527  ;;  %4322 = vst.msk [vmem:[#allocation4 + $0x38] sm:$0xff] %vm4218_vm12, %v4242_v12  ;;  %v4239_v36 = vmax.f32 %v4237_v53, %v4238_v28  ;;  %v205_v28 = vld [vmem:[%s10123_s0 + $0x178] sm:$0xff] }
 0x291   :  { %3075 = vst.msk [vmem:[#allocation3 + $0xe0] sm:$0xff] %vm3046_vm9, %v2911_v29  ;;  %1004 = vrot.lane.b32.xlu1 %v3145_v62, %s7045_s17  ;;  %v213_v62 = vld [vmem:[%s10123_s0 + $0x1b8] sm:$0xff] }
 0x292   :  { %2691 = vst.msk [vmem:[#allocation3 + $0xe8] sm:$0xff] %vm2661_vm8, %v2528_v34  ;;  %621 = vrot.lane.b32.xlu0 %v2761_v45, %s7046_s18 }
 0x293   :  { %4321 = vst.msk [vmem:[#allocation4 + $0x30] sm:$0xff] %vm4218_vm12, %v4239_v36  ;;  %v1759_v37 = vpop.permute.xlu1 %1758 }
 0x294   :  { %v1376_v26 = vpop.permute.xlu0 %1375  ;;  %1921 = vst.msk [vmem:[#allocation3 + $0xf0] sm:$0xff] %vm1890_vm6, %v1759_v37 }
 0x295   :  { %1537 = vst.msk [vmem:[#allocation3 + $0xf8] sm:$0xff] %vm1505_vm5, %v1376_v26  ;;  %2541 = vrot.lane.b32.xlu1 %v8261_v33, %s7050_s26 }
 0x296   :  { %2157 = vrot.lane.b32.xlu0 %v3146_v16, %s7049_s23  ;;  %278 = vst.msk [vmem:[#allocation2 + $0x2d9] sm:$0xff] %vm48_vm0, %v213_v62  ;;  %270 = vst.msk [vmem:[#allocation2 + $0x279] sm:$0xff] %vm48_vm0, %v205_v28  ;;  %v2767_v28 = vld [vmem:[#allocation2 + $0x249] sm:$0xff] }
 0x297   :  { %v3296_v38 = vpop.permute.xlu1 %3295 }
 0x298   :  { %v2913_v41 = vpop.permute.xlu0 %2912  ;;  %3460 = vst.msk [vmem:[#allocation3 + $0xe0] sm:$0xff] %vm3431_vm10, %v3296_v38 }
 0x299   :  { %3076 = vst.msk [vmem:[#allocation3 + $0xe8] sm:$0xff] %vm3046_vm9, %v2913_v41  ;;  %1389 = vrot.lane.b32.xlu1 %v8261_v33, %s7047_s19 }
 0x29a   :  { %v4353_v56 = vld [vmem:[#allocation4 + $0x30] ss:$2 sm:$0xff]  ;;  %v4385_v43 = vld [vmem:[#allocation4 + $0x31] ss:$2 sm:$0xff]  ;;  %1006 = vrot.lane.b32.xlu0 %v3146_v16, %s7045_s17 }
 0x29b   :  { %v4413_v44 = vmax.f32 %v4353_v56, %v4385_v43  ;;  %v1761_v55 = vpop.permute.xlu1 %1760  ;;  %v3150_v56 = vld [vmem:[#allocation2 + $0x232] sm:$0xff] }
 0x29c   :  { %v608_v57 = vpop.permute.xlu0 %607  ;;  %1922 = vst.msk [vmem:[#allocation3 + $0xf8] sm:$0xff] %vm1890_vm6, %v1761_v55 }
 0x29d   :  { %768 = vst.msk [vmem:[#allocation3 + $0x100] sm:$0xff] %vm735_vm3, %v608_v57  ;;  %2926 = vrot.lane.b32.xlu1 %v2762_v35, %s7051_s27  ;;  %v8575_v58 = vld [vmem:[#allocation2 + $0x2d8] sm:$0xff] }
 0x29e   :  { %4471 = vst.msk [vmem:[#allocation5 + $0x41] sm:$0xff] %vm4218_vm12, %v4413_v44  ;;  %2543 = vrot.lane.b32.xlu0 %v8277_v50, %s7050_s26 }
 0x29f   :  { %v3298_v33 = vpop.permute.xlu1 %3297  ;;  %v3524_v54 = vld [vmem:[#allocation3 + $0xe0] sm:$0xff]  ;;  %408 = vst.msk [vmem:[#allocation3 + $0x1c8] sm:$0xff] %vm48_vm0, %v8575_v58 }
 0x2a0   :  { %v2144_v52 = vpop.permute.xlu0 %2143  ;;  %3461 = vst.msk [vmem:[#allocation3 + $0xe8] sm:$0xff] %vm3431_vm10, %v3298_v33  ;;  %6821 = vmatprep.mubr.msk.f32.mxu0 %vm3572_vm11, %v3524_v54  ;;  %v8633_v33 = vld [vmem:[#allocation2 + $0x278] sm:$0xff] }
 0x2a1   :  { %2306 = vst.msk [vmem:[#allocation3 + $0xf0] sm:$0xff] %vm2275_vm7, %v2144_v52  ;;  %1774 = vrot.lane.b32.xlu1 %v2762_v35, %s7048_s20 }
 0x2a2   :  { %1391 = vrot.lane.b32.xlu0 %v8277_v50, %s7047_s19  ;;  %400 = vst.msk [vmem:[#allocation3 + $0x188] sm:$0xff] %vm48_vm0, %v8633_v33 }
 0x2a3   :  { %v993_v59 = vpop.permute.xlu1 %992 }
 0x2a4   :  { %v610_v63 = vpop.permute.xlu0 %609  ;;  %1153 = vst.msk [vmem:[#allocation3 + $0x100] sm:$0xff] %vm1120_vm4, %v993_v59 }
 0x2a5   :  { %v8556_v61 = vld [vmem:[#allocation5 + $0x40] sm:$0xff]  ;;  %769 = vst.msk [vmem:[#allocation3 + $0x108] sm:$0xff] %vm735_vm3, %v610_v63  ;;  %3311 = vrot.lane.b32.xlu1 %v3147_v39, %s7052_s25 }
 0x2a6   :  { %4504 = vst.msk [vmem:[#allocation6 + $0x20] sm:$0xff] %vm4218_vm12, %v8556_v61  ;;  %2928 = vrot.lane.b32.xlu0 %v2763_v49, %s7051_s27 }
 0x2a7   :  { %v2530_v50 = vpop.permute.xlu1 %2529  ;;  %v3525_v0 = vld [vmem:[#allocation3 + $0xe8] sm:$0xff] }
 0x2a8   :  { %v2146_v45 = vpop.permute.xlu0 %2145  ;;  %2692 = vst.msk [vmem:[#allocation3 + $0xf0] sm:$0xff] %vm2661_vm8, %v2530_v50  ;;  %6822 = vmatmul.mubr.msk.f32.gmra.mxu0 %vm3572_vm11, %v3525_v0  ;;  %v6805_v15 = vpop.f32.mrf.mxu0  ;;  %v8648_v0 = vld [vmem:[#allocation2 + $0x2a0] sm:$0xff] }
 0x2a9   :  { %2307 = vst.msk [vmem:[#allocation3 + $0xf8] sm:$0xff] %vm2275_vm7, %v2146_v45  ;;  %1776 = vrot.lane.b32.xlu1 %v2763_v49, %s7048_s20  ;;  %v3921_v29 = vadd.f32 %v8505_v20, %v6805_v15 }
 0x2aa   :  { %623 = vrot.lane.b32.xlu0 %v2762_v35, %s7046_s18  ;;  %v3915_v53 = vpop.f32.mrf.mxu0  ;;  %403 = vst.msk [vmem:[#allocation3 + $0x1a0] sm:$0xff] %vm48_vm0, %v8648_v0 }
 0x2ab   :  { %v1378_v4 = vpop.permute.xlu1 %1377  ;;  %v4171_v46 = vmax.f32 %v3921_v29, 0.0 }
 0x2ac   :  { %v995_v5 = vpop.permute.xlu0 %994  ;;  %1538 = vst.msk [vmem:[#allocation3 + $0x100] sm:$0xff] %vm1505_vm5, %v1378_v4 }
 0x2ad   :  { %1154 = vst.msk [vmem:[#allocation3 + $0x108] sm:$0xff] %vm1120_vm4, %v995_v5  ;;  %3313 = vrot.lane.b32.xlu1 %v3148_v3, %s7052_s25  ;;  %v4246_v52 = vsel %vm4218_vm12, %v4171_v46, -inf  ;;  %v853_v46 = vld [vmem:[#allocation2 + $0x2aa] sm:$0xff] }
 0x2ae   :  { %2159 = vrot.lane.b32.xlu0 %v3147_v39, %s7049_s23 }
 0x2af   :  { %v2915_v6 = vpop.permute.xlu1 %2914 }
 0x2b0   :  { %v2532_v47 = vpop.permute.xlu0 %2531  ;;  %3077 = vst.msk [vmem:[#allocation3 + $0xf0] sm:$0xff] %vm3046_vm9, %v2915_v6  ;;  %v214_v6 = vld [vmem:[%s10123_s0 + $0x1c0] sm:$0xff] }
 0x2b1   :  { %2693 = vst.msk [vmem:[#allocation3 + $0xf8] sm:$0xff] %vm2661_vm8, %v2532_v47  ;;  %1008 = vrot.lane.b32.xlu1 %v3147_v39, %s7045_s17  ;;  %v467_v47 = vld [vmem:[#allocation2 + $0x2a1] sm:$0xff] }
 0x2b2   :  { %625 = vrot.lane.b32.xlu0 %v2763_v49, %s7046_s18  ;;  %279 = vst.msk [vmem:[#allocation2 + $0x2e9] sm:$0xff] %vm48_vm0, %v214_v6 }
 0x2b3   :  { %v1763_v7 = vpop.permute.xlu1 %1762 }
 0x2b4   :  { %v1380_v8 = vpop.permute.xlu0 %1379  ;;  %1923 = vst.msk [vmem:[#allocation3 + $0x100] sm:$0xff] %vm1890_vm6, %v1763_v7 }
 0x2b5   :  { %1539 = vst.msk [vmem:[#allocation3 + $0x108] sm:$0xff] %vm1505_vm5, %v1380_v8  ;;  %2545 = vrot.lane.b32.xlu1 %v8318_v13, %s7050_s26 }
 0x2b6   :  { %2161 = vrot.lane.b32.xlu0 %v3148_v3, %s7049_s23 }
 0x2b7   :  { %v3300_v48 = vpop.permute.xlu1 %3299 }
 0x2b8   :  { %v2917_v14 = vpop.permute.xlu0 %2916  ;;  %3462 = vst.msk [vmem:[#allocation3 + $0xf0] sm:$0xff] %vm3431_vm10, %v3300_v48 }
 0x2b9   :  { %3078 = vst.msk [vmem:[#allocation3 + $0xf8] sm:$0xff] %vm3046_vm9, %v2917_v14  ;;  %1393 = vrot.lane.b32.xlu1 %v8318_v13, %s7047_s19 }
 0x2ba   :  { %1010 = vrot.lane.b32.xlu0 %v3148_v3, %s7045_s17  ;;  %v8653_v3 = vld [vmem:[#allocation2 + $0x2a8] sm:$0xff] }
 0x2bb   :  { %v1765_v16 = vpop.permute.xlu1 %1764  ;;  %404 = vst.msk [vmem:[#allocation3 + $0x1a8] sm:$0xff] %vm48_vm0, %v8653_v3 }
 0x2bc   :  { %v612_v17 = vpop.permute.xlu0 %611  ;;  %1924 = vst.msk [vmem:[#allocation3 + $0x108] sm:$0xff] %vm1890_vm6, %v1765_v16 }
 0x2bd   :  { %770 = vst.msk [vmem:[#allocation3 + $0x110] sm:$0xff] %vm735_vm3, %v612_v17  ;;  %2930 = vrot.lane.b32.xlu1 %v2764_v19, %s7051_s27  ;;  %v8672_v17 = vld [vmem:[#allocation2 + $0x2e8] sm:$0xff] }
 0x2be   :  { %2547 = vrot.lane.b32.xlu0 %v8335_v22, %s7050_s26  ;;  %409 = vst.msk [vmem:[#allocation3 + $0x1d0] sm:$0xff] %vm48_vm0, %v8672_v17 }
 0x2bf   :  { %v3302_v13 = vpop.permute.xlu1 %3301  ;;  %v3526_v27 = vld [vmem:[#allocation3 + $0xf0] sm:$0xff] }
 0x2c0   :  { %v2148_v21 = vpop.permute.xlu0 %2147  ;;  %3463 = vst.msk [vmem:[#allocation3 + $0xf8] sm:$0xff] %vm3431_vm10, %v3302_v13  ;;  %6824 = vmatprep.mubr.msk.f32.mxu0 %vm3572_vm11, %v3526_v27  ;;  %v468_v13 = vld [vmem:[#allocation2 + $0x2a9] sm:$0xff] }
 0x2c1   :  { %2308 = vst.msk [vmem:[#allocation3 + $0x100] sm:$0xff] %vm2275_vm7, %v2148_v21  ;;  %1778 = vrot.lane.b32.xlu1 %v2764_v19, %s7048_s20  ;;  %v2766_v21 = vld [vmem:[#allocation2 + $0x241] sm:$0xff] }
 0x2c2   :  { %1395 = vrot.lane.b32.xlu0 %v8335_v22, %s7047_s19  ;;  %v3916_v22 = vadd.f32 %v8505_v20, %v3915_v53  ;;  %v215_v53 = vld [vmem:[%s10123_s0 + $0x1c8] sm:$0xff] }
 0x2c3   :  { %v997_v24 = vpop.permute.xlu1 %996  ;;  %280 = vst.msk [vmem:[#allocation2 + $0x2f1] sm:$0xff] %vm48_vm0, %v215_v53 }
 0x2c4   :  { %v614_v12 = vpop.permute.xlu0 %613  ;;  %1155 = vst.msk [vmem:[#allocation3 + $0x110] sm:$0xff] %vm1120_vm4, %v997_v24  ;;  %v4170_v43 = vmax.f32 %v3916_v22, 0.0 }
 0x2c5   :  { %771 = vst.msk [vmem:[#allocation3 + $0x118] sm:$0xff] %vm735_vm3, %v614_v12  ;;  %3315 = vrot.lane.b32.xlu1 %v3149_v42, %s7052_s25 }
 0x2c6   :  { %2932 = vrot.lane.b32.xlu0 %v2765_v23, %s7051_s27  ;;  %v4243_v59 = vsel %vm4218_vm12, %v4170_v43, -inf }
 0x2c7   :  { %v2534_v34 = vpop.permute.xlu1 %2533  ;;  %v3527_v37 = vld [vmem:[#allocation3 + $0xf8] sm:$0xff] }
 0x2c8   :  { %v2150_v36 = vpop.permute.xlu0 %2149  ;;  %2694 = vst.msk [vmem:[#allocation3 + $0x100] sm:$0xff] %vm2661_vm8, %v2534_v34  ;;  %v6808_v26 = vpop.f32.mrf.mxu0  ;;  %6825 = vmatmul.mubr.msk.f32.gmra.mxu0 %vm3572_vm11, %v3527_v37 }
 0x2c9   :  { %2309 = vst.msk [vmem:[#allocation3 + $0x108] sm:$0xff] %vm2275_vm7, %v2150_v36  ;;  %v3931_v38 = vadd.f32 %v8505_v20, %v6808_v26  ;;  %1780 = vrot.lane.b32.xlu1 %v2765_v23, %s7048_s20  ;;  %v3151_v36 = vld [vmem:[#allocation2 + $0x242] sm:$0xff] }
 0x2ca   :  { %627 = vrot.lane.b32.xlu0 %v2764_v19, %s7046_s18  ;;  %v3925_v41 = vpop.f32.mrf.mxu0  ;;  %v8706_v26 = vld [vmem:[#allocation2 + $0x2f0] sm:$0xff] }
 0x2cb   :  { %v4173_v44 = vmax.f32 %v3931_v38, 0.0  ;;  %v3926_v35 = vadd.f32 %v8505_v20, %v3925_v41  ;;  %v1382_v55 = vpop.permute.xlu1 %1381  ;;  %410 = vst.msk [vmem:[#allocation3 + $0x1d8] sm:$0xff] %vm48_vm0, %v8706_v26 }
 0x2cc   :  { %v999_v57 = vpop.permute.xlu0 %998  ;;  %1540 = vst.msk [vmem:[#allocation3 + $0x110] sm:$0xff] %vm1505_vm5, %v1382_v55 }
 0x2cd   :  { %1156 = vst.msk [vmem:[#allocation3 + $0x118] sm:$0xff] %vm1120_vm4, %v999_v57  ;;  %v4247_v54 = vsel %vm4218_vm12, %v4173_v44, -inf  ;;  %v4172_v39 = vmax.f32 %v3926_v35, 0.0  ;;  %3317 = vrot.lane.b32.xlu1 %v3150_v56, %s7052_s25  ;;  %v206_v44 = vld [vmem:[%s10123_s0 + $0x180] sm:$0xff]  ;;  %v3152_v35 = vld [vmem:[#allocation2 + $0x24a] sm:$0xff] }
 0x2ce   :  { %2163 = vrot.lane.b32.xlu0 %v3149_v42, %s7049_s23  ;;  %v4248_v49 = vmax.f32 %v4246_v52, %v4247_v54  ;;  %271 = vst.msk [vmem:[#allocation2 + $0x289] sm:$0xff] %vm48_vm0, %v206_v44 }
 0x2cf   :  { %v4244_v63 = vsel %vm4218_vm12, %v4172_v39, -inf  ;;  %v2919_v62 = vpop.permute.xlu1 %2918  ;;  %v1622_v39 = vld [vmem:[#allocation2 + $0x2b9] sm:$0xff] }
 0x2d0   :  { %v2536_v50 = vpop.permute.xlu0 %2535  ;;  %4324 = vst.msk [vmem:[#allocation4 + $0x48] sm:$0xff] %vm4218_vm12, %v4248_v49  ;;  %v4245_v45 = vmax.f32 %v4243_v59, %v4244_v63 }
 0x2d1   :  { %3079 = vst.msk [vmem:[#allocation3 + $0x100] sm:$0xff] %vm3046_vm9, %v2919_v62  ;;  %1012 = vrot.lane.b32.xlu1 %v3149_v42, %s7045_s17 }
 0x2d2   :  { %2695 = vst.msk [vmem:[#allocation3 + $0x108] sm:$0xff] %vm2661_vm8, %v2536_v50  ;;  %629 = vrot.lane.b32.xlu0 %v2765_v23, %s7046_s18  ;;  %v852_v23 = vld [vmem:[#allocation2 + $0x2a2] sm:$0xff] }
 0x2d3   :  { %4323 = vst.msk [vmem:[#allocation4 + $0x40] sm:$0xff] %vm4218_vm12, %v4245_v45  ;;  %v1767_v4 = vpop.permute.xlu1 %1766 }
 0x2d4   :  { %v1384_v5 = vpop.permute.xlu0 %1383  ;;  %1925 = vst.msk [vmem:[#allocation3 + $0x110] sm:$0xff] %vm1890_vm6, %v1767_v4  ;;  %v207_v4 = vld [vmem:[%s10123_s0 + $0x188] sm:$0xff] }
 0x2d5   :  { %1541 = vst.msk [vmem:[#allocation3 + $0x118] sm:$0xff] %vm1505_vm5, %v1384_v5  ;;  %2549 = vrot.lane.b32.xlu1 %v8384_v10, %s7050_s26  ;;  %v8731_v54 = vld [vmem:[#allocation2 + $0x288] sm:$0xff] }
 0x2d6   :  { %2165 = vrot.lane.b32.xlu0 %v3150_v56, %s7049_s23  ;;  %401 = vst.msk [vmem:[#allocation3 + $0x190] sm:$0xff] %vm48_vm0, %v8731_v54  ;;  %272 = vst.msk [vmem:[#allocation2 + $0x291] sm:$0xff] %vm48_vm0, %v207_v4  ;;  %v217_v4 = vld [vmem:[%s10123_s0 + $0x1d8] sm:$0xff] }
 0x2d7   :  { %v3304_v7 = vpop.permute.xlu1 %3303  ;;  %282 = vst.msk [vmem:[#allocation2 + $0x309] sm:$0xff] %vm48_vm0, %v217_v4 }
 0x2d8   :  { %v2921_v8 = vpop.permute.xlu0 %2920  ;;  %3464 = vst.msk [vmem:[#allocation3 + $0x100] sm:$0xff] %vm3431_vm10, %v3304_v7 }
 0x2d9   :  { %3080 = vst.msk [vmem:[#allocation3 + $0x108] sm:$0xff] %vm3046_vm9, %v2921_v8  ;;  %1014 = vrot.lane.b32.xlu1 %v3150_v56, %s7045_s17 }
 0x2da   :  { %v4355_v11 = vld [vmem:[#allocation4 + $0x40] ss:$2 sm:$0xff]  ;;  %v4387_v48 = vld [vmem:[#allocation4 + $0x41] ss:$2 sm:$0xff]  ;;  %647 = vrot.lane.b32.xlu0 %v467_v47, %s7046_s18 }
 0x2db   :  { %v4414_v14 = vmax.f32 %v4355_v11, %v4387_v48  ;;  %v1769_v19 = vpop.permute.xlu1 %1768 }
 0x2dc   :  { %v616_v16 = vpop.permute.xlu0 %615  ;;  %1926 = vst.msk [vmem:[#allocation3 + $0x118] sm:$0xff] %vm1890_vm6, %v1769_v19 }
 0x2dd   :  { %772 = vst.msk [vmem:[#allocation3 + $0x120] sm:$0xff] %vm735_vm3, %v616_v16  ;;  %2551 = vrot.lane.b32.xlu1 %v8406_v31, %s7050_s26  ;;  %v2007_v16 = vld [vmem:[#allocation2 + $0x2ba] sm:$0xff] }
 0x2de   :  { %4472 = vst.msk [vmem:[#allocation5 + $0x51] sm:$0xff] %vm4218_vm12, %v4414_v14  ;;  %1397 = vrot.lane.b32.xlu0 %v8384_v10, %s7047_s19 }
 0x2df   :  { %v3306_v27 = vpop.permute.xlu1 %3305  ;;  %v3528_v42 = vld [vmem:[#allocation3 + $0x100] sm:$0xff] }
 0x2e0   :  { %v2152_v15 = vpop.permute.xlu0 %2151  ;;  %3465 = vst.msk [vmem:[#allocation3 + $0x108] sm:$0xff] %vm3431_vm10, %v3306_v27  ;;  %6827 = vmatprep.mubr.msk.f32.mxu0 %vm3572_vm11, %v3528_v42 }
 0x2e1   :  { %2310 = vst.msk [vmem:[#allocation3 + $0x110] sm:$0xff] %vm2275_vm7, %v2152_v15  ;;  %649 = vrot.lane.b32.xlu1 %v468_v13, %s7046_s18  ;;  %v1623_v13 = vld [vmem:[#allocation2 + $0x2c1] sm:$0xff] }
 0x2e2   :  { %2934 = vrot.lane.b32.xlu0 %v2766_v21, %s7051_s27 }
 0x2e3   :  { %v1001_v10 = vpop.permute.xlu1 %1000 }
 0x2e4   :  { %v618_v24 = vpop.permute.xlu0 %617  ;;  %1157 = vst.msk [vmem:[#allocation3 + $0x120] sm:$0xff] %vm1120_vm4, %v1001_v10  ;;  %v8764_v10 = vld [vmem:[#allocation2 + $0x290] sm:$0xff] }
 0x2e5   :  { %v8686_v12 = vld [vmem:[#allocation5 + $0x50] sm:$0xff]  ;;  %773 = vst.msk [vmem:[#allocation3 + $0x128] sm:$0xff] %vm735_vm3, %v618_v24  ;;  %1399 = vrot.lane.b32.xlu1 %v8406_v31, %s7047_s19 }
 0x2e6   :  { %4505 = vst.msk [vmem:[#allocation6 + $0x28] sm:$0xff] %vm4218_vm12, %v8686_v12  ;;  %1032 = vrot.lane.b32.xlu0 %v852_v23, %s7045_s17 }
 0x2e7   :  { %v2538_v29 = vpop.permute.xlu1 %2537  ;;  %v3529_v34 = vld [vmem:[#allocation3 + $0x108] sm:$0xff]  ;;  %402 = vst.msk [vmem:[#allocation3 + $0x198] sm:$0xff] %vm48_vm0, %v8764_v10 }
 0x2e8   :  { %v2154_v22 = vpop.permute.xlu0 %2153  ;;  %2696 = vst.msk [vmem:[#allocation3 + $0x110] sm:$0xff] %vm2661_vm8, %v2538_v29  ;;  %6828 = vmatmul.mubr.msk.f32.gmra.mxu0 %vm3572_vm11, %v3529_v34  ;;  %v6811_v62 = vpop.f32.mrf.mxu0  ;;  %v2768_v29 = vld [vmem:[#allocation2 + $0x259] sm:$0xff] }
 0x2e9   :  { %2311 = vst.msk [vmem:[#allocation3 + $0x118] sm:$0xff] %vm2275_vm7, %v2154_v22  ;;  %2936 = vrot.lane.b32.xlu1 %v2767_v28, %s7051_s27  ;;  %v3941_v5 = vadd.f32 %v8505_v20, %v6811_v62 }
 0x2ea   :  { %1782 = vrot.lane.b32.xlu0 %v2766_v21, %s7048_s20  ;;  %v3935_v45 = vpop.f32.mrf.mxu0 }
 0x2eb   :  { %v1386_v31 = vpop.permute.xlu1 %1385  ;;  %v3936_v6 = vadd.f32 %v8505_v20, %v3935_v45  ;;  %v4175_v48 = vmax.f32 %v3941_v5, 0.0 }
 0x2ec   :  { %v1003_v37 = vpop.permute.xlu0 %1002  ;;  %1542 = vst.msk [vmem:[#allocation3 + $0x120] sm:$0xff] %vm1505_vm5, %v1386_v31 }
 0x2ed   :  { %1158 = vst.msk [vmem:[#allocation3 + $0x128] sm:$0xff] %vm1120_vm4, %v1003_v37  ;;  %631 = vrot.lane.b32.xlu1 %v2766_v21, %s7046_s18  ;;  %v4174_v21 = vmax.f32 %v3936_v6, 0.0  ;;  %v4252_v24 = vsel %vm4218_vm12, %v4175_v48, -inf  ;;  %v3154_v48 = vld [vmem:[#allocation2 + $0x262] sm:$0xff] }
 0x2ee   :  { %3319 = vrot.lane.b32.xlu0 %v3151_v36, %s7052_s25 }
 0x2ef   :  { %v2923_v38 = vpop.permute.xlu1 %2922  ;;  %v4249_v22 = vsel %vm4218_vm12, %v4174_v21, -inf }
 0x2f0   :  { %v2540_v41 = vpop.permute.xlu0 %2539  ;;  %3081 = vst.msk [vmem:[#allocation3 + $0x110] sm:$0xff] %vm3046_vm9, %v2923_v38 }
 0x2f1   :  { %2697 = vst.msk [vmem:[#allocation3 + $0x118] sm:$0xff] %vm2661_vm8, %v2540_v41  ;;  %1417 = vrot.lane.b32.xlu1 %v8443_v40, %s7047_s19  ;;  %v216_v41 = vld [vmem:[%s10123_s0 + $0x1d0] sm:$0xff] }
 0x2f2   :  { %1034 = vrot.lane.b32.xlu0 %v853_v46, %s7045_s17  ;;  %281 = vst.msk [vmem:[#allocation2 + $0x301] sm:$0xff] %vm48_vm0, %v216_v41 }
 0x2f3   :  { %v1771_v56 = vpop.permute.xlu1 %1770 }
 0x2f4   :  { %v1388_v43 = vpop.permute.xlu0 %1387  ;;  %1927 = vst.msk [vmem:[#allocation3 + $0x120] sm:$0xff] %vm1890_vm6, %v1771_v56 }
 0x2f5   :  { %1543 = vst.msk [vmem:[#allocation3 + $0x128] sm:$0xff] %vm1505_vm5, %v1388_v43  ;;  %2167 = vrot.lane.b32.xlu1 %v3151_v36, %s7049_s23 }
 0x2f6   :  { %1784 = vrot.lane.b32.xlu0 %v2767_v28, %s7048_s20 }
 0x2f7   :  { %v3308_v40 = vpop.permute.xlu1 %3307 }
 0x2f8   :  { %v2925_v55 = vpop.permute.xlu0 %2924  ;;  %3466 = vst.msk [vmem:[#allocation3 + $0x110] sm:$0xff] %vm3431_vm10, %v3308_v40 }
 0x2f9   :  { %3082 = vst.msk [vmem:[#allocation3 + $0x118] sm:$0xff] %vm3046_vm9, %v2925_v55  ;;  %633 = vrot.lane.b32.xlu1 %v2767_v28, %s7046_s18  ;;  %v2008_v55 = vld [vmem:[#allocation2 + $0x2c2] sm:$0xff] }
 0x2fa   :  { %3321 = vrot.lane.b32.xlu0 %v3152_v35, %s7052_s25 }
 0x2fb   :  { %v1773_v57 = vpop.permute.xlu1 %1772 }
 0x2fc   :  { %v620_v52 = vpop.permute.xlu0 %619  ;;  %1928 = vst.msk [vmem:[#allocation3 + $0x128] sm:$0xff] %vm1890_vm6, %v1773_v57 }
 0x2fd   :  { %774 = vst.msk [vmem:[#allocation3 + $0x130] sm:$0xff] %vm735_vm3, %v620_v52  ;;  %1419 = vrot.lane.b32.xlu1 %v8465_v2, %s7047_s19 }
 0x2fe   :  { %1016 = vrot.lane.b32.xlu0 %v3151_v36, %s7045_s17 }
 0x2ff   :  { %v3310_v49 = vpop.permute.xlu1 %3309  ;;  %v3530_v63 = vld [vmem:[#allocation3 + $0x110] sm:$0xff] }
 0x300   :  { %v2156_v59 = vpop.permute.xlu0 %2155  ;;  %3467 = vst.msk [vmem:[#allocation3 + $0x118] sm:$0xff] %vm3431_vm10, %v3310_v49  ;;  %6830 = vmatprep.mubr.msk.f32.mxu0 %vm3572_vm11, %v3530_v63  ;;  %v2769_v49 = vld [vmem:[#allocation2 + $0x261] sm:$0xff] }
 0x301   :  { %2312 = vst.msk [vmem:[#allocation3 + $0x120] sm:$0xff] %vm2275_vm7, %v2156_v59  ;;  %2169 = vrot.lane.b32.xlu1 %v3152_v35, %s7049_s23 }
 0x302   :  { %1802 = vrot.lane.b32.xlu0 %v1622_v39, %s7048_s20 }
 0x303   :  { %v1005_v2 = vpop.permute.xlu1 %1004 }
 0x304   :  { %v622_v50 = vpop.permute.xlu0 %621  ;;  %1159 = vst.msk [vmem:[#allocation3 + $0x130] sm:$0xff] %vm1120_vm4, %v1005_v2 }
 0x305   :  { %775 = vst.msk [vmem:[#allocation3 + $0x138] sm:$0xff] %vm735_vm3, %v622_v50  ;;  %651 = vrot.lane.b32.xlu1 %v1622_v39, %s7046_s18  ;;  %v8796_v39 = vld [vmem:[#allocation2 + $0x300] sm:$0xff] }
 0x306   :  { %2553 = vrot.lane.b32.xlu0 %v8484_v9, %s7050_s26  ;;  %411 = vst.msk [vmem:[#allocation3 + $0x1e0] sm:$0xff] %vm48_vm0, %v8796_v39 }
 0x307   :  { %v2542_v47 = vpop.permute.xlu1 %2541  ;;  %v3531_v8 = vld [vmem:[#allocation3 + $0x118] sm:$0xff] }
 0x308   :  { %v2158_v7 = vpop.permute.xlu0 %2157  ;;  %2698 = vst.msk [vmem:[#allocation3 + $0x120] sm:$0xff] %vm2661_vm8, %v2542_v47  ;;  %v6814_v11 = vpop.f32.mrf.mxu0  ;;  %6831 = vmatmul.mubr.msk.f32.gmra.mxu0 %vm3572_vm11, %v3531_v8 }
 0x309   :  { %2313 = vst.msk [vmem:[#allocation3 + $0x128] sm:$0xff] %vm2275_vm7, %v2158_v7  ;;  %v3951_v14 = vadd.f32 %v8505_v20, %v6814_v11  ;;  %1401 = vrot.lane.b32.xlu1 %v8484_v9, %s7047_s19  ;;  %v8829_v11 = vld [vmem:[#allocation2 + $0x308] sm:$0xff] }
 0x30a   :  { %1018 = vrot.lane.b32.xlu0 %v3152_v35, %s7045_s17  ;;  %v3945_v19 = vpop.f32.mrf.mxu0  ;;  %412 = vst.msk [vmem:[#allocation3 + $0x1e8] sm:$0xff] %vm48_vm0, %v8829_v11 }
 0x30b   :  { %v4177_v27 = vmax.f32 %v3951_v14, 0.0  ;;  %v3946_v15 = vadd.f32 %v8505_v20, %v3945_v19  ;;  %v1390_v42 = vpop.permute.xlu1 %1389  ;;  %v2778_v14 = vld [vmem:[#allocation2 + $0x2d1] sm:$0xff] }
 0x30c   :  { %v1007_v23 = vpop.permute.xlu0 %1006  ;;  %1544 = vst.msk [vmem:[#allocation3 + $0x130] sm:$0xff] %vm1505_vm5, %v1390_v42 }
 0x30d   :  { %1160 = vst.msk [vmem:[#allocation3 + $0x138] sm:$0xff] %vm1120_vm4, %v1007_v23  ;;  %v4253_v9 = vsel %vm4218_vm12, %v4177_v27, -inf  ;;  %v4176_v53 = vmax.f32 %v3946_v15, 0.0  ;;  %2187 = vrot.lane.b32.xlu1 %v2007_v16, %s7049_s23  ;;  %v3163_v23 = vld [vmem:[#allocation2 + $0x2d2] sm:$0xff] }
 0x30e   :  { %1804 = vrot.lane.b32.xlu0 %v1623_v13, %s7048_s20  ;;  %v4254_v28 = vmax.f32 %v4252_v24, %v4253_v9  ;;  %v2779_v24 = vld [vmem:[#allocation2 + $0x2d9] sm:$0xff] }
 0x30f   :  { %v4250_v34 = vsel %vm4218_vm12, %v4176_v53, -inf  ;;  %v2927_v36 = vpop.permute.xlu1 %2926 }
 0x310   :  { %v2544_v31 = vpop.permute.xlu0 %2543  ;;  %4326 = vst.msk [vmem:[#allocation4 + $0x58] sm:$0xff] %vm4218_vm12, %v4254_v28  ;;  %v4251_v37 = vmax.f32 %v4249_v22, %v4250_v34 }
 0x311   :  { %3083 = vst.msk [vmem:[#allocation3 + $0x120] sm:$0xff] %vm3046_vm9, %v2927_v36  ;;  %2938 = vrot.lane.b32.xlu1 %v2768_v29, %s7051_s27 }
 0x312   :  { %2699 = vst.msk [vmem:[#allocation3 + $0x128] sm:$0xff] %vm2661_vm8, %v2544_v31  ;;  %2555 = vrot.lane.b32.xlu0 %v8519_v25, %s7050_s26 }
 0x313   :  { %4325 = vst.msk [vmem:[#allocation4 + $0x50] sm:$0xff] %vm4218_vm12, %v4251_v37  ;;  %v1775_v46 = vpop.permute.xlu1 %1774 }
 0x314   :  { %v1392_v38 = vpop.permute.xlu0 %1391  ;;  %1929 = vst.msk [vmem:[#allocation3 + $0x130] sm:$0xff] %vm1890_vm6, %v1775_v46 }
 0x315   :  { %1545 = vst.msk [vmem:[#allocation3 + $0x138] sm:$0xff] %vm1505_vm5, %v1392_v38  ;;  %1036 = vrot.lane.b32.xlu1 %v2007_v16, %s7045_s17 }
 0x316   :  { %653 = vrot.lane.b32.xlu0 %v1623_v13, %s7046_s18 }
 0x317   :  { %v3312_v56 = vpop.permute.xlu1 %3311 }
 0x318   :  { %v2929_v43 = vpop.permute.xlu0 %2928  ;;  %3468 = vst.msk [vmem:[#allocation3 + $0x120] sm:$0xff] %vm3431_vm10, %v3312_v56 }
 0x319   :  { %3084 = vst.msk [vmem:[#allocation3 + $0x128] sm:$0xff] %vm3046_vm9, %v2929_v43  ;;  %1786 = vrot.lane.b32.xlu1 %v2768_v29, %s7048_s20 }
 0x31a   :  { %v4357_v44 = vld [vmem:[#allocation4 + $0x50] ss:$2 sm:$0xff]  ;;  %v4389_v35 = vld [vmem:[#allocation4 + $0x51] ss:$2 sm:$0xff]  ;;  %1403 = vrot.lane.b32.xlu0 %v8519_v25, %s7047_s19 }
 0x31b   :  { %v4415_v40 = vmax.f32 %v4357_v44, %v4389_v35  ;;  %v1777_v57 = vpop.permute.xlu1 %1776  ;;  %v3153_v25 = vld [vmem:[#allocation2 + $0x25a] sm:$0xff] }
 0x31c   :  { %v624_v52 = vpop.permute.xlu0 %623  ;;  %1930 = vst.msk [vmem:[#allocation3 + $0x138] sm:$0xff] %vm1890_vm6, %v1777_v57 }
 0x31d   :  { %776 = vst.msk [vmem:[#allocation3 + $0x140] sm:$0xff] %vm735_vm3, %v624_v52  ;;  %2573 = vrot.lane.b32.xlu1 %v8542_v51, %s7050_s26 }
 0x31e   :  { %4473 = vst.msk [vmem:[#allocation5 + $0x61] sm:$0xff] %vm4218_vm12, %v4415_v40  ;;  %2189 = vrot.lane.b32.xlu0 %v2008_v55, %s7049_s23 }
 0x31f   :  { %v3314_v59 = vpop.permute.xlu1 %3313  ;;  %v3532_v62 = vld [vmem:[#allocation3 + $0x120] sm:$0xff] }
 0x320   :  { %v2160_v63 = vpop.permute.xlu0 %2159  ;;  %3469 = vst.msk [vmem:[#allocation3 + $0x128] sm:$0xff] %vm3431_vm10, %v3314_v59  ;;  %6833 = vmatprep.mubr.msk.f32.mxu0 %vm3572_vm11, %v3532_v62  ;;  %v2770_v62 = vld [vmem:[#allocation2 + $0x271] sm:$0xff] }
 0x321   :  { %2314 = vst.msk [vmem:[#allocation3 + $0x130] sm:$0xff] %vm2275_vm7, %v2160_v63  ;;  %3323 = vrot.lane.b32.xlu1 %v3153_v25, %s7052_s25  ;;  %v3164_v63 = vld [vmem:[#allocation2 + $0x2da] sm:$0xff] }
 0x322   :  { %2940 = vrot.lane.b32.xlu0 %v2769_v49, %s7051_s27 }
 0x323   :  { %v1009_v2 = vpop.permute.xlu1 %1008 }
 0x324   :  { %v626_v50 = vpop.permute.xlu0 %625  ;;  %1161 = vst.msk [vmem:[#allocation3 + $0x140] sm:$0xff] %vm1120_vm4, %v1009_v2 }
 0x325   :  { %v8809_v45 = vld [vmem:[#allocation5 + $0x60] sm:$0xff]  ;;  %777 = vst.msk [vmem:[#allocation3 + $0x148] sm:$0xff] %vm735_vm3, %v626_v50  ;;  %1038 = vrot.lane.b32.xlu1 %v2008_v55, %s7045_s17 }
 0x326   :  { %4506 = vst.msk [vmem:[#allocation6 + $0x30] sm:$0xff] %vm4218_vm12, %v8809_v45  ;;  %635 = vrot.lane.b32.xlu0 %v2768_v29, %s7046_s18 }
 0x327   :  { %v2546_v5 = vpop.permute.xlu1 %2545  ;;  %v3533_v47 = vld [vmem:[#allocation3 + $0x128] sm:$0xff] }
 0x328   :  { %v2162_v6 = vpop.permute.xlu0 %2161  ;;  %2700 = vst.msk [vmem:[#allocation3 + $0x130] sm:$0xff] %vm2661_vm8, %v2546_v5  ;;  %6834 = vmatmul.mubr.msk.f32.gmra.mxu0 %vm3572_vm11, %v3533_v47  ;;  %v6817_v29 = vpop.f32.mrf.mxu0 }
 0x329   :  { %2315 = vst.msk [vmem:[#allocation3 + $0x138] sm:$0xff] %vm2275_vm7, %v2162_v6  ;;  %1788 = vrot.lane.b32.xlu1 %v2769_v49, %s7048_s20  ;;  %v3961_v36 = vadd.f32 %v8505_v20, %v6817_v29 }
 0x32a   :  { %1421 = vrot.lane.b32.xlu0 %v8542_v51, %s7047_s19  ;;  %v3955_v34 = vpop.f32.mrf.mxu0 }
 0x32b   :  { %v1394_v7 = vpop.permute.xlu1 %1393  ;;  %v3956_v31 = vadd.f32 %v8505_v20, %v3955_v34  ;;  %v4179_v56 = vmax.f32 %v3961_v36, 0.0 }
 0x32c   :  { %v1011_v8 = vpop.permute.xlu0 %1010  ;;  %1546 = vst.msk [vmem:[#allocation3 + $0x140] sm:$0xff] %vm1505_vm5, %v1394_v7  ;;  %v218_v7 = vld [vmem:[%s10123_s0 + $0x1e0] sm:$0xff] }
 0x32d   :  { %1162 = vst.msk [vmem:[#allocation3 + $0x148] sm:$0xff] %vm1120_vm4, %v1011_v8  ;;  %2575 = vrot.lane.b32.xlu1 %v8575_v58, %s7050_s26  ;;  %v4178_v35 = vmax.f32 %v3956_v31, 0.0  ;;  %v3156_v31 = vld [vmem:[#allocation2 + $0x27a] sm:$0xff] }
 0x32e   :  { %2171 = vrot.lane.b32.xlu0 %v3153_v25, %s7049_s23  ;;  %283 = vst.msk [vmem:[#allocation2 + $0x319] sm:$0xff] %vm48_vm0, %v218_v7 }
 0x32f   :  { %v2931_v19 = vpop.permute.xlu1 %2930 }
 0x330   :  { %v2548_v51 = vpop.permute.xlu0 %2547  ;;  %3085 = vst.msk [vmem:[#allocation3 + $0x130] sm:$0xff] %vm3046_vm9, %v2931_v19 }
 0x331   :  { %2701 = vst.msk [vmem:[#allocation3 + $0x138] sm:$0xff] %vm2661_vm8, %v2548_v51  ;;  %3325 = vrot.lane.b32.xlu1 %v3154_v48, %s7052_s25 }
 0x332   :  { %2958 = vrot.lane.b32.xlu0 %v2778_v14, %s7051_s27 }
 0x333   :  { %v1779_v16 = vpop.permute.xlu1 %1778 }
 0x334   :  { %v1396_v13 = vpop.permute.xlu0 %1395  ;;  %1931 = vst.msk [vmem:[#allocation3 + $0x140] sm:$0xff] %vm1890_vm6, %v1779_v16 }
 0x335   :  { %1547 = vst.msk [vmem:[#allocation3 + $0x148] sm:$0xff] %vm1505_vm5, %v1396_v13  ;;  %1020 = vrot.lane.b32.xlu1 %v3153_v25, %s7045_s17  ;;  %v4258_v25 = vsel %vm4218_vm12, %v4179_v56, -inf }
 0x336   :  { %637 = vrot.lane.b32.xlu0 %v2769_v49, %s7046_s18 }
 0x337   :  { %v3316_v21 = vpop.permute.xlu1 %3315 }
 0x338   :  { %v2933_v27 = vpop.permute.xlu0 %2932  ;;  %3470 = vst.msk [vmem:[#allocation3 + $0x130] sm:$0xff] %vm3431_vm10, %v3316_v21  ;;  %v8903_v21 = vld [vmem:[#allocation2 + $0x318] sm:$0xff] }
 0x339   :  { %3086 = vst.msk [vmem:[#allocation3 + $0x138] sm:$0xff] %vm3046_vm9, %v2933_v27  ;;  %1806 = vrot.lane.b32.xlu1 %v2778_v14, %s7048_s20  ;;  %v2771_v27 = vld [vmem:[#allocation2 + $0x279] sm:$0xff] }
 0x33a   :  { %1423 = vrot.lane.b32.xlu0 %v8575_v58, %s7047_s19  ;;  %413 = vst.msk [vmem:[#allocation3 + $0x1f0] sm:$0xff] %vm48_vm0, %v8903_v21 }
 0x33b   :  { %v1781_v15 = vpop.permute.xlu1 %1780 }
 0x33c   :  { %v628_v42 = vpop.permute.xlu0 %627  ;;  %1932 = vst.msk [vmem:[#allocation3 + $0x148] sm:$0xff] %vm1890_vm6, %v1781_v15 }
 0x33d   :  { %778 = vst.msk [vmem:[#allocation3 + $0x150] sm:$0xff] %vm735_vm3, %v628_v42  ;;  %2557 = vrot.lane.b32.xlu1 %v8601_v18, %s7050_s26 }
 0x33e   :  { %2173 = vrot.lane.b32.xlu0 %v3154_v48, %s7049_s23 }
 0x33f   :  { %v3318_v9 = vpop.permute.xlu1 %3317  ;;  %v3534_v28 = vld [vmem:[#allocation3 + $0x130] sm:$0xff] }
 0x340   :  { %v2164_v53 = vpop.permute.xlu0 %2163  ;;  %3471 = vst.msk [vmem:[#allocation3 + $0x138] sm:$0xff] %vm3431_vm10, %v3318_v9  ;;  %6836 = vmatprep.mubr.msk.f32.mxu0 %vm3572_vm11, %v3534_v28 }
 0x341   :  { %2316 = vst.msk [vmem:[#allocation3 + $0x140] sm:$0xff] %vm2275_vm7, %v2164_v53  ;;  %3343 = vrot.lane.b32.xlu1 %v3163_v23, %s7052_s25  ;;  %v219_v53 = vld [vmem:[%s10123_s0 + $0x1e8] sm:$0xff] }
 0x342   :  { %2960 = vrot.lane.b32.xlu0 %v2779_v24, %s7051_s27  ;;  %284 = vst.msk [vmem:[#allocation2 + $0x321] sm:$0xff] %vm48_vm0, %v219_v53 }
 0x343   :  { %v1013_v58 = vpop.permute.xlu1 %1012 }
 0x344   :  { %v630_v22 = vpop.permute.xlu0 %629  ;;  %1163 = vst.msk [vmem:[#allocation3 + $0x150] sm:$0xff] %vm1120_vm4, %v1013_v58 }
 0x345   :  { %779 = vst.msk [vmem:[#allocation3 + $0x158] sm:$0xff] %vm735_vm3, %v630_v22  ;;  %1022 = vrot.lane.b32.xlu1 %v3154_v48, %s7045_s17 }
 0x346   :  { %655 = vrot.lane.b32.xlu0 %v2778_v14, %s7046_s18 }
 0x347   :  { %v2550_v37 = vpop.permute.xlu1 %2549  ;;  %v3535_v38 = vld [vmem:[#allocation3 + $0x138] sm:$0xff] }
 0x348   :  { %v2166_v46 = vpop.permute.xlu0 %2165  ;;  %2702 = vst.msk [vmem:[#allocation3 + $0x140] sm:$0xff] %vm2661_vm8, %v2550_v37  ;;  %v6820_v41 = vpop.f32.mrf.mxu0  ;;  %6837 = vmatmul.mubr.msk.f32.gmra.mxu0 %vm3572_vm11, %v3535_v38  ;;  %v2780_v37 = vld [vmem:[#allocation2 + $0x2e9] sm:$0xff] }
 0x349   :  { %2317 = vst.msk [vmem:[#allocation3 + $0x148] sm:$0xff] %vm2275_vm7, %v2166_v46  ;;  %v3971_v43 = vadd.f32 %v8505_v20, %v6820_v41  ;;  %1808 = vrot.lane.b32.xlu1 %v2779_v24, %s7048_s20  ;;  %v8935_v36 = vld [vmem:[#allocation2 + $0x320] sm:$0xff] }
 0x34a   :  { %1405 = vrot.lane.b32.xlu0 %v8601_v18, %s7047_s19  ;;  %v3965_v44 = vpop.f32.mrf.mxu0  ;;  %414 = vst.msk [vmem:[#allocation3 + $0x1f8] sm:$0xff] %vm48_vm0, %v8935_v36 }
 0x34b   :  { %v4181_v40 = vmax.f32 %v3971_v43, 0.0  ;;  %v3966_v55 = vadd.f32 %v8505_v20, %v3965_v44  ;;  %v1015_v57 = vpop.permute.xlu1 %1014  ;;  %v4255_v20 = vsel %vm4218_vm12, %v4178_v35, -inf }
 0x34c   :  { %v648_v52 = vpop.permute.xlu0 %647  ;;  %1164 = vst.msk [vmem:[#allocation3 + $0x158] sm:$0xff] %vm1120_vm4, %v1015_v57  ;;  %v2781_v57 = vld [vmem:[#allocation2 + $0x2f1] sm:$0xff] }
 0x34d   :  { %788 = vst.msk [vmem:[#allocation3 + $0x1a0] sm:$0xff] %vm735_vm3, %v648_v52  ;;  %v4259_v49 = vsel %vm4218_vm12, %v4181_v40, -inf  ;;  %v4180_v59 = vmax.f32 %v3966_v55, 0.0  ;;  %2559 = vrot.lane.b32.xlu1 %v8633_v33, %s7050_s26  ;;  %v8961_v55 = vld [vmem:[#allocation2 + $0x2ea] sm:$0xff] }
 0x34e   :  { %2191 = vrot.lane.b32.xlu0 %v3163_v23, %s7049_s23  ;;  %v4260_v18 = vmax.f32 %v4258_v25, %v4259_v49 }
 0x34f   :  { %v4256_v2 = vsel %vm4218_vm12, %v4180_v59, -inf  ;;  %v2552_v50 = vpop.permute.xlu1 %2551 }
 0x350   :  { %v1398_v4 = vpop.permute.xlu0 %1397  ;;  %4328 = vst.msk [vmem:[#allocation4 + $0x68] sm:$0xff] %vm4218_vm12, %v4260_v18  ;;  %v4257_v5 = vmax.f32 %v4255_v20, %v4256_v2 }
 0x351   :  { %2703 = vst.msk [vmem:[#allocation3 + $0x148] sm:$0xff] %vm2661_vm8, %v2552_v50  ;;  %3345 = vrot.lane.b32.xlu1 %v3164_v63, %s7052_s25 }
 0x352   :  { %1548 = vst.msk [vmem:[#allocation3 + $0x150] sm:$0xff] %vm1505_vm5, %v1398_v4  ;;  %2942 = vrot.lane.b32.xlu0 %v2770_v62, %s7051_s27 }
 0x353   :  { %4327 = vst.msk [vmem:[#allocation4 + $0x60] sm:$0xff] %vm4218_vm12, %v4257_v5  ;;  %v650_v6 = vpop.permute.xlu1 %649  ;;  %v220_v5 = vld [vmem:[%s10123_s0 + $0x1f0] sm:$0xff] }
 0x354   :  { %v2935_v47 = vpop.permute.xlu0 %2934  ;;  %789 = vst.msk [vmem:[#allocation3 + $0x1a8] sm:$0xff] %vm735_vm3, %v650_v6 }
 0x355   :  { %3087 = vst.msk [vmem:[#allocation3 + $0x140] sm:$0xff] %vm3046_vm9, %v2935_v47  ;;  %1040 = vrot.lane.b32.xlu1 %v3163_v23, %s7045_s17 }
 0x356   :  { %657 = vrot.lane.b32.xlu0 %v2779_v24, %s7046_s18  ;;  %285 = vst.msk [vmem:[#allocation2 + $0x331] sm:$0xff] %vm48_vm0, %v220_v5 }
 0x357   :  { %v1400_v8 = vpop.permute.xlu1 %1399 }
 0x358   :  { %v1033_v48 = vpop.permute.xlu0 %1032  ;;  %1549 = vst.msk [vmem:[#allocation3 + $0x158] sm:$0xff] %vm1505_vm5, %v1400_v8 }
 0x359   :  { %1173 = vst.msk [vmem:[#allocation3 + $0x1a0] sm:$0xff] %vm1120_vm4, %v1033_v48  ;;  %1790 = vrot.lane.b32.xlu1 %v2770_v62, %s7048_s20 }
 0x35a   :  { %v4359_v14 = vld [vmem:[#allocation4 + $0x60] ss:$2 sm:$0xff]  ;;  %v4391_v19 = vld [vmem:[#allocation4 + $0x61] ss:$2 sm:$0xff]  ;;  %1407 = vrot.lane.b32.xlu0 %v8633_v33, %s7047_s19  ;;  %v3155_v33 = vld [vmem:[#allocation2 + $0x272] sm:$0xff] }
 0x35b   :  { %v4416_v51 = vmax.f32 %v4359_v14, %v4391_v19  ;;  %v2937_v16 = vpop.permute.xlu1 %2936 }
 0x35c   :  { %v1783_v13 = vpop.permute.xlu0 %1782  ;;  %3088 = vst.msk [vmem:[#allocation3 + $0x148] sm:$0xff] %vm3046_vm9, %v2937_v16 }
 0x35d   :  { %1933 = vst.msk [vmem:[#allocation3 + $0x150] sm:$0xff] %vm1890_vm6, %v1783_v13  ;;  %2577 = vrot.lane.b32.xlu1 %v8672_v17, %s7050_s26 }
 0x35e   :  { %4474 = vst.msk [vmem:[#allocation5 + $0x71] sm:$0xff] %vm4218_vm12, %v4416_v51  ;;  %2193 = vrot.lane.b32.xlu0 %v3164_v63, %s7049_s23 }
 0x35f   :  { %v632_v15 = vpop.permute.xlu1 %631 }
 0x360   :  { %v3320_v42 = vpop.permute.xlu0 %3319  ;;  %780 = vst.msk [vmem:[#allocation3 + $0x160] sm:$0xff] %vm735_vm3, %v632_v15  ;;  %v2772_v15 = vld [vmem:[#allocation2 + $0x289] sm:$0xff] }
 0x361   :  { %3472 = vst.msk [vmem:[#allocation3 + $0x140] sm:$0xff] %vm3431_vm10, %v3320_v42  ;;  %3327 = vrot.lane.b32.xlu1 %v3155_v33, %s7052_s25 }
 0x362   :  { %2944 = vrot.lane.b32.xlu0 %v2771_v27, %s7051_s27 }
 0x363   :  { %v1418_v23 = vpop.permute.xlu1 %1417 }
 0x364   :  { %v1035_v24 = vpop.permute.xlu0 %1034  ;;  %1558 = vst.msk [vmem:[#allocation3 + $0x1a0] sm:$0xff] %vm1505_vm5, %v1418_v23 }
 0x365   :  { %v8915_v9 = vld [vmem:[#allocation5 + $0x70] sm:$0xff]  ;;  %1174 = vst.msk [vmem:[#allocation3 + $0x1a8] sm:$0xff] %vm1120_vm4, %v1035_v24  ;;  %1042 = vrot.lane.b32.xlu1 %v3164_v63, %s7045_s17  ;;  %v8973_v63 = vld [vmem:[%s10125_s2] ss:$0 sm:$0xff] }
 0x366   :  { %4507 = vst.msk [vmem:[#allocation6 + $0x38] sm:$0xff] %vm4218_vm12, %v8915_v9  ;;  %639 = vrot.lane.b32.xlu0 %v2770_v62, %s7046_s18 }
 0x367   :  { %v2168_v28 = vpop.permute.xlu1 %2167 }
 0x368   :  { %v1785_v29 = vpop.permute.xlu0 %1784  ;;  %v3536_v58 = vld [vmem:[#allocation3 + $0x140] sm:$0xff]  ;;  %2318 = vst.msk [vmem:[#allocation3 + $0x150] sm:$0xff] %vm2275_vm7, %v2168_v28  ;;  %v6823_v49 = vpop.f32.mrf.mxu0 }
 0x369   :  { %1934 = vst.msk [vmem:[#allocation3 + $0x158] sm:$0xff] %vm1890_vm6, %v1785_v29  ;;  %6839 = vmatprep.mubr.msk.f32.mxu0 %vm3572_vm11, %v3536_v58  ;;  %1792 = vrot.lane.b32.xlu1 %v2771_v27, %s7048_s20  ;;  %v3981_v62 = vadd.f32 %v8973_v63, %v6823_v49  ;;  %v221_v29 = vld [vmem:[%s10123_s0 + $0x1f8] sm:$0xff]  ;;  %s7053_s0 = smov 40  }
 0x36a   :  { %1425 = vrot.lane.b32.xlu0 %v8672_v17, %s7047_s19  ;;  %v3975_v18 = vpop.f32.mrf.mxu0  ;;  %286 = vst.msk [vmem:[#allocation2 + $0x339] sm:$0xff] %vm48_vm0, %v221_v29  ;;  %vm4790_vm0 = vcmask 261312  }
 0x36b   :  { %v634_v22 = vpop.permute.xlu1 %633  ;;  %v3976_v20 = vadd.f32 %v8973_v63, %v3975_v18  ;;  %v4183_v6 = vmax.f32 %v3981_v62, 0.0  ;;  %v2782_v18 = vld [vmem:[#allocation2 + $0x301] sm:$0xff] }
 0x36c   :  { %v3322_v34 = vpop.permute.xlu0 %3321  ;;  %781 = vst.msk [vmem:[#allocation3 + $0x168] sm:$0xff] %vm735_vm3, %v634_v22 }
 0x36d   :  { %3473 = vst.msk [vmem:[#allocation3 + $0x148] sm:$0xff] %vm3431_vm10, %v3322_v34  ;;  %2579 = vrot.lane.b32.xlu1 %v8706_v26, %s7050_s26  ;;  %v4182_v8 = vmax.f32 %v3976_v20, 0.0  ;;  %v4264_v16 = vsel %vm4218_vm12, %v4183_v6, -inf }
 0x36e   :  { %2175 = vrot.lane.b32.xlu0 %v3155_v33, %s7049_s23 }
 0x36f   :  { %v1420_v46 = vpop.permute.xlu1 %1419  ;;  %v4261_v42 = vsel %vm4218_vm12, %v4182_v8, -inf  ;;  %v2783_v8 = vld [vmem:[#allocation2 + $0x309] sm:$0xff] }
 0x370   :  { %v1017_v17 = vpop.permute.xlu0 %1016  ;;  %1559 = vst.msk [vmem:[#allocation3 + $0x1a8] sm:$0xff] %vm1505_vm5, %v1420_v46 }
 0x371   :  { %1165 = vst.msk [vmem:[#allocation3 + $0x160] sm:$0xff] %vm1120_vm4, %v1017_v17  ;;  %3329 = vrot.lane.b32.xlu1 %v3156_v31, %s7052_s25 }
 0x372   :  { %2962 = vrot.lane.b32.xlu0 %v2780_v37, %s7051_s27 }
 0x373   :  { %v2170_v38 = vpop.permute.xlu1 %2169 }
 0x374   :  { %v1803_v41 = vpop.permute.xlu0 %1802  ;;  %v3537_v56 = vld [vmem:[#allocation3 + $0x148] sm:$0xff]  ;;  %2319 = vst.msk [vmem:[#allocation3 + $0x158] sm:$0xff] %vm2275_vm7, %v2170_v38 }
 0x375   :  { %1943 = vst.msk [vmem:[#allocation3 + $0x1a0] sm:$0xff] %vm1890_vm6, %v1803_v41  ;;  %6840 = vmatmul.mubr.msk.f32.gmra.mxu0 %vm3572_vm11, %v3537_v56  ;;  %1024 = vrot.lane.b32.xlu1 %v3155_v33, %s7045_s17 }
 0x376   :  { %641 = vrot.lane.b32.xlu0 %v2771_v27, %s7046_s18  ;;  %v3166_v27 = vld [vmem:[#allocation2 + $0x2f2] sm:$0xff] }
 0x377   :  { %v652_v43 = vpop.permute.xlu1 %651 }
 0x378   :  { %v2554_v44 = vpop.permute.xlu0 %2553  ;;  %790 = vst.msk [vmem:[#allocation3 + $0x1b0] sm:$0xff] %vm735_vm3, %v652_v43  ;;  %v3157_v43 = vld [vmem:[#allocation2 + $0x28a] sm:$0xff] }
 0x379   :  { %2704 = vst.msk [vmem:[#allocation3 + $0x150] sm:$0xff] %vm2661_vm8, %v2554_v44  ;;  %1810 = vrot.lane.b32.xlu1 %v2780_v37, %s7048_s20  ;;  %v2773_v44 = vld [vmem:[#allocation2 + $0x291] sm:$0xff] }
 0x37a   :  { %1427 = vrot.lane.b32.xlu0 %v8706_v26, %s7047_s19 }
 0x37b   :  { %v1402_v35 = vpop.permute.xlu1 %1401 }
 0x37c   :  { %v1019_v40 = vpop.permute.xlu0 %1018  ;;  %1550 = vst.msk [vmem:[#allocation3 + $0x160] sm:$0xff] %vm1505_vm5, %v1402_v35 }
 0x37d   :  { %1166 = vst.msk [vmem:[#allocation3 + $0x168] sm:$0xff] %vm1120_vm4, %v1019_v40  ;;  %2561 = vrot.lane.b32.xlu1 %v8731_v54, %s7050_s26 }
 0x37e   :  { %2177 = vrot.lane.b32.xlu0 %v3156_v31, %s7049_s23 }
 0x37f   :  { %v2188_v52 = vpop.permute.xlu1 %2187 }
 0x380   :  { %v1805_v25 = vpop.permute.xlu0 %1804  ;;  %2328 = vst.msk [vmem:[#allocation3 + $0x1a0] sm:$0xff] %vm2275_vm7, %v2188_v52 }
 0x381   :  { %1944 = vst.msk [vmem:[#allocation3 + $0x1a8] sm:$0xff] %vm1890_vm6, %v1805_v25  ;;  %3347 = vrot.lane.b32.xlu1 %v8961_v55, %s7052_s25 }
 0x382   :  { %2964 = vrot.lane.b32.xlu0 %v2781_v57, %s7051_s27 }
 0x383   :  { %v2939_v26 = vpop.permute.xlu1 %2938 }
 0x384   :  { %v2556_v59 = vpop.permute.xlu0 %2555  ;;  %3089 = vst.msk [vmem:[#allocation3 + $0x150] sm:$0xff] %vm3046_vm9, %v2939_v26 }
 0x385   :  { %2705 = vst.msk [vmem:[#allocation3 + $0x158] sm:$0xff] %vm2661_vm8, %v2556_v59  ;;  %1026 = vrot.lane.b32.xlu1 %v3156_v31, %s7045_s17  ;;  %v3158_v59 = vld [vmem:[#allocation2 + $0x292] sm:$0xff] }
 0x386   :  { %659 = vrot.lane.b32.xlu0 %v2780_v37, %s7046_s18 }
 0x387   :  { %v1037_v2 = vpop.permute.xlu1 %1036 }
 0x388   :  { %v654_v50 = vpop.permute.xlu0 %653  ;;  %1175 = vst.msk [vmem:[#allocation3 + $0x1b0] sm:$0xff] %vm1120_vm4, %v1037_v2  ;;  %v6826_v4 = vpop.f32.mrf.mxu0 }
 0x389   :  { %791 = vst.msk [vmem:[#allocation3 + $0x1b8] sm:$0xff] %vm735_vm3, %v654_v50  ;;  %v3991_v47 = vadd.f32 %v8973_v63, %v6826_v4  ;;  %1812 = vrot.lane.b32.xlu1 %v2781_v57, %s7048_s20 }
 0x38a   :  { %1409 = vrot.lane.b32.xlu0 %v8731_v54, %s7047_s19  ;;  %v3985_v7 = vpop.f32.mrf.mxu0 }
 0x38b   :  { %v4185_v48 = vmax.f32 %v3991_v47, 0.0  ;;  %v3986_v14 = vadd.f32 %v8973_v63, %v3985_v7  ;;  %v1787_v19 = vpop.permute.xlu1 %1786  ;;  %v3167_v7 = vld [vmem:[#allocation2 + $0x302] sm:$0xff] }
 0x38c   :  { %v1404_v51 = vpop.permute.xlu0 %1403  ;;  %1935 = vst.msk [vmem:[#allocation3 + $0x160] sm:$0xff] %vm1890_vm6, %v1787_v19 }
 0x38d   :  { %1551 = vst.msk [vmem:[#allocation3 + $0x168] sm:$0xff] %vm1505_vm5, %v1404_v51  ;;  %v4265_v13 = vsel %vm4218_vm12, %v4185_v48, -inf  ;;  %v4184_v33 = vmax.f32 %v3986_v14, 0.0  ;;  %2563 = vrot.lane.b32.xlu1 %v8764_v10, %s7050_s26 }
 0x38e   :  { %2195 = vrot.lane.b32.xlu0 %v8961_v55, %s7049_s23  ;;  %v4266_v54 = vmax.f32 %v4264_v16, %v4265_v13 }
 0x38f   :  { %v4262_v23 = vsel %vm4218_vm12, %v4184_v33, -inf  ;;  %v2574_v24 = vpop.permute.xlu1 %2573 }
 0x390   :  { %v2190_v53 = vpop.permute.xlu0 %2189  ;;  %4330 = vst.msk [vmem:[#allocation4 + $0x78] sm:$0xff] %vm4218_vm12, %v4266_v54  ;;  %v4263_v28 = vmax.f32 %v4261_v42, %v4262_v23 }
 0x391   :  { %2714 = vst.msk [vmem:[#allocation3 + $0x1a0] sm:$0xff] %vm2661_vm8, %v2574_v24  ;;  %3349 = vrot.lane.b32.xlu1 %v3166_v27, %s7052_s25 }
 0x392   :  { %2329 = vst.msk [vmem:[#allocation3 + $0x1a8] sm:$0xff] %vm2275_vm7, %v2190_v53  ;;  %2946 = vrot.lane.b32.xlu0 %v2772_v15, %s7051_s27 }
 0x393   :  { %4329 = vst.msk [vmem:[#allocation4 + $0x70] sm:$0xff] %vm4218_vm12, %v4263_v28  ;;  %v3324_v58 = vpop.permute.xlu1 %3323 }
 0x394   :  { %v2941_v22 = vpop.permute.xlu0 %2940  ;;  %3474 = vst.msk [vmem:[#allocation3 + $0x150] sm:$0xff] %vm3431_vm10, %v3324_v58 }
 0x395   :  { %3090 = vst.msk [vmem:[#allocation3 + $0x158] sm:$0xff] %vm3046_vm9, %v2941_v22  ;;  %1044 = vrot.lane.b32.xlu1 %v8961_v55, %s7045_s17 }
 0x396   :  { %661 = vrot.lane.b32.xlu0 %v2781_v57, %s7046_s18 }
 0x397   :  { %v1039_v34 = vpop.permute.xlu1 %1038 }
 0x398   :  { %v636_v31 = vpop.permute.xlu0 %635  ;;  %1176 = vst.msk [vmem:[#allocation3 + $0x1b8] sm:$0xff] %vm1120_vm4, %v1039_v34 }
 0x399   :  { %782 = vst.msk [vmem:[#allocation3 + $0x170] sm:$0xff] %vm735_vm3, %v636_v31  ;;  %1794 = vrot.lane.b32.xlu1 %v2772_v15, %s7048_s20 }
 0x39a   :  { %v4361_v37 = vld [vmem:[#allocation4 + $0x70] ss:$2 sm:$0xff]  ;;  %v4393_v46 = vld [vmem:[#allocation4 + $0x71] ss:$2 sm:$0xff]  ;;  %1411 = vrot.lane.b32.xlu0 %v8764_v10, %s7047_s19 }
 0x39b   :  { %v4417_v17 = vmax.f32 %v4361_v37, %v4393_v46  ;;  %v1789_v38 = vpop.permute.xlu1 %1788  ;;  %v3538_v56 = vld [vmem:[#allocation3 + $0x150] sm:$0xff] }
 0x39c   :  { %v1422_v41 = vpop.permute.xlu0 %1421  ;;  %1936 = vst.msk [vmem:[#allocation3 + $0x168] sm:$0xff] %vm1890_vm6, %v1789_v38  ;;  %6842 = vmatprep.mubr.msk.f32.mxu0 %vm3572_vm11, %v3538_v56  ;;  %v2774_v38 = vld [vmem:[#allocation2 + $0x2a1] sm:$0xff] }
 0x39d   :  { %1560 = vst.msk [vmem:[#allocation3 + $0x1b0] sm:$0xff] %vm1505_vm5, %v1422_v41  ;;  %2581 = vrot.lane.b32.xlu1 %v8796_v39, %s7050_s26 }
 0x39e   :  { %4475 = vst.msk [vmem:[#allocation5 + $0x81] sm:$0xff] %vm4218_vm12, %v4417_v17  ;;  %2197 = vrot.lane.b32.xlu0 %v3166_v27, %s7049_s23  ;;  %v3168_v17 = vld [vmem:[#allocation2 + $0x30a] sm:$0xff] }
 0x39f   :  { %v2576_v10 = vpop.permute.xlu1 %2575 }
 0x3a0   :  { %v2172_v35 = vpop.permute.xlu0 %2171  ;;  %2715 = vst.msk [vmem:[#allocation3 + $0x1a8] sm:$0xff] %vm2661_vm8, %v2576_v10 }
 0x3a1   :  { %2320 = vst.msk [vmem:[#allocation3 + $0x160] sm:$0xff] %vm2275_vm7, %v2172_v35  ;;  %3331 = vrot.lane.b32.xlu1 %v3157_v43, %s7052_s25 }
 0x3a2   :  { %2948 = vrot.lane.b32.xlu0 %v2773_v44, %s7051_s27 }
 0x3a3   :  { %v3326_v40 = vpop.permute.xlu1 %3325 }
 0x3a4   :  { %v2959_v55 = vpop.permute.xlu0 %2958  ;;  %3475 = vst.msk [vmem:[#allocation3 + $0x158] sm:$0xff] %vm3431_vm10, %v3326_v40 }
 0x3a5   :  { %3099 = vst.msk [vmem:[#allocation3 + $0x1a0] sm:$0xff] %vm3046_vm9, %v2959_v55  ;;  %1046 = vrot.lane.b32.xlu1 %v3166_v27, %s7045_s17 }
 0x3a6   :  { %643 = vrot.lane.b32.xlu0 %v2772_v15, %s7046_s18 }
 0x3a7   :  { %v1021_v57 = vpop.permute.xlu1 %1020 }
 0x3a8   :  { %v638_v52 = vpop.permute.xlu0 %637  ;;  %1167 = vst.msk [vmem:[#allocation3 + $0x170] sm:$0xff] %vm1120_vm4, %v1021_v57  ;;  %v6829_v19 = vpop.f32.mrf.mxu0 }
 0x3a9   :  { %783 = vst.msk [vmem:[#allocation3 + $0x178] sm:$0xff] %vm735_vm3, %v638_v52  ;;  %1796 = vrot.lane.b32.xlu1 %v2773_v44, %s7048_s20  ;;  %v4001_v13 = vadd.f32 %v8973_v63, %v6829_v19 }
 0x3aa   :  { %1429 = vrot.lane.b32.xlu0 %v8796_v39, %s7047_s19  ;;  %v3995_v16 = vpop.f32.mrf.mxu0 }
 0x3ab   :  { %v1807_v25 = vpop.permute.xlu1 %1806  ;;  %v3539_v26 = vld [vmem:[#allocation3 + $0x158] sm:$0xff]  ;;  %v3996_v33 = vadd.f32 %v8973_v63, %v3995_v16  ;;  %v4187_v42 = vmax.f32 %v4001_v13, 0.0  ;;  %v2785_v16 = vld [vmem:[#allocation2 + $0x321] sm:$0xff] }
 0x3ac   :  { %v1424_v49 = vpop.permute.xlu0 %1423  ;;  %1945 = vst.msk [vmem:[#allocation3 + $0x1b0] sm:$0xff] %vm1890_vm6, %v1807_v25  ;;  %6843 = vmatmul.mubr.msk.f32.gmra.mxu0 %vm3572_vm11, %v3539_v26  ;;  %v2391_v13 = vld [vmem:[#allocation2 + $0x2b8] sm:$0xff] }
 0x3ad   :  { %1561 = vst.msk [vmem:[#allocation3 + $0x1b8] sm:$0xff] %vm1505_vm5, %v1424_v49  ;;  %2583 = vrot.lane.b32.xlu1 %v8829_v11, %s7050_s26  ;;  %v4186_v53 = vmax.f32 %v3996_v33, 0.0  ;;  %v4270_v31 = vsel %vm4218_vm12, %v4187_v42, -inf }
 0x3ae   :  { %2179 = vrot.lane.b32.xlu0 %v3157_v43, %s7049_s23 }
 0x3af   :  { %v2558_v62 = vpop.permute.xlu1 %2557  ;;  %v4267_v41 = vsel %vm4218_vm12, %v4186_v53, -inf }
 0x3b0   :  { %v2174_v20 = vpop.permute.xlu0 %2173  ;;  %2706 = vst.msk [vmem:[#allocation3 + $0x160] sm:$0xff] %vm2661_vm8, %v2558_v62  ;;  %v3159_v62 = vld [vmem:[#allocation2 + $0x2a2] sm:$0xff] }
 0x3b1   :  { %2321 = vst.msk [vmem:[#allocation3 + $0x168] sm:$0xff] %vm2275_vm7, %v2174_v20  ;;  %3333 = vrot.lane.b32.xlu1 %v3158_v59, %s7052_s25  ;;  %v2775_v20 = vld [vmem:[#allocation2 + $0x2a9] sm:$0xff] }
 0x3b2   :  { %2966 = vrot.lane.b32.xlu0 %v2782_v18, %s7051_s27 }
 0x3b3   :  { %v3344_v39 = vpop.permute.xlu1 %3343 }
 0x3b4   :  { %v2961_v2 = vpop.permute.xlu0 %2960  ;;  %3484 = vst.msk [vmem:[#allocation3 + $0x1a0] sm:$0xff] %vm3431_vm10, %v3344_v39 }
 0x3b5   :  { %3100 = vst.msk [vmem:[#allocation3 + $0x1a8] sm:$0xff] %vm3046_vm9, %v2961_v2  ;;  %1028 = vrot.lane.b32.xlu1 %v3157_v43, %s7045_s17 }
 0x3b6   :  { %645 = vrot.lane.b32.xlu0 %v2773_v44, %s7046_s18 }
 0x3b7   :  { %v1023_v50 = vpop.permute.xlu1 %1022 }
 0x3b8   :  { %v656_v4 = vpop.permute.xlu0 %655  ;;  %1168 = vst.msk [vmem:[#allocation3 + $0x178] sm:$0xff] %vm1120_vm4, %v1023_v50 }
 0x3b9   :  { %792 = vst.msk [vmem:[#allocation3 + $0x1c0] sm:$0xff] %vm735_vm3, %v656_v4  ;;  %1814 = vrot.lane.b32.xlu1 %v2782_v18, %s7048_s20 }
 0x3ba   :  { %1431 = vrot.lane.b32.xlu0 %v8829_v11, %s7047_s19 }
 0x3bb   :  { %v1809_v5 = vpop.permute.xlu1 %1808  ;;  %v3548_v47 = vld [vmem:[#allocation3 + $0x1a0] sm:$0xff] }
 0x3bc   :  { %v1406_v6 = vpop.permute.xlu0 %1405  ;;  %1946 = vst.msk [vmem:[#allocation3 + $0x1b8] sm:$0xff] %vm1890_vm6, %v1809_v5  ;;  %6857 = vmatprep.mubr.msk.f32.mxu1 %vm3572_vm11, %v3548_v47  ;;  %v2784_v47 = vld [vmem:[#allocation2 + $0x319] sm:$0xff] }
 0x3bd   :  { %1552 = vst.msk [vmem:[#allocation3 + $0x170] sm:$0xff] %vm1505_vm5, %v1406_v6  ;;  %2565 = vrot.lane.b32.xlu1 %v8648_v0, %s7050_s26 }
 0x3be   :  { %2181 = vrot.lane.b32.xlu0 %v3158_v59, %s7049_s23 }
 0x3bf   :  { %v2560_v48 = vpop.permute.xlu1 %2559 }
 0x3c0   :  { %v2192_v14 = vpop.permute.xlu0 %2191  ;;  %2707 = vst.msk [vmem:[#allocation3 + $0x168] sm:$0xff] %vm2661_vm8, %v2560_v48 }
 0x3c1   :  { %2330 = vst.msk [vmem:[#allocation3 + $0x1b0] sm:$0xff] %vm2275_vm7, %v2192_v14  ;;  %3351 = vrot.lane.b32.xlu1 %v3167_v7, %s7052_s25 }
 0x3c2   :  { %2968 = vrot.lane.b32.xlu0 %v2783_v8, %s7051_s27 }
 0x3c3   :  { %v3346_v11 = vpop.permute.xlu1 %3345 }
 0x3c4   :  { %v2943_v51 = vpop.permute.xlu0 %2942  ;;  %3485 = vst.msk [vmem:[#allocation3 + $0x1a8] sm:$0xff] %vm3431_vm10, %v3346_v11 }
 0x3c5   :  { %3091 = vst.msk [vmem:[#allocation3 + $0x160] sm:$0xff] %vm3046_vm9, %v2943_v51  ;;  %1030 = vrot.lane.b32.xlu1 %v3158_v59, %s7045_s17 }
 0x3c6   :  { %663 = vrot.lane.b32.xlu0 %v2782_v18, %s7046_s18 }
 0x3c7   :  { %v1041_v54 = vpop.permute.xlu1 %1040 }
 0x3c8   :  { %v658_v27 = vpop.permute.xlu0 %657  ;;  %1177 = vst.msk [vmem:[#allocation3 + $0x1c0] sm:$0xff] %vm1120_vm4, %v1041_v54  ;;  %v6832_v15 = vpop.f32.mrf.mxu0 }
 0x3c9   :  { %793 = vst.msk [vmem:[#allocation3 + $0x1c8] sm:$0xff] %vm735_vm3, %v658_v27  ;;  %v4011_v23 = vadd.f32 %v8973_v63, %v6832_v15  ;;  %1816 = vrot.lane.b32.xlu1 %v2783_v8, %s7048_s20 }
 0x3ca   :  { %1413 = vrot.lane.b32.xlu0 %v8648_v0, %s7047_s19  ;;  %v4005_v24 = vpop.f32.mrf.mxu0 }
 0x3cb   :  { %v4189_v28 = vmax.f32 %v4011_v23, 0.0  ;;  %v4006_v29 = vadd.f32 %v8973_v63, %v4005_v24  ;;  %v1791_v58 = vpop.permute.xlu1 %1790  ;;  %v3549_v34 = vld [vmem:[#allocation3 + $0x1a8] sm:$0xff] }
 0x3cc   :  { %v1408_v22 = vpop.permute.xlu0 %1407  ;;  %1937 = vst.msk [vmem:[#allocation3 + $0x170] sm:$0xff] %vm1890_vm6, %v1791_v58  ;;  %6858 = vmatmul.mubr.msk.f32.vlgmr.msra.gmra.mxu1 %vm3572_vm11, %v3549_v34 }
 0x3cd   :  { %1553 = vst.msk [vmem:[#allocation3 + $0x178] sm:$0xff] %vm1505_vm5, %v1408_v22  ;;  %v4271_v37 = vsel %vm4218_vm12, %v4189_v28, -inf  ;;  %v4188_v46 = vmax.f32 %v4006_v29, 0.0  ;;  %2567 = vrot.lane.b32.xlu1 %v8653_v3, %s7050_s26  ;;  %v2776_v28 = vld [vmem:[#allocation2 + $0x2b9] sm:$0xff] }
 0x3ce   :  { %2199 = vrot.lane.b32.xlu0 %v3167_v7, %s7049_s23  ;;  %v4272_v0 = vmax.f32 %v4270_v31, %v4271_v37  ;;  %v2392_v29 = vld [vmem:[#allocation2 + $0x2c0] sm:$0xff] }
 0x3cf   :  { %v4268_v56 = vsel %vm4218_vm12, %v4188_v46, -inf  ;;  %v2578_v43 = vpop.permute.xlu1 %2577  ;;  %v3170_v37 = vld [vmem:[#allocation2 + $0x322] sm:$0xff] }
 0x3d0   :  { %v2194_v44 = vpop.permute.xlu0 %2193  ;;  %4332 = vst.msk [vmem:[#allocation4 + $0x88] sm:$0xff] %vm4218_vm12, %v4272_v0  ;;  %v4269_v10 = vmax.f32 %v4267_v41, %v4268_v56 }
 0x3d1   :  { %2716 = vst.msk [vmem:[#allocation3 + $0x1b0] sm:$0xff] %vm2661_vm8, %v2578_v43  ;;  %3353 = vrot.lane.b32.xlu1 %v3168_v17, %s7052_s25 }
 0x3d2   :  { %2331 = vst.msk [vmem:[#allocation3 + $0x1b8] sm:$0xff] %vm2275_vm7, %v2194_v44  ;;  %2950 = vrot.lane.b32.xlu0 %v2774_v38, %s7051_s27 }
 0x3d3   :  { %4331 = vst.msk [vmem:[#allocation4 + $0x80] sm:$0xff] %vm4218_vm12, %v4269_v10  ;;  %v3328_v35 = vpop.permute.xlu1 %3327 }
 0x3d4   :  { %v2945_v40 = vpop.permute.xlu0 %2944  ;;  %3476 = vst.msk [vmem:[#allocation3 + $0x160] sm:$0xff] %vm3431_vm10, %v3328_v35 }
 0x3d5   :  { %3092 = vst.msk [vmem:[#allocation3 + $0x168] sm:$0xff] %vm3046_vm9, %v2945_v40  ;;  %1048 = vrot.lane.b32.xlu1 %v3167_v7, %s7045_s17 }
 0x3d6   :  { %665 = vrot.lane.b32.xlu0 %v2783_v8, %s7046_s18 }
 0x3d7   :  { %v1043_v55 = vpop.permute.xlu1 %1042 }
 0x3d8   :  { %v640_v57 = vpop.permute.xlu0 %639  ;;  %1178 = vst.msk [vmem:[#allocation3 + $0x1c8] sm:$0xff] %vm1120_vm4, %v1043_v55 }
 0x3d9   :  { %784 = vst.msk [vmem:[#allocation3 + $0x180] sm:$0xff] %vm735_vm3, %v640_v57  ;;  %1798 = vrot.lane.b32.xlu1 %v2774_v38, %s7048_s20 }
 0x3da   :  { %v4363_v52 = vld [vmem:[#allocation4 + $0x80] ss:$2 sm:$0xff]  ;;  %v4395_v25 = vld [vmem:[#allocation4 + $0x81] ss:$2 sm:$0xff]  ;;  %1415 = vrot.lane.b32.xlu0 %v8653_v3, %s7047_s19 }
 0x3db   :  { %v4418_v49 = vmax.f32 %v4363_v52, %v4395_v25  ;;  %v1793_v26 = vpop.permute.xlu1 %1792  ;;  %v3540_v18 = vld [vmem:[#allocation3 + $0x160] sm:$0xff] }
 0x3dc   :  { %v1426_v59 = vpop.permute.xlu0 %1425  ;;  %1938 = vst.msk [vmem:[#allocation3 + $0x178] sm:$0xff] %vm1890_vm6, %v1793_v26  ;;  %6845 = vmatprep.mubr.msk.f32.mxu0 %vm3572_vm11, %v3540_v18 }
 0x3dd   :  { %1562 = vst.msk [vmem:[#allocation3 + $0x1c0] sm:$0xff] %vm1505_vm5, %v1426_v59  ;;  %2585 = vrot.lane.b32.xlu1 %v8903_v21, %s7050_s26  ;;  %v2401_v59 = vld [vmem:[#allocation2 + $0x330] sm:$0xff] }
 0x3de   :  { %4476 = vst.msk [vmem:[#allocation5 + $0xb1] sm:$0xff] %vm4218_vm12, %v4418_v49  ;;  %2201 = vrot.lane.b32.xlu0 %v3168_v17, %s7049_s23 }
 0x3df   :  { %v2580_v3 = vpop.permute.xlu1 %2579 }
 0x3e0   :  { %v2176_v39 = vpop.permute.xlu0 %2175  ;;  %2717 = vst.msk [vmem:[#allocation3 + $0x1b8] sm:$0xff] %vm2661_vm8, %v2580_v3 }
 0x3e1   :  { %2322 = vst.msk [vmem:[#allocation3 + $0x170] sm:$0xff] %vm2275_vm7, %v2176_v39  ;;  %3335 = vrot.lane.b32.xlu1 %v3159_v62, %s7052_s25 }
 0x3e2   :  { %2952 = vrot.lane.b32.xlu0 %v2775_v20, %s7051_s27 }
 0x3e3   :  { %v3330_v2 = vpop.permute.xlu1 %3329 }
 0x3e4   :  { %v2963_v50 = vpop.permute.xlu0 %2962  ;;  %3477 = vst.msk [vmem:[#allocation3 + $0x168] sm:$0xff] %vm3431_vm10, %v3330_v2  ;;  %v3161_v2 = vld [vmem:[#allocation2 + $0x2ba] sm:$0xff] }
 0x3e5   :  { %v9118_v4 = vld [vmem:[#allocation5 + $0xb0] sm:$0xff]  ;;  %3101 = vst.msk [vmem:[#allocation3 + $0x1b0] sm:$0xff] %vm3046_vm9, %v2963_v50  ;;  %1433 = vrot.lane.b32.xlu1 %v8903_v21, %s7047_s19 }
 0x3e6   :  { %4509 = vst.msk [vmem:[#allocation6 + $0x48] sm:$0xff] %vm4218_vm12, %v9118_v4  ;;  %1050 = vrot.lane.b32.xlu0 %v3168_v17, %s7045_s17  ;;  %v3160_v21 = vld [vmem:[#allocation2 + $0x2aa] sm:$0xff] }
 0x3e7   :  { %v1025_v5 = vpop.permute.xlu1 %1024 }
 0x3e8   :  { %v642_v6 = vpop.permute.xlu0 %641  ;;  %1169 = vst.msk [vmem:[#allocation3 + $0x180] sm:$0xff] %vm1120_vm4, %v1025_v5  ;;  %v6835_v53 = vpop.f32.mrf.mxu0 }
 0x3e9   :  { %785 = vst.msk [vmem:[#allocation3 + $0x188] sm:$0xff] %vm735_vm3, %v642_v6  ;;  %2183 = vrot.lane.b32.xlu1 %v3159_v62, %s7049_s23  ;;  %v4021_v31 = vadd.f32 %v8973_v63, %v6835_v53  ;;  %v2402_v6 = vld [vmem:[#allocation2 + $0x338] sm:$0xff] }
 0x3ea   :  { %1800 = vrot.lane.b32.xlu0 %v2775_v20, %s7048_s20  ;;  %v4015_v34 = vpop.f32.mrf.mxu0  ;;  %v2018_v53 = vld [vmem:[#allocation2 + $0x33a] sm:$0xff] }
 0x3eb   :  { %v1811_v7 = vpop.permute.xlu1 %1810  ;;  %v3541_v48 = vld [vmem:[#allocation3 + $0x168] sm:$0xff]  ;;  %v4016_v46 = vadd.f32 %v8973_v63, %v4015_v34  ;;  %v4191_v41 = vmax.f32 %v4021_v31, 0.0 }
 0x3ec   :  { %v1428_v8 = vpop.permute.xlu0 %1427  ;;  %1947 = vst.msk [vmem:[#allocation3 + $0x1c0] sm:$0xff] %vm1890_vm6, %v1811_v7  ;;  %6846 = vmatmul.mubr.msk.f32.gmra.mxu0 %vm3572_vm11, %v3541_v48  ;;  %v2403_v34 = vld [vmem:[#allocation2 + $0x348] sm:$0xff] }
 0x3ed   :  { %1563 = vst.msk [vmem:[#allocation3 + $0x1c8] sm:$0xff] %vm1505_vm5, %v1428_v8  ;;  %2970 = vrot.lane.b32.xlu1 %v2784_v47, %s7051_s27  ;;  %v4190_v44 = vmax.f32 %v4016_v46, 0.0  ;;  %v4276_v52 = vsel %vm4218_vm12, %v4191_v41, -inf  ;;  %v2789_v46 = vld [vmem:[#allocation2 + $0x351] sm:$0xff]  ;;  %v4484_v41 = vld [vmem:[#allocation5] sm:$0xff] }
 0x3ee   :  { %2587 = vrot.lane.b32.xlu0 %v8935_v36, %s7050_s26  ;;  %4500 = vst.msk [vmem:[#allocation6] sm:$0xff] %vm4218_vm12, %v4484_v41 }
 0x3ef   :  { %v2562_v14 = vpop.permute.xlu1 %2561  ;;  %v4273_v18 = vsel %vm4218_vm12, %v4190_v44, -inf }
 0x3f0   :  { %v2178_v19 = vpop.permute.xlu0 %2177  ;;  %2708 = vst.msk [vmem:[#allocation3 + $0x170] sm:$0xff] %vm2661_vm8, %v2562_v14  ;;  %v3162_v14 = vld [vmem:[#allocation2 + $0x2c2] sm:$0xff] }
 0x3f1   :  { %2323 = vst.msk [vmem:[#allocation3 + $0x178] sm:$0xff] %vm2275_vm7, %v2178_v19  ;;  %1435 = vrot.lane.b32.xlu1 %v8935_v36, %s7047_s19  ;;  %v3169_v36 = vld [vmem:[#allocation2 + $0x31a] sm:$0xff]  ;;  %v2786_v19 = vld [vmem:[#allocation2 + $0x331] sm:$0xff] }
 0x3f2   :  { %3337 = vrot.lane.b32.xlu0 %v3160_v21, %s7052_s25 }
 0x3f3   :  { %v3348_v11 = vpop.permute.xlu1 %3347 }
 0x3f4   :  { %v2965_v51 = vpop.permute.xlu0 %2964  ;;  %3486 = vst.msk [vmem:[#allocation3 + $0x1b0] sm:$0xff] %vm3431_vm10, %v3348_v11 }
 0x3f5   :  { %3102 = vst.msk [vmem:[#allocation3 + $0x1b8] sm:$0xff] %vm3046_vm9, %v2965_v51  ;;  %2185 = vrot.lane.b32.xlu1 %v3160_v21, %s7049_s23 }
 0x3f6   :  { %1818 = vrot.lane.b32.xlu0 %v2784_v47, %s7048_s20 }
 0x3f7   :  { %v1027_v33 = vpop.permute.xlu1 %1026 }
 0x3f8   :  { %v660_v54 = vpop.permute.xlu0 %659  ;;  %1170 = vst.msk [vmem:[#allocation3 + $0x188] sm:$0xff] %vm1120_vm4, %v1027_v33 }
 0x3f9   :  { %794 = vst.msk [vmem:[#allocation3 + $0x1d0] sm:$0xff] %vm735_vm3, %v660_v54  ;;  %2972 = vrot.lane.b32.xlu1 %v2785_v16, %s7051_s27  ;;  %v3171_v54 = vld [vmem:[#allocation2 + $0x332] sm:$0xff] }
 0x3fa   :  { %2569 = vrot.lane.b32.xlu0 %v2391_v13, %s7050_s26 }
 0x3fb   :  { %v1813_v27 = vpop.permute.xlu1 %1812  ;;  %v3550_v42 = vld [vmem:[#allocation3 + $0x1b0] sm:$0xff] }
 0x3fc   :  { %v1410_v15 = vpop.permute.xlu0 %1409  ;;  %1948 = vst.msk [vmem:[#allocation3 + $0x1c8] sm:$0xff] %vm1890_vm6, %v1813_v27  ;;  %6860 = vmatprep.mubr.msk.f32.mxu1 %vm3572_vm11, %v3550_v42 }
 0x3fd   :  { %1554 = vst.msk [vmem:[#allocation3 + $0x180] sm:$0xff] %vm1505_vm5, %v1410_v15  ;;  %667 = vrot.lane.b32.xlu1 %v2784_v47, %s7046_s18 }
 0x3fe   :  { %3355 = vrot.lane.b32.xlu0 %v3169_v36, %s7052_s25 }
 0x3ff   :  { %v2564_v23 = vpop.permute.xlu1 %2563 }
 0x400   :  { %v2196_v24 = vpop.permute.xlu0 %2195  ;;  %2709 = vst.msk [vmem:[#allocation3 + $0x178] sm:$0xff] %vm2661_vm8, %v2564_v23 }
 0x401   :  { %2332 = vst.msk [vmem:[#allocation3 + $0x1c0] sm:$0xff] %vm2275_vm7, %v2196_v24  ;;  %2203 = vrot.lane.b32.xlu1 %v3169_v36, %s7049_s23 }
 0x402   :  { %1820 = vrot.lane.b32.xlu0 %v2785_v16, %s7048_s20 }
 0x403   :  { %v3350_v58 = vpop.permute.xlu1 %3349 }
 0x404   :  { %v2947_v22 = vpop.permute.xlu0 %2946  ;;  %3487 = vst.msk [vmem:[#allocation3 + $0x1b8] sm:$0xff] %vm3431_vm10, %v3350_v58 }
 0x405   :  { %3093 = vst.msk [vmem:[#allocation3 + $0x170] sm:$0xff] %vm3046_vm9, %v2947_v22  ;;  %2954 = vrot.lane.b32.xlu1 %v2776_v28, %s7051_s27  ;;  %v2404_v22 = vld [vmem:[#allocation2 + $0x350] sm:$0xff] }
 0x406   :  { %2571 = vrot.lane.b32.xlu0 %v2392_v29, %s7050_s26 }
 0x407   :  { %v1045_v0 = vpop.permute.xlu1 %1044 }
 0x408   :  { %v662_v17 = vpop.permute.xlu0 %661  ;;  %1179 = vst.msk [vmem:[#allocation3 + $0x1d0] sm:$0xff] %vm1120_vm4, %v1045_v0  ;;  %v6838_v38 = vpop.f32.mrf.mxu0  ;;  %v2788_v0 = vld [vmem:[#allocation2 + $0x349] sm:$0xff] }
 0x409   :  { %795 = vst.msk [vmem:[#allocation3 + $0x1d8] sm:$0xff] %vm735_vm3, %v662_v17  ;;  %v4031_v56 = vadd.f32 %v8973_v63, %v6838_v38  ;;  %669 = vrot.lane.b32.xlu1 %v2785_v16, %s7046_s18  ;;  %s7054_s18 = smov 48  }
 0x40a   :  { %3357 = vrot.lane.b32.xlu0 %v3170_v37, %s7052_s25  ;;  %v4025_v43 = vpop.f32.mrf.mxu0 }
 0x40b   :  { %v4193_v10 = vmax.f32 %v4031_v56, 0.0  ;;  %v4026_v35 = vadd.f32 %v8973_v63, %v4025_v43  ;;  %v1795_v40 = vpop.permute.xlu1 %1794  ;;  %v3551_v57 = vld [vmem:[#allocation3 + $0x1b8] sm:$0xff]  ;;  %v2777_v63 = vld [vmem:[#allocation2 + $0x2c1] sm:$0xff]  ;;  %v3173_v43 = vld [vmem:[#allocation2 + $0x34a] sm:$0xff] }
 0x40c   :  { %v1412_v55 = vpop.permute.xlu0 %1411  ;;  %1939 = vst.msk [vmem:[#allocation3 + $0x180] sm:$0xff] %vm1890_vm6, %v1795_v40  ;;  %6861 = vmatmul.mubr.msk.f32.gmra.mxu1 %vm3572_vm11, %v3551_v57  ;;  %v3174_v56 = vld [vmem:[#allocation2 + $0x352] sm:$0xff] }
 0x40d   :  { %1555 = vst.msk [vmem:[#allocation3 + $0x188] sm:$0xff] %vm1505_vm5, %v1412_v55  ;;  %v4277_v25 = vsel %vm4218_vm12, %v4193_v10, -inf  ;;  %v4192_v49 = vmax.f32 %v4026_v35, 0.0  ;;  %2205 = vrot.lane.b32.xlu1 %v3170_v37, %s7049_s23  ;;  %v4516_v35 = vld [vmem:[#allocation5 + $0x1] sm:$0xff] }
 0x40e   :  { %1052 = vrot.lane.b32.xlu0 %v3169_v36, %s7045_s17  ;;  %v4278_v26 = vmax.f32 %v4276_v52, %v4277_v25  ;;  %v2787_v36 = vld [vmem:[#allocation2 + $0x339] sm:$0xff]  ;;  %v4517_v52 = vld [vmem:[#allocation5 + $0x11] sm:$0xff]  ;;  %v4613_v25 = vld [vmem:[#allocation5 + $0x2] sm:$0xff] }
 0x40f   :  { %v4274_v62 = vsel %vm4218_vm12, %v4192_v49, -inf  ;;  %v2582_v20 = vpop.permute.xlu1 %2581 }
 0x410   :  { %v2198_v3 = vpop.permute.xlu0 %2197  ;;  %4334 = vst.msk [vmem:[#allocation4 + $0x98] sm:$0xff] %vm4218_vm12, %v4278_v26  ;;  %v4275_v39 = vmax.f32 %v4273_v18, %v4274_v62 }
 0x411   :  { %2718 = vst.msk [vmem:[#allocation3 + $0x1c0] sm:$0xff] %vm2661_vm8, %v2582_v20  ;;  %2956 = vrot.lane.b32.xlu1 %v2777_v63, %s7051_s27  ;;  %v4614_v63 = vld [vmem:[#allocation5 + $0x12] sm:$0xff] }
 0x412   :  { %2333 = vst.msk [vmem:[#allocation3 + $0x1c8] sm:$0xff] %vm2275_vm7, %v2198_v3  ;;  %2589 = vrot.lane.b32.xlu0 %v2401_v59, %s7050_s26  ;;  %v4518_v3 = vld [vmem:[#allocation5 + $0x21] sm:$0xff] }
 0x413   :  { %4333 = vst.msk [vmem:[#allocation4 + $0x90] sm:$0xff] %vm4218_vm12, %v4275_v39  ;;  %v3332_v50 = vpop.permute.xlu1 %3331 }
 0x414   :  { %v2949_v5 = vpop.permute.xlu0 %2948  ;;  %3478 = vst.msk [vmem:[#allocation3 + $0x170] sm:$0xff] %vm3431_vm10, %v3332_v50 }
 0x415   :  { %3094 = vst.msk [vmem:[#allocation3 + $0x178] sm:$0xff] %vm3046_vm9, %v2949_v5  ;;  %1054 = vrot.lane.b32.xlu1 %v3170_v37, %s7045_s17 }
 0x416   :  { %3339 = vrot.lane.b32.xlu0 %v3161_v2, %s7052_s25 }
 0x417   :  { %v1047_v47 = vpop.permute.xlu1 %1046 }
 0x418   :  { %v644_v7 = vpop.permute.xlu0 %643  ;;  %1180 = vst.msk [vmem:[#allocation3 + $0x1d8] sm:$0xff] %vm1120_vm4, %v1047_v47  ;;  %v4615_v47 = vld [vmem:[#allocation5 + $0x22] sm:$0xff] }
 0x419   :  { %786 = vst.msk [vmem:[#allocation3 + $0x190] sm:$0xff] %vm735_vm3, %v644_v7  ;;  %2591 = vrot.lane.b32.xlu1 %v2402_v6, %s7050_s26 }
 0x41a   :  { %v4365_v8 = vld [vmem:[#allocation4 + $0x90] ss:$2 sm:$0xff]  ;;  %v4397_v48 = vld [vmem:[#allocation4 + $0x91] ss:$2 sm:$0xff]  ;;  %1437 = vrot.lane.b32.xlu0 %v2401_v59, %s7047_s19 }
 0x41b   :  { %v4419_v21 = vmax.f32 %v4365_v8, %v4397_v48  ;;  %v1797_v11 = vpop.permute.xlu1 %1796  ;;  %v3542_v16 = vld [vmem:[#allocation3 + $0x170] sm:$0xff]  ;;  %v5317_v48 = vld [vmem:[%s10126_s3 + $0x40] sm:$0xff] }
 0x41c   :  { %v1430_v51 = vpop.permute.xlu0 %1429  ;;  %1940 = vst.msk [vmem:[#allocation3 + $0x188] sm:$0xff] %vm1890_vm6, %v1797_v11  ;;  %6848 = vmatprep.mubr.msk.f32.mxu0 %vm3572_vm11, %v3542_v16  ;;  %6875 = vmatprep.subr.mxu1 %v5317_v48  ;;  %v9275_v11 = vld [vmem:[#allocation5 + $0x32] sm:$0xff] }
 0x41d   :  { %1564 = vst.msk [vmem:[#allocation3 + $0x1d0] sm:$0xff] %vm1505_vm5, %v1430_v51  ;;  %3341 = vrot.lane.b32.xlu1 %v3162_v14, %s7052_s25  ;;  %6876 = vmatpush3.msra.mxu1 %v5317_v48 }
 0x41e   :  { %4477 = vst.msk [vmem:[#allocation5 + $0xc1] sm:$0xff] %vm4218_vm12, %v4419_v21  ;;  %2974 = vrot.lane.b32.xlu0 %v2786_v19, %s7051_s27 }
 0x41f   :  { %v2584_v13 = vpop.permute.xlu1 %2583 }
 0x420   :  { %v2180_v33 = vpop.permute.xlu0 %2179  ;;  %2719 = vst.msk [vmem:[#allocation3 + $0x1c8] sm:$0xff] %vm2661_vm8, %v2584_v13 }
 0x421   :  { %2324 = vst.msk [vmem:[#allocation3 + $0x180] sm:$0xff] %vm2275_vm7, %v2180_v33  ;;  %1822 = vrot.lane.b32.xlu1 %v2786_v19, %s7048_s20  ;;  %v5316_v19 = vld [vmem:[%s10126_s3 + $0x38] sm:$0xff]  ;;  %v5314_v33 = vld [vmem:[%s10126_s3 + $0x28] sm:$0xff] }
 0x422   :  { %1439 = vrot.lane.b32.xlu0 %v2402_v6, %s7047_s19  ;;  %v4519_v6 = vld [vmem:[#allocation5 + $0x31] sm:$0xff]  ;;  %6877 = vmatprep.subr.mxu1 %v5316_v19 }
 0x423   :  { %v3334_v27 = vpop.permute.xlu1 %3333  ;;  %6878 = vmatpush3.msra.mxu1 %v5316_v19 }
 0x424   :  { %v2967_v15 = vpop.permute.xlu0 %2966  ;;  %3479 = vst.msk [vmem:[#allocation3 + $0x178] sm:$0xff] %vm3431_vm10, %v3334_v27 }
 0x425   :  { %v9204_v42 = vld [vmem:[#allocation5 + $0xc0] sm:$0xff]  ;;  %3103 = vst.msk [vmem:[#allocation3 + $0x1c0] sm:$0xff] %vm3046_vm9, %v2967_v15  ;;  %3359 = vrot.lane.b32.xlu1 %v3171_v54, %s7052_s25 }
 0x426   :  { %4510 = vst.msk [vmem:[#allocation6 + $0x50] sm:$0xff] %vm4218_vm12, %v9204_v42  ;;  %2976 = vrot.lane.b32.xlu0 %v2787_v36, %s7051_s27 }
 0x427   :  { %v1029_v23 = vpop.permute.xlu1 %1028 }
 0x428   :  { %v646_v24 = vpop.permute.xlu0 %645  ;;  %1171 = vst.msk [vmem:[#allocation3 + $0x190] sm:$0xff] %vm1120_vm4, %v1029_v23 }
 0x429   :  { %787 = vst.msk [vmem:[#allocation3 + $0x198] sm:$0xff] %vm735_vm3, %v646_v24  ;;  %2207 = vrot.lane.b32.xlu1 %v3171_v54, %s7049_s23  ;;  %v5313_v54 = vld [vmem:[%s10126_s3 + $0x20] sm:$0xff]  ;;  %v5311_v24 = vld [vmem:[%s10126_s3 + $0x10] sm:$0xff] }
 0x42a   :  { %1824 = vrot.lane.b32.xlu0 %v2787_v36, %s7048_s20 }
 0x42b   :  { %v1815_v28 = vpop.permute.xlu1 %1814  ;;  %v3543_v58 = vld [vmem:[#allocation3 + $0x178] sm:$0xff] }
 0x42c   :  { %v1432_v29 = vpop.permute.xlu0 %1431  ;;  %1949 = vst.msk [vmem:[#allocation3 + $0x1d0] sm:$0xff] %vm1890_vm6, %v1815_v28  ;;  %6849 = vmatmul.mubr.msk.f32.gmra.mxu0 %vm3572_vm11, %v3543_v58  ;;  %v5310_v28 = vld [vmem:[%s10126_s3 + $0x8] sm:$0xff] }
 0x42d   :  { %1565 = vst.msk [vmem:[#allocation3 + $0x1d8] sm:$0xff] %vm1505_vm5, %v1432_v29  ;;  %2209 = vrot.lane.b32.xlu1 %v2018_v53, %s7049_s23 }
 0x42e   :  { %3361 = vrot.lane.b32.xlu0 %v2018_v53, %s7052_s25 }
 0x42f   :  { %v2566_v31 = vpop.permute.xlu1 %2565 }
 0x430   :  { %v2182_v37 = vpop.permute.xlu0 %2181  ;;  %2710 = vst.msk [vmem:[#allocation3 + $0x180] sm:$0xff] %vm2661_vm8, %v2566_v31  ;;  %v5309_v31 = vld [vmem:[%s10126_s3] sm:$0xff] }
 0x431   :  { %2325 = vst.msk [vmem:[#allocation3 + $0x188] sm:$0xff] %vm2275_vm7, %v2182_v37  ;;  %2595 = vrot.lane.b32.xlu1 %v2404_v22, %s7050_s26  ;;  %v9324_v37 = vld [vmem:[%s10125_s2] ss:$0 sm:$0xff] }
 0x432   :  { %2593 = vrot.lane.b32.xlu0 %v2403_v34, %s7050_s26  ;;  %v9316_v34 = vld [vmem:[#allocation5 + $0x41] sm:$0xff] }
 0x433   :  { %v3352_v17 = vpop.permute.xlu1 %3351 }
 0x434   :  { %v2969_v38 = vpop.permute.xlu0 %2968  ;;  %3488 = vst.msk [vmem:[#allocation3 + $0x1c0] sm:$0xff] %vm3431_vm10, %v3352_v17 }
 0x435   :  { %3104 = vst.msk [vmem:[#allocation3 + $0x1c8] sm:$0xff] %vm3046_vm9, %v2969_v38  ;;  %2980 = vrot.lane.b32.xlu1 %v2789_v46, %s7051_s27  ;;  %v6841_v53 = vpop.f32.mrf.mxu0 }
 0x436   :  { %2978 = vrot.lane.b32.xlu0 %v2788_v0, %s7051_s27  ;;  %v4041_v46 = vadd.f32 %v9324_v37, %v6841_v53 }
 0x437   :  { %v1031_v44 = vpop.permute.xlu1 %1030  ;;  %v4035_v22 = vpop.f32.mrf.mxu0 }
 0x438   :  { %v664_v10 = vpop.permute.xlu0 %663  ;;  %1172 = vst.msk [vmem:[#allocation3 + $0x198] sm:$0xff] %vm1120_vm4, %v1031_v44  ;;  %v4036_v0 = vadd.f32 %v9324_v37, %v4035_v22  ;;  %v4620_v22 = vld [vmem:[#allocation5 + $0x72] sm:$0xff] }
 0x439   :  { %796 = vst.msk [vmem:[#allocation3 + $0x1e0] sm:$0xff] %vm735_vm3, %v664_v10  ;;  %3365 = vrot.lane.b32.xlu1 %v3174_v56, %s7052_s25 }
 0x43a   :  { %3363 = vrot.lane.b32.xlu0 %v3173_v43, %s7052_s25  ;;  %v4195_v43 = vmax.f32 %v4041_v46, 0.0 }
 0x43b   :  { %v1817_v40 = vpop.permute.xlu1 %1816  ;;  %v3552_v57 = vld [vmem:[#allocation3 + $0x1c0] sm:$0xff] }
 0x43c   :  { %v1414_v55 = vpop.permute.xlu0 %1413  ;;  %1950 = vst.msk [vmem:[#allocation3 + $0x1d8] sm:$0xff] %vm1890_vm6, %v1817_v40  ;;  %6863 = vmatprep.mubr.msk.f32.mxu1 %vm3572_vm11, %v3552_v57 }
 0x43d   :  { %1556 = vst.msk [vmem:[#allocation3 + $0x190] sm:$0xff] %vm1505_vm5, %v1414_v55  ;;  %4550 = vrot.lane.b32.xlu1 %v4517_v52, %s7045_s17 }
 0x43e   :  { %4548 = vrot.lane.b32.xlu0 %v4516_v35, %s7045_s17  ;;  %v4194_v35 = vmax.f32 %v4036_v0, 0.0 }
 0x43f   :  { %v2568_v49 = vpop.permute.xlu1 %2567 }
 0x440   :  { %v2200_v26 = vpop.permute.xlu0 %2199  ;;  %2711 = vst.msk [vmem:[#allocation3 + $0x188] sm:$0xff] %vm2661_vm8, %v2568_v49  ;;  %v4617_v49 = vld [vmem:[#allocation5 + $0x42] sm:$0xff] }
 0x441   :  { %2334 = vst.msk [vmem:[#allocation3 + $0x1d0] sm:$0xff] %vm2275_vm7, %v2200_v26  ;;  %4647 = vrot.lane.b32.xlu1 %v4614_v63, %s7048_s20  ;;  %v4282_v26 = vsel %vm4218_vm12, %v4195_v43, -inf }
 0x442   :  { %4645 = vrot.lane.b32.xlu0 %v4613_v25, %s7048_s20  ;;  %v4521_v25 = vld [vmem:[#allocation5 + $0x51] sm:$0xff] }
 0x443   :  { %v3354_v59 = vpop.permute.xlu1 %3353 }
 0x444   :  { %v2951_v18 = vpop.permute.xlu0 %2950  ;;  %3489 = vst.msk [vmem:[#allocation3 + $0x1c8] sm:$0xff] %vm3431_vm10, %v3354_v59 }
 0x445   :  { %3095 = vst.msk [vmem:[#allocation3 + $0x180] sm:$0xff] %vm3046_vm9, %v2951_v18  ;;  %4744 = vrot.lane.b32.xlu1 %v8290_v60, %s7050_s26 }
 0x446   :  { %4742 = vrot.lane.b32.xlu0 %v8170_v32, %s7050_s26 }
 0x447   :  { %v1049_v62 = vpop.permute.xlu1 %1048 }
 0x448   :  { %v666_v20 = vpop.permute.xlu0 %665  ;;  %1181 = vst.msk [vmem:[#allocation3 + $0x1e0] sm:$0xff] %vm1120_vm4, %v1049_v62  ;;  %v4279_v62 = vsel %vm4218_vm12, %v4194_v35, -inf  ;;  %v4814_v35 = vld [vmem:[#allocation5 + $0x81] sm:$0xff] }
 0x449   :  { %797 = vst.msk [vmem:[#allocation3 + $0x1e8] sm:$0xff] %vm735_vm3, %v666_v20  ;;  %4552 = vrot.lane.b32.xlu1 %v4518_v3, %s7045_s17 }
 0x44a   :  { %4839 = vrot.lane.b32.xlu0 %v4517_v52, %s7052_s25 }
 0x44b   :  { %v1799_v39 = vpop.permute.xlu1 %1798  ;;  %v3553_v50 = vld [vmem:[#allocation3 + $0x1c8] sm:$0xff] }
 0x44c   :  { %v1416_v2 = vpop.permute.xlu0 %1415  ;;  %1941 = vst.msk [vmem:[#allocation3 + $0x190] sm:$0xff] %vm1890_vm6, %v1799_v39  ;;  %6864 = vmatmul.mubr.msk.f32.gmra.mxu1 %vm3572_vm11, %v3553_v50 }
 0x44d   :  { %1557 = vst.msk [vmem:[#allocation3 + $0x198] sm:$0xff] %vm1505_vm5, %v1416_v2  ;;  %4936 = vrot.lane.b32.xlu1 %v4614_v63, %s7053_s0 }
 0x44e   :  { %4841 = vrot.lane.b32.xlu0 %v4518_v3, %s7052_s25 }
 0x44f   :  { %v2586_v32 = vpop.permute.xlu1 %2585 }
 0x450   :  { %v2202_v5 = vpop.permute.xlu0 %2201  ;;  %2720 = vst.msk [vmem:[#allocation3 + $0x1d0] sm:$0xff] %vm2661_vm8, %v2586_v32 }
 0x451   :  { %2335 = vst.msk [vmem:[#allocation3 + $0x1d8] sm:$0xff] %vm2275_vm7, %v2202_v5  ;;  %4649 = vrot.lane.b32.xlu1 %v4615_v47, %s7048_s20 }
 0x452   :  { %4554 = vrot.lane.b32.xlu0 %v4519_v6, %s7045_s17 }
 0x453   :  { %v3336_v7 = vpop.permute.xlu1 %3335 }
 0x454   :  { %v2953_v8 = vpop.permute.xlu0 %2952  ;;  %3480 = vst.msk [vmem:[#allocation3 + $0x180] sm:$0xff] %vm3431_vm10, %v3336_v7 }
 0x455   :  { %3096 = vst.msk [vmem:[#allocation3 + $0x188] sm:$0xff] %vm3046_vm9, %v2953_v8  ;;  %5034 = vrot.lane.b32.xlu1 %v8290_v60, %s7054_s18  ;;  %v5315_v60 = vld [vmem:[%s10126_s3 + $0x30] sm:$0xff] }
 0x456   :  { %4938 = vrot.lane.b32.xlu0 %v4615_v47, %s7053_s0  ;;  %6879 = vmatprep.subr.mxu1 %v5315_v60 }
 0x457   :  { %v1434_v21 = vpop.permute.xlu1 %1433  ;;  %6880 = vmatpush3.msra.mxu1 %v5315_v60 }
 0x458   :  { %v1051_v14 = vpop.permute.xlu0 %1050  ;;  %1566 = vst.msk [vmem:[#allocation3 + $0x1e0] sm:$0xff] %vm1505_vm5, %v1434_v21  ;;  %6881 = vmatprep.subr.mxu1 %v5314_v33 }
 0x459   :  { %1182 = vst.msk [vmem:[#allocation3 + $0x1e8] sm:$0xff] %vm1120_vm4, %v1051_v14  ;;  %4746 = vrot.lane.b32.xlu1 %v8420_v30, %s7050_s26  ;;  %6882 = vmatpush3.msra.mxu1 %v5314_v33 }
 0x45a   :  { %4651 = vrot.lane.b32.xlu0 %v9275_v11, %s7048_s20  ;;  %6883 = vmatprep.subr.mxu1 %v5313_v54 }
 0x45b   :  { %v2184_v51 = vpop.permute.xlu1 %2183  ;;  %v3544_v13 = vld [vmem:[#allocation3 + $0x180] sm:$0xff]  ;;  %6884 = vmatpush3.msra.mxu1 %v5313_v54 }
 0x45c   :  { %v1801_v16 = vpop.permute.xlu0 %1800  ;;  %2326 = vst.msk [vmem:[#allocation3 + $0x190] sm:$0xff] %vm2275_vm7, %v2184_v51  ;;  %6851 = vmatprep.mubr.msk.f32.mxu0 %vm3572_vm11, %v3544_v13  ;;  %v4522_v13 = vld [vmem:[#allocation5 + $0x61] sm:$0xff] }
 0x45d   :  { %1942 = vst.msk [vmem:[#allocation3 + $0x198] sm:$0xff] %vm1890_vm6, %v1801_v16  ;;  %5131 = vrot.lane.b32.xlu1 %v4518_v3, %s7055_s28 }
 0x45e   :  { %5036 = vrot.lane.b32.xlu0 %v8420_v30, %s7054_s18  ;;  %v5312_v30 = vld [vmem:[%s10126_s3 + $0x18] sm:$0xff] }
 0x45f   :  { %v2971_v36 = vpop.permute.xlu1 %2970  ;;  %6885 = vmatprep.subr.mxu1 %v5312_v30 }
 0x460   :  { %v2588_v27 = vpop.permute.xlu0 %2587  ;;  %3105 = vst.msk [vmem:[#allocation3 + $0x1d0] sm:$0xff] %vm3046_vm9, %v2971_v36  ;;  %6886 = vmatpush3.msra.mxu1 %v5312_v30 }
 0x461   :  { %2721 = vst.msk [vmem:[#allocation3 + $0x1d8] sm:$0xff] %vm2661_vm8, %v2588_v27  ;;  %4843 = vrot.lane.b32.xlu1 %v4519_v6, %s7052_s25  ;;  %6887 = vmatprep.subr.mxu1 %v5311_v24 }
 0x462   :  { %4748 = vrot.lane.b32.xlu0 %v8556_v61, %s7050_s26  ;;  %6888 = vmatpush3.msra.mxu1 %v5311_v24 }
 0x463   :  { %v1436_v15 = vpop.permute.xlu1 %1435  ;;  %6889 = vmatprep.subr.mxu1 %v5310_v28 }
 0x464   :  { %v3338_v23 = vpop.permute.xlu0 %3337  ;;  %1567 = vst.msk [vmem:[#allocation3 + $0x1e8] sm:$0xff] %vm1505_vm5, %v1436_v15  ;;  %6890 = vmatpush3.msra.mxu1 %v5310_v28  ;;  %v4523_v15 = vld [vmem:[#allocation5 + $0x71] sm:$0xff] }
 0x465   :  { %3481 = vst.msk [vmem:[#allocation3 + $0x188] sm:$0xff] %vm3431_vm10, %v3338_v23  ;;  %5228 = vrot.lane.b32.xlu1 %v4615_v47, %s7056_s1  ;;  %6891 = vmatprep.subr.mxu1 %v5309_v31  ;;  %v4619_v23 = vld [vmem:[#allocation5 + $0x62] sm:$0xff] }
 0x466   :  { %5133 = vrot.lane.b32.xlu0 %v4519_v6, %s7055_s28  ;;  %6892 = vmatpush3.msra.mxu1 %v5309_v31  ;;  %v4618_v6 = vld [vmem:[#allocation5 + $0x52] sm:$0xff] }
 0x467   :  { %v2186_v29 = vpop.permute.xlu1 %2185 }
 0x468   :  { %v1819_v58 = vpop.permute.xlu0 %1818  ;;  %2327 = vst.msk [vmem:[#allocation3 + $0x198] sm:$0xff] %vm2275_vm7, %v2186_v29 }
 0x469   :  { %1951 = vst.msk [vmem:[#allocation3 + $0x1e0] sm:$0xff] %vm1890_vm6, %v1819_v58  ;;  %4845 = vrot.lane.b32.xlu1 %v9316_v34, %s7052_s25 }
 0x46a   :  { %4556 = vrot.lane.b32.xlu0 %v9316_v34, %s7045_s17 }
 0x46b   :  { %v2973_v17 = vpop.permute.xlu1 %2972 }
 0x46c   :  { %v2570_v38 = vpop.permute.xlu0 %2569  ;;  %v3545_v41 = vld [vmem:[#allocation3 + $0x188] sm:$0xff]  ;;  %3106 = vst.msk [vmem:[#allocation3 + $0x1d8] sm:$0xff] %vm3046_vm9, %v2973_v17  ;;  %v6844_v56 = vpop.f32.mrf.mxu0 }
 0x46d   :  { %2712 = vst.msk [vmem:[#allocation3 + $0x190] sm:$0xff] %vm2661_vm8, %v2570_v38  ;;  %6852 = vmatmul.mubr.msk.f32.gmra.mxu0 %vm3572_vm11, %v3545_v41  ;;  %v4051_v44 = vadd.f32 %v9324_v37, %v6844_v56  ;;  %5230 = vrot.lane.b32.xlu1 %v9275_v11, %s7056_s1  ;;  %v4717_v38 = vld [vmem:[#allocation5 + $0x80] sm:$0xff] }
 0x46e   :  { %4940 = vrot.lane.b32.xlu0 %v9275_v11, %s7053_s0  ;;  %v4045_v10 = vpop.f32.mrf.mxu0 }
 0x46f   :  { %v4197_v40 = vmax.f32 %v4051_v44, 0.0  ;;  %v4046_v55 = vadd.f32 %v9324_v37, %v4045_v10  ;;  %v668_v57 = vpop.permute.xlu1 %667 }
 0x470   :  { %v3356_v52 = vpop.permute.xlu0 %3355  ;;  %798 = vst.msk [vmem:[#allocation3 + $0x1f0] sm:$0xff] %vm735_vm3, %v668_v57  ;;  %v4621_v57 = vld [vmem:[#allocation5 + $0xa2] sm:$0xff] }
 0x471   :  { %3490 = vst.msk [vmem:[#allocation3 + $0x1d0] sm:$0xff] %vm3431_vm10, %v3356_v52  ;;  %v4283_v63 = vsel %vm4218_vm12, %v4197_v40, -inf  ;;  %v4196_v59 = vmax.f32 %v4046_v55, 0.0  ;;  %4653 = vrot.lane.b32.xlu1 %v4617_v49, %s7048_s20 }
 0x472   :  { %4558 = vrot.lane.b32.xlu0 %v4521_v25, %s7045_s17  ;;  %v4284_v18 = vmax.f32 %v4282_v26, %v4283_v63 }
 0x473   :  { %v4280_v20 = vsel %vm4218_vm12, %v4196_v59, -inf  ;;  %v2204_v3 = vpop.permute.xlu1 %2203 }
 0x474   :  { %v1821_v39 = vpop.permute.xlu0 %1820  ;;  %4336 = vst.msk [vmem:[#allocation4 + $0xa8] sm:$0xff] %vm4218_vm12, %v4284_v18  ;;  %v4281_v2 = vmax.f32 %v4279_v62, %v4280_v20  ;;  %v4911_v62 = vld [vmem:[#allocation5 + $0x82] sm:$0xff] }
 0x475   :  { %2336 = vst.msk [vmem:[#allocation3 + $0x1e0] sm:$0xff] %vm2275_vm7, %v2204_v3  ;;  %5038 = vrot.lane.b32.xlu1 %v8556_v61, %s7054_s18 }
 0x476   :  { %1952 = vst.msk [vmem:[#allocation3 + $0x1e8] sm:$0xff] %vm1890_vm6, %v1821_v39  ;;  %4942 = vrot.lane.b32.xlu0 %v4617_v49, %s7053_s0  ;;  %v4622_v39 = vld [vmem:[#allocation5 + $0xb2] sm:$0xff] }
 0x477   :  { %4335 = vst.msk [vmem:[#allocation4 + $0xa0] sm:$0xff] %vm4218_vm12, %v4281_v2  ;;  %v2955_v50 = vpop.permute.xlu1 %2954  ;;  %v5009_v2 = vld [vmem:[#allocation5 + $0x90] sm:$0xff] }
 0x478   :  { %v2572_v32 = vpop.permute.xlu0 %2571  ;;  %v3554_v5 = vld [vmem:[#allocation3 + $0x1d0] sm:$0xff]  ;;  %3097 = vst.msk [vmem:[#allocation3 + $0x190] sm:$0xff] %vm3046_vm9, %v2955_v50 }
 0x479   :  { %2713 = vst.msk [vmem:[#allocation3 + $0x198] sm:$0xff] %vm2661_vm8, %v2572_v32  ;;  %6866 = vmatprep.mubr.msk.f32.mxu1 %vm3572_vm11, %v3554_v5  ;;  %4750 = vrot.lane.b32.xlu1 %v8686_v12, %s7050_s26 }
 0x47a   :  { %4655 = vrot.lane.b32.xlu0 %v4618_v6, %s7048_s20 }
 0x47b   :  { %v670_v47 = vpop.permute.xlu1 %669 }
 0x47c   :  { %v3358_v7 = vpop.permute.xlu0 %3357  ;;  %799 = vst.msk [vmem:[#allocation3 + $0x1f8] sm:$0xff] %vm735_vm3, %v670_v47  ;;  %vm5082_vm3 = vcmask 458112  }
 0x47d   :  { %3491 = vst.msk [vmem:[#allocation3 + $0x1d8] sm:$0xff] %vm3431_vm10, %v3358_v7  ;;  %5135 = vrot.lane.b32.xlu1 %v9316_v34, %s7055_s28  ;;  %v4492_v34 = vld [vmem:[#allocation5 + $0xa0] sm:$0xff] }
 0x47e   :  { %v4367_v61 = vld [vmem:[#allocation4 + $0xa0] ss:$2 sm:$0xff]  ;;  %v4399_v8 = vld [vmem:[#allocation4 + $0xa1] ss:$2 sm:$0xff]  ;;  %5040 = vrot.lane.b32.xlu0 %v8686_v12, %s7054_s18  ;;  %4508 = vst.msk [vmem:[#allocation6 + $0x40] sm:$0xff] %vm4218_vm12, %v4492_v34 }
 0x47f   :  { %v4420_v48 = vmax.f32 %v4367_v61, %v4399_v8  ;;  %v2206_v21 = vpop.permute.xlu1 %2205 }
 0x480   :  { %v1053_v14 = vpop.permute.xlu0 %1052  ;;  %2337 = vst.msk [vmem:[#allocation3 + $0x1e8] sm:$0xff] %vm2275_vm7, %v2206_v21 }
 0x481   :  { %4478 = vst.msk [vmem:[#allocation5 + $0xd1] sm:$0xff] %vm4218_vm12, %v4420_v48  ;;  %4847 = vrot.lane.b32.xlu1 %v4521_v25, %s7052_s25 }
 0x482   :  { %1183 = vst.msk [vmem:[#allocation3 + $0x1f0] sm:$0xff] %vm1120_vm4, %v1053_v14  ;;  %4752 = vrot.lane.b32.xlu0 %v8809_v45, %s7050_s26  ;;  %v4526_v14 = vld [vmem:[#allocation5 + $0xc1] sm:$0xff] }
 0x483   :  { %v2957_v19 = vpop.permute.xlu1 %2956 }
 0x484   :  { %v2590_v11 = vpop.permute.xlu0 %2589  ;;  %v3555_v12 = vld [vmem:[#allocation3 + $0x1d8] sm:$0xff]  ;;  %3098 = vst.msk [vmem:[#allocation3 + $0x198] sm:$0xff] %vm3046_vm9, %v2957_v19 }
 0x485   :  { %2722 = vst.msk [vmem:[#allocation3 + $0x1e0] sm:$0xff] %vm2661_vm8, %v2590_v11  ;;  %6867 = vmatmul.mubr.msk.f32.gmra.mxu1 %vm3572_vm11, %v3555_v12  ;;  %5232 = vrot.lane.b32.xlu1 %v4617_v49, %s7056_s1  ;;  %v4525_v49 = vld [vmem:[#allocation5 + $0xb1] sm:$0xff] }
 0x486   :  { %5137 = vrot.lane.b32.xlu0 %v4521_v25, %s7055_s28  ;;  %v5203_v11 = vld [vmem:[#allocation5 + $0x92] sm:$0xff] }
 0x487   :  { %v1055_v60 = vpop.permute.xlu1 %1054 }
 0x488   :  { %v3340_v51 = vpop.permute.xlu0 %3339  ;;  %v9379_v16 = vld [vmem:[#allocation5 + $0xd0] sm:$0xff]  ;;  %1184 = vst.msk [vmem:[#allocation3 + $0x1f8] sm:$0xff] %vm1120_vm4, %v1055_v60  ;;  %vm5179_vm4 = vcmask 523712  }
 0x489   :  { %3482 = vst.msk [vmem:[#allocation3 + $0x190] sm:$0xff] %vm3431_vm10, %v3340_v51  ;;  %4849 = vrot.lane.b32.xlu1 %v4522_v13, %s7052_s25 }
 0x48a   :  { %4511 = vst.msk [vmem:[#allocation6 + $0x58] sm:$0xff] %vm4218_vm12, %v9379_v16  ;;  %4560 = vrot.lane.b32.xlu0 %v4522_v13, %s7045_s17 }
 0x48b   :  { %v2592_v33 = vpop.permute.xlu1 %2591 }
 0x48c   :  { %v1438_v54 = vpop.permute.xlu0 %1437  ;;  %2723 = vst.msk [vmem:[#allocation3 + $0x1e8] sm:$0xff] %vm2661_vm8, %v2592_v33  ;;  %v6859_v61 = vpop.f32.mrf.mxu1 }
 0x48d   :  { %1568 = vst.msk [vmem:[#allocation3 + $0x1f0] sm:$0xff] %vm1505_vm5, %v1438_v54  ;;  %5234 = vrot.lane.b32.xlu1 %v4618_v6, %s7056_s1  ;;  %v4101_v19 = vadd.f32 %v9324_v37, %v6859_v61 }
 0x48e   :  { %4944 = vrot.lane.b32.xlu0 %v4618_v6, %s7053_s0  ;;  %v4095_v21 = vpop.f32.mrf.mxu1 }
 0x48f   :  { %v3342_v36 = vpop.permute.xlu1 %3341  ;;  %v4096_v12 = vadd.f32 %v9324_v37, %v4095_v21  ;;  %v4207_v33 = vmax.f32 %v4101_v19, 0.0 }
 0x490   :  { %v2975_v27 = vpop.permute.xlu0 %2974  ;;  %v3546_v30 = vld [vmem:[#allocation3 + $0x190] sm:$0xff]  ;;  %3483 = vst.msk [vmem:[#allocation3 + $0x198] sm:$0xff] %vm3431_vm10, %v3342_v36 }
 0x491   :  { %3107 = vst.msk [vmem:[#allocation3 + $0x1e0] sm:$0xff] %vm3046_vm9, %v2975_v27  ;;  %6854 = vmatprep.mubr.msk.f32.mxu0 %vm3572_vm11, %v3546_v30  ;;  %4657 = vrot.lane.b32.xlu1 %v4619_v23, %s7048_s20  ;;  %v4206_v27 = vmax.f32 %v4096_v12, 0.0 }
 0x492   :  { %4562 = vrot.lane.b32.xlu0 %v4523_v15, %s7045_s17 }
 0x493   :  { %v1823_v24 = vpop.permute.xlu1 %1822 }
 0x494   :  { %v1440_v53 = vpop.permute.xlu0 %1439  ;;  %1953 = vst.msk [vmem:[#allocation3 + $0x1f0] sm:$0xff] %vm1890_vm6, %v1823_v24 }
 0x495   :  { %1569 = vst.msk [vmem:[#allocation3 + $0x1f8] sm:$0xff] %vm1505_vm5, %v1440_v53  ;;  %5042 = vrot.lane.b32.xlu1 %v8809_v45, %s7054_s18  ;;  %v9473_v53 = vld [vmem:[#allocation5 + $0xd1] sm:$0xff]  ;;  %vm5276_vm5 = vcmask 589312  }
 0x496   :  { %4946 = vrot.lane.b32.xlu0 %v4619_v23, %s7053_s0 }
 0x497   :  { %v3360_v28 = vpop.permute.xlu1 %3359  ;;  %v3547_v58 = vld [vmem:[#allocation3 + $0x198] sm:$0xff] }
 0x498   :  { %v2977_v29 = vpop.permute.xlu0 %2976  ;;  %3492 = vst.msk [vmem:[#allocation3 + $0x1e0] sm:$0xff] %vm3431_vm10, %v3360_v28  ;;  %6855 = vmatmul.mubr.msk.f32.gmra.mxu0 %vm3572_vm11, %v3547_v58  ;;  %v4623_v28 = vld [vmem:[#allocation5 + $0xc2] sm:$0xff] }
 0x499   :  { %3108 = vst.msk [vmem:[#allocation3 + $0x1e8] sm:$0xff] %vm3046_vm9, %v2977_v29  ;;  %4754 = vrot.lane.b32.xlu1 %v8915_v9, %s7050_s26  ;;  %v4300_v29 = vsel %vm4218_vm12, %v4207_v33, -inf }
 0x49a   :  { %4659 = vrot.lane.b32.xlu0 %v4620_v22, %s7048_s20 }
 0x49b   :  { %v2208_v31 = vpop.permute.xlu1 %2207 }
 0x49c   :  { %v1825_v45 = vpop.permute.xlu0 %1824  ;;  %2338 = vst.msk [vmem:[#allocation3 + $0x1f0] sm:$0xff] %vm2275_vm7, %v2208_v31  ;;  %v4297_v31 = vsel %vm4218_vm12, %v4206_v27, -inf }
 0x49d   :  { %1954 = vst.msk [vmem:[#allocation3 + $0x1f8] sm:$0xff] %vm1890_vm6, %v1825_v45  ;;  %5139 = vrot.lane.b32.xlu1 %v4522_v13, %s7055_s28  ;;  %vm5325_vm6 = vcmask 588800  }
 0x49e   :  { %5044 = vrot.lane.b32.xlu0 %v8915_v9, %s7054_s18  ;;  %v4524_v9 = vld [vmem:[#allocation5 + $0xa1] sm:$0xff] }
 0x49f   :  { %v2210_v46 = vpop.permute.xlu1 %2209  ;;  %v3556_v17 = vld [vmem:[#allocation3 + $0x1e0] sm:$0xff] }
 0x4a0   :  { %v3362_v0 = vpop.permute.xlu0 %3361  ;;  %2339 = vst.msk [vmem:[#allocation3 + $0x1f8] sm:$0xff] %vm2275_vm7, %v2210_v46  ;;  %6869 = vmatprep.mubr.msk.f32.mxu1 %vm3572_vm11, %v3556_v17  ;;  %vm5535_vm7 = vcmask 130048  }
 0x4a1   :  { %3493 = vst.msk [vmem:[#allocation3 + $0x1e8] sm:$0xff] %vm3431_vm10, %v3362_v0  ;;  %4851 = vrot.lane.b32.xlu1 %v4523_v15, %s7052_s25 }
 0x4a2   :  { %4756 = vrot.lane.b32.xlu0 %v4717_v38, %s7050_s26 }
 0x4a3   :  { %v2596_v41 = vpop.permute.xlu1 %2595 }
 0x4a4   :  { %v2594_v56 = vpop.permute.xlu0 %2593  ;;  %2725 = vst.msk [vmem:[#allocation3 + $0x1f8] sm:$0xff] %vm2661_vm8, %v2596_v41 }
 0x4a5   :  { %2724 = vst.msk [vmem:[#allocation3 + $0x1f0] sm:$0xff] %vm2661_vm8, %v2594_v56  ;;  %5236 = vrot.lane.b32.xlu1 %v4619_v23, %s7056_s1  ;;  %v9491_v56 = vld [vmem:[#allocation5 + $0xd2] sm:$0xff]  ;;  %vm5595_vm8 = vcmask 1041409  }
 0x4a6   :  { %5141 = vrot.lane.b32.xlu0 %v4523_v15, %s7055_s28 }
 0x4a7   :  { %v2981_v43 = vpop.permute.xlu1 %2980 }
 0x4a8   :  { %v2979_v44 = vpop.permute.xlu0 %2978  ;;  %v3557_v10 = vld [vmem:[#allocation3 + $0x1e8] sm:$0xff]  ;;  %3110 = vst.msk [vmem:[#allocation3 + $0x1f8] sm:$0xff] %vm3046_vm9, %v2981_v43 }
 0x4a9   :  { %3109 = vst.msk [vmem:[#allocation3 + $0x1f0] sm:$0xff] %vm3046_vm9, %v2979_v44  ;;  %6870 = vmatmul.mubr.msk.f32.gmra.mxu1 %vm3572_vm11, %v3557_v10  ;;  %4853 = vrot.lane.b32.xlu1 %v4814_v35, %s7052_s25  ;;  %vm5597_vm9 = vcmask 1043459  }
 0x4aa   :  { %4564 = vrot.lane.b32.xlu0 %v4524_v9, %s7045_s17 }
 0x4ab   :  { %v3366_v40 = vpop.permute.xlu1 %3365 }
 0x4ac   :  { %v3364_v55 = vpop.permute.xlu0 %3363  ;;  %3495 = vst.msk [vmem:[#allocation3 + $0x1f8] sm:$0xff] %vm3431_vm10, %v3366_v40 }
 0x4ad   :  { %3494 = vst.msk [vmem:[#allocation3 + $0x1f0] sm:$0xff] %vm3431_vm10, %v3364_v55  ;;  %5238 = vrot.lane.b32.xlu1 %v4620_v22, %s7056_s1  ;;  %vm5599_vm10 = vcmask 1045509  }
 0x4ae   :  { %4948 = vrot.lane.b32.xlu0 %v4620_v22, %s7053_s0 }
 0x4af   :  { %v4551_v25 = vpop.permute.xlu1 %4550 }
 0x4b0   :  { %v4549_v52 = vpop.permute.xlu0 %4548  ;;  %4598 = vst.msk [vmem:[#allocation6 + $0x8] sm:$0xff] %vm4596_vm14, %v4551_v25 }
 0x4b1   :  { %4597 = vst.msk [vmem:[#allocation6] sm:$0xff] %vm4596_vm14, %v4549_v52  ;;  %4661 = vrot.lane.b32.xlu1 %v4621_v57, %s7048_s20  ;;  %v6847_v52 = vpop.f32.mrf.mxu0 }
 0x4b2   :  { %4566 = vrot.lane.b32.xlu0 %v4525_v49, %s7045_s17 }
 0x4b3   :  { %v4648_v63 = vpop.permute.xlu1 %4647  ;;  %v3559_v18 = vld [vmem:[#allocation3 + $0x1f8] sm:$0xff] }
 0x4b4   :  { %v4646_v26 = vpop.permute.xlu0 %4645  ;;  %v3558_v59 = vld [vmem:[#allocation3 + $0x1f0] sm:$0xff]  ;;  %4695 = vst.msk [vmem:[#allocation6 + $0x8] sm:$0xff] %vm4693_vm15, %v4648_v63 }
 0x4b5   :  { %4694 = vst.msk [vmem:[#allocation6] sm:$0xff] %vm4693_vm15, %v4646_v26  ;;  %6872 = vmatprep.mubr.msk.f32.mxu1 %vm3572_vm11, %v3558_v59  ;;  %5046 = vrot.lane.b32.xlu1 %v4717_v38, %s7054_s18  ;;  %v4055_v59 = vpop.f32.mrf.mxu0 }
 0x4b6   :  { %4950 = vrot.lane.b32.xlu0 %v4911_v62, %s7053_s0  ;;  %6873 = vmatmul.mubr.msk.f32.gmra.mxu1 %vm3572_vm11, %v3559_v18  ;;  %v4061_v18 = vadd.f32 %v9324_v37, %v6847_v52  ;;  %vm5601_vm11 = vcmask 1047559  }
 0x4b7   :  { %v4745_v3 = vpop.permute.xlu1 %4744 }
 0x4b8   :  { %v4743_v20 = vpop.permute.xlu0 %4742  ;;  %4792 = vst.msk [vmem:[#allocation6 + $0x8] sm:$0xff] %vm4790_vm0, %v4745_v3 }
 0x4b9   :  { %4791 = vst.msk [vmem:[#allocation6] sm:$0xff] %vm4790_vm0, %v4743_v20  ;;  %4758 = vrot.lane.b32.xlu1 %v9118_v4, %s7050_s26  ;;  %v5106_v4 = vld [vmem:[#allocation5 + $0x91] sm:$0xff] }
 0x4ba   :  { %4663 = vrot.lane.b32.xlu0 %v4622_v39, %s7048_s20 }
 0x4bb   :  { %v4553_v32 = vpop.permute.xlu1 %4552 }
 0x4bc   :  { %v4840_v50 = vpop.permute.xlu0 %4839  ;;  %4599 = vst.msk [vmem:[#allocation6 + $0x10] sm:$0xff] %vm4596_vm14, %v4553_v32 }
 0x4bd   :  { %4888 = vst.msk [vmem:[#allocation6] sm:$0xff] %vm4887_vm1, %v4840_v50  ;;  %5143 = vrot.lane.b32.xlu1 %v4814_v35, %s7055_s28 }
 0x4be   :  { %5048 = vrot.lane.b32.xlu0 %v5009_v2, %s7054_s18  ;;  %v4199_v2 = vmax.f32 %v4061_v18, 0.0 }
 0x4bf   :  { %v4937_v6 = vpop.permute.xlu1 %4936 }
 0x4c0   :  { %v4842_v5 = vpop.permute.xlu0 %4841  ;;  %4985 = vst.msk [vmem:[#allocation6] sm:$0xff] %vm4984_vm2, %v4937_v6  ;;  %v4288_v61 = vsel %vm4218_vm12, %v4199_v2, -inf }
 0x4c1   :  { %4889 = vst.msk [vmem:[#allocation6 + $0x8] sm:$0xff] %vm4887_vm1, %v4842_v5  ;;  %4855 = vrot.lane.b32.xlu1 %v4525_v49, %s7052_s25 }
 0x4c2   :  { %4760 = vrot.lane.b32.xlu0 %v9204_v42, %s7050_s26 }
 0x4c3   :  { %v4650_v7 = vpop.permute.xlu1 %4649 }
 0x4c4   :  { %v4555_v47 = vpop.permute.xlu0 %4554  ;;  %4696 = vst.msk [vmem:[#allocation6 + $0x10] sm:$0xff] %vm4693_vm15, %v4650_v7 }
 0x4c5   :  { %4600 = vst.msk [vmem:[#allocation6 + $0x18] sm:$0xff] %vm4596_vm14, %v4555_v47  ;;  %5240 = vrot.lane.b32.xlu1 %v4911_v62, %s7056_s1  ;;  %v4056_v62 = vadd.f32 %v9324_v37, %v4055_v59 }
 0x4c6   :  { %5145 = vrot.lane.b32.xlu0 %v5106_v4, %s7055_s28 }
 0x4c7   :  { %v5035_v48 = vpop.permute.xlu1 %5034  ;;  %v4198_v5 = vmax.f32 %v4056_v62, 0.0 }
 0x4c8   :  { %v4939_v8 = vpop.permute.xlu0 %4938  ;;  %5083 = vst.msk [vmem:[#allocation6] sm:$0xff] %vm5082_vm3, %v5035_v48 }
 0x4c9   :  { %4986 = vst.msk [vmem:[#allocation6 + $0x8] sm:$0xff] %vm4984_vm2, %v4939_v8  ;;  %4857 = vrot.lane.b32.xlu1 %v4526_v14, %s7052_s25 }
 0x4ca   :  { %4568 = vrot.lane.b32.xlu0 %v4526_v14, %s7045_s17 }
 0x4cb   :  { %v4747_v51 = vpop.permute.xlu1 %4746 }
 0x4cc   :  { %v4652_v60 = vpop.permute.xlu0 %4651  ;;  %4793 = vst.msk [vmem:[#allocation6 + $0x10] sm:$0xff] %vm4790_vm0, %v4747_v51  ;;  %v6862_v13 = vpop.f32.mrf.mxu1 }
 0x4cd   :  { %4697 = vst.msk [vmem:[#allocation6 + $0x18] sm:$0xff] %vm4693_vm15, %v4652_v60  ;;  %v4111_v54 = vadd.f32 %v9324_v37, %v6862_v13  ;;  %5242 = vrot.lane.b32.xlu1 %v5203_v11, %s7056_s1 }
 0x4ce   :  { %4952 = vrot.lane.b32.xlu0 %v4622_v39, %s7053_s0  ;;  %v4105_v36 = vpop.f32.mrf.mxu1 }
 0x4cf   :  { %v4209_v30 = vmax.f32 %v4111_v54, 0.0  ;;  %v4106_v15 = vadd.f32 %v9324_v37, %v4105_v36  ;;  %v5132_v24 = vpop.permute.xlu1 %5131 }
 0x4d0   :  { %v5037_v23 = vpop.permute.xlu0 %5036  ;;  %5180 = vst.msk [vmem:[#allocation6] sm:$0xff] %vm5179_vm4, %v5132_v24 }
 0x4d1   :  { %5084 = vst.msk [vmem:[#allocation6 + $0x8] sm:$0xff] %vm5082_vm3, %v5037_v23  ;;  %v4301_v58 = vsel %vm4218_vm12, %v4209_v30, -inf  ;;  %v4208_v22 = vmax.f32 %v4106_v15, 0.0  ;;  %4665 = vrot.lane.b32.xlu1 %v4623_v28, %s7048_s20 }
 0x4d2   :  { %4570 = vrot.lane.b32.xlu0 %v9473_v53, %s7045_s17  ;;  %v4302_v34 = vmax.f32 %v4300_v29, %v4301_v58 }
 0x4d3   :  { %v4298_v45 = vsel %vm4218_vm12, %v4208_v22, -inf  ;;  %v4844_v0 = vpop.permute.xlu1 %4843 }
 0x4d4   :  { %v4749_v46 = vpop.permute.xlu0 %4748  ;;  %4342 = vst.msk [vmem:[#allocation4 + $0xd8] sm:$0xff] %vm4218_vm12, %v4302_v34  ;;  %v4299_v17 = vmax.f32 %v4297_v31, %v4298_v45 }
 0x4d5   :  { %4794 = vst.msk [vmem:[#allocation6 + $0x18] sm:$0xff] %vm4790_vm0, %v4749_v46  ;;  %5050 = vrot.lane.b32.xlu1 %v9204_v42, %s7054_s18 }
 0x4d6   :  { %4890 = vst.msk [vmem:[#allocation6 + $0x10] sm:$0xff] %vm4887_vm1, %v4844_v0  ;;  %4954 = vrot.lane.b32.xlu0 %v4623_v28, %s7053_s0 }
 0x4d7   :  { %4341 = vst.msk [vmem:[#allocation4 + $0xd0] sm:$0xff] %vm4218_vm12, %v4299_v17  ;;  %v5229_v41 = vpop.permute.xlu1 %5228 }
 0x4d8   :  { %v5134_v38 = vpop.permute.xlu0 %5133  ;;  %5277 = vst.msk [vmem:[#allocation6] sm:$0xff] %vm5276_vm5, %v5229_v41 }
 0x4d9   :  { %5181 = vst.msk [vmem:[#allocation6 + $0x8] sm:$0xff] %vm5179_vm4, %v5134_v38  ;;  %4762 = vrot.lane.b32.xlu1 %v9379_v16, %s7050_s26 }
 0x4da   :  { %4667 = vrot.lane.b32.xlu0 %v9491_v56, %s7048_s20 }
 0x4db   :  { %v4846_v43 = vpop.permute.xlu1 %4845 }
 0x4dc   :  { %v4557_v9 = vpop.permute.xlu0 %4556  ;;  %4891 = vst.msk [vmem:[#allocation6 + $0x18] sm:$0xff] %vm4887_vm1, %v4846_v43 }
 0x4dd   :  { %4601 = vst.msk [vmem:[#allocation6 + $0x20] sm:$0xff] %vm4596_vm14, %v4557_v9  ;;  %5147 = vrot.lane.b32.xlu1 %v4526_v14, %s7055_s28  ;;  %v4285_v14 = vsel %vm4218_vm12, %v4198_v5, -inf }
 0x4de   :  { %v4373_v42 = vld [vmem:[#allocation4 + $0xd0] ss:$2 sm:$0xff]  ;;  %v4405_v44 = vld [vmem:[#allocation4 + $0xd1] ss:$2 sm:$0xff]  ;;  %5052 = vrot.lane.b32.xlu0 %v9379_v16, %s7054_s18 }
 0x4df   :  { %v4423_v10 = vmax.f32 %v4373_v42, %v4405_v44  ;;  %v5231_v40 = vpop.permute.xlu1 %5230  ;;  %v5293_v55 = vld [vmem:[#allocation6] sm:$0xff] }
 0x4e0   :  { %v4941_v35 = vpop.permute.xlu0 %4940  ;;  %5278 = vst.msk [vmem:[#allocation6 + $0x8] sm:$0xff] %vm5276_vm5, %v5231_v40  ;;  %6893 = vmatprep.mubr.msk.f32.mxu1 %vm5325_vm6, %v5293_v55 }
 0x4e1   :  { %4481 = vst.msk [vmem:[#allocation5 + $0x101] sm:$0xff] %vm4218_vm12, %v4423_v10  ;;  %4859 = vrot.lane.b32.xlu1 %v9473_v53, %s7052_s25 }
 0x4e2   :  { %4987 = vst.msk [vmem:[#allocation6 + $0x10] sm:$0xff] %vm4984_vm2, %v4941_v35 }
 0x4e3   :  { %v4654_v16 = vpop.permute.xlu1 %4653 }
 0x4e4   :  { %v4559_v57 = vpop.permute.xlu0 %4558  ;;  %4698 = vst.msk [vmem:[#allocation6 + $0x20] sm:$0xff] %vm4693_vm15, %v4654_v16 }
 0x4e5   :  { %4602 = vst.msk [vmem:[#allocation6 + $0x28] sm:$0xff] %vm4596_vm14, %v4559_v57  ;;  %5244 = vrot.lane.b32.xlu1 %v4623_v28, %s7056_s1 }
 0x4e7   :  { %v5039_v49 = vpop.permute.xlu1 %5038  ;;  %v5294_v26 = vld [vmem:[#allocation6 + $0x8] sm:$0xff] }
 0x4e8   :  { %v4943_v25 = vpop.permute.xlu0 %4942  ;;  %v9511_v63 = vld [vmem:[#allocation5 + $0x100] sm:$0xff]  ;;  %5085 = vst.msk [vmem:[#allocation6 + $0x10] sm:$0xff] %vm5082_vm3, %v5039_v49  ;;  %6894 = vmatmul.mubr.msk.f32.vlgmr.msra.gmra.mxu1 %vm5325_vm6, %v5294_v26 }
 0x4e9   :  { %4988 = vst.msk [vmem:[#allocation6 + $0x18] sm:$0xff] %vm4984_vm2, %v4943_v25 }
 0x4ea   :  { %4514 = vst.msk [vmem:[#allocation6 + $0x70] sm:$0xff] %vm4218_vm12, %v9511_v63 }
 0x4eb   :  { %v4751_v3 = vpop.permute.xlu1 %4750 }
 0x4ec   :  { %v4656_v20 = vpop.permute.xlu0 %4655  ;;  %4795 = vst.msk [vmem:[#allocation6 + $0x20] sm:$0xff] %vm4790_vm0, %v4751_v3  ;;  %v6850_v39 = vpop.f32.mrf.mxu0 }
 0x4ed   :  { %4699 = vst.msk [vmem:[#allocation6 + $0x28] sm:$0xff] %vm4693_vm15, %v4656_v20  ;;  %v4071_v50 = vadd.f32 %v9324_v37, %v6850_v39 }
 0x4ee   :  { %v4065_v32 = vpop.f32.mrf.mxu0 }
 0x4ef   :  { %v4201_v6 = vmax.f32 %v4071_v50, 0.0  ;;  %v4066_v4 = vadd.f32 %v9324_v37, %v4065_v32  ;;  %v5136_v7 = vpop.permute.xlu1 %5135 }
 0x4f0   :  { %v5041_v47 = vpop.permute.xlu0 %5040  ;;  %5182 = vst.msk [vmem:[#allocation6 + $0x10] sm:$0xff] %vm5179_vm4, %v5136_v7 }
 0x4f1   :  { %5086 = vst.msk [vmem:[#allocation6 + $0x18] sm:$0xff] %vm5082_vm3, %v5041_v47  ;;  %v4289_v8 = vsel %vm4218_vm12, %v4201_v6, -inf  ;;  %v4200_v48 = vmax.f32 %v4066_v4, 0.0 }
 0x4f2   :  { %v4290_v21 = vmax.f32 %v4288_v61, %v4289_v8 }
 0x4f3   :  { %v4286_v19 = vsel %vm4218_vm12, %v4200_v48, -inf  ;;  %v4848_v12 = vpop.permute.xlu1 %4847 }
 0x4f4   :  { %v4753_v11 = vpop.permute.xlu0 %4752  ;;  %4338 = vst.msk [vmem:[#allocation4 + $0xb8] sm:$0xff] %vm4218_vm12, %v4290_v21  ;;  %v4287_v60 = vmax.f32 %v4285_v14, %v4286_v19 }
 0x4f5   :  { %4796 = vst.msk [vmem:[#allocation6 + $0x28] sm:$0xff] %vm4790_vm0, %v4753_v11 }
 0x4f6   :  { %4892 = vst.msk [vmem:[#allocation6 + $0x20] sm:$0xff] %vm4887_vm1, %v4848_v12 }
 0x4f7   :  { %4337 = vst.msk [vmem:[#allocation4 + $0xb0] sm:$0xff] %vm4218_vm12, %v4287_v60  ;;  %v5233_v13 = vpop.permute.xlu1 %5232 }
 0x4f8   :  { %v5138_v51 = vpop.permute.xlu0 %5137  ;;  %5279 = vst.msk [vmem:[#allocation6 + $0x10] sm:$0xff] %vm5276_vm5, %v5233_v13 }
 0x4f9   :  { %5183 = vst.msk [vmem:[#allocation6 + $0x18] sm:$0xff] %vm5179_vm4, %v5138_v51 }
 0x4fb   :  { %v4850_v54 = vpop.permute.xlu1 %4849 }
 0x4fc   :  { %v4561_v33 = vpop.permute.xlu0 %4560  ;;  %4893 = vst.msk [vmem:[#allocation6 + $0x28] sm:$0xff] %vm4887_vm1, %v4850_v54 }
 0x4fd   :  { %4603 = vst.msk [vmem:[#allocation6 + $0x30] sm:$0xff] %vm4596_vm14, %v4561_v33 }
 0x4fe   :  { %v4369_v36 = vld [vmem:[#allocation4 + $0xb0] ss:$2 sm:$0xff]  ;;  %v4401_v27 = vld [vmem:[#allocation4 + $0xb1] ss:$2 sm:$0xff] }
 0x4ff   :  { %v4421_v30 = vmax.f32 %v4369_v36, %v4401_v27  ;;  %v5235_v23 = vpop.permute.xlu1 %5234  ;;  %v5295_v24 = vld [vmem:[#allocation6 + $0x10] sm:$0xff] }
 0x500   :  { %v4945_v15 = vpop.permute.xlu0 %4944  ;;  %5280 = vst.msk [vmem:[#allocation6 + $0x18] sm:$0xff] %vm5276_vm5, %v5235_v23  ;;  %6896 = vmatprep.mubr.msk.f32.mxu1 %vm5325_vm6, %v5295_v24 }
 0x501   :  { %4479 = vst.msk [vmem:[#allocation5 + $0xe1] sm:$0xff] %vm4218_vm12, %v4421_v30 }
 0x502   :  { %4989 = vst.msk [vmem:[#allocation6 + $0x20] sm:$0xff] %vm4984_vm2, %v4945_v15 }
 0x503   :  { %v4658_v29 = vpop.permute.xlu1 %4657 }
 0x504   :  { %v4563_v28 = vpop.permute.xlu0 %4562  ;;  %4700 = vst.msk [vmem:[#allocation6 + $0x30] sm:$0xff] %vm4693_vm15, %v4658_v29 }
 0x505   :  { %4604 = vst.msk [vmem:[#allocation6 + $0x38] sm:$0xff] %vm4596_vm14, %v4563_v28 }
 0x507   :  { %v5043_v22 = vpop.permute.xlu1 %5042  ;;  %v5296_v45 = vld [vmem:[#allocation6 + $0x18] sm:$0xff] }
 0x508   :  { %v4947_v58 = vpop.permute.xlu0 %4946  ;;  %v4721_v34 = vld [vmem:[#allocation5 + $0xe0] sm:$0xff]  ;;  %5087 = vst.msk [vmem:[#allocation6 + $0x20] sm:$0xff] %vm5082_vm3, %v5043_v22  ;;  %6897 = vmatmul.mubr.msk.f32.gmra.mxu1 %vm5325_vm6, %v5296_v45 }
 0x509   :  { %v9544_v31 = vld [vmem:[#allocation5 + $0xe1] sm:$0xff]  ;;  %4990 = vst.msk [vmem:[#allocation6 + $0x28] sm:$0xff] %vm4984_vm2, %v4947_v58  ;;  %4764 = vrot.lane.b32.xlu0 %v4721_v34, %s7050_s26 }
 0x50a   :  { %4861 = vrot.lane.b32.xlu1 %v9544_v31, %s7052_s25  ;;  %4512 = vst.msk [vmem:[#allocation6 + $0x60] sm:$0xff] %vm4218_vm12, %v4721_v34  ;;  %v9559_v41 = vld [vmem:[#allocation5 + $0xe2] sm:$0xff] }
 0x50b   :  { %v4755_v0 = vpop.permute.xlu1 %4754 }
 0x50c   :  { %v4660_v46 = vpop.permute.xlu0 %4659  ;;  %4797 = vst.msk [vmem:[#allocation6 + $0x30] sm:$0xff] %vm4790_vm0, %v4755_v0  ;;  %v6865_v32 = vpop.f32.mrf.mxu1 }
 0x50d   :  { %4701 = vst.msk [vmem:[#allocation6 + $0x38] sm:$0xff] %vm4693_vm15, %v4660_v46  ;;  %5149 = vrot.lane.b32.xlu0 %v9473_v53, %s7055_s28  ;;  %v4121_v7 = vadd.f32 %v9324_v37, %v6865_v32 }
 0x50e   :  { %5246 = vrot.lane.b32.xlu1 %v9491_v56, %s7056_s1  ;;  %v4115_v47 = vpop.f32.mrf.mxu1 }
 0x50f   :  { %v5140_v38 = vpop.permute.xlu1 %5139  ;;  %v4116_v61 = vadd.f32 %v9324_v37, %v4115_v47  ;;  %v4211_v14 = vmax.f32 %v4121_v7, 0.0 }
 0x510   :  { %v5045_v17 = vpop.permute.xlu0 %5044  ;;  %5184 = vst.msk [vmem:[#allocation6 + $0x20] sm:$0xff] %vm5179_vm4, %v5140_v38 }
 0x511   :  { %5088 = vst.msk [vmem:[#allocation6 + $0x28] sm:$0xff] %vm5082_vm3, %v5045_v17  ;;  %4572 = vrot.lane.b32.xlu0 %v9544_v31, %s7045_s17  ;;  %v4210_v12 = vmax.f32 %v4116_v61, 0.0  ;;  %v4306_v36 = vsel %vm4218_vm12, %v4211_v14, -inf }
 0x512   :  { %4669 = vrot.lane.b32.xlu1 %v9559_v41, %s7048_s20 }
 0x513   :  { %v4852_v43 = vpop.permute.xlu1 %4851  ;;  %v4303_v23 = vsel %vm4218_vm12, %v4210_v12, -inf }
 0x514   :  { %v4757_v9 = vpop.permute.xlu0 %4756  ;;  %4894 = vst.msk [vmem:[#allocation6 + $0x30] sm:$0xff] %vm4887_vm1, %v4852_v43 }
 0x515   :  { %4798 = vst.msk [vmem:[#allocation6 + $0x38] sm:$0xff] %vm4790_vm0, %v4757_v9  ;;  %4956 = vrot.lane.b32.xlu0 %v9491_v56, %s7053_s0 }
 0x516   :  { %5054 = vrot.lane.b32.xlu1 %v4721_v34, %s7054_s18 }
 0x517   :  { %v5237_v42 = vpop.permute.xlu1 %5236 }
 0x518   :  { %v5142_v53 = vpop.permute.xlu0 %5141  ;;  %5281 = vst.msk [vmem:[#allocation6 + $0x20] sm:$0xff] %vm5276_vm5, %v5237_v42 }
 0x519   :  { %5185 = vst.msk [vmem:[#allocation6 + $0x28] sm:$0xff] %vm5179_vm4, %v5142_v53 }
 0x51b   :  { %v4854_v10 = vpop.permute.xlu1 %4853 }
 0x51c   :  { %v4565_v44 = vpop.permute.xlu0 %4564  ;;  %4895 = vst.msk [vmem:[#allocation6 + $0x38] sm:$0xff] %vm4887_vm1, %v4854_v10 }
 0x51d   :  { %4605 = vst.msk [vmem:[#allocation6 + $0x40] sm:$0xff] %vm4596_vm14, %v4565_v44 }
 0x51f   :  { %v5239_v40 = vpop.permute.xlu1 %5238  ;;  %v5297_v55 = vld [vmem:[#allocation6 + $0x20] sm:$0xff] }
 0x520   :  { %v4949_v35 = vpop.permute.xlu0 %4948  ;;  %5282 = vst.msk [vmem:[#allocation6 + $0x28] sm:$0xff] %vm5276_vm5, %v5239_v40  ;;  %6899 = vmatprep.mubr.msk.f32.mxu1 %vm5325_vm6, %v5297_v55 }
 0x521   :  { %4991 = vst.msk [vmem:[#allocation6 + $0x30] sm:$0xff] %vm4984_vm2, %v4949_v35 }
 0x523   :  { %v4662_v57 = vpop.permute.xlu1 %4661 }
 0x524   :  { %v4567_v56 = vpop.permute.xlu0 %4566  ;;  %4702 = vst.msk [vmem:[#allocation6 + $0x40] sm:$0xff] %vm4693_vm15, %v4662_v57 }
 0x525   :  { %4606 = vst.msk [vmem:[#allocation6 + $0x48] sm:$0xff] %vm4596_vm14, %v4567_v56 }
 0x527   :  { %v5047_v52 = vpop.permute.xlu1 %5046  ;;  %v5298_v25 = vld [vmem:[#allocation6 + $0x28] sm:$0xff] }
 0x528   :  { %v4951_v16 = vpop.permute.xlu0 %4950  ;;  %5089 = vst.msk [vmem:[#allocation6 + $0x30] sm:$0xff] %vm5082_vm3, %v5047_v52  ;;  %6900 = vmatmul.mubr.msk.f32.gmra.mxu1 %vm5325_vm6, %v5298_v25 }
 0x529   :  { %4992 = vst.msk [vmem:[#allocation6 + $0x38] sm:$0xff] %vm4984_vm2, %v4951_v16 }
 0x52b   :  { %v4759_v26 = vpop.permute.xlu1 %4758 }
 0x52c   :  { %v4664_v49 = vpop.permute.xlu0 %4663  ;;  %4799 = vst.msk [vmem:[#allocation6 + $0x40] sm:$0xff] %vm4790_vm0, %v4759_v26 }
 0x52d   :  { %4703 = vst.msk [vmem:[#allocation6 + $0x48] sm:$0xff] %vm4693_vm15, %v4664_v49  ;;  %v6853_v45 = vpop.f32.mrf.mxu0 }
 0x52e   :  { %v4081_v17 = vadd.f32 %v9324_v37, %v6853_v45 }
 0x52f   :  { %v5144_v18 = vpop.permute.xlu1 %5143  ;;  %v4075_v0 = vpop.f32.mrf.mxu0 }
 0x530   :  { %v5049_v59 = vpop.permute.xlu0 %5048  ;;  %5186 = vst.msk [vmem:[#allocation6 + $0x30] sm:$0xff] %vm5179_vm4, %v5144_v18  ;;  %v4076_v53 = vadd.f32 %v9324_v37, %v4075_v0  ;;  %v4203_v10 = vmax.f32 %v4081_v17, 0.0 }
 0x531   :  { %5090 = vst.msk [vmem:[#allocation6 + $0x38] sm:$0xff] %vm5082_vm3, %v5049_v59 }
 0x532   :  { %v4202_v55 = vmax.f32 %v4076_v53, 0.0  ;;  %v4294_v16 = vsel %vm4218_vm12, %v4203_v10, -inf }
 0x533   :  { %v4856_v20 = vpop.permute.xlu1 %4855 }
 0x534   :  { %v4761_v62 = vpop.permute.xlu0 %4760  ;;  %4896 = vst.msk [vmem:[#allocation6 + $0x40] sm:$0xff] %vm4887_vm1, %v4856_v20  ;;  %v4291_v26 = vsel %vm4218_vm12, %v4202_v55, -inf }
 0x535   :  { %4800 = vst.msk [vmem:[#allocation6 + $0x48] sm:$0xff] %vm4790_vm0, %v4761_v62 }
 0x537   :  { %v5241_v39 = vpop.permute.xlu1 %5240 }
 0x538   :  { %v5146_v3 = vpop.permute.xlu0 %5145  ;;  %5283 = vst.msk [vmem:[#allocation6 + $0x30] sm:$0xff] %vm5276_vm5, %v5241_v39 }
 0x539   :  { %5187 = vst.msk [vmem:[#allocation6 + $0x38] sm:$0xff] %vm5179_vm4, %v5146_v3 }
 0x53b   :  { %v4858_v50 = vpop.permute.xlu1 %4857 }
 0x53c   :  { %v4569_v2 = vpop.permute.xlu0 %4568  ;;  %4897 = vst.msk [vmem:[#allocation6 + $0x48] sm:$0xff] %vm4887_vm1, %v4858_v50 }
 0x53d   :  { %4607 = vst.msk [vmem:[#allocation6 + $0x50] sm:$0xff] %vm4596_vm14, %v4569_v2 }
 0x53f   :  { %v5243_v6 = vpop.permute.xlu1 %5242  ;;  %v5299_v4 = vld [vmem:[#allocation6 + $0x30] sm:$0xff] }
 0x540   :  { %v4953_v5 = vpop.permute.xlu0 %4952  ;;  %5284 = vst.msk [vmem:[#allocation6 + $0x38] sm:$0xff] %vm5276_vm5, %v5243_v6  ;;  %6902 = vmatprep.mubr.msk.f32.mxu1 %vm5325_vm6, %v5299_v4 }
 0x541   :  { %4993 = vst.msk [vmem:[#allocation6 + $0x40] sm:$0xff] %vm4984_vm2, %v4953_v5 }
 0x543   :  { %v4666_v48 = vpop.permute.xlu1 %4665 }
 0x544   :  { %v4571_v8 = vpop.permute.xlu0 %4570  ;;  %4704 = vst.msk [vmem:[#allocation6 + $0x50] sm:$0xff] %vm4693_vm15, %v4666_v48  ;;  %v6999_v48 = vld [vmem:[%s10125_s2] ss:$0 sm:$0xff] }
 0x545   :  { %4608 = vst.msk [vmem:[#allocation6 + $0x58] sm:$0xff] %vm4596_vm14, %v4571_v8  ;;  %v6868_v21 = vpop.f32.mrf.mxu1 }
 0x546   :  { %v4131_v19 = vadd.f32 %v9324_v37, %v6868_v21 }
 0x547   :  { %v4125_v11 = vpop.f32.mrf.mxu1  ;;  %v5051_v33 = vpop.permute.xlu1 %5050  ;;  %v5300_v54 = vld [vmem:[#allocation6 + $0x38] sm:$0xff] }
 0x548   :  { %v4213_v60 = vmax.f32 %v4131_v19, 0.0  ;;  %v4126_v51 = vadd.f32 %v9324_v37, %v4125_v11  ;;  %v4955_v13 = vpop.permute.xlu0 %4954  ;;  %5091 = vst.msk [vmem:[#allocation6 + $0x40] sm:$0xff] %vm5082_vm3, %v5051_v33  ;;  %6903 = vmatmul.mubr.msk.f32.gmra.mxu1 %vm5325_vm6, %v5300_v54 }
 0x549   :  { %4994 = vst.msk [vmem:[#allocation6 + $0x48] sm:$0xff] %vm4984_vm2, %v4955_v13 }
 0x54a   :  { %v4307_v27 = vsel %vm4218_vm12, %v4213_v60, -inf  ;;  %v4212_v30 = vmax.f32 %v4126_v51, 0.0 }
 0x54b   :  { %v4308_v15 = vmax.f32 %v4306_v36, %v4307_v27  ;;  %v4763_v29 = vpop.permute.xlu1 %4762 }
 0x54c   :  { %v4304_v24 = vsel %vm4218_vm12, %v4212_v30, -inf  ;;  %v4668_v28 = vpop.permute.xlu0 %4667  ;;  %4801 = vst.msk [vmem:[#allocation6 + $0x50] sm:$0xff] %vm4790_vm0, %v4763_v29 }
 0x54d   :  { %4344 = vst.msk [vmem:[#allocation4 + $0xe8] sm:$0xff] %vm4218_vm12, %v4308_v15  ;;  %v4305_v58 = vmax.f32 %v4303_v23, %v4304_v24 }
 0x54e   :  { %4705 = vst.msk [vmem:[#allocation6 + $0x58] sm:$0xff] %vm4693_vm15, %v4668_v28  ;;  %v4820_v28 = vld [vmem:[#allocation5 + $0x101] sm:$0xff] }
 0x54f   :  { %4343 = vst.msk [vmem:[#allocation4 + $0xe0] sm:$0xff] %vm4218_vm12, %v4305_v58  ;;  %v5148_v34 = vpop.permute.xlu1 %5147 }
 0x550   :  { %v5053_v22 = vpop.permute.xlu0 %5052  ;;  %5188 = vst.msk [vmem:[#allocation6 + $0x40] sm:$0xff] %vm5179_vm4, %v5148_v34 }
 0x551   :  { %5092 = vst.msk [vmem:[#allocation6 + $0x48] sm:$0xff] %vm5082_vm3, %v5053_v22 }
 0x553   :  { %v4860_v46 = vpop.permute.xlu1 %4859 }
 0x554   :  { %4898 = vst.msk [vmem:[#allocation6 + $0x50] sm:$0xff] %vm4887_vm1, %v4860_v46  ;;  %v4627_v46 = vld [vmem:[#allocation5 + $0x102] sm:$0xff] }
 0x556   :  { %v4375_v38 = vld [vmem:[#allocation4 + $0xe0] ss:$2 sm:$0xff]  ;;  %v4407_v9 = vld [vmem:[#allocation4 + $0xe1] ss:$2 sm:$0xff] }
 0x557   :  { %v4424_v43 = vmax.f32 %v4375_v38, %v4407_v9  ;;  %v5245_v42 = vpop.permute.xlu1 %5244  ;;  %v9693_v38 = vld [vmem:[%s10127_s4] ss:$0 sm:$0xff]  ;;  %s7058_s4 = smov 80  }
 0x558   :  { %5285 = vst.msk [vmem:[#allocation6 + $0x40] sm:$0xff] %vm5276_vm5, %v5245_v42  ;;  %v6856_v44 = vpop.f32.mrf.mxu0  ;;  %v5017_v42 = vld [vmem:[#allocation5 + $0x130] sm:$0xff] }
 0x559   :  { %4482 = vst.msk [vmem:[#allocation5 + $0x111] sm:$0xff] %vm4218_vm12, %v4424_v43  ;;  %v4091_v35 = vadd.f32 %v9324_v37, %v6856_v44 }
 0x55a   :  { %v4085_v40 = vpop.f32.mrf.mxu0 }
 0x55b   :  { %v4205_v56 = vmax.f32 %v4091_v35, 0.0  ;;  %v4086_v57 = vadd.f32 %v9324_v37, %v4085_v40 }
 0x55d   :  { %v4295_v52 = vsel %vm4218_vm12, %v4205_v56, -inf  ;;  %v4204_v25 = vmax.f32 %v4086_v57, 0.0  ;;  %v5114_v56 = vld [vmem:[#allocation5 + $0x131] sm:$0xff] }
 0x55e   :  { %v4296_v49 = vmax.f32 %v4294_v16, %v4295_v52 }
 0x55f   :  { %v4292_v59 = vsel %vm4218_vm12, %v4204_v25, -inf  ;;  %v5301_v18 = vld [vmem:[#allocation6 + $0x40] sm:$0xff]  ;;  %v5211_v25 = vld [vmem:[#allocation5 + $0x132] sm:$0xff] }
 0x560   :  { %v9627_v62 = vld [vmem:[#allocation5 + $0x110] sm:$0xff]  ;;  %4340 = vst.msk [vmem:[#allocation4 + $0xc8] sm:$0xff] %vm4218_vm12, %v4296_v49  ;;  %v4293_v20 = vmax.f32 %v4291_v26, %v4292_v59  ;;  %6905 = vmatprep.mubr.msk.f32.mxu1 %vm5325_vm6, %v5301_v18 }
 0x561   :  { %4515 = vst.msk [vmem:[#allocation6 + $0x78] sm:$0xff] %vm4218_vm12, %v9627_v62  ;;  %v4531_v0 = vld [vmem:[#allocation5 + $0x111] sm:$0xff] }
 0x562   :  { %4339 = vst.msk [vmem:[#allocation4 + $0xc0] sm:$0xff] %vm4218_vm12, %v4293_v20  ;;  %v4628_v17 = vld [vmem:[#allocation5 + $0x112] sm:$0xff] }
 0x569   :  { %v4371_v3 = vld [vmem:[#allocation4 + $0xc0] ss:$2 sm:$0xff]  ;;  %v4403_v39 = vld [vmem:[#allocation4 + $0xc1] ss:$2 sm:$0xff]  ;;  %v6871_v50 = vpop.f32.mrf.mxu1 }
 0x56a   :  { %v4422_v2 = vmax.f32 %v4371_v3, %v4403_v39  ;;  %v4141_v32 = vadd.f32 %v9324_v37, %v6871_v50 }
 0x56b   :  { %v4135_v5 = vpop.f32.mrf.mxu1 }
 0x56c   :  { %4480 = vst.msk [vmem:[#allocation5 + $0xf1] sm:$0xff] %vm4218_vm12, %v4422_v2  ;;  %v4136_v47 = vadd.f32 %v9324_v37, %v4135_v5  ;;  %v4215_v7 = vmax.f32 %v4141_v32, 0.0 }
 0x56e   :  { %v4214_v8 = vmax.f32 %v4136_v47, 0.0  ;;  %v4312_v14 = vsel %vm4218_vm12, %v4215_v7, -inf }
 0x570   :  { %v4309_v51 = vsel %vm4218_vm12, %v4214_v8, -inf }
 0x573   :  { %v4529_v6 = vld [vmem:[#allocation5 + $0xf1] sm:$0xff] }
 0x574   :  { %v4722_v4 = vld [vmem:[#allocation5 + $0xf0] sm:$0xff]  ;;  %4574 = vrot.lane.b32.xlu0 %v4529_v6, %s7045_s17 }
 0x575   :  { %4766 = vrot.lane.b32.xlu1 %v4722_v4, %s7050_s26  ;;  %4513 = vst.msk [vmem:[#allocation6 + $0x68] sm:$0xff] %vm4218_vm12, %v4722_v4  ;;  %v4626_v54 = vld [vmem:[#allocation5 + $0xf2] sm:$0xff] }
 0x576   :  { %v6874_v61 = vpop.f32.mrf.mxu1 }
 0x577   :  { %v4151_v21 = vadd.f32 %v6999_v48, %v6874_v61 }
 0x578   :  { %4958 = vrot.lane.b32.xlu0 %v9559_v41, %s7053_s0  ;;  %v4145_v37 = vpop.f32.mrf.mxu1 }
 0x579   :  { %5151 = vrot.lane.b32.xlu1 %v9544_v31, %s7055_s28  ;;  %v4217_v19 = vmax.f32 %v4151_v21, 0.0  ;;  %v4146_v11 = vadd.f32 %v6999_v48, %v4145_v37 }
 0x57b   :  { %v4765_v12 = vpop.permute.xlu0 %4764  ;;  %v4313_v13 = vsel %vm4218_vm12, %v4217_v19, -inf  ;;  %v4216_v33 = vmax.f32 %v4146_v11, 0.0 }
 0x57c   :  { %v4862_v60 = vpop.permute.xlu1 %4861  ;;  %4802 = vst.msk [vmem:[#allocation6 + $0x58] sm:$0xff] %vm4790_vm0, %v4765_v12  ;;  %v4314_v36 = vmax.f32 %v4312_v14, %v4313_v13  ;;  %4671 = vrot.lane.b32.xlu0 %v4626_v54, %s7048_s20 }
 0x57d   :  { %4899 = vst.msk [vmem:[#allocation6 + $0x58] sm:$0xff] %vm4887_vm1, %v4862_v60  ;;  %4863 = vrot.lane.b32.xlu1 %v4529_v6, %s7052_s25  ;;  %v4310_v31 = vsel %vm4218_vm12, %v4216_v33, -inf }
 0x57e   :  { %4346 = vst.msk [vmem:[#allocation4 + $0xf8] sm:$0xff] %vm4218_vm12, %v4314_v36  ;;  %v4311_v27 = vmax.f32 %v4309_v51, %v4310_v31 }
 0x57f   :  { %v5150_v30 = vpop.permute.xlu0 %5149 }
 0x580   :  { %v5247_v15 = vpop.permute.xlu1 %5246  ;;  %5189 = vst.msk [vmem:[#allocation6 + $0x48] sm:$0xff] %vm5179_vm4, %v5150_v30  ;;  %5056 = vrot.lane.b32.xlu0 %v4722_v4, %s7054_s18 }
 0x581   :  { %4345 = vst.msk [vmem:[#allocation4 + $0xf0] sm:$0xff] %vm4218_vm12, %v4311_v27  ;;  %5248 = vrot.lane.b32.xlu1 %v9559_v41, %s7056_s1 }
 0x582   :  { %5286 = vst.msk [vmem:[#allocation6 + $0x48] sm:$0xff] %vm5276_vm5, %v5247_v15 }
 0x583   :  { %v4573_v23 = vpop.permute.xlu0 %4572 }
 0x584   :  { %v4670_v24 = vpop.permute.xlu1 %4669  ;;  %4609 = vst.msk [vmem:[#allocation6 + $0x60] sm:$0xff] %vm4596_vm14, %v4573_v23  ;;  %4768 = vrot.lane.b32.xlu0 %v9511_v63, %s7050_s26 }
 0x585   :  { %4706 = vst.msk [vmem:[#allocation6 + $0x60] sm:$0xff] %vm4693_vm15, %v4670_v24  ;;  %4865 = vrot.lane.b32.xlu1 %v4820_v28, %s7052_s25 }
 0x587   :  { %v4957_v29 = vpop.permute.xlu0 %4956 }
 0x588   :  { %v5055_v58 = vpop.permute.xlu1 %5054  ;;  %v4377_v22 = vld [vmem:[#allocation4 + $0xf0] ss:$2 sm:$0xff]  ;;  %v4409_v34 = vld [vmem:[#allocation4 + $0xf1] ss:$2 sm:$0xff]  ;;  %4995 = vst.msk [vmem:[#allocation6 + $0x50] sm:$0xff] %vm4984_vm2, %v4957_v29  ;;  %5153 = vrot.lane.b32.xlu0 %v4529_v6, %s7055_s28 }
 0x589   :  { %v5302_v45 = vld [vmem:[#allocation6 + $0x48] sm:$0xff]  ;;  %v4425_v41 = vmax.f32 %v4377_v22, %v4409_v34  ;;  %5093 = vst.msk [vmem:[#allocation6 + $0x50] sm:$0xff] %vm5082_vm3, %v5055_v58  ;;  %5250 = vrot.lane.b32.xlu1 %v4626_v54, %s7056_s1 }
 0x58a   :  { %6906 = vmatmul.mubr.msk.f32.gmra.mxu1 %vm5325_vm6, %v5302_v45 }
 0x58b   :  { %4483 = vst.msk [vmem:[#allocation5 + $0x121] sm:$0xff] %vm4218_vm12, %v4425_v41  ;;  %vm5604_vm12 = vcmask 123904  }
 0x58c   :  { %4576 = vrot.lane.b32.xlu0 %v4820_v28, %s7045_s17 }
 0x58d   :  { %4673 = vrot.lane.b32.xlu1 %v4627_v46, %s7048_s20 }
 0x590   :  { %4960 = vrot.lane.b32.xlu0 %v4626_v54, %s7053_s0 }
 0x591   :  { %5058 = vrot.lane.b32.xlu1 %v9511_v63, %s7054_s18 }
 0x592   :  { %v4725_v63 = vld [vmem:[#allocation5 + $0x120] sm:$0xff] }
 0x593   :  { %v4919_v9 = vld [vmem:[#allocation5 + $0x122] sm:$0xff] }
 0x594   :  { %4578 = vrot.lane.b32.xlu0 %v4531_v0, %s7045_s17  ;;  %v4822_v40 = vld [vmem:[#allocation5 + $0x121] sm:$0xff] }
 0x595   :  { %4770 = vrot.lane.b32.xlu1 %v9627_v62, %s7050_s26 }
 0x598   :  { %4962 = vrot.lane.b32.xlu0 %v4627_v46, %s7053_s0 }
 0x599   :  { %5155 = vrot.lane.b32.xlu1 %v4820_v28, %s7055_s28 }
 0x59c   :  { %4675 = vrot.lane.b32.xlu0 %v4628_v17, %s7048_s20 }
 0x59d   :  { %4867 = vrot.lane.b32.xlu1 %v4531_v0, %s7052_s25 }
 0x5a0   :  { %5060 = vrot.lane.b32.xlu0 %v9627_v62, %s7054_s18 }
 0x5a1   :  { %5252 = vrot.lane.b32.xlu1 %v4627_v46, %s7056_s1 }
 0x5a4   :  { %4772 = vrot.lane.b32.xlu0 %v4725_v63, %s7050_s26  ;;  %s7059_s26 = smov 96  }
 0x5a5   :  { %4964 = vrot.lane.b32.xlu1 %v4628_v17, %s7053_s0 }
 0x5a8   :  { %5157 = vrot.lane.b32.xlu0 %v4531_v0, %s7055_s28  ;;  %v6895_v43 = vpop.f32.mrf.mxu1 }
 0x5a9   :  { %4966 = vrot.lane.b32.xlu1 %v4919_v9, %s7053_s0  ;;  %v5446_v53 = vadd.f32 %v6895_v43, %v9693_v38  ;;  %s7060_s0 = smov 112  }
 0x5aa   :  { %v5440_v44 = vpop.f32.mrf.mxu1 }
 0x5ab   :  { %v5520_v10 = vmax.f32 %v5446_v53, 0.0  ;;  %v5441_v35 = vadd.f32 %v9693_v38, %v5440_v44 }
 0x5ac   :  { %4869 = vrot.lane.b32.xlu0 %v4822_v40, %s7052_s25 }
 0x5ad   :  { %5064 = vrot.lane.b32.xlu1 %v5017_v42, %s7054_s18  ;;  %v5519_v55 = vmax.f32 %v5441_v35, 0.0  ;;  %v5537_v57 = vsel %vm5535_vm7, %v5520_v10, -inf }
 0x5af   :  { %v5536_v16 = vsel %vm5535_vm7, %v5519_v55, -inf }
 0x5b0   :  { %v5538_v52 = vmax.f32 %v5536_v16, %v5537_v57  ;;  %5254 = vrot.lane.b32.xlu0 %v4628_v17, %s7056_s1 }
 0x5b1   :  { %5161 = vrot.lane.b32.xlu1 %v5114_v56, %s7055_s28 }
 0x5b2   :  { %5560 = vst.msk [vmem:[#allocation7] sm:$0xff] %vm5535_vm7, %v5538_v52 }
 0x5b4   :  { %5062 = vrot.lane.b32.xlu0 %v4725_v63, %s7054_s18 }
 0x5b5   :  { %5258 = vrot.lane.b32.xlu1 %v5211_v25, %s7056_s1 }
 0x5b8   :  { %5159 = vrot.lane.b32.xlu0 %v4822_v40, %s7055_s28 }
 0x5bc   :  { %5256 = vrot.lane.b32.xlu0 %v4919_v9, %s7056_s1 }
 0x5c8   :  { %v6898_v49 = vpop.f32.mrf.mxu1 }
 0x5c9   :  { %v5456_v26 = vadd.f32 %v6898_v49, %v9693_v38 }
 0x5ca   :  { %v5450_v59 = vpop.f32.mrf.mxu1 }
 0x5cb   :  { %v5522_v18 = vmax.f32 %v5456_v26, 0.0  ;;  %v5451_v62 = vadd.f32 %v9693_v38, %v5450_v59 }
 0x5cd   :  { %v5521_v20 = vmax.f32 %v5451_v62, 0.0  ;;  %v5540_v3 = vsel %vm5535_vm7, %v5522_v18, -inf }
 0x5cf   :  { %v5539_v39 = vsel %vm5535_vm7, %v5521_v20, -inf }
 0x5d0   :  { %v5541_v2 = vmax.f32 %v5539_v39, %v5540_v3 }
 0x5d2   :  { %5561 = vst.msk [vmem:[#allocation7 + $0x8] sm:$0xff] %vm5535_vm7, %v5541_v2 }
 0x5e6   :  { %v4575_v50 = vpop.permute.xlu0 %4574 }
 0x5e7   :  { %v4767_v32 = vpop.permute.xlu1 %4766  ;;  %4610 = vst.msk [vmem:[#allocation6 + $0x68] sm:$0xff] %vm4596_vm14, %v4575_v50 }
 0x5e8   :  { %4803 = vst.msk [vmem:[#allocation6 + $0x60] sm:$0xff] %vm4790_vm0, %v4767_v32  ;;  %v6901_v5 = vpop.f32.mrf.mxu1 }
 0x5e9   :  { %v5466_v6 = vadd.f32 %v6901_v5, %v9693_v38 }
 0x5ea   :  { %v4959_v4 = vpop.permute.xlu0 %4958  ;;  %v5460_v7 = vpop.f32.mrf.mxu1 }
 0x5eb   :  { %v5152_v47 = vpop.permute.xlu1 %5151  ;;  %4996 = vst.msk [vmem:[#allocation6 + $0x58] sm:$0xff] %vm4984_vm2, %v4959_v4  ;;  %v5524_v61 = vmax.f32 %v5466_v6, 0.0  ;;  %v5461_v8 = vadd.f32 %v9693_v38, %v5460_v7 }
 0x5ec   :  { %5190 = vst.msk [vmem:[#allocation6 + $0x50] sm:$0xff] %vm5179_vm4, %v5152_v47 }
 0x5ed   :  { %v5523_v48 = vmax.f32 %v5461_v8, 0.0  ;;  %v5543_v14 = vsel %vm5535_vm7, %v5524_v61, -inf  ;;  %v7057_v61 = vmov 1983009808  }
 0x5ee   :  { %v4672_v21 = vpop.permute.xlu0 %4671  ;;  %v5577_v8 = vunpack.c.l.s4 %v7057_v61 }
 0x5ef   :  { %v4864_v37 = vpop.permute.xlu1 %4863  ;;  %4707 = vst.msk [vmem:[#allocation6 + $0x68] sm:$0xff] %vm4693_vm15, %v4672_v21  ;;  %v5542_v19 = vsel %vm5535_vm7, %v5523_v48, -inf  ;;  %v5579_v48 = vlaneseq }
 0x5f0   :  { %4900 = vst.msk [vmem:[#allocation6 + $0x60] sm:$0xff] %vm4887_vm1, %v4864_v37  ;;  %v5544_v11 = vmax.f32 %v5542_v19, %v5543_v14  ;;  %v5578_v21 = vunpack.c.0.s8 %v5577_v8  ;;  %v5606_v14 = vld [vmem:[#allocation7 + $0x2] sm:$0x1]  ;;  %v5608_v19 = vld [vmem:[#allocation7 + $0x3] sm:$0x1] }
 0x5f1   :  { %v5580_v37 = vshrl.u32 %v5579_v48, 7 }
 0x5f2   :  { %v5057_v12 = vpop.permute.xlu0 %5056  ;;  %5562 = vst.msk [vmem:[#allocation7 + $0x10] sm:$0xff] %vm5535_vm7, %v5544_v11  ;;  %v5640_v11 = vld [vmem:[#allocation7 + $0x4] sm:$0x1] }
 0x5f3   :  { %v5249_v60 = vpop.permute.xlu1 %5248  ;;  %5094 = vst.msk [vmem:[#allocation6 + $0x58] sm:$0xff] %vm5082_vm3, %v5057_v12  ;;  %v5642_v12 = vld [vmem:[#allocation7 + $0x5] sm:$0x1] }
 0x5f4   :  { %5287 = vst.msk [vmem:[#allocation6 + $0x50] sm:$0xff] %vm5276_vm5, %v5249_v60  ;;  %v5674_v60 = vld [vmem:[#allocation7 + $0x6] sm:$0x1] }
 0x5f6   :  { %v4769_v51 = vpop.permute.xlu0 %4768 }
 0x5f7   :  { %v4866_v13 = vpop.permute.xlu1 %4865  ;;  %4804 = vst.msk [vmem:[#allocation6 + $0x68] sm:$0xff] %vm4790_vm0, %v4769_v51  ;;  %v5676_v51 = vld [vmem:[#allocation7 + $0x7] sm:$0x1] }
 0x5f8   :  { %4901 = vst.msk [vmem:[#allocation6 + $0x68] sm:$0xff] %vm4887_vm1, %v4866_v13  ;;  %v5568_v13 = vld [vmem:[#allocation7] sm:$0x1] }
 0x5fa   :  { %v5154_v33 = vpop.permute.xlu0 %5153 }
 0x5fb   :  { %v5251_v54 = vpop.permute.xlu1 %5250  ;;  %v5303_v36 = vld [vmem:[#allocation6 + $0x50] sm:$0xff]  ;;  %5191 = vst.msk [vmem:[#allocation6 + $0x58] sm:$0xff] %vm5179_vm4, %v5154_v33  ;;  %v5570_v33 = vld [vmem:[#allocation7 + $0x1] sm:$0x1] }
 0x5fc   :  { %6908 = vmatprep.mubr.msk.f32.mxu1 %vm5325_vm6, %v5303_v36  ;;  %5288 = vst.msk [vmem:[#allocation6 + $0x58] sm:$0xff] %vm5276_vm5, %v5251_v54  ;;  %v9772_v54 = vsub.s32 %v5578_v21, %v5580_v37 }
 0x5fe   :  { %v4577_v31 = vpop.permute.xlu0 %4576 }
 0x5ff   :  { %v4674_v27 = vpop.permute.xlu1 %4673  ;;  %4611 = vst.msk [vmem:[#allocation6 + $0x70] sm:$0xff] %vm4596_vm14, %v4577_v31 }
 0x600   :  { %4708 = vst.msk [vmem:[#allocation6 + $0x70] sm:$0xff] %vm4693_vm15, %v4674_v27  ;;  %v5610_v27 = vmax.f32 %v5606_v14, %v5608_v19  ;;  %v5709_v14 = vld [vmem:[#allocation7 + $0x8] sm:$0x1]  ;;  %v5711_v19 = vld [vmem:[#allocation7 + $0x9] sm:$0x1] }
 0x602   :  { %v4961_v30 = vpop.permute.xlu0 %4960 }
 0x603   :  { %v5059_v15 = vpop.permute.xlu1 %5058  ;;  %4997 = vst.msk [vmem:[#allocation6 + $0x60] sm:$0xff] %vm4984_vm2, %v4961_v30  ;;  %v5304_v23 = vld [vmem:[#allocation6 + $0x58] sm:$0xff] }
 0x604   :  { %5095 = vst.msk [vmem:[#allocation6 + $0x60] sm:$0xff] %vm5082_vm3, %v5059_v15  ;;  %6909 = vmatmul.mubr.msk.f32.gmra.mxu1 %vm5325_vm6, %v5304_v23 }
 0x606   :  { %v4579_v24 = vpop.permute.xlu0 %4578 }
 0x607   :  { %v4771_v28 = vpop.permute.xlu1 %4770  ;;  %4612 = vst.msk [vmem:[#allocation6 + $0x78] sm:$0xff] %vm4596_vm14, %v4579_v24  ;;  %v5644_v24 = vmax.f32 %v5640_v11, %v5642_v12  ;;  %v5743_v11 = vld [vmem:[#allocation7 + $0xa] sm:$0x1]  ;;  %v5745_v12 = vld [vmem:[#allocation7 + $0xb] sm:$0x1]  ;;  %vm5672_vm14 = vcmask 386304  }
 0x608   :  { %4805 = vst.msk [vmem:[#allocation6 + $0x70] sm:$0xff] %vm4790_vm0, %v4771_v28  ;;  %v6904_v29 = vpop.f32.mrf.mxu1 }
 0x609   :  { %v5476_v58 = vadd.f32 %v6904_v29, %v9693_v38 }
 0x60a   :  { %v4963_v22 = vpop.permute.xlu0 %4962  ;;  %v5470_v41 = vpop.f32.mrf.mxu1 }
 0x60b   :  { %v5156_v34 = vpop.permute.xlu1 %5155  ;;  %4998 = vst.msk [vmem:[#allocation6 + $0x68] sm:$0xff] %vm4984_vm2, %v4963_v22  ;;  %v5526_v45 = vmax.f32 %v5476_v58, 0.0  ;;  %v5471_v46 = vadd.f32 %v9693_v38, %v5470_v41  ;;  %v5678_v22 = vmax.f32 %v5674_v60, %v5676_v51  ;;  %v5777_v60 = vld [vmem:[#allocation7 + $0xc] sm:$0x1]  ;;  %v5779_v51 = vld [vmem:[#allocation7 + $0xd] sm:$0x1] }
 0x60c   :  { %5192 = vst.msk [vmem:[#allocation6 + $0x60] sm:$0xff] %vm5179_vm4, %v5156_v34 }
 0x60d   :  { %v5546_v63 = vsel %vm5535_vm7, %v5526_v45, -inf  ;;  %v5525_v9 = vmax.f32 %v5471_v46, 0.0 }
 0x60e   :  { %v4676_v0 = vpop.permute.xlu0 %4675 }
 0x60f   :  { %v4868_v17 = vpop.permute.xlu1 %4867  ;;  %4709 = vst.msk [vmem:[#allocation6 + $0x78] sm:$0xff] %vm4693_vm15, %v4676_v0  ;;  %v5545_v43 = vsel %vm5535_vm7, %v5525_v9, -inf  ;;  %vm5706_vm15 = vcmask 517504  }
 0x610   :  { %4902 = vst.msk [vmem:[#allocation6 + $0x70] sm:$0xff] %vm4887_vm1, %v4868_v17  ;;  %v5547_v53 = vmax.f32 %v5545_v43, %v5546_v63  ;;  %v5572_v17 = vmax.f32 %v5568_v13, %v5570_v33  ;;  %v5620_v63 = vrot.slane %v5610_v27, %v9772_v54 }
 0x612   :  { %v5061_v42 = vpop.permute.xlu0 %5060  ;;  %5563 = vst.msk [vmem:[#allocation7 + $0x18] sm:$0xff] %vm5535_vm7, %v5547_v53 }
 0x613   :  { %v5253_v44 = vpop.permute.xlu1 %5252  ;;  %5096 = vst.msk [vmem:[#allocation6 + $0x68] sm:$0xff] %vm5082_vm3, %v5061_v42  ;;  %v5654_v42 = vrot.slane %v5644_v24, %v9772_v54 }
 0x614   :  { %5289 = vst.msk [vmem:[#allocation6 + $0x60] sm:$0xff] %vm5276_vm5, %v5253_v44 }
 0x616   :  { %v4773_v10 = vpop.permute.xlu0 %4772 }
 0x617   :  { %v4965_v35 = vpop.permute.xlu1 %4964  ;;  %4806 = vst.msk [vmem:[#allocation6 + $0x78] sm:$0xff] %vm4790_vm0, %v4773_v10  ;;  %vm5741_vm0 = vcmask 648704  }
 0x618   :  { %4999 = vst.msk [vmem:[#allocation6 + $0x70] sm:$0xff] %vm4984_vm2, %v4965_v35  ;;  %v5688_v35 = vrot.slane %v5678_v22, %v9772_v54 }
 0x61a   :  { %v5158_v40 = vpop.permute.xlu0 %5157 }
 0x61b   :  { %v4967_v55 = vpop.permute.xlu1 %4966  ;;  %v5305_v56 = vld [vmem:[#allocation6 + $0x60] sm:$0xff]  ;;  %5193 = vst.msk [vmem:[#allocation6 + $0x68] sm:$0xff] %vm5179_vm4, %v5158_v40 }
 0x61c   :  { %6911 = vmatprep.mubr.msk.f32.mxu1 %vm5325_vm6, %v5305_v56 }
 0x61e   :  { %v4870_v57 = vpop.permute.xlu0 %4869 }
 0x61f   :  { %v5065_v16 = vpop.permute.xlu1 %5064  ;;  %4903 = vst.msk [vmem:[#allocation6 + $0x78] sm:$0xff] %vm4887_vm1, %v4870_v57  ;;  %v5582_v57 = vrot.slane %v5572_v17, %v9772_v54  ;;  %vm5775_vm1 = vcmask 779904  }
 0x620   :  { %5000 = vst.msk [vmem:[#allocation6 + $0x78] sm:$0xff] %vm4984_vm2, %v4967_v55  ;;  %vm5809_vm2 = vcmask 911104  }
 0x621   :  { %5098 = vst.msk [vmem:[#allocation6 + $0x78] sm:$0xff] %vm5082_vm3, %v5065_v16 }
 0x622   :  { %v5255_v52 = vpop.permute.xlu0 %5254 }
 0x623   :  { %v5162_v25 = vpop.permute.xlu1 %5161  ;;  %5290 = vst.msk [vmem:[#allocation6 + $0x68] sm:$0xff] %vm5276_vm5, %v5255_v52 }
 0x624   :  { %5195 = vst.msk [vmem:[#allocation6 + $0x78] sm:$0xff] %vm5179_vm4, %v5162_v25 }
 0x626   :  { %v5063_v49 = vpop.permute.xlu0 %5062 }
 0x627   :  { %v5259_v26 = vpop.permute.xlu1 %5258  ;;  %5097 = vst.msk [vmem:[#allocation6 + $0x70] sm:$0xff] %vm5082_vm3, %v5063_v49  ;;  %vm5843_vm3 = vcmask 1042304  }
 0x628   :  { %5292 = vst.msk [vmem:[#allocation6 + $0x78] sm:$0xff] %vm5276_vm5, %v5259_v26 }
 0x62a   :  { %v5160_v59 = vpop.permute.xlu0 %5159  ;;  %v5306_v18 = vld [vmem:[#allocation6 + $0x68] sm:$0xff] }
 0x62b   :  { %5194 = vst.msk [vmem:[#allocation6 + $0x70] sm:$0xff] %vm5179_vm4, %v5160_v59  ;;  %6912 = vmatmul.mubr.msk.f32.gmra.mxu1 %vm5325_vm6, %v5306_v18  ;;  %vm7061_vm4 = vmmov 0  }
 0x62e   :  { %v5257_v62 = vpop.permute.xlu0 %5256 }
 0x62f   :  { %5291 = vst.msk [vmem:[#allocation6 + $0x70] sm:$0xff] %vm5276_vm5, %v5257_v62  ;;  %v5308_v20 = vld [vmem:[#allocation6 + $0x78] sm:$0xff]  ;;  %vm6246_vm5 = vcmask 523264  }
 0x636   :  { %v5307_v3 = vld [vmem:[#allocation6 + $0x70] sm:$0xff] }
 0x637   :  { %6914 = vmatprep.mubr.msk.f32.mxu1 %vm5325_vm6, %v5307_v3 }
 0x638   :  { %6915 = vmatmul.mubr.msk.f32.gmra.mxu1 %vm5325_vm6, %v5308_v20  ;;  %vm6422_vm6 = vcmask 261120  }
 0x64a   :  { %v6907_v39 = vpop.f32.mrf.mxu1 }
 0x64b   :  { %v5486_v2 = vadd.f32 %v6907_v39, %v9693_v38 }
 0x64c   :  { %v5480_v50 = vpop.f32.mrf.mxu1 }
 0x64d   :  { %v5528_v32 = vmax.f32 %v5486_v2, 0.0  ;;  %v5481_v5 = vadd.f32 %v9693_v38, %v5480_v50 }
 0x64f   :  { %v5527_v6 = vmax.f32 %v5481_v5, 0.0  ;;  %v5549_v4 = vsel %vm5535_vm7, %v5528_v32, -inf }
 0x651   :  { %v5548_v47 = vsel %vm5535_vm7, %v5527_v6, -inf }
 0x652   :  { %v5550_v7 = vmax.f32 %v5548_v47, %v5549_v4 }
 0x654   :  { %5564 = vst.msk [vmem:[#allocation7 + $0x20] sm:$0xff] %vm5535_vm7, %v5550_v7 }
 0x65b   :  { %v5607_v36 = vld [vmem:[#allocation7 + $0x22] sm:$0x1]  ;;  %v5609_v31 = vld [vmem:[#allocation7 + $0x23] sm:$0x1]  ;;  %v5641_v30 = vld [vmem:[#allocation7 + $0x24] sm:$0x1] }
 0x65c   :  { %v5611_v15 = vmax.f32 %v5607_v36, %v5609_v31  ;;  %v5643_v23 = vld [vmem:[#allocation7 + $0x25] sm:$0x1]  ;;  %v5675_v28 = vld [vmem:[#allocation7 + $0x26] sm:$0x1]  ;;  %v5677_v29 = vld [vmem:[#allocation7 + $0x27] sm:$0x1]  ;;  %v5713_v31 = vmax.f32 %v5709_v14, %v5711_v19 }
 0x65d   :  { %v5645_v58 = vmax.f32 %v5641_v30, %v5643_v23  ;;  %v5679_v34 = vmax.f32 %v5675_v28, %v5677_v29  ;;  %v5569_v45 = vld [vmem:[#allocation7 + $0x20] sm:$0x1]  ;;  %v5571_v41 = vld [vmem:[#allocation7 + $0x21] sm:$0x1]  ;;  %v5747_v28 = vmax.f32 %v5743_v11, %v5745_v12 }
 0x65e   :  { %v5627_v46 = vrot.slane %v5611_v15, %v9772_v54  ;;  %v5573_v0 = vmax.f32 %v5569_v45, %v5571_v41  ;;  %v5781_v41 = vmax.f32 %v5777_v60, %v5779_v51  ;;  %v5877_v60 = vld [vmem:[#allocation7 + $0x12] sm:$0x1] }
 0x65f   :  { %v5661_v9 = vrot.slane %v5645_v58, %v9772_v54  ;;  %v5695_v43 = vrot.slane %v5679_v34, %v9772_v54 }
 0x660   :  { %v5630_v53 = vrot.slane %v5627_v46, 7  ;;  %v5589_v44 = vrot.slane %v5573_v0, %v9772_v54 }
 0x661   :  { %v5664_v10 = vrot.slane %v5661_v9, 7  ;;  %v5698_v40 = vrot.slane %v5695_v43, 7  ;;  %v5813_v9 = vld [vmem:[#allocation7 + $0xf] sm:$0x1]  ;;  %v5723_v43 = vrot.slane %v5713_v31, %v9772_v54 }
 0x662   :  { %v5631_v55 = vsel %vm5595_vm8, %v5630_v53, %v5620_v63  ;;  %v5594_v56 = vrot.slane %v5589_v44, 7  ;;  %v5811_v63 = vld [vmem:[#allocation7 + $0xe] sm:$0x1] }
 0x663   :  { %v5632_v16 = vsel %vm5597_vm9, %v5630_v53, %v5631_v55  ;;  %v5665_v52 = vsel %vm5595_vm8, %v5664_v10, %v5654_v42  ;;  %v5699_v26 = vsel %vm5595_vm8, %v5698_v40, %v5688_v35 }
 0x664   :  { %v5633_v25 = vsel %vm5599_vm10, %v5630_v53, %v5632_v16  ;;  %v5666_v49 = vsel %vm5597_vm9, %v5664_v10, %v5665_v52  ;;  %v5596_v59 = vsel %vm5595_vm8, %v5594_v56, %v5582_v57  ;;  %v5700_v39 = vsel %vm5597_vm9, %v5698_v40, %v5699_v26 }
 0x665   :  { %v5634_v18 = vsel %vm5601_vm11, %v5630_v53, %v5633_v25  ;;  %v5598_v62 = vsel %vm5597_vm9, %v5594_v56, %v5596_v59  ;;  %v5667_v20 = vsel %vm5599_vm10, %v5664_v10, %v5666_v49  ;;  %v5701_v32 = vsel %vm5599_vm10, %v5698_v40, %v5700_v39 }
 0x666   :  { %5635 = vrot.lane.b32.xlu0 %v5634_v18, %s7048_s20  ;;  %v5600_v3 = vsel %vm5599_vm10, %v5594_v56, %v5598_v62  ;;  %v5668_v50 = vsel %vm5601_vm11, %v5664_v10, %v5667_v20  ;;  %v5702_v5 = vsel %vm5601_vm11, %v5698_v40, %v5701_v32  ;;  %v5757_v10 = vrot.slane %v5747_v28, %v9772_v54  ;;  %v5846_v28 = vld [vmem:[#allocation7 + $0x10] sm:$0x1] }
 0x667   :  { %v5602_v2 = vsel %vm5601_vm11, %v5594_v56, %v5600_v3  ;;  %v5791_v56 = vrot.slane %v5781_v41, %v9772_v54  ;;  %v5815_v57 = vmax.f32 %v5811_v63, %v5813_v9 }
 0x668   :  { %5605 = vst.msk [vmem:[#allocation8] sm:$0x3] %vm5604_vm12, %v5602_v2 }
 0x669   :  { %v5825_v3 = vrot.slane %v5815_v57, %v9772_v54  ;;  %v6125_v57 = vld [vmem:[%s10128_s5 + $0x78] sm:$0xff] }
 0x66a   :  { %5669 = vrot.lane.b32.xlu0 %v5668_v50, %s7052_s25 }
 0x66e   :  { %5703 = vrot.lane.b32.xlu0 %v5702_v5, %s7054_s18 }
 0x6c4   :  { %v6910_v6 = vpop.f32.mrf.mxu1 }
 0x6c5   :  { %v5496_v4 = vadd.f32 %v6910_v6, %v9693_v38 }
 0x6c6   :  { %v5490_v47 = vpop.f32.mrf.mxu1 }
 0x6c7   :  { %v5530_v7 = vmax.f32 %v5496_v4, 0.0  ;;  %v5491_v61 = vadd.f32 %v9693_v38, %v5490_v47 }
 0x6c9   :  { %v5529_v8 = vmax.f32 %v5491_v61, 0.0  ;;  %v5552_v48 = vsel %vm5535_vm7, %v5530_v7, -inf }
 0x6cb   :  { %v5551_v21 = vsel %vm5535_vm7, %v5529_v8, -inf }
 0x6cc   :  { %v5553_v37 = vmax.f32 %v5551_v21, %v5552_v48 }
 0x6ce   :  { %5565 = vst.msk [vmem:[#allocation7 + $0x28] sm:$0xff] %vm5535_vm7, %v5553_v37 }
 0x6d5   :  { %v5710_v13 = vld [vmem:[#allocation7 + $0x28] sm:$0x1]  ;;  %v5712_v33 = vld [vmem:[#allocation7 + $0x29] sm:$0x1]  ;;  %v5744_v36 = vld [vmem:[#allocation7 + $0x2a] sm:$0x1] }
 0x6d6   :  { %v5714_v27 = vmax.f32 %v5710_v13, %v5712_v33  ;;  %v5746_v30 = vld [vmem:[#allocation7 + $0x2b] sm:$0x1]  ;;  %v5778_v15 = vld [vmem:[#allocation7 + $0x2c] sm:$0x1]  ;;  %v5780_v23 = vld [vmem:[#allocation7 + $0x2d] sm:$0x1] }
 0x6d7   :  { %v5748_v29 = vmax.f32 %v5744_v36, %v5746_v30  ;;  %v5782_v58 = vmax.f32 %v5778_v15, %v5780_v23  ;;  %v5812_v22 = vld [vmem:[#allocation7 + $0x2e] sm:$0x1]  ;;  %v5814_v34 = vld [vmem:[#allocation7 + $0x2f] sm:$0x1]  ;;  %v5879_v13 = vld [vmem:[#allocation7 + $0x13] sm:$0x1] }
 0x6d8   :  { %v5636_v24 = vpop.permute.xlu0 %5635  ;;  %v5730_v45 = vrot.slane %v5714_v27, %v9772_v54  ;;  %v5816_v46 = vmax.f32 %v5812_v22, %v5814_v34  ;;  %v5910_v33 = vld [vmem:[#allocation7 + $0x14] sm:$0x1]  ;;  %v5912_v36 = vld [vmem:[#allocation7 + $0x15] sm:$0x1]  ;;  %v5943_v27 = vld [vmem:[#allocation7 + $0x16] sm:$0x1] }
 0x6d9   :  { %5639 = vst.msk [vmem:[#allocation8] sm:$0x3] %vm5638_vm13, %v5636_v24  ;;  %v5764_v0 = vrot.slane %v5748_v29, %v9772_v54  ;;  %v5798_v17 = vrot.slane %v5782_v58, %v9772_v54  ;;  %v5945_v30 = vld [vmem:[#allocation7 + $0x17] sm:$0x1]  ;;  %v6141_v15 = vld [vmem:[%s10128_s5 + $0xf8] sm:$0xff]  ;;  %v5914_v9 = vmax.f32 %v5910_v33, %v5912_v36 }
 0x6da   :  { %v5733_v53 = vrot.slane %v5730_v45, 7  ;;  %v5832_v42 = vrot.slane %v5816_v46, %v9772_v54  ;;  %v5848_v29 = vld [vmem:[#allocation7 + $0x11] sm:$0x1]  ;;  %6711 = vmatprep.subr.mxu1 %v6141_v15  ;;  %v5881_v46 = vmax.f32 %v5877_v60, %v5879_v13  ;;  %v6010_v13 = vld [vmem:[#allocation7 + $0x1a] sm:$0x1] }
 0x6db   :  { %v5767_v35 = vrot.slane %v5764_v0, 7  ;;  %v5801_v40 = vrot.slane %v5798_v17, 7  ;;  %6712 = vmatpush3.msra.mxu1 %v6125_v57  ;;  %v6012_v33 = vld [vmem:[#allocation7 + $0x1b] sm:$0x1]  ;;  %v6136_v15 = vld [vmem:[%s10128_s5 + $0xd0] sm:$0xff] }
 0x6dc   :  { %v5670_v44 = vpop.permute.xlu0 %5669  ;;  %v5734_v55 = vsel %vm5595_vm8, %v5733_v53, %v5723_v43  ;;  %v5835_v59 = vrot.slane %v5832_v42, 7  ;;  %v5947_v42 = vmax.f32 %v5943_v27, %v5945_v30  ;;  %v6043_v27 = vld [vmem:[#allocation7 + $0x1c] sm:$0x1] }
 0x6dd   :  { %5673 = vst.msk [vmem:[#allocation8] sm:$0x3] %vm5672_vm14, %v5670_v44  ;;  %v5735_v16 = vsel %vm5597_vm9, %v5733_v53, %v5734_v55  ;;  %v5768_v52 = vsel %vm5595_vm8, %v5767_v35, %v5757_v10  ;;  %v5802_v26 = vsel %vm5595_vm8, %v5801_v40, %v5791_v56 }
 0x6de   :  { %v5736_v25 = vsel %vm5599_vm10, %v5733_v53, %v5735_v16  ;;  %v5769_v49 = vsel %vm5597_vm9, %v5767_v35, %v5768_v52  ;;  %v5803_v39 = vsel %vm5597_vm9, %v5801_v40, %v5802_v26  ;;  %v5836_v2 = vsel %vm5595_vm8, %v5835_v59, %v5825_v3  ;;  %v6140_v16 = vld [vmem:[%s10128_s5 + $0xf0] sm:$0xff]  ;;  %v6139_v26 = vld [vmem:[%s10128_s5 + $0xe8] sm:$0xff] }
 0x6df   :  { %v5737_v62 = vsel %vm5601_vm11, %v5733_v53, %v5736_v25  ;;  %v5770_v20 = vsel %vm5599_vm10, %v5767_v35, %v5769_v49  ;;  %v5804_v32 = vsel %vm5599_vm10, %v5801_v40, %v5803_v39  ;;  %v5837_v5 = vsel %vm5597_vm9, %v5835_v59, %v5836_v2  ;;  %v6124_v52 = vld [vmem:[%s10128_s5 + $0x70] sm:$0xff]  ;;  %6713 = vmatprep.subr.mxu1 %v6140_v16  ;;  %v6118_v16 = vld [vmem:[%s10128_s5 + $0x40] sm:$0xff] }
 0x6e0   :  { %v5704_v18 = vpop.permute.xlu0 %5703  ;;  %5738 = vrot.lane.b32.xlu0 %v5737_v62, %s7056_s1  ;;  %v5771_v50 = vsel %vm5601_vm11, %v5767_v35, %v5770_v20  ;;  %v5805_v6 = vsel %vm5601_vm11, %v5801_v40, %v5804_v32  ;;  %v5838_v4 = vsel %vm5599_vm10, %v5835_v59, %v5837_v5  ;;  %v5924_v3 = vrot.slane %v5914_v9, %v9772_v54  ;;  %v6138_v32 = vld [vmem:[%s10128_s5 + $0xe0] sm:$0xff] }
 0x6e1   :  { %5707 = vst.msk [vmem:[#allocation8] sm:$0x3] %vm5706_vm15, %v5704_v18  ;;  %v5839_v7 = vsel %vm5601_vm11, %v5835_v59, %v5838_v4  ;;  %v5891_v59 = vrot.slane %v5881_v46, %v9772_v54  ;;  %v5957_v2 = vrot.slane %v5947_v42, %v9772_v54  ;;  %6714 = vmatpush3.msra.mxu1 %v6124_v52  ;;  %v6133_v52 = vld [vmem:[%s10128_s5 + $0xb8] sm:$0xff] }
 0x6e2   :  { %6715 = vmatprep.subr.mxu1 %v6139_v26  ;;  %v6014_v9 = vmax.f32 %v6010_v13, %v6012_v33  ;;  %v6076_v26 = vld [vmem:[#allocation7 + $0x1e] sm:$0x1] }
 0x6e4   :  { %5772 = vrot.lane.b32.xlu0 %v5771_v50, %s7058_s4  ;;  %v6123_v50 = vld [vmem:[%s10128_s5 + $0x68] sm:$0xff] }
 0x6e5   :  { %6716 = vmatpush3.msra.mxu1 %v6123_v50 }
 0x6e6   :  { %6717 = vmatprep.subr.mxu1 %v6138_v32 }
 0x6e8   :  { %5806 = vrot.lane.b32.xlu0 %v5805_v6, %s7059_s26 }
 0x6eb   :  { %v6913_v47 = vpop.f32.mrf.mxu1 }
 0x6ec   :  { %v5506_v61 = vadd.f32 %v6913_v47, %v9693_v38  ;;  %5840 = vrot.lane.b32.xlu0 %v5839_v7, %s7060_s0  ;;  %v6122_v7 = vld [vmem:[%s10128_s5 + $0x60] sm:$0xff] }
 0x6ed   :  { %v5500_v8 = vpop.f32.mrf.mxu1  ;;  %6718 = vmatpush3.msra.mxu1 %v6122_v7 }
 0x6ee   :  { %v5532_v48 = vmax.f32 %v5506_v61, 0.0  ;;  %v5501_v21 = vadd.f32 %v9693_v38, %v5500_v8 }
 0x6f0   :  { %v5531_v37 = vmax.f32 %v5501_v21, 0.0  ;;  %v5555_v14 = vsel %vm5535_vm7, %v5532_v48, -inf  ;;  %v6137_v48 = vld [vmem:[%s10128_s5 + $0xd8] sm:$0xff] }
 0x6f1   :  { %6719 = vmatprep.subr.mxu1 %v6137_v48 }
 0x6f2   :  { %v5554_v19 = vsel %vm5535_vm7, %v5531_v37, -inf }
 0x6f3   :  { %v5556_v11 = vmax.f32 %v5554_v19, %v5555_v14  ;;  %v5977_v19 = vld [vmem:[#allocation7 + $0x18] sm:$0x1] }
 0x6f5   :  { %5566 = vst.msk [vmem:[#allocation7 + $0x30] sm:$0xff] %vm5535_vm7, %v5556_v11 }
 0x6f8   :  { %v6916_v12 = vpop.f32.mrf.mxu1 }
 0x6f9   :  { %v5516_v51 = vadd.f32 %v6916_v12, %v9693_v38  ;;  %v6121_v12 = vld [vmem:[%s10128_s5 + $0x58] sm:$0xff] }
 0x6fa   :  { %v5510_v31 = vpop.f32.mrf.mxu1  ;;  %6720 = vmatpush3.msra.mxu1 %v6121_v12 }
 0x6fb   :  { %v5534_v23 = vmax.f32 %v5516_v51, 0.0  ;;  %v5511_v24 = vadd.f32 %v9693_v38, %v5510_v31  ;;  %v5850_v38 = vmax.f32 %v5846_v28, %v5848_v29  ;;  %v5979_v51 = vld [vmem:[#allocation7 + $0x19] sm:$0x1]  ;;  %v6045_v28 = vld [vmem:[#allocation7 + $0x1d] sm:$0x1]  ;;  %6721 = vmatprep.subr.mxu1 %v6136_v15  ;;  %v6128_v15 = vld [vmem:[%s10128_s5 + $0x90] sm:$0xff] }
 0x6fc   :  { %v5878_v58 = vld [vmem:[#allocation7 + $0x32] sm:$0x1]  ;;  %v5880_v22 = vld [vmem:[#allocation7 + $0x33] sm:$0x1]  ;;  %v5911_v34 = vld [vmem:[#allocation7 + $0x34] sm:$0x1] }
 0x6fd   :  { %v5558_v45 = vsel %vm5535_vm7, %v5534_v23, -inf  ;;  %v5533_v41 = vmax.f32 %v5511_v24, 0.0  ;;  %v5882_v0 = vmax.f32 %v5878_v58, %v5880_v22  ;;  %v5913_v17 = vld [vmem:[#allocation7 + $0x35] sm:$0x1]  ;;  %v5944_v63 = vld [vmem:[#allocation7 + $0x36] sm:$0x1]  ;;  %v5860_v47 = vrot.slane %v5850_v38, %v9772_v54 }
 0x6fe   :  { %v5915_v43 = vmax.f32 %v5911_v34, %v5913_v17  ;;  %v5946_v53 = vld [vmem:[#allocation7 + $0x37] sm:$0x1]  ;;  %v5847_v44 = vld [vmem:[#allocation7 + $0x30] sm:$0x1]  ;;  %v5849_v10 = vld [vmem:[#allocation7 + $0x31] sm:$0x1] }
 0x6ff   :  { %v5557_v35 = vsel %vm5535_vm7, %v5533_v41, -inf  ;;  %v5898_v40 = vrot.slane %v5882_v0, %v9772_v54  ;;  %v5948_v55 = vmax.f32 %v5944_v63, %v5946_v53  ;;  %v5851_v56 = vmax.f32 %v5847_v44, %v5849_v10  ;;  %v6120_v23 = vld [vmem:[%s10128_s5 + $0x50] sm:$0xff]  ;;  %v6135_v58 = vld [vmem:[%s10128_s5 + $0xc8] sm:$0xff] }
 0x700   :  { %v5559_v25 = vmax.f32 %v5557_v35, %v5558_v45  ;;  %v5931_v49 = vrot.slane %v5915_v43, %v9772_v54  ;;  %v6119_v22 = vld [vmem:[%s10128_s5 + $0x48] sm:$0xff]  ;;  %v5981_v0 = vmax.f32 %v5977_v19, %v5979_v51  ;;  %6722 = vmatpush3.msra.mxu1 %v6120_v23  ;;  %v6114_v51 = vld [vmem:[%s10128_s5 + $0x20] sm:$0xff]  ;;  %v6112_v23 = vld [vmem:[%s10128_s5 + $0x10] sm:$0xff] }
 0x701   :  { %v5901_v18 = vrot.slane %v5898_v40, 7  ;;  %v5964_v62 = vrot.slane %v5948_v55, %v9772_v54  ;;  %v5867_v20 = vrot.slane %v5851_v56, %v9772_v54  ;;  %6723 = vmatprep.subr.mxu1 %v6135_v58  ;;  %v6134_v40 = vld [vmem:[%s10128_s5 + $0xc0] sm:$0xff]  ;;  %v6047_v56 = vmax.f32 %v6043_v27, %v6045_v28  ;;  %v6113_v27 = vld [vmem:[%s10128_s5 + $0x18] sm:$0xff]  ;;  %v6127_v28 = vld [vmem:[%s10128_s5 + $0x88] sm:$0xff] }
 0x702   :  { %5567 = vst.msk [vmem:[#allocation7 + $0x38] sm:$0xff] %vm5535_vm7, %v5559_v25  ;;  %v5934_v39 = vrot.slane %v5931_v49, 7  ;;  %6724 = vmatpush3.msra.mxu1 %v6119_v22  ;;  %v6111_v58 = vld [vmem:[%s10128_s5 + $0x8] sm:$0xff]  ;;  %v6126_v22 = vld [vmem:[%s10128_s5 + $0x80] sm:$0xff]  ;;  %vm6409_vm7 = vcmask 254976  }
 0x703   :  { %v5902_v5 = vsel %vm5595_vm8, %v5901_v18, %v5891_v59  ;;  %v9877_v6 = vrot.slane %v5964_v62, 7  ;;  %v5870_v4 = vrot.slane %v5867_v20, 7  ;;  %v6078_v59 = vld [vmem:[#allocation7 + $0x1f] sm:$0x1]  ;;  %6725 = vmatprep.subr.mxu1 %v6134_v40  ;;  %v5991_v20 = vrot.slane %v5981_v0, %v9772_v54 }
 0x704   :  { %v5903_v61 = vsel %vm5597_vm9, %v5901_v18, %v5902_v5  ;;  %v5935_v8 = vsel %vm5595_vm8, %v5934_v39, %v5924_v3  ;;  %6726 = vmatpush3.msra.mxu1 %v6118_v16  ;;  %v6132_v5 = vld [vmem:[%s10128_s5 + $0xb0] sm:$0xff]  ;;  %v6080_v7 = vmax.f32 %v6076_v26, %v6078_v59  ;;  %v6236_v16 = vld [vmem:[%s10130_s7 + $0x28] sm:$0xff]  ;;  %v6231_v59 = vld [vmem:[%s10130_s7] sm:$0xff] }
 0x705   :  { %v5904_v21 = vsel %vm5599_vm10, %v5901_v18, %v5903_v61  ;;  %v5936_v37 = vsel %vm5597_vm9, %v5934_v39, %v5935_v8  ;;  %v5968_v14 = vsel %vm5595_vm8, %v9877_v6, %v5957_v2  ;;  %v5871_v11 = vsel %vm5595_vm8, %v5870_v4, %v5860_v47  ;;  %6727 = vmatprep.subr.mxu1 %v6133_v52  ;;  %v6131_v61 = vld [vmem:[%s10128_s5 + $0xa8] sm:$0xff]  ;;  %v6235_v52 = vld [vmem:[%s10130_s7 + $0x20] sm:$0xff] }
 0x706   :  { %v5905_v60 = vsel %vm5601_vm11, %v5901_v18, %v5904_v21  ;;  %v5872_v36 = vsel %vm5597_vm9, %v5870_v4, %v5871_v11  ;;  %v5937_v31 = vsel %vm5599_vm10, %v5934_v39, %v5936_v37  ;;  %v5969_v24 = vsel %vm5597_vm9, %v9877_v6, %v5968_v14  ;;  %v6117_v18 = vld [vmem:[%s10128_s5 + $0x38] sm:$0xff]  ;;  %v6115_v21 = vld [vmem:[%s10128_s5 + $0x28] sm:$0xff] }
 0x707   :  { %5906 = vrot.lane.b32.xlu1 %v5905_v60, %s7048_s20  ;;  %v5873_v30 = vsel %vm5599_vm10, %v5870_v4, %v5872_v36  ;;  %v5938_v46 = vsel %vm5601_vm11, %v5934_v39, %v5937_v31  ;;  %v5970_v42 = vsel %vm5599_vm10, %v9877_v6, %v5969_v24  ;;  %v6024_v2 = vrot.slane %v6014_v9, %v9772_v54  ;;  %v6130_v60 = vld [vmem:[%s10128_s5 + $0xa0] sm:$0xff]  ;;  %v6129_v36 = vld [vmem:[%s10128_s5 + $0x98] sm:$0xff]  ;;  %v6232_v26 = vld [vmem:[%s10130_s7 + $0x8] sm:$0xff] }
 0x708   :  { %v5874_v29 = vsel %vm5601_vm11, %v5870_v4, %v5873_v30  ;;  %v5971_v62 = vsel %vm5601_vm11, %v9877_v6, %v5970_v42  ;;  %v6116_v6 = vld [vmem:[%s10128_s5 + $0x30] sm:$0xff]  ;;  %v6057_v47 = vrot.slane %v6047_v56, %v9772_v54  ;;  %6728 = vmatpush3.msra.mxu1 %v6117_v18  ;;  %v6090_v33 = vrot.slane %v6080_v7, %v9772_v54  ;;  %v6238_v56 = vld [vmem:[%s10130_s7 + $0x38] sm:$0xff]  ;;  %v6322_v7 = vld [vmem:[%s10132_s9 + $0x8] sm:$0xff] }
 0x709   :  { %v5978_v34 = vld [vmem:[#allocation7 + $0x38] sm:$0x1]  ;;  %v5980_v45 = vld [vmem:[#allocation7 + $0x39] sm:$0x1]  ;;  %v6011_v41 = vld [vmem:[#allocation7 + $0x3a] sm:$0x1]  ;;  %6729 = vmatprep.subr.mxu1 %v6132_v5 }
 0x70a   :  { %5876 = vst.msk [vmem:[#allocation8 + $0x2] sm:$0x3] %vm5604_vm12, %v5874_v29  ;;  %v5982_v17 = vmax.f32 %v5978_v34, %v5980_v45  ;;  %v6013_v63 = vld [vmem:[#allocation7 + $0x3b] sm:$0x1]  ;;  %v6044_v43 = vld [vmem:[#allocation7 + $0x3c] sm:$0x1]  ;;  %6730 = vmatpush3.msra.mxu1 %v6116_v6 }
 0x70b   :  { %v6046_v53 = vld [vmem:[#allocation7 + $0x3d] sm:$0x1]  ;;  %5939 = vrot.lane.b32.xlu1 %v5938_v46, %s7052_s25  ;;  %v6015_v44 = vmax.f32 %v6011_v41, %v6013_v63  ;;  %v6077_v38 = vld [vmem:[#allocation7 + $0x3e] sm:$0x1]  ;;  %v6079_v35 = vld [vmem:[#allocation7 + $0x3f] sm:$0x1]  ;;  %6731 = vmatprep.subr.mxu1 %v6131_v61 }
 0x70c   :  { %v6048_v10 = vmax.f32 %v6044_v43, %v6046_v53  ;;  %v5998_v55 = vrot.slane %v5982_v17, %v9772_v54  ;;  %v6081_v57 = vmax.f32 %v6077_v38, %v6079_v35  ;;  %6732 = vmatpush3.msra.mxu1 %v6115_v21  ;;  %v6110_v45 = vld [vmem:[%s10128_s5] sm:$0xff]  ;;  %v6326_v5 = vld [vmem:[%s10132_s9 + $0x28] sm:$0xff] }
 0x70d   :  { %v6031_v25 = vrot.slane %v6015_v44, %v9772_v54  ;;  %6733 = vmatprep.subr.mxu1 %v6130_v60  ;;  %v6325_v6 = vld [vmem:[%s10132_s9 + $0x20] sm:$0xff] }
 0x70e   :  { %v6064_v49 = vrot.slane %v6048_v10, %v9772_v54  ;;  %v6001_v3 = vrot.slane %v5998_v55, 7  ;;  %v6097_v39 = vrot.slane %v6081_v57, %v9772_v54  ;;  %6734 = vmatpush3.msra.mxu1 %v6114_v51  ;;  %v6237_v57 = vld [vmem:[%s10130_s7 + $0x30] sm:$0xff]  ;;  %v6321_v61 = vld [vmem:[%s10132_s9] sm:$0xff] }
 0x70f   :  { %5972 = vrot.lane.b32.xlu1 %v5971_v62, %s7054_s18  ;;  %v6034_v50 = vrot.slane %v6031_v25, 7  ;;  %6735 = vmatprep.subr.mxu1 %v6129_v36  ;;  %v6234_v25 = vld [vmem:[%s10130_s7 + $0x18] sm:$0xff]  ;;  %v6609_v62 = vld [vmem:[%s10129_s6] ss:$0 sm:$0xff] }
 0x710   :  { %v6067_v32 = vrot.slane %v6064_v49, 7  ;;  %v6002_v4 = vsel %vm5595_vm8, %v6001_v3, %v5991_v20  ;;  %v6100_v11 = vrot.slane %v6097_v39, 7  ;;  %6736 = vmatpush3.msra.mxu1 %v6113_v27  ;;  %v6233_v49 = vld [vmem:[%s10130_s7 + $0x10] sm:$0xff]  ;;  %v6411_v60 = vld [vmem:[%s10134_s11] sm:$0xff] }
 0x711   :  { %v6003_v8 = vsel %vm5597_vm9, %v6001_v3, %v6002_v4  ;;  %v6035_v48 = vsel %vm5595_vm8, %v6034_v50, %v6024_v2  ;;  %6737 = vmatprep.subr.mxu1 %v6128_v15  ;;  %v6324_v4 = vld [vmem:[%s10132_s9 + $0x18] sm:$0xff]  ;;  %v6613_v51 = vld [vmem:[%s10133_s10] ss:$0 sm:$0xff] }
 0x712   :  { %v6004_v37 = vsel %vm5599_vm10, %v6001_v3, %v6003_v8  ;;  %v6036_v14 = vsel %vm5597_vm9, %v6034_v50, %v6035_v48  ;;  %v6068_v19 = vsel %vm5595_vm8, %v6067_v32, %v6057_v47  ;;  %v6101_v30 = vsel %vm5595_vm8, %v6100_v11, %v6090_v33  ;;  %6738 = vmatpush3.msra.mxu1 %v6112_v23  ;;  %v6323_v47 = vld [vmem:[%s10132_s9 + $0x10] sm:$0xff]  ;;  %v6611_v8 = vld [vmem:[%s10131_s8] ss:$0 sm:$0xff] }
 0x713   :  { %v6005_v12 = vsel %vm5601_vm11, %v6001_v3, %v6004_v37  ;;  %v6037_v13 = vsel %vm5599_vm10, %v6034_v50, %v6036_v14  ;;  %v6069_v31 = vsel %vm5597_vm9, %v6067_v32, %v6068_v19  ;;  %v6102_v29 = vsel %vm5597_vm9, %v6100_v11, %v6101_v30  ;;  %6739 = vmatprep.subr.mxu1 %v6127_v28  ;;  %v6414_v19 = vld [vmem:[%s10134_s11 + $0x18] sm:$0xff] }
 0x714   :  { %6006 = vrot.lane.b32.xlu1 %v6005_v12, %s7056_s1  ;;  %v6038_v54 = vsel %vm5601_vm11, %v6034_v50, %v6037_v13  ;;  %v6070_v24 = vsel %vm5599_vm10, %v6067_v32, %v6069_v31  ;;  %v6103_v41 = vsel %vm5599_vm10, %v6100_v11, %v6102_v29  ;;  %6740 = vmatpush3.msra.mxu1 %v6111_v58  ;;  %v6328_v50 = vld [vmem:[%s10132_s9 + $0x38] sm:$0xff]  ;;  %v6412_v12 = vld [vmem:[%s10134_s11 + $0x8] sm:$0xff] }
 0x715   :  { %v6071_v34 = vsel %vm5601_vm11, %v6067_v32, %v6070_v24  ;;  %6741 = vmatprep.subr.mxu1 %v6126_v22  ;;  %v6104_v46 = vsel %vm5601_vm11, %v6100_v11, %v6103_v41  ;;  %v6327_v32 = vld [vmem:[%s10132_s9 + $0x30] sm:$0xff] }
 0x716   :  { %6742 = vmatpush3.msra.mxu1 %v6110_v45  ;;  %v6413_v11 = vld [vmem:[%s10134_s11 + $0x10] sm:$0xff] }
 0x717   :  { %6917 = vmatprep.subr.mxu1 %v7044_v1 }
 0x718   :  { %6039 = vrot.lane.b32.xlu1 %v6038_v54, %s7058_s4  ;;  %s6504_s4 = sshll.u32 %s7062_s15, 4  ;;  %s6505_s4 = int_to_ptr.vmem [resolvable:$true] %s6504_s4 }
 0x719   :  { %s7000_s6 = scalar_lea.vmem %s6505_s4, 32  ;;  %p7005_p1 = scmp.lt.s32.totalorder %s6505_s4, %s6505_s4 }
 0x71a   :  { %p7001_p0 = scmp.ne.s32.totalorder %s6505_s4, %s7000_s6  ;;  %p7006_p2 = scmp.lt.s32.totalorder %s7000_s6, %s7000_s6 }
 0x71c   :  { %6072 = vrot.lane.b32.xlu1 %v6071_v34, %s7059_s26  ;;  %p7007_p3 = por %p7006_p2, %p7005_p1 }
 0x71e   :  { %p7008_p4 = pnand %p7007_p3, %p7001_p0 }
 0x720   :  { %6105 = vrot.lane.b32.xlu1 %v6104_v46, %s7060_s0 }
 0x752   :  { %v5739_v0 = vpop.permute.xlu0 %5738 }
 0x753   :  { %5742 = vst.msk [vmem:[#allocation8] sm:$0x3] %vm5741_vm0, %v5739_v0 }
 0x756   :  { %v5773_v17 = vpop.permute.xlu0 %5772 }
 0x757   :  { %5776 = vst.msk [vmem:[#allocation8] sm:$0x3] %vm5775_vm1, %v5773_v17 }
 0x75a   :  { %v5807_v63 = vpop.permute.xlu0 %5806 }
 0x75b   :  { %5810 = vst.msk [vmem:[#allocation8] sm:$0x3] %vm5809_vm2, %v5807_v63 }
 0x75e   :  { %v5841_v9 = vpop.permute.xlu0 %5840 }
 0x75f   :  { %5844 = vst.msk [vmem:[#allocation8] sm:$0x3] %vm5843_vm3, %v5841_v9 }
 0x779   :  { %v5907_v43 = vpop.permute.xlu1 %5906 }
 0x77a   :  { %5909 = vst.msk [vmem:[#allocation8 + $0x2] sm:$0x3] %vm5638_vm13, %v5907_v43 }
 0x77d   :  { %v5940_v53 = vpop.permute.xlu1 %5939 }
 0x77e   :  { %5942 = vst.msk [vmem:[#allocation8 + $0x2] sm:$0x3] %vm5672_vm14, %v5940_v53 }
 0x781   :  { %v5973_v42 = vpop.permute.xlu1 %5972 }
 0x782   :  { %5975 = vst.msk [vmem:[#allocation8 + $0x2] sm:$0x3] %vm5706_vm15, %v5973_v42 }
 0x786   :  { %v6007_v44 = vpop.permute.xlu1 %6006 }
 0x787   :  { %6009 = vst.msk [vmem:[#allocation8 + $0x2] sm:$0x3] %vm5741_vm0, %v6007_v44 }
 0x78a   :  { %v6040_v10 = vpop.permute.xlu1 %6039 }
 0x78b   :  { %6042 = vst.msk [vmem:[#allocation8 + $0x2] sm:$0x3] %vm5775_vm1, %v6040_v10 }
 0x78e   :  { %v6073_v38 = vpop.permute.xlu1 %6072 }
 0x78f   :  { %6075 = vst.msk [vmem:[#allocation8 + $0x2] sm:$0x3] %vm5809_vm2, %v6073_v38 }
 0x792   :  { %v6106_v35 = vpop.permute.xlu1 %6105 }
 0x793   :  { %6108 = vst.msk [vmem:[#allocation8 + $0x2] sm:$0x3] %vm5843_vm3, %v6106_v35 }
 0x79a   :  { %v6610_v40 = vld.sshfl [vmem:[#allocation8] sm:$0x33 pattern:$0x76325410] }
 0x79b   :  { %v6157_v55 = vcombine.high %v6610_v40, %v6610_v40 }
 0x79d   :  { %6224 = vmatprep.mubr.f32.mxu1 %v6157_v55 }
 0x79e   :  { %6225 = vmatmul.mubr.f32.vlgmr.msra.gmra.mxu1 %v6610_v40 }
 0x79f   :  { %6918 = vmatpush3.msra.mxu1 %v6238_v56  ;;  %6933 = vmatprep.mubr.msk.f32.mxu1 %vm7061_vm4, %v7044_v1 }
 0x7a0   :  { %6919 = vmatprep.subr.mxu1 %v7044_v1 }
 0x7a1   :  { %6920 = vmatpush3.msra.mxu1 %v6237_v57 }
 0x7a2   :  { %6921 = vmatprep.subr.mxu1 %v7044_v1 }
 0x7a3   :  { %6922 = vmatpush3.msra.mxu1 %v6236_v16 }
 0x7a4   :  { %6923 = vmatprep.subr.mxu1 %v7044_v1 }
 0x7a5   :  { %6924 = vmatpush3.msra.mxu1 %v6235_v52 }
 0x7a6   :  { %6925 = vmatprep.subr.mxu1 %v7044_v1 }
 0x7a7   :  { %6926 = vmatpush3.msra.mxu1 %v6234_v25 }
 0x7a8   :  { %6927 = vmatprep.subr.mxu1 %v7044_v1 }
 0x7a9   :  { %6928 = vmatpush3.msra.mxu1 %v6233_v49 }
 0x7aa   :  { %6929 = vmatprep.subr.mxu1 %v7044_v1 }
 0x7ab   :  { %6930 = vmatpush3.msra.mxu1 %v6232_v26 }
 0x7ac   :  { %6931 = vmatprep.subr.mxu1 %v7044_v1 }
 0x7ad   :  { %6932 = vmatpush3.msra.mxu1 %v6231_v59 }
 0x7ae   :  { %6936 = vmatprep.subr.mxu1 %v7044_v1 }
 0x85e   :  { %v6743_v18 = vpop.f32.mrf.mxu1 }
 0x860   :  { %v6744_v20 = vpop.f32.mrf.mxu1 }
 0x861   :  { %v6745_v3 = vadd.f32 %v6744_v20, %v6743_v18 }
 0x863   :  { %v6227_v39 = vadd.f32 %v6745_v3, %v6609_v62 }
 0x865   :  { %v6230_v2 = vmax.f32 %v6227_v39, 0.0 }
 0x867   :  { %6934 = vmatmul.mubr.msk.f32.vlgmr.msra.gmra.mxu1 %vm6246_vm5, %v6230_v2 }
 0x868   :  { %6937 = vmatpush3.msra.mxu1 %v6328_v50  ;;  %6952 = vmatprep.mubr.msk.f32.mxu1 %vm7061_vm4, %v7044_v1 }
 0x869   :  { %6938 = vmatprep.subr.mxu1 %v7044_v1 }
 0x86a   :  { %6939 = vmatpush3.msra.mxu1 %v6327_v32 }
 0x86b   :  { %6940 = vmatprep.subr.mxu1 %v7044_v1 }
 0x86c   :  { %6941 = vmatpush3.msra.mxu1 %v6326_v5 }
 0x86d   :  { %6942 = vmatprep.subr.mxu1 %v7044_v1 }
 0x86e   :  { %6943 = vmatpush3.msra.mxu1 %v6325_v6 }
 0x86f   :  { %6944 = vmatprep.subr.mxu1 %v7044_v1 }
 0x870   :  { %6945 = vmatpush3.msra.mxu1 %v6324_v4 }
 0x871   :  { %6946 = vmatprep.subr.mxu1 %v7044_v1 }
 0x872   :  { %6947 = vmatpush3.msra.mxu1 %v6323_v47 }
 0x873   :  { %6948 = vmatprep.subr.mxu1 %v7044_v1 }
 0x874   :  { %6949 = vmatpush3.msra.mxu1 %v6322_v7 }
 0x875   :  { %6950 = vmatprep.subr.mxu1 %v7044_v1 }
 0x876   :  { %6951 = vmatpush3.msra.mxu1 %v6321_v61 }
 0x877   :  { %6955 = vmatprep.subr.mxu1 %v7044_v1 }
 0x927   :  { %v6316_v48 = vpop.f32.mrf.mxu1 }
 0x928   :  { %v6317_v21 = vadd.f32 %v6611_v8, %v6316_v48 }
 0x929   :  { %v6935_v37 = vpop.f32.mrf.mxu1 }
 0x92a   :  { %v6320_v14 = vmax.f32 %v6317_v21, 0.0 }
 0x92c   :  { %6953 = vmatmul.mubr.msk.f32.vlgmr.msra.gmra.mxu1 %vm6246_vm5, %v6320_v14 }
 0x92d   :  { %6956 = vmatpush3.msra.mxu1 %v6414_v19  ;;  %6963 = vmatprep.mubr.msk.f32.mxu1 %vm7061_vm4, %v7044_v1 }
 0x92e   :  { %6957 = vmatprep.subr.mxu1 %v7044_v1 }
 0x92f   :  { %6958 = vmatpush3.msra.mxu1 %v6413_v11 }
 0x930   :  { %6959 = vmatprep.subr.mxu1 %v7044_v1 }
 0x931   :  { %6960 = vmatpush3.msra.mxu1 %v6412_v12 }
 0x932   :  { %6961 = vmatprep.subr.mxu1 %v7044_v1 }
 0x933   :  { %6962 = vmatpush3.msra.mxu1 %v6411_v60 }
 0x9ec   :  { %v6405_v13 = vpop.f32.mrf.mxu1 }
 0x9ed   :  { %v6406_v33 = vadd.f32 %v6613_v51, %v6405_v13 }
 0x9ee   :  { %v6954_v36 = vpop.f32.mrf.mxu1 }
 0x9ef   :  { %6964 = vmatmul.mubr.msk.f32.vlgmr.msra.gmra.mxu1 %vm6422_vm6, %v6406_v33  ;;  %6410 = vst.msk [vmem:[#allocation9] sm:$0x3] %vm6409_vm7, %v6406_v33 }
 0x9f0   :  { %7011 = shalt.err (!%p7008_p4)
}
 0x9f1   :  { %6507 = dma.vmem_to_hbm [thread:$0]  %s6505_s4, 32, %s10136_s13, [#allocation10]   ;;  %v6615_v1 = vld [vmem:[%s10135_s12] ss:$0 sm:$0xff]  ;;  %vm6496_vm8 = vcmask 74752  }
 0x9f2   :  { %s7063_s26 = smov [#allocation11]  }
 0x9f3   :  { %s6514_s0 = sshll.u32 %s7063_s26, 4  ;;  %s6515_s0 = int_to_ptr.vmem [resolvable:$true] %s6514_s0 }
 0x9f4   :  { %s7020_s17 = scalar_lea.vmem %s6515_s0, 32  ;;  %p7025_p6 = scmp.lt.s32.totalorder %s6515_s0, %s6515_s0 }
 0x9f5   :  { %p7021_p5 = scmp.ne.s32.totalorder %s6515_s0, %s7020_s17  ;;  %p7026_p7 = scmp.lt.s32.totalorder %s7020_s17, %s7020_s17 }
 0x9f7   :  { %p7027_p8 = por %p7026_p7, %p7025_p6 }
 0x9f9   :  { %p7028_p9 = pnand %p7027_p8, %p7021_p5 }
 0xaaf   :  { %v6492_v31 = vpop.f32.mrf.mxu1 }
 0xab0   :  { %v6493_v27 = vadd.f32 %v6615_v1, %v6492_v31 }
 0xab1   :  { %v6965_v30 = vpop.f32.mrf.mxu1 }
 0xab2   :  { %6497 = vst.msk [vmem:[#allocation11] sm:$0x3] %vm6496_vm8, %v6493_v27 }
 0xab3   :  { %7031 = shalt.err (!%p7028_p9)
}
 0xab4   :  { %6517 = dma.vmem_to_hbm [thread:$0]  %s6515_s0, 32, %s10137_s14, [#allocation12]  }
 0xab5   :  { %7040 = dma.done.wait [#allocation10], 32  }
 0xab6   :  { %7041 = vsyncadd [#allocation10], 4294967264 }
 0xab7   :  { %7042 = dma.done.wait [#allocation12], 32  }
 0xab8   :  { %7043 = vsyncadd [#allocation12], 4294967264 }
 0xab9   :  { %6524 = vsyncpa [#allocation10], 1 }
 0xaba   :  { %6525 = vsyncpa [#allocation12], 1 }

</bundles_post_ra>
